<compile_context>
chip_gen: v6e
topology: v6e:2x2x1
jax: 0.10.0
libtpu: 0.0.40
codegen_flags: <defaults>
</compile_context>

<pallas_src>
import jax
import jax.numpy as jnp
from jax.experimental import pallas as pl
from jax.experimental.pallas import tpu as pltpu

EPS = 1e-5             # torch.nn.LayerNorm default eps
EDGE_TILE = 512        # edges per grid step (multiple of 128); sweep 512/1024 on v5e/v6e
EMBED_ROW_TILE = 512   # node rows per grid step in the embedding kernels


# ----------------------------------------------------------------------------
# helpers
# ----------------------------------------------------------------------------

def _round_up(n, m):
    return ((n + m - 1) // m) * m


def _layer_norm(x, g, b):
    m = jnp.mean(x, axis=-1, keepdims=True)
    v = jnp.mean((x - m) ** 2, axis=-1, keepdims=True)
    return (x - m) * jax.lax.rsqrt(v + EPS) * g + b


def _vmem_limit_bytes():
    """Generation-aware VMEM budget (v7x: 64 MiB/TC; v5e/v6e: 128 MiB)."""
    try:
        cap = getattr(pltpu.get_tpu_info(), "vmem_capacity_bytes", None)
    except Exception:
        cap = None
    if cap is not None and cap <= 64 * 1024 * 1024:
        return 40 * 1024 * 1024
    return 64 * 1024 * 1024


def _const_spec(arr):
    # Constant-index (whole array resident across the grid) input.
    # TODO(synk): on v7x add pipeline_mode=pl.Buffered(1) to these specs to stop
    #             double-buffering never-changing blocks (halves their footprint).
    return pl.BlockSpec(arr.shape, lambda e: (0, 0))


# ----------------------------------------------------------------------------
# Pallas kernels
# ----------------------------------------------------------------------------

def _embed_kernel(x_ref, g_ref, b_ref, w1_ref, b1_ref, w2_ref, b2_ref, o_ref):
    """LayerNorm -> Linear -> ReLU -> Linear -> ReLU on one row tile."""
    h = _layer_norm(x_ref[...], g_ref[...], b_ref[...])
    h = jnp.maximum(jnp.dot(h, w1_ref[...], preferred_element_type=jnp.float32)
                    + b1_ref[...], 0.0)
    o_ref[...] = jnp.maximum(jnp.dot(h, w2_ref[...], preferred_element_type=jnp.float32)
                             + b2_ref[...], 0.0)


def _make_conv_kernel(with_head: bool):
    """One BipartiteGraphConvolution, gridded over edge tiles.

    Grid axis 0 = edge tiles (reduction, "arbitrary").  Scratch:
      lrproj : bf16 stacked [left_proj ; right_proj]  ([Nl+Nr, emb])
      acc    : f32 resident accumulator of sum_e relu(LN(msg_pre_e))
    If with_head, the GCN output head (Linear->ReLU->Linear(emb,1,no bias)) is
    fused and the single output is the [Nr, 1] logit column.
    """
    def kernel(*refs):
        (idx_ref, tgtrow_ref, left_ref, right_ref, deg_ref, edgec_ref,
         wl_ref, bl_ref, wr_ref,
         fg_ref, fb_ref, fw_ref, fbias_ref,
         pg_ref, pb_ref, ow1_ref, ob1_ref, ow2_ref, ob2_ref) = refs[:19]
        if with_head:
            hw1_ref, hb1_ref, hw2_ref = refs[19:22]
            out_ref, lrproj_ref, acc_ref = refs[22:]
        else:
            out_ref, lrproj_ref, acc_ref = refs[19:]

        t = pl.program_id(0)
        nt = pl.num_programs(0)
        te = idx_ref.shape[0]
        nl = left_ref.shape[0]          # padded to a multiple of 16 by the wrapper
        nr = right_ref.shape[0]

        @pl.when(t == 0)
        def _init():
            # feature_module_right (source/left, no bias) stacked on top of
            # feature_module_left (target/right, with bias); cached as bf16 for
            # the one-hot gather matmul.
            lrproj_ref[0:nl, :] = jnp.dot(
                left_ref[...], wr_ref[...],
                preferred_element_type=jnp.float32).astype(jnp.bfloat16)
            lrproj_ref[nl:nl + nr, :] = (
                jnp.dot(right_ref[...], wl_ref[...],
                        preferred_element_type=jnp.float32)
                + bl_ref[...]).astype(jnp.bfloat16)
            acc_ref[...] = jnp.zeros_like(acc_ref)

        # ---- fused gather: one combined one-hot, one MXU matmul -------------
        # idx[:, 0] = src index (in [0, Nl)), idx[:, 1] = tgt index + Nl
        # (in [Nl, Nl+Nr)); padded edges carry -1 in both columns -> zero rows.
        idx = idx_ref[...]                                       # [TE, 2] int32
        col_iota = jax.lax.broadcasted_iota(jnp.int32, (te, nl + nr), 1)
        comb_oh = ((idx[:, 0:1] == col_iota) |
                   (idx[:, 1:2] == col_iota)).astype(jnp.bfloat16)
        gathered = jnp.dot(comb_oh, lrproj_ref[...],
                           preferred_element_type=jnp.float32)   # left_g + right_g

        # constant edge term (edge_nfeats==1 -> LN(e) == ln_b -> ln_b @ we)
        msg_pre = gathered + edgec_ref[...]

        # feature_module_final up to the ReLU; its Linear is hoisted to finalize.
        h = jnp.maximum(_layer_norm(msg_pre, fg_ref[...], fb_ref[...]), 0.0)

        # 'add' aggregation: pre-transposed scatter one-hot [Nr, TE] @ h [TE, emb]
        scat_oh = (tgtrow_ref[...] ==
                   jax.lax.broadcasted_iota(jnp.int32, (nr, te), 0)
                   ).astype(jnp.bfloat16)
        acc_ref[...] += jnp.dot(scat_oh, h.astype(jnp.bfloat16),
                                preferred_element_type=jnp.float32)

        @pl.when(t == nt - 1)
        def _finalize():
            # hoisted feature_module_final Linear (f32, once per conv):
            #   agg_i = (sum_e h_e) @ fw + deg_i * fbias
            agg = (jnp.dot(acc_ref[...], fw_ref[...],
                           preferred_element_type=jnp.float32)
                   + deg_ref[...] * fbias_ref[...])
            # post_conv_module = LayerNorm
            aggn = _layer_norm(agg, pg_ref[...], pb_ref[...])
            # conv output_module(cat([aggn, right], -1)): one lane-dense K=2*emb matmul
            x = jnp.concatenate([aggn, right_ref[...]], axis=-1)
            h2 = jnp.maximum(
                jnp.dot(x, ow1_ref[...], preferred_element_type=jnp.float32)
                + ob1_ref[...], 0.0)
            new_right = (jnp.dot(h2, ow2_ref[...],
                                 preferred_element_type=jnp.float32) + ob2_ref[...])
            if with_head:
                # GCN head: Linear(emb,emb) -> ReLU -> Linear(emb,1,bias=False)
                hh = jnp.maximum(
                    jnp.dot(new_right, hw1_ref[...],
                            preferred_element_type=jnp.float32) + hb1_ref[...], 0.0)
                out_ref[...] = jnp.sum(hh * hw2_ref[...], axis=-1, keepdims=True)
            else:
                out_ref[...] = new_right

    return kernel


# ----------------------------------------------------------------------------
# pallas_call wrappers
# ----------------------------------------------------------------------------

def embed(p, x, row_tile=EMBED_ROW_TILE):
    """Row-tiled node embedding (LN -> Linear -> ReLU -> Linear -> ReLU)."""
    n, f = x.shape
    emb = p['w2'].shape[1]
    tile = min(row_tile, _round_up(n, 8))
    n_pad = _round_up(n, tile)
    if n_pad != n:
        x = jnp.pad(x, ((0, n_pad - n), (0, 0)))     # zero rows -> finite LN output
    consts = (p['ln_g'], p['ln_b'], p['w1'], p['b1'], p['w2'], p['b2'])
    out = pl.pallas_call(
        _embed_kernel,
        out_shape=jax.ShapeDtypeStruct((n_pad, emb), jnp.float32),
        grid_spec=pltpu.PrefetchScalarGridSpec(
            num_scalar_prefetch=0,
            grid=(n_pad // tile,),
            in_specs=[pl.BlockSpec((tile, f), lambda i: (i, 0))]
                     + [_const_spec(a) for a in consts],
            out_specs=pl.BlockSpec((tile, emb), lambda i: (i, 0))),
        compiler_params=pltpu.CompilerParams(
            dimension_semantics=("parallel",),
            vmem_limit_bytes=_vmem_limit_bytes()),
    )(x, *consts)
    return out[:n]


def bipartite_conv(conv_p, *, left, right, deg, edge_const, idx_cols, tgt_row,
                   head_p=None, edge_tile=EDGE_TILE):
    """One BipartiteGraphConvolution (optionally with the scalar head fused)."""
    e_pad = tgt_row.shape[1]
    n_tiles = e_pad // edge_tile
    nl, emb = left.shape
    nr = right.shape[0]
    with_head = head_p is not None

    inputs = [idx_cols, tgt_row, left, right, deg, edge_const,
              conv_p['wl'], conv_p['bl'], conv_p['wr'],
              conv_p['fg'], conv_p['fb'], conv_p['fw'], conv_p['fbias'],
              conv_p['pg'], conv_p['pb'],
              conv_p['ow1'], conv_p['ob1'], conv_p['ow2'], conv_p['ob2']]
    if with_head:
        inputs += [head_p['w1'], head_p['b1'], head_p['w2']]

    in_specs = ([pl.BlockSpec((edge_tile, 2), lambda e: (e, 0)),   # packed src/tgt cols
                 pl.BlockSpec((1, edge_tile), lambda e: (0, e))]   # lane-dense tgt row
                + [_const_spec(a) for a in inputs[2:]])

    if with_head:
        out_shape = jax.ShapeDtypeStruct((nr, 1), jnp.float32)
        out_specs = pl.BlockSpec((nr, 1), lambda e: (0, 0))
        io_alias = {}                      # output shape differs from `right`
    else:
        out_shape = jax.ShapeDtypeStruct((nr, emb), jnp.float32)
        out_specs = pl.BlockSpec((nr, emb), lambda e: (0, 0))
        io_alias = {3: 0}                  # donate `right` buffer to the new embedding

    # TODO(synk): v7x dual-TensorCore: add a leading "parallel" grid axis over
    #             edge-tile halves, emit [2, Nr, emb] partial accumulators and
    #             move the finalize (post-LN + output_module/head) to a tiny
    #             follow-up reduce kernel; gate on chip generation.
    # TODO(synk): for Nl+Nr in the thousands, replace the one-hot GATHER with
    #             scalar-prefetched indices in SMEM + row gathers from the
    #             resident bf16 lrproj scratch (O(E) instead of O(E*N) MACs).
    return pl.pallas_call(
        _make_conv_kernel(with_head),
        out_shape=out_shape,
        grid_spec=pltpu.PrefetchScalarGridSpec(
            num_scalar_prefetch=0,
            grid=(n_tiles,),
            in_specs=in_specs,
            out_specs=out_specs,
            scratch_shapes=[pltpu.VMEM((nl + nr, emb), jnp.bfloat16),  # stacked projections
                            pltpu.VMEM((nr, emb), jnp.float32)]),      # add-agg accumulator
        input_output_aliases=io_alias,
        compiler_params=pltpu.CompilerParams(
            dimension_semantics=("arbitrary",),
            vmem_limit_bytes=_vmem_limit_bytes()),
    )(*inputs)


def bipartite_gcn_forward(params, constraint_features, edge_indices, edge_features,
                          variable_features, num_rounds=1, edge_tile=EDGE_TILE):
    """Equivalent of BipartiteGCNNoHeads.forward (activation=None)."""
    # mirror the module's "index out extra features" behaviour
    vnf = params['var_emb']['ln_g'].shape[1]
    if variable_features.shape[1] != vnf:
        variable_features = variable_features[:, :vnf]

    ef = params['edge_emb']['ln_g'].shape[1]
    if ef != 1 or edge_features.shape[1] != ef:
        # TODO(synk): edge_nfeats > 1 needs a per-edge edge_proj input stream.
        raise NotImplementedError("fused conv kernel assumes edge_nfeats == 1")

    n_cons = constraint_features.shape[0]
    n_vars = variable_features.shape[0]

    # node embeddings (row-tiled pallas kernels)
    cons = embed(params['cons_emb'], constraint_features.astype(jnp.float32))
    var = embed(params['var_emb'], variable_features.astype(jnp.float32))

    # pad node counts to multiples of 16 (aligned sublane writes into the stacked
    # bf16 projection scratch); padded rows are never referenced by any edge index.
    nc16, nv16 = _round_up(n_cons, 16), _round_up(n_vars, 16)
    cons = jnp.pad(cons, ((0, nc16 - n_cons), (0, 0)))
    var = jnp.pad(var, ((0, nv16 - n_vars), (0, 0)))

    # edge index preprocessing (done once, reused across rounds and directions);
    # padded edges carry index -1 -> all-zero one-hot rows -> contribute nothing.
    cons_idx = edge_indices[0].astype(jnp.int32)
    var_idx = edge_indices[1].astype(jnp.int32)
    e = cons_idx.shape[0]
    e_pad = _round_up(max(e, 1), edge_tile)
    pad = e_pad - e

    def pack_cols(src, tgt, n_left):       # [E_pad, 2]: col0 = src, col1 = tgt + n_left
        return jnp.stack([jnp.pad(src, (0, pad), constant_values=-1),
                          jnp.pad(tgt + n_left, (0, pad), constant_values=-1)], axis=1)

    def lane_row(idx):                      # lane-dense [1, E_pad] for the scatter one-hot
        return jnp.pad(idx, (0, pad), constant_values=-1).reshape(1, e_pad)

    idx_vc = pack_cols(var_idx, cons_idx, nv16)    # v->c: src = variables, tgt = constraints
    idx_cv = pack_cols(cons_idx, var_idx, nc16)    # c->v: src = constraints, tgt = variables
    cons_row, var_row = lane_row(cons_idx), lane_row(var_idx)

    ones = jnp.ones((e,), jnp.float32)
    deg_cons = jax.ops.segment_sum(ones, cons_idx, num_segments=nc16).reshape(nc16, 1)
    deg_var = jax.ops.segment_sum(ones, var_idx, num_segments=nv16).reshape(nv16, 1)

    # edge_nfeats == 1: LayerNorm over one feature returns its bias, so the
    # per-edge feature_module_edge output is a constant row per conv direction.
    eb = params['edge_emb']['ln_b']
    edgec_vc = eb @ params['conv_v_to_c']['we']    # [1, emb]
    edgec_cv = eb @ params['conv_c_to_v']['we']

    for r in range(num_rounds):
        # conv_v_to_c: left = variables (source), right = constraints (target)
        cons = bipartite_conv(params['conv_v_to_c'], left=var, right=cons,
                              deg=deg_cons, edge_const=edgec_vc,
                              idx_cols=idx_vc, tgt_row=cons_row,
                              head_p=None, edge_tile=edge_tile)
        last = (r == num_rounds - 1)
        # conv_c_to_v: left = constraints (source), right = variables (target);
        # the scalar output head is fused into the final call.
        out = bipartite_conv(params['conv_c_to_v'], left=cons, right=var,
                             deg=deg_var, edge_const=edgec_cv,
                             idx_cols=idx_cv, tgt_row=var_row,
                             head_p=params['head'] if last else None,
                             edge_tile=edge_tile)
        if last:
            return out[:n_vars, 0]        # .squeeze(-1), drop node padding
        var = out
    # NOTE: _mask_nan_logits is never invoked in the reference forward().


# ----------------------------------------------------------------------------
# deterministic parameter init (synthetic weights, same shapes as the module)
# ----------------------------------------------------------------------------

def init_params(key, emb=64, cons_nfeats=5, edge_nfeats=1, var_nfeats=19):
    kit = iter(jax.random.split(key, 64))

    def lin_w(fi, fo):
        return jax.random.normal(next(kit), (fi, fo), jnp.float32) / jnp.sqrt(float(fi))

    def lin_b(fo):
        return 0.1 * jax.random.normal(next(kit), (1, fo), jnp.float32)

    def ln(f):
        g = 1.0 + 0.1 * jax.random.normal(next(kit), (1, f), jnp.float32)
        b = 0.1 * jax.random.normal(next(kit), (1, f), jnp.float32)
        return g, b

    def embed_p(f_in):
        g, b = ln(f_in)
        return dict(ln_g=g, ln_b=b, w1=lin_w(f_in, emb), b1=lin_b(emb),
                    w2=lin_w(emb, emb), b2=lin_b(emb))

    def conv_p():
        wl, bl = lin_w(emb, emb), lin_b(emb)        # feature_module_left (target)
        we = lin_w(edge_nfeats, emb)                # Linear(1, emb, bias=False)
        wr = lin_w(emb, emb)                        # Linear(emb, emb, bias=False)
        fg, fb = ln(emb)
        fw, fbias = lin_w(emb, emb), lin_b(emb)
        pg, pb = ln(emb)
        ow1 = lin_w(2 * emb, emb)                   # Linear(2*emb, emb) on cat([agg, right])
        ob1 = lin_b(emb)
        ow2, ob2 = lin_w(emb, emb), lin_b(emb)
        return dict(wl=wl, bl=bl, we=we, wr=wr, fg=fg, fb=fb, fw=fw, fbias=fbias,
                    pg=pg, pb=pb, ow1=ow1, ob1=ob1, ow2=ow2, ob2=ob2)

    eg, eb = ln(edge_nfeats)
    return dict(
        cons_emb=embed_p(cons_nfeats),
        edge_emb=dict(ln_g=eg, ln_b=eb),
        var_emb=embed_p(var_nfeats),
        conv_v_to_c=conv_p(),
        conv_c_to_v=conv_p(),
        head=dict(w1=lin_w(emb, emb), b1=lin_b(emb),
                  w2=jax.random.normal(next(kit), (1, emb), jnp.float32)
                  / jnp.sqrt(float(emb))),
    )


# ----------------------------------------------------------------------------
# pure-JAX f32 reference (correctness check; uses the general formulation)
# ----------------------------------------------------------------------------

def _ref_ln(x, g, b):
    m = x.mean(-1, keepdims=True)
    v = ((x - m) ** 2).mean(-1, keepdims=True)
    return (x - m) / jnp.sqrt(v + EPS) * g + b


def _ref_embed(p, x):
    h = _ref_ln(x, p['ln_g'], p['ln_b'])
    h = jnp.maximum(h @ p['w1'] + p['b1'], 0.0)
    return jnp.maximum(h @ p['w2'] + p['b2'], 0.0)


def _ref_conv(p, edge_p, left, src, tgt, edge_raw, right):
    edge = _ref_ln(edge_raw, edge_p['ln_g'], edge_p['ln_b'])
    right_proj = right @ p['wl'] + p['bl']
    left_proj = left @ p['wr']
    edge_proj = edge @ p['we']
    msg_pre = right_proj[tgt] + edge_proj + left_proj[src]
    h = jnp.maximum(_ref_ln(msg_pre, p['fg'], p['fb']), 0.0)
    msg = h @ p['fw'] + p['fbias']
    agg = jax.ops.segment_sum(msg, tgt, num_segments=right.shape[0])
    aggn = _ref_ln(agg, p['pg'], p['pb'])
    x = jnp.concatenate([aggn, right], axis=-1)
    h = jnp.maximum(x @ p['ow1'] + p['ob1'], 0.0)
    return h @ p['ow2'] + p['ob2']


def reference_forward(params, cons_feats, edge_indices, edge_feats, var_feats,
                      num_rounds=1):
    cons = _ref_embed(params['cons_emb'], cons_feats)
    var = _ref_embed(params['var_emb'], var_feats)
    ci, vi = edge_indices[0], edge_indices[1]
    for _ in range(num_rounds):
        cons = _ref_conv(params['conv_v_to_c'], params['edge_emb'],
                         var, vi, ci, edge_feats, cons)
        var = _ref_conv(params['conv_c_to_v'], params['edge_emb'],
                        cons, ci, vi, edge_feats, var)
    h = jnp.maximum(var @ params['head']['w1'] + params['head']['b1'], 0.0)
    return jnp.sum(h * params['head']['w2'], axis=-1)


# ----------------------------------------------------------------------------

if __name__ == "__main__":
    key = jax.random.PRNGKey(0)
    k_param, k_cons, k_var, k_edge, k_ci, k_vi = jax.random.split(key, 6)

    n_cons, n_vars, n_edges = 16, 32, 64
    cons_nfeats, edge_nfeats, var_nfeats = 5, 1, 19

    params = init_params(k_param, emb=64, cons_nfeats=cons_nfeats,
                         edge_nfeats=edge_nfeats, var_nfeats=var_nfeats)

    constraint_features = jax.random.normal(k_cons, (n_cons, cons_nfeats), jnp.float32)
    variable_features = jax.random.normal(k_var, (n_vars, var_nfeats), jnp.float32)
    edge_features = jax.random.normal(k_edge, (n_edges, edge_nfeats), jnp.float32)
    cons_idx = jax.random.randint(k_ci, (n_edges,), 0, n_cons, jnp.int32)
    var_idx = jax.random.randint(k_vi, (n_edges,), 0, n_vars, jnp.int32)
    edge_indices = jnp.stack([cons_idx, var_idx], axis=0)

    fwd = jax.jit(bipartite_gcn_forward, static_argnames=("num_rounds", "edge_tile"))
    out = fwd(params, constraint_features, edge_indices, edge_features,
              variable_features, num_rounds=1)
    out = jax.block_until_ready(out)

    ref = reference_forward(params, constraint_features, edge_indices,
                            edge_features, variable_features, num_rounds=1)
    assert out.shape == (n_vars,)
    assert bool(jnp.all(jnp.isfinite(out)))
    # bf16 one-hot gather/scatter path -> compare against the f32 reference
    # with a tolerance that covers bf16 rounding of the cached projections /
    # pre-aggregation messages (the hoisted fw/fbias now run in f32).
    assert bool(jnp.allclose(out, ref, atol=1e-1, rtol=1e-1)), \
        float(jnp.max(jnp.abs(out - ref)))

    print("KERNEL_OK")
</pallas_src>

<mosaic_0001>
module attributes {stable_mosaic.version = 11 : i64} {
  func.func private @main(%arg0: i32) attributes {dimension_semantics = [#tpu.dimension_semantics<core_parallel>], iteration_bounds = array<i64: 2>, tpu.core_type = #tpu.core_type<sc_scalar_subcore>, window_params = []} {
    return
  }
}

module attributes {stable_mosaic.version = 11 : i64} {
  func.func private @main(%arg0: i32) attributes {dimension_semantics = [#tpu.dimension_semantics<core_parallel>], iteration_bounds = array<i64: 2>, tpu.core_type = #tpu.core_type<sc_scalar_subcore>, window_params = []} {
    return
  }
}

module attributes {stable_mosaic.version = 11 : i64} {
  func.func @_embed_kernel(%arg0: i32, %arg1: memref<16x5xf32, #tpu.memory_space<vmem>>, %arg2: memref<1x5xf32, #tpu.memory_space<vmem>>, %arg3: memref<1x5xf32, #tpu.memory_space<vmem>>, %arg4: memref<5x64xf32, #tpu.memory_space<vmem>>, %arg5: memref<1x64xf32, #tpu.memory_space<vmem>>, %arg6: memref<64x64xf32, #tpu.memory_space<vmem>>, %arg7: memref<1x64xf32, #tpu.memory_space<vmem>>, %arg8: memref<16x64xf32, #tpu.memory_space<vmem>>) attributes {dimension_semantics = [#tpu.dimension_semantics<parallel>], iteration_bounds = array<i64: 1>, scalar_prefetch = 0 : i64, scratch_operands = 0 : i64, tpu.core_type = #tpu.core_type<tc>, window_params = [{transform_indices = @transform_0, window_bounds = array<i64: 16, 5>}, {pipeline_mode = #tpu.pipeline_mode<synchronous>, transform_indices = @transform_1, window_bounds = array<i64: 1, 5>}, {pipeline_mode = #tpu.pipeline_mode<synchronous>, transform_indices = @transform_2, window_bounds = array<i64: 1, 5>}, {pipeline_mode = #tpu.pipeline_mode<synchronous>, transform_indices = @transform_3, window_bounds = array<i64: 5, 64>}, {pipeline_mode = #tpu.pipeline_mode<synchronous>, transform_indices = @transform_4, window_bounds = array<i64: 1, 64>}, {pipeline_mode = #tpu.pipeline_mode<synchronous>, transform_indices = @transform_5, window_bounds = array<i64: 64, 64>}, {pipeline_mode = #tpu.pipeline_mode<synchronous>, transform_indices = @transform_6, window_bounds = array<i64: 1, 64>}, {transform_indices = @transform_7, window_bounds = array<i64: 16, 64>}]} {
    %c0 = arith.constant 0 : index
    %c0_0 = arith.constant 0 : index
    %0 = vector.load %arg1[%c0, %c0_0] : memref<16x5xf32, #tpu.memory_space<vmem>>, vector<16x5xf32>
    %c0_1 = arith.constant 0 : index
    %c0_2 = arith.constant 0 : index
    %1 = vector.load %arg2[%c0_1, %c0_2] : memref<1x5xf32, #tpu.memory_space<vmem>>, vector<1x5xf32>
    %c0_3 = arith.constant 0 : index
    %c0_4 = arith.constant 0 : index
    %2 = vector.load %arg3[%c0_3, %c0_4] : memref<1x5xf32, #tpu.memory_space<vmem>>, vector<1x5xf32>
    %cst = arith.constant dense<0.000000e+00> : vector<16xf32>
    %3 = vector.multi_reduction <add>, %0, %cst [1] : vector<16x5xf32> to vector<16xf32>
    %4 = vector.shape_cast %3 : vector<16xf32> to vector<16x1xf32>
    %cst_5 = arith.constant 5.000000e+00 : f32
    %5 = vector.broadcast %cst_5 : f32 to vector<16x1xf32>
    %6 = arith.divf %4, %5 : vector<16x1xf32>
    %7 = vector.broadcast %6 : vector<16x1xf32> to vector<16x5xf32>
    %8 = arith.subf %0, %7 : vector<16x5xf32>
    %9 = arith.mulf %8, %8 : vector<16x5xf32>
    %cst_6 = arith.constant dense<0.000000e+00> : vector<16xf32>
    %10 = vector.multi_reduction <add>, %9, %cst_6 [1] : vector<16x5xf32> to vector<16xf32>
    %11 = vector.shape_cast %10 : vector<16xf32> to vector<16x1xf32>
    %cst_7 = arith.constant 5.000000e+00 : f32
    %12 = vector.broadcast %cst_7 : f32 to vector<16x1xf32>
    %13 = arith.divf %11, %12 : vector<16x1xf32>
    %14 = vector.broadcast %6 : vector<16x1xf32> to vector<16x5xf32>
    %15 = arith.subf %0, %14 : vector<16x5xf32>
    %cst_8 = arith.constant 9.99999974E-6 : f32
    %16 = vector.broadcast %cst_8 : f32 to vector<16x1xf32>
    %17 = arith.addf %13, %16 : vector<16x1xf32>
    %18 = math.rsqrt %17 : vector<16x1xf32>
    %19 = vector.broadcast %18 : vector<16x1xf32> to vector<16x5xf32>
    %20 = arith.mulf %15, %19 : vector<16x5xf32>
    %21 = vector.broadcast %1 : vector<1x5xf32> to vector<16x5xf32>
    %22 = arith.mulf %20, %21 : vector<16x5xf32>
    %23 = vector.broadcast %2 : vector<1x5xf32> to vector<16x5xf32>
    %24 = arith.addf %22, %23 : vector<16x5xf32>
    %c0_9 = arith.constant 0 : index
    %c0_10 = arith.constant 0 : index
    %25 = vector.load %arg4[%c0_9, %c0_10] : memref<5x64xf32, #tpu.memory_space<vmem>>, vector<5x64xf32>
    %cst_11 = arith.constant dense<0.000000e+00> : vector<16x64xf32>
    %26 = tpu.matmul %24, %25, %cst_11 {dimension_numbers = #tpu.dot_dimension_numbers<[1], [0], [0], [1], [0, 0, 1, 1], [], []>} : vector<16x5xf32>, vector<5x64xf32>, vector<16x64xf32> -> vector<16x64xf32>
    %c0_12 = arith.constant 0 : index
    %c0_13 = arith.constant 0 : index
    %27 = vector.load %arg5[%c0_12, %c0_13] : memref<1x64xf32, #tpu.memory_space<vmem>>, vector<1x64xf32>
    %28 = vector.broadcast %27 : vector<1x64xf32> to vector<16x64xf32>
    %29 = arith.addf %26, %28 : vector<16x64xf32>
    %cst_14 = arith.constant 0.000000e+00 : f32
    %30 = vector.broadcast %cst_14 : f32 to vector<16x64xf32>
    %31 = arith.maximumf %29, %30 : vector<16x64xf32>
    %c0_15 = arith.constant 0 : index
    %c0_16 = arith.constant 0 : index
    %32 = vector.load %arg6[%c0_15, %c0_16] : memref<64x64xf32, #tpu.memory_space<vmem>>, vector<64x64xf32>
    %cst_17 = arith.constant dense<0.000000e+00> : vector<16x64xf32>
    %33 = tpu.matmul %31, %32, %cst_17 {dimension_numbers = #tpu.dot_dimension_numbers<[1], [0], [0], [1], [0, 0, 1, 1], [], []>} : vector<16x64xf32>, vector<64x64xf32>, vector<16x64xf32> -> vector<16x64xf32>
    %c0_18 = arith.constant 0 : index
    %c0_19 = arith.constant 0 : index
    %34 = vector.load %arg7[%c0_18, %c0_19] : memref<1x64xf32, #tpu.memory_space<vmem>>, vector<1x64xf32>
    %35 = vector.broadcast %34 : vector<1x64xf32> to vector<16x64xf32>
    %36 = arith.addf %33, %35 : vector<16x64xf32>
    %cst_20 = arith.constant 0.000000e+00 : f32
    %37 = vector.broadcast %cst_20 : f32 to vector<16x64xf32>
    %38 = arith.maximumf %36, %37 : vector<16x64xf32>
    %c0_21 = arith.constant 0 : index
    %c0_22 = arith.constant 0 : index
    %39 = vector.load %arg8[%c0_21, %c0_22] : memref<16x64xf32, #tpu.memory_space<vmem>>, vector<16x64xf32>
    tpu.vector_store %arg8[%c0_21, %c0_22], %38 {strides = array<i32>} : memref<16x64xf32, #tpu.memory_space<vmem>>, vector<16x64xf32>,
    return
  }
  func.func @transform_0(%arg0: i32) -> (i32, i32) {
    %c0_i32 = arith.constant 0 : i32
    %c0_i32_0 = arith.constant 0 : i32
    return %arg0, %c0_i32 : i32, i32
  }
  func.func @transform_1(%arg0: i32) -> (i32, i32) {
    %c0_i32 = arith.constant 0 : i32
    %c0_i32_0 = arith.constant 0 : i32
    %c0_i32_1 = arith.constant 0 : i32
    return %c0_i32, %c0_i32_0 : i32, i32
  }
  func.func @transform_2(%arg0: i32) -> (i32, i32) {
    %c0_i32 = arith.constant 0 : i32
    %c0_i32_0 = arith.constant 0 : i32
    %c0_i32_1 = arith.constant 0 : i32
    return %c0_i32, %c0_i32_0 : i32, i32
  }
  func.func @transform_3(%arg0: i32) -> (i32, i32) {
    %c0_i32 = arith.constant 0 : i32
    %c0_i32_0 = arith.constant 0 : i32
    %c0_i32_1 = arith.constant 0 : i32
    return %c0_i32, %c0_i32_0 : i32, i32
  }
  func.func @transform_4(%arg0: i32) -> (i32, i32) {
    %c0_i32 = arith.constant 0 : i32
    %c0_i32_0 = arith.constant 0 : i32
    %c0_i32_1 = arith.constant 0 : i32
    return %c0_i32, %c0_i32_0 : i32, i32
  }
  func.func @transform_5(%arg0: i32) -> (i32, i32) {
    %c0_i32 = arith.constant 0 : i32
    %c0_i32_0 = arith.constant 0 : i32
    %c0_i32_1 = arith.constant 0 : i32
    return %c0_i32, %c0_i32_0 : i32, i32
  }
  func.func @transform_6(%arg0: i32) -> (i32, i32) {
    %c0_i32 = arith.constant 0 : i32
    %c0_i32_0 = arith.constant 0 : i32
    %c0_i32_1 = arith.constant 0 : i32
    return %c0_i32, %c0_i32_0 : i32, i32
  }
  func.func @transform_7(%arg0: i32) -> (i32, i32) {
    %c0_i32 = arith.constant 0 : i32
    %c0_i32_0 = arith.constant 0 : i32
    return %arg0, %c0_i32 : i32, i32
  }
}

module attributes {stable_mosaic.version = 11 : i64} {
  func.func @_embed_kernel(%arg0: i32, %arg1: memref<32x19xf32, #tpu.memory_space<vmem>>, %arg2: memref<1x19xf32, #tpu.memory_space<vmem>>, %arg3: memref<1x19xf32, #tpu.memory_space<vmem>>, %arg4: memref<19x64xf32, #tpu.memory_space<vmem>>, %arg5: memref<1x64xf32, #tpu.memory_space<vmem>>, %arg6: memref<64x64xf32, #tpu.memory_space<vmem>>, %arg7: memref<1x64xf32, #tpu.memory_space<vmem>>, %arg8: memref<32x64xf32, #tpu.memory_space<vmem>>) attributes {dimension_semantics = [#tpu.dimension_semantics<parallel>], iteration_bounds = array<i64: 1>, scalar_prefetch = 0 : i64, scratch_operands = 0 : i64, tpu.core_type = #tpu.core_type<tc>, window_params = [{transform_indices = @transform_0, window_bounds = array<i64: 32, 19>}, {pipeline_mode = #tpu.pipeline_mode<synchronous>, transform_indices = @transform_1, window_bounds = array<i64: 1, 19>}, {pipeline_mode = #tpu.pipeline_mode<synchronous>, transform_indices = @transform_2, window_bounds = array<i64: 1, 19>}, {pipeline_mode = #tpu.pipeline_mode<synchronous>, transform_indices = @transform_3, window_bounds = array<i64: 19, 64>}, {pipeline_mode = #tpu.pipeline_mode<synchronous>, transform_indices = @transform_4, window_bounds = array<i64: 1, 64>}, {pipeline_mode = #tpu.pipeline_mode<synchronous>, transform_indices = @transform_5, window_bounds = array<i64: 64, 64>}, {pipeline_mode = #tpu.pipeline_mode<synchronous>, transform_indices = @transform_6, window_bounds = array<i64: 1, 64>}, {transform_indices = @transform_7, window_bounds = array<i64: 32, 64>}]} {
    %c0 = arith.constant 0 : index
    %c0_0 = arith.constant 0 : index
    %0 = vector.load %arg1[%c0, %c0_0] : memref<32x19xf32, #tpu.memory_space<vmem>>, vector<32x19xf32>
    %c0_1 = arith.constant 0 : index
    %c0_2 = arith.constant 0 : index
    %1 = vector.load %arg2[%c0_1, %c0_2] : memref<1x19xf32, #tpu.memory_space<vmem>>, vector<1x19xf32>
    %c0_3 = arith.constant 0 : index
    %c0_4 = arith.constant 0 : index
    %2 = vector.load %arg3[%c0_3, %c0_4] : memref<1x19xf32, #tpu.memory_space<vmem>>, vector<1x19xf32>
    %cst = arith.constant dense<0.000000e+00> : vector<32xf32>
    %3 = vector.multi_reduction <add>, %0, %cst [1] : vector<32x19xf32> to vector<32xf32>
    %4 = vector.shape_cast %3 : vector<32xf32> to vector<32x1xf32>
    %cst_5 = arith.constant 1.900000e+01 : f32
    %5 = vector.broadcast %cst_5 : f32 to vector<32x1xf32>
    %6 = arith.divf %4, %5 : vector<32x1xf32>
    %7 = vector.broadcast %6 : vector<32x1xf32> to vector<32x19xf32>
    %8 = arith.subf %0, %7 : vector<32x19xf32>
    %9 = arith.mulf %8, %8 : vector<32x19xf32>
    %cst_6 = arith.constant dense<0.000000e+00> : vector<32xf32>
    %10 = vector.multi_reduction <add>, %9, %cst_6 [1] : vector<32x19xf32> to vector<32xf32>
    %11 = vector.shape_cast %10 : vector<32xf32> to vector<32x1xf32>
    %cst_7 = arith.constant 1.900000e+01 : f32
    %12 = vector.broadcast %cst_7 : f32 to vector<32x1xf32>
    %13 = arith.divf %11, %12 : vector<32x1xf32>
    %14 = vector.broadcast %6 : vector<32x1xf32> to vector<32x19xf32>
    %15 = arith.subf %0, %14 : vector<32x19xf32>
    %cst_8 = arith.constant 9.99999974E-6 : f32
    %16 = vector.broadcast %cst_8 : f32 to vector<32x1xf32>
    %17 = arith.addf %13, %16 : vector<32x1xf32>
    %18 = math.rsqrt %17 : vector<32x1xf32>
    %19 = vector.broadcast %18 : vector<32x1xf32> to vector<32x19xf32>
    %20 = arith.mulf %15, %19 : vector<32x19xf32>
    %21 = vector.broadcast %1 : vector<1x19xf32> to vector<32x19xf32>
    %22 = arith.mulf %20, %21 : vector<32x19xf32>
    %23 = vector.broadcast %2 : vector<1x19xf32> to vector<32x19xf32>
    %24 = arith.addf %22, %23 : vector<32x19xf32>
    %c0_9 = arith.constant 0 : index
    %c0_10 = arith.constant 0 : index
    %25 = vector.load %arg4[%c0_9, %c0_10] : memref<19x64xf32, #tpu.memory_space<vmem>>, vector<19x64xf32>
    %cst_11 = arith.constant dense<0.000000e+00> : vector<32x64xf32>
    %26 = tpu.matmul %24, %25, %cst_11 {dimension_numbers = #tpu.dot_dimension_numbers<[1], [0], [0], [1], [0, 0, 1, 1], [], []>} : vector<32x19xf32>, vector<19x64xf32>, vector<32x64xf32> -> vector<32x64xf32>
    %c0_12 = arith.constant 0 : index
    %c0_13 = arith.constant 0 : index
    %27 = vector.load %arg5[%c0_12, %c0_13] : memref<1x64xf32, #tpu.memory_space<vmem>>, vector<1x64xf32>
    %28 = vector.broadcast %27 : vector<1x64xf32> to vector<32x64xf32>
    %29 = arith.addf %26, %28 : vector<32x64xf32>
    %cst_14 = arith.constant 0.000000e+00 : f32
    %30 = vector.broadcast %cst_14 : f32 to vector<32x64xf32>
    %31 = arith.maximumf %29, %30 : vector<32x64xf32>
    %c0_15 = arith.constant 0 : index
    %c0_16 = arith.constant 0 : index
    %32 = vector.load %arg6[%c0_15, %c0_16] : memref<64x64xf32, #tpu.memory_space<vmem>>, vector<64x64xf32>
    %cst_17 = arith.constant dense<0.000000e+00> : vector<32x64xf32>
    %33 = tpu.matmul %31, %32, %cst_17 {dimension_numbers = #tpu.dot_dimension_numbers<[1], [0], [0], [1], [0, 0, 1, 1], [], []>} : vector<32x64xf32>, vector<64x64xf32>, vector<32x64xf32> -> vector<32x64xf32>
    %c0_18 = arith.constant 0 : index
    %c0_19 = arith.constant 0 : index
    %34 = vector.load %arg7[%c0_18, %c0_19] : memref<1x64xf32, #tpu.memory_space<vmem>>, vector<1x64xf32>
    %35 = vector.broadcast %34 : vector<1x64xf32> to vector<32x64xf32>
    %36 = arith.addf %33, %35 : vector<32x64xf32>
    %cst_20 = arith.constant 0.000000e+00 : f32
    %37 = vector.broadcast %cst_20 : f32 to vector<32x64xf32>
    %38 = arith.maximumf %36, %37 : vector<32x64xf32>
    %c0_21 = arith.constant 0 : index
    %c0_22 = arith.constant 0 : index
    %39 = vector.load %arg8[%c0_21, %c0_22] : memref<32x64xf32, #tpu.memory_space<vmem>>, vector<32x64xf32>
    tpu.vector_store %arg8[%c0_21, %c0_22], %38 {strides = array<i32>} : memref<32x64xf32, #tpu.memory_space<vmem>>, vector<32x64xf32>,
    return
  }
  func.func @transform_0(%arg0: i32) -> (i32, i32) {
    %c0_i32 = arith.constant 0 : i32
    %c0_i32_0 = arith.constant 0 : i32
    return %arg0, %c0_i32 : i32, i32
  }
  func.func @transform_1(%arg0: i32) -> (i32, i32) {
    %c0_i32 = arith.constant 0 : i32
    %c0_i32_0 = arith.constant 0 : i32
    %c0_i32_1 = arith.constant 0 : i32
    return %c0_i32, %c0_i32_0 : i32, i32
  }
  func.func @transform_2(%arg0: i32) -> (i32, i32) {
    %c0_i32 = arith.constant 0 : i32
    %c0_i32_0 = arith.constant 0 : i32
    %c0_i32_1 = arith.constant 0 : i32
    return %c0_i32, %c0_i32_0 : i32, i32
  }
  func.func @transform_3(%arg0: i32) -> (i32, i32) {
    %c0_i32 = arith.constant 0 : i32
    %c0_i32_0 = arith.constant 0 : i32
    %c0_i32_1 = arith.constant 0 : i32
    return %c0_i32, %c0_i32_0 : i32, i32
  }
  func.func @transform_4(%arg0: i32) -> (i32, i32) {
    %c0_i32 = arith.constant 0 : i32
    %c0_i32_0 = arith.constant 0 : i32
    %c0_i32_1 = arith.constant 0 : i32
    return %c0_i32, %c0_i32_0 : i32, i32
  }
  func.func @transform_5(%arg0: i32) -> (i32, i32) {
    %c0_i32 = arith.constant 0 : i32
    %c0_i32_0 = arith.constant 0 : i32
    %c0_i32_1 = arith.constant 0 : i32
    return %c0_i32, %c0_i32_0 : i32, i32
  }
  func.func @transform_6(%arg0: i32) -> (i32, i32) {
    %c0_i32 = arith.constant 0 : i32
    %c0_i32_0 = arith.constant 0 : i32
    %c0_i32_1 = arith.constant 0 : i32
    return %c0_i32, %c0_i32_0 : i32, i32
  }
  func.func @transform_7(%arg0: i32) -> (i32, i32) {
    %c0_i32 = arith.constant 0 : i32
    %c0_i32_0 = arith.constant 0 : i32
    return %arg0, %c0_i32 : i32, i32
  }
}

module attributes {stable_mosaic.version = 11 : i64} {
  func.func @kernel(%arg0: i32, %arg1: memref<512x2xi32, #tpu.memory_space<vmem>>, %arg2: memref<1x512xi32, #tpu.memory_space<vmem>>, %arg3: memref<32x64xf32, #tpu.memory_space<vmem>>, %arg4: memref<16x64xf32, #tpu.memory_space<vmem>>, %arg5: memref<16x1xf32, #tpu.memory_space<vmem>>, %arg6: memref<1x64xf32, #tpu.memory_space<vmem>>, %arg7: memref<64x64xf32, #tpu.memory_space<vmem>>, %arg8: memref<1x64xf32, #tpu.memory_space<vmem>>, %arg9: memref<64x64xf32, #tpu.memory_space<vmem>>, %arg10: memref<1x64xf32, #tpu.memory_space<vmem>>, %arg11: memref<1x64xf32, #tpu.memory_space<vmem>>, %arg12: memref<64x64xf32, #tpu.memory_space<vmem>>, %arg13: memref<1x64xf32, #tpu.memory_space<vmem>>, %arg14: memref<1x64xf32, #tpu.memory_space<vmem>>, %arg15: memref<1x64xf32, #tpu.memory_space<vmem>>, %arg16: memref<128x64xf32, #tpu.memory_space<vmem>>, %arg17: memref<1x64xf32, #tpu.memory_space<vmem>>, %arg18: memref<64x64xf32, #tpu.memory_space<vmem>>, %arg19: memref<1x64xf32, #tpu.memory_space<vmem>>, %arg20: memref<16x64xf32, #tpu.memory_space<vmem>>, %arg21: memref<48x64xbf16, #tpu.memory_space<vmem>>, %arg22: memref<16x64xf32, #tpu.memory_space<vmem>>) attributes {dimension_semantics = [#tpu.dimension_semantics<arbitrary>], iteration_bounds = array<i64: 1>, scalar_prefetch = 0 : i64, scratch_operands = 2 : i64, tpu.core_type = #tpu.core_type<tc>, window_params = [{transform_indices = @transform_0, window_bounds = array<i64: 512, 2>}, {transform_indices = @transform_1, window_bounds = array<i64: 1, 512>}, {pipeline_mode = #tpu.pipeline_mode<synchronous>, transform_indices = @transform_2, window_bounds = array<i64: 32, 64>}, {pipeline_mode = #tpu.pipeline_mode<synchronous>, transform_indices = @transform_3, window_bounds = array<i64: 16, 64>}, {pipeline_mode = #tpu.pipeline_mode<synchronous>, transform_indices = @transform_4, window_bounds = array<i64: 16, 1>}, {pipeline_mode = #tpu.pipeline_mode<synchronous>, transform_indices = @transform_5, window_bounds = array<i64: 1, 64>}, {pipeline_mode = #tpu.pipeline_mode<synchronous>, transform_indices = @transform_6, window_bounds = array<i64: 64, 64>}, {pipeline_mode = #tpu.pipeline_mode<synchronous>, transform_indices = @transform_7, window_bounds = array<i64: 1, 64>}, {pipeline_mode = #tpu.pipeline_mode<synchronous>, transform_indices = @transform_8, window_bounds = array<i64: 64, 64>}, {pipeline_mode = #tpu.pipeline_mode<synchronous>, transform_indices = @transform_9, window_bounds = array<i64: 1, 64>}, {pipeline_mode = #tpu.pipeline_mode<synchronous>, transform_indices = @transform_10, window_bounds = array<i64: 1, 64>}, {pipeline_mode = #tpu.pipeline_mode<synchronous>, transform_indices = @transform_11, window_bounds = array<i64: 64, 64>}, {pipeline_mode = #tpu.pipeline_mode<synchronous>, transform_indices = @transform_12, window_bounds = array<i64: 1, 64>}, {pipeline_mode = #tpu.pipeline_mode<synchronous>, transform_indices = @transform_13, window_bounds = array<i64: 1, 64>}, {pipeline_mode = #tpu.pipeline_mode<synchronous>, transform_indices = @transform_14, window_bounds = array<i64: 1, 64>}, {pipeline_mode = #tpu.pipeline_mode<synchronous>, transform_indices = @transform_15, window_bounds = array<i64: 128, 64>}, {pipeline_mode = #tpu.pipeline_mode<synchronous>, transform_indices = @transform_16, window_bounds = array<i64: 1, 64>}, {pipeline_mode = #tpu.pipeline_mode<synchronous>, transform_indices = @transform_17, window_bounds = array<i64: 64, 64>}, {pipeline_mode = #tpu.pipeline_mode<synchronous>, transform_indices = @transform_18, window_bounds = array<i64: 1, 64>}, {pipeline_mode = #tpu.pipeline_mode<synchronous>, transform_indices = @transform_19, window_bounds = array<i64: 16, 64>}]} {
    %c0_i32 = arith.constant 0 : i32
    %0 = arith.cmpi eq, %arg0, %c0_i32 : i32
    %1 = arith.extui %0 : i1 to i32
    %c0_i32_0 = arith.constant 0 : i32
    %2 = arith.cmpi ne, %1, %c0_i32_0 : i32
    scf.if %2 {
      %c0_25 = arith.constant 0 : index
      %c0_26 = arith.constant 0 : index
      %61 = vector.load %arg3[%c0_25, %c0_26] : memref<32x64xf32, #tpu.memory_space<vmem>>, vector<32x64xf32>
      %c0_27 = arith.constant 0 : index
      %c0_28 = arith.constant 0 : index
      %62 = vector.load %arg9[%c0_27, %c0_28] : memref<64x64xf32, #tpu.memory_space<vmem>>, vector<64x64xf32>
      %cst_29 = arith.constant dense<0.000000e+00> : vector<32x64xf32>
      %63 = tpu.matmul %61, %62, %cst_29 {dimension_numbers = #tpu.dot_dimension_numbers<[1], [0], [0], [1], [0, 0, 1, 1], [], []>} : vector<32x64xf32>, vector<64x64xf32>, vector<32x64xf32> -> vector<32x64xf32>
      %64 = arith.truncf %63 : vector<32x64xf32> to vector<32x64xbf16>
      %c0_30 = arith.constant 0 : index
      %c0_31 = arith.constant 0 : index
      %65 = vector.load %arg21[%c0_30, %c0_31] : memref<48x64xbf16, #tpu.memory_space<vmem>>, vector<32x64xbf16>
      tpu.vector_store %arg21[%c0_30, %c0_31], %64 {strides = array<i32>} : memref<48x64xbf16, #tpu.memory_space<vmem>>, vector<32x64xbf16>,
      %c0_32 = arith.constant 0 : index
      %c0_33 = arith.constant 0 : index
      %66 = vector.load %arg4[%c0_32, %c0_33] : memref<16x64xf32, #tpu.memory_space<vmem>>, vector<16x64xf32>
      %c0_34 = arith.constant 0 : index
      %c0_35 = arith.constant 0 : index
      %67 = vector.load %arg7[%c0_34, %c0_35] : memref<64x64xf32, #tpu.memory_space<vmem>>, vector<64x64xf32>
      %cst_36 = arith.constant dense<0.000000e+00> : vector<16x64xf32>
      %68 = tpu.matmul %66, %67, %cst_36 {dimension_numbers = #tpu.dot_dimension_numbers<[1], [0], [0], [1], [0, 0, 1, 1], [], []>} : vector<16x64xf32>, vector<64x64xf32>, vector<16x64xf32> -> vector<16x64xf32>
      %c0_37 = arith.constant 0 : index
      %c0_38 = arith.constant 0 : index
      %69 = vector.load %arg8[%c0_37, %c0_38] : memref<1x64xf32, #tpu.memory_space<vmem>>, vector<1x64xf32>
      %70 = vector.broadcast %69 : vector<1x64xf32> to vector<16x64xf32>
      %71 = arith.addf %68, %70 : vector<16x64xf32>
      %72 = arith.truncf %71 : vector<16x64xf32> to vector<16x64xbf16>
      %c32 = arith.constant 32 : index
      %c0_39 = arith.constant 0 : index
      %73 = vector.load %arg21[%c32, %c0_39] : memref<48x64xbf16, #tpu.memory_space<vmem>>, vector<16x64xbf16>
      tpu.vector_store %arg21[%c32, %c0_39], %72 {strides = array<i32>} : memref<48x64xbf16, #tpu.memory_space<vmem>>, vector<16x64xbf16>,
      %cst_40 = arith.constant 0.000000e+00 : f32
      %74 = vector.broadcast %cst_40 : f32 to vector<16x64xf32>
      %c0_41 = arith.constant 0 : index
      %c0_42 = arith.constant 0 : index
      %75 = vector.load %arg22[%c0_41, %c0_42] : memref<16x64xf32, #tpu.memory_space<vmem>>, vector<16x64xf32>
      tpu.vector_store %arg22[%c0_41, %c0_42], %74 {strides = array<i32>} : memref<16x64xf32, #tpu.memory_space<vmem>>, vector<16x64xf32>,
    } else {
    }
    %c0 = arith.constant 0 : index
    %c0_1 = arith.constant 0 : index
    %3 = vector.load %arg1[%c0, %c0_1] : memref<512x2xi32, #tpu.memory_space<vmem>>, vector<512x2xi32>
    %4 = tpu.iota {dimensions = array<i32: 1>} : vector<512x48xi32>
    %5 = vector.extract_strided_slice %3 {offsets = [0, 0], sizes = [512, 1], strides = [1, 1]} : vector<512x2xi32> to vector<512x1xi32>
    %6 = vector.broadcast %5 : vector<512x1xi32> to vector<512x48xi32>
    %7 = arith.cmpi eq, %6, %4 : vector<512x48xi32>
    %8 = vector.extract_strided_slice %3 {offsets = [0, 1], sizes = [512, 1], strides = [1, 1]} : vector<512x2xi32> to vector<512x1xi32>
    %9 = vector.broadcast %8 : vector<512x1xi32> to vector<512x48xi32>
    %10 = arith.cmpi eq, %9, %4 : vector<512x48xi32>
    %11 = arith.ori %7, %10 : vector<512x48xi1>
    %12 = arith.extui %11 : vector<512x48xi1> to vector<512x48xi32>
    %13 = arith.sitofp %12 : vector<512x48xi32> to vector<512x48xf32>
    %14 = arith.truncf %13 : vector<512x48xf32> to vector<512x48xbf16>
    %c0_2 = arith.constant 0 : index
    %c0_3 = arith.constant 0 : index
    %15 = vector.load %arg21[%c0_2, %c0_3] : memref<48x64xbf16, #tpu.memory_space<vmem>>, vector<48x64xbf16>
    %cst = arith.constant dense<0.000000e+00> : vector<512x64xf32>
    %16 = tpu.matmul %14, %15, %cst {dimension_numbers = #tpu.dot_dimension_numbers<[1], [0], [0], [1], [0, 0, 1, 1], [], []>} : vector<512x48xbf16>, vector<48x64xbf16>, vector<512x64xf32> -> vector<512x64xf32>
    %c0_4 = arith.constant 0 : index
    %c0_5 = arith.constant 0 : index
    %17 = vector.load %arg6[%c0_4, %c0_5] : memref<1x64xf32, #tpu.memory_space<vmem>>, vector<1x64xf32>
    %18 = vector.broadcast %17 : vector<1x64xf32> to vector<512x64xf32>
    %19 = arith.addf %16, %18 : vector<512x64xf32>
    %c0_6 = arith.constant 0 : index
    %c0_7 = arith.constant 0 : index
    %20 = vector.load %arg10[%c0_6, %c0_7] : memref<1x64xf32, #tpu.memory_space<vmem>>, vector<1x64xf32>
    %c0_8 = arith.constant 0 : index
    %c0_9 = arith.constant 0 : index
    %21 = vector.load %arg11[%c0_8, %c0_9] : memref<1x64xf32, #tpu.memory_space<vmem>>, vector<1x64xf32>
    %cst_10 = arith.constant dense<0.000000e+00> : vector<512xf32>
    %22 = vector.multi_reduction <add>, %19, %cst_10 [1] : vector<512x64xf32> to vector<512xf32>
    %23 = vector.shape_cast %22 : vector<512xf32> to vector<512x1xf32>
    %cst_11 = arith.constant 6.400000e+01 : f32
    %24 = vector.broadcast %cst_11 : f32 to vector<512x1xf32>
    %25 = arith.divf %23, %24 : vector<512x1xf32>
    %26 = vector.broadcast %25 : vector<512x1xf32> to vector<512x64xf32>
    %27 = arith.subf %19, %26 : vector<512x64xf32>
    %28 = arith.mulf %27, %27 : vector<512x64xf32>
    %cst_12 = arith.constant dense<0.000000e+00> : vector<512xf32>
    %29 = vector.multi_reduction <add>, %28, %cst_12 [1] : vector<512x64xf32> to vector<512xf32>
    %30 = vector.shape_cast %29 : vector<512xf32> to vector<512x1xf32>
    %cst_13 = arith.constant 6.400000e+01 : f32
    %31 = vector.broadcast %cst_13 : f32 to vector<512x1xf32>
    %32 = arith.divf %30, %31 : vector<512x1xf32>
    %33 = vector.broadcast %25 : vector<512x1xf32> to vector<512x64xf32>
    %34 = arith.subf %19, %33 : vector<512x64xf32>
    %cst_14 = arith.constant 9.99999974E-6 : f32
    %35 = vector.broadcast %cst_14 : f32 to vector<512x1xf32>
    %36 = arith.addf %32, %35 : vector<512x1xf32>
    %37 = math.rsqrt %36 : vector<512x1xf32>
    %38 = vector.broadcast %37 : vector<512x1xf32> to vector<512x64xf32>
    %39 = arith.mulf %34, %38 : vector<512x64xf32>
    %40 = vector.broadcast %20 : vector<1x64xf32> to vector<512x64xf32>
    %41 = arith.mulf %39, %40 : vector<512x64xf32>
    %42 = vector.broadcast %21 : vector<1x64xf32> to vector<512x64xf32>
    %43 = arith.addf %41, %42 : vector<512x64xf32>
    %cst_15 = arith.constant 0.000000e+00 : f32
    %44 = vector.broadcast %cst_15 : f32 to vector<512x64xf32>
    %45 = arith.maximumf %43, %44 : vector<512x64xf32>
    %c0_16 = arith.constant 0 : index
    %c0_17 = arith.constant 0 : index
    %46 = vector.load %arg2[%c0_16, %c0_17] : memref<1x512xi32, #tpu.memory_space<vmem>>, vector<1x512xi32>
    %47 = tpu.iota {dimensions = array<i32: 0>} : vector<16x512xi32>
    %48 = vector.broadcast %46 : vector<1x512xi32> to vector<16x512xi32>
    %49 = arith.cmpi eq, %48, %47 : vector<16x512xi32>
    %50 = arith.extui %49 : vector<16x512xi1> to vector<16x512xi32>
    %51 = arith.sitofp %50 : vector<16x512xi32> to vector<16x512xf32>
    %52 = arith.truncf %51 : vector<16x512xf32> to vector<16x512xbf16>
    %c0_18 = arith.constant 0 : index
    %c0_19 = arith.constant 0 : index
    %53 = vector.load %arg22[%c0_18, %c0_19] : memref<16x64xf32, #tpu.memory_space<vmem>>, vector<16x64xf32>
    %54 = arith.truncf %45 : vector<512x64xf32> to vector<512x64xbf16>
    %cst_20 = arith.constant dense<0.000000e+00> : vector<16x64xf32>
    %55 = tpu.matmul %52, %54, %cst_20 {dimension_numbers = #tpu.dot_dimension_numbers<[1], [0], [0], [1], [0, 0, 1, 1], [], []>} : vector<16x512xbf16>, vector<512x64xbf16>, vector<16x64xf32> -> vector<16x64xf32>
    %56 = arith.addf %53, %55 : vector<16x64xf32>
    %c0_21 = arith.constant 0 : index
    %c0_22 = arith.constant 0 : index
    %57 = vector.load %arg22[%c0_21, %c0_22] : memref<16x64xf32, #tpu.memory_space<vmem>>, vector<16x64xf32>
    tpu.vector_store %arg22[%c0_21, %c0_22], %56 {strides = array<i32>} : memref<16x64xf32, #tpu.memory_space<vmem>>, vector<16x64xf32>,
    %c0_i32_23 = arith.constant 0 : i32
    %58 = arith.cmpi eq, %arg0, %c0_i32_23 : i32
    %59 = arith.extui %58 : i1 to i32
    %c0_i32_24 = arith.constant 0 : i32
    %60 = arith.cmpi ne, %59, %c0_i32_24 : i32
    scf.if %60 {
      %c0_25 = arith.constant 0 : index
      %c0_26 = arith.constant 0 : index
      %61 = vector.load %arg22[%c0_25, %c0_26] : memref<16x64xf32, #tpu.memory_space<vmem>>, vector<16x64xf32>
      %c0_27 = arith.constant 0 : index
      %c0_28 = arith.constant 0 : index
      %62 = vector.load %arg12[%c0_27, %c0_28] : memref<64x64xf32, #tpu.memory_space<vmem>>, vector<64x64xf32>
      %cst_29 = arith.constant dense<0.000000e+00> : vector<16x64xf32>
      %63 = tpu.matmul %61, %62, %cst_29 {dimension_numbers = #tpu.dot_dimension_numbers<[1], [0], [0], [1], [0, 0, 1, 1], [], []>} : vector<16x64xf32>, vector<64x64xf32>, vector<16x64xf32> -> vector<16x64xf32>
      %c0_30 = arith.constant 0 : index
      %c0_31 = arith.constant 0 : index
      %64 = vector.load %arg5[%c0_30, %c0_31] : memref<16x1xf32, #tpu.memory_space<vmem>>, vector<16x1xf32>
      %c0_32 = arith.constant 0 : index
      %c0_33 = arith.constant 0 : index
      %65 = vector.load %arg13[%c0_32, %c0_33] : memref<1x64xf32, #tpu.memory_space<vmem>>, vector<1x64xf32>
      %66 = vector.broadcast %64 : vector<16x1xf32> to vector<16x64xf32>
      %67 = vector.broadcast %65 : vector<1x64xf32> to vector<16x64xf32>
      %68 = arith.mulf %66, %67 : vector<16x64xf32>
      %69 = arith.addf %63, %68 : vector<16x64xf32>
      %c0_34 = arith.constant 0 : index
      %c0_35 = arith.constant 0 : index
      %70 = vector.load %arg14[%c0_34, %c0_35] : memref<1x64xf32, #tpu.memory_space<vmem>>, vector<1x64xf32>
      %c0_36 = arith.constant 0 : index
      %c0_37 = arith.constant 0 : index
      %71 = vector.load %arg15[%c0_36, %c0_37] : memref<1x64xf32, #tpu.memory_space<vmem>>, vector<1x64xf32>
      %cst_38 = arith.constant dense<0.000000e+00> : vector<16xf32>
      %72 = vector.multi_reduction <add>, %69, %cst_38 [1] : vector<16x64xf32> to vector<16xf32>
      %73 = vector.shape_cast %72 : vector<16xf32> to vector<16x1xf32>
      %cst_39 = arith.constant 6.400000e+01 : f32
      %74 = vector.broadcast %cst_39 : f32 to vector<16x1xf32>
      %75 = arith.divf %73, %74 : vector<16x1xf32>
      %76 = vector.broadcast %75 : vector<16x1xf32> to vector<16x64xf32>
      %77 = arith.subf %69, %76 : vector<16x64xf32>
      %78 = arith.mulf %77, %77 : vector<16x64xf32>
      %cst_40 = arith.constant dense<0.000000e+00> : vector<16xf32>
      %79 = vector.multi_reduction <add>, %78, %cst_40 [1] : vector<16x64xf32> to vector<16xf32>
      %80 = vector.shape_cast %79 : vector<16xf32> to vector<16x1xf32>
      %cst_41 = arith.constant 6.400000e+01 : f32
      %81 = vector.broadcast %cst_41 : f32 to vector<16x1xf32>
      %82 = arith.divf %80, %81 : vector<16x1xf32>
      %83 = vector.broadcast %75 : vector<16x1xf32> to vector<16x64xf32>
      %84 = arith.subf %69, %83 : vector<16x64xf32>
      %cst_42 = arith.constant 9.99999974E-6 : f32
      %85 = vector.broadcast %cst_42 : f32 to vector<16x1xf32>
      %86 = arith.addf %82, %85 : vector<16x1xf32>
      %87 = math.rsqrt %86 : vector<16x1xf32>
      %88 = vector.broadcast %87 : vector<16x1xf32> to vector<16x64xf32>
      %89 = arith.mulf %84, %88 : vector<16x64xf32>
      %90 = vector.broadcast %70 : vector<1x64xf32> to vector<16x64xf32>
      %91 = arith.mulf %89, %90 : vector<16x64xf32>
      %92 = vector.broadcast %71 : vector<1x64xf32> to vector<16x64xf32>
      %93 = arith.addf %91, %92 : vector<16x64xf32>
      %c0_43 = arith.constant 0 : index
      %c0_44 = arith.constant 0 : index
      %94 = vector.load %arg4[%c0_43, %c0_44] : memref<16x64xf32, #tpu.memory_space<vmem>>, vector<16x64xf32>
      %95 = tpu.concatenate %93, %94 in 1 : vector<16x64xf32>, vector<16x64xf32> -> vector<16x128xf32>
      %c0_45 = arith.constant 0 : index
      %c0_46 = arith.constant 0 : index
      %96 = vector.load %arg16[%c0_45, %c0_46] : memref<128x64xf32, #tpu.memory_space<vmem>>, vector<128x64xf32>
      %cst_47 = arith.constant dense<0.000000e+00> : vector<16x64xf32>
      %97 = tpu.matmul %95, %96, %cst_47 {dimension_numbers = #tpu.dot_dimension_numbers<[1], [0], [0], [1], [0, 0, 1, 1], [], []>} : vector<16x128xf32>, vector<128x64xf32>, vector<16x64xf32> -> vector<16x64xf32>
      %c0_48 = arith.constant 0 : index
      %c0_49 = arith.constant 0 : index
      %98 = vector.load %arg17[%c0_48, %c0_49] : memref<1x64xf32, #tpu.memory_space<vmem>>, vector<1x64xf32>
      %99 = vector.broadcast %98 : vector<1x64xf32> to vector<16x64xf32>
      %100 = arith.addf %97, %99 : vector<16x64xf32>
      %cst_50 = arith.constant 0.000000e+00 : f32
      %101 = vector.broadcast %cst_50 : f32 to vector<16x64xf32>
      %102 = arith.maximumf %100, %101 : vector<16x64xf32>
      %c0_51 = arith.constant 0 : index
      %c0_52 = arith.constant 0 : index
      %103 = vector.load %arg18[%c0_51, %c0_52] : memref<64x64xf32, #tpu.memory_space<vmem>>, vector<64x64xf32>
      %cst_53 = arith.constant dense<0.000000e+00> : vector<16x64xf32>
      %104 = tpu.matmul %102, %103, %cst_53 {dimension_numbers = #tpu.dot_dimension_numbers<[1], [0], [0], [1], [0, 0, 1, 1], [], []>} : vector<16x64xf32>, vector<64x64xf32>, vector<16x64xf32> -> vector<16x64xf32>
      %c0_54 = arith.constant 0 : index
      %c0_55 = arith.constant 0 : index
      %105 = vector.load %arg19[%c0_54, %c0_55] : memref<1x64xf32, #tpu.memory_space<vmem>>, vector<1x64xf32>
      %106 = vector.broadcast %105 : vector<1x64xf32> to vector<16x64xf32>
      %107 = arith.addf %104, %106 : vector<16x64xf32>
      %c0_56 = arith.constant 0 : index
      %c0_57 = arith.constant 0 : index
      %108 = vector.load %arg20[%c0_56, %c0_57] : memref<16x64xf32, #tpu.memory_space<vmem>>, vector<16x64xf32>
      tpu.vector_store %arg20[%c0_56, %c0_57], %107 {strides = array<i32>} : memref<16x64xf32, #tpu.memory_space<vmem>>, vector<16x64xf32>,
    } else {
    }
    return
  }
  func.func @transform_0(%arg0: i32) -> (i32, i32) {
    %c0_i32 = arith.constant 0 : i32
    %c0_i32_0 = arith.constant 0 : i32
    return %arg0, %c0_i32 : i32, i32
  }
  func.func @transform_1(%arg0: i32) -> (i32, i32) {
    %c0_i32 = arith.constant 0 : i32
    %c0_i32_0 = arith.constant 0 : i32
    return %c0_i32, %arg0 : i32, i32
  }
  func.func @transform_2(%arg0: i32) -> (i32, i32) {
    %c0_i32 = arith.constant 0 : i32
    %c0_i32_0 = arith.constant 0 : i32
    %c0_i32_1 = arith.constant 0 : i32
    return %c0_i32, %c0_i32_0 : i32, i32
  }
  func.func @transform_3(%arg0: i32) -> (i32, i32) {
    %c0_i32 = arith.constant 0 : i32
    %c0_i32_0 = arith.constant 0 : i32
    %c0_i32_1 = arith.constant 0 : i32
    return %c0_i32, %c0_i32_0 : i32, i32
  }
  func.func @transform_4(%arg0: i32) -> (i32, i32) {
    %c0_i32 = arith.constant 0 : i32
    %c0_i32_0 = arith.constant 0 : i32
    %c0_i32_1 = arith.constant 0 : i32
    return %c0_i32, %c0_i32_0 : i32, i32
  }
  func.func @transform_5(%arg0: i32) -> (i32, i32) {
    %c0_i32 = arith.constant 0 : i32
    %c0_i32_0 = arith.constant 0 : i32
    %c0_i32_1 = arith.constant 0 : i32
    return %c0_i32, %c0_i32_0 : i32, i32
  }
  func.func @transform_6(%arg0: i32) -> (i32, i32) {
    %c0_i32 = arith.constant 0 : i32
    %c0_i32_0 = arith.constant 0 : i32
    %c0_i32_1 = arith.constant 0 : i32
    return %c0_i32, %c0_i32_0 : i32, i32
  }
  func.func @transform_7(%arg0: i32) -> (i32, i32) {
    %c0_i32 = arith.constant 0 : i32
    %c0_i32_0 = arith.constant 0 : i32
    %c0_i32_1 = arith.constant 0 : i32
    return %c0_i32, %c0_i32_0 : i32, i32
  }
  func.func @transform_8(%arg0: i32) -> (i32, i32) {
    %c0_i32 = arith.constant 0 : i32
    %c0_i32_0 = arith.constant 0 : i32
    %c0_i32_1 = arith.constant 0 : i32
    return %c0_i32, %c0_i32_0 : i32, i32
  }
  func.func @transform_9(%arg0: i32) -> (i32, i32) {
    %c0_i32 = arith.constant 0 : i32
    %c0_i32_0 = arith.constant 0 : i32
    %c0_i32_1 = arith.constant 0 : i32
    return %c0_i32, %c0_i32_0 : i32, i32
  }
  func.func @transform_10(%arg0: i32) -> (i32, i32) {
    %c0_i32 = arith.constant 0 : i32
    %c0_i32_0 = arith.constant 0 : i32
    %c0_i32_1 = arith.constant 0 : i32
    return %c0_i32, %c0_i32_0 : i32, i32
  }
  func.func @transform_11(%arg0: i32) -> (i32, i32) {
    %c0_i32 = arith.constant 0 : i32
    %c0_i32_0 = arith.constant 0 : i32
    %c0_i32_1 = arith.constant 0 : i32
    return %c0_i32, %c0_i32_0 : i32, i32
  }
  func.func @transform_12(%arg0: i32) -> (i32, i32) {
    %c0_i32 = arith.constant 0 : i32
    %c0_i32_0 = arith.constant 0 : i32
    %c0_i32_1 = arith.constant 0 : i32
    return %c0_i32, %c0_i32_0 : i32, i32
  }
  func.func @transform_13(%arg0: i32) -> (i32, i32) {
    %c0_i32 = arith.constant 0 : i32
    %c0_i32_0 = arith.constant 0 : i32
    %c0_i32_1 = arith.constant 0 : i32
    return %c0_i32, %c0_i32_0 : i32, i32
  }
  func.func @transform_14(%arg0: i32) -> (i32, i32) {
    %c0_i32 = arith.constant 0 : i32
    %c0_i32_0 = arith.constant 0 : i32
    %c0_i32_1 = arith.constant 0 : i32
    return %c0_i32, %c0_i32_0 : i32, i32
  }
  func.func @transform_15(%arg0: i32) -> (i32, i32) {
    %c0_i32 = arith.constant 0 : i32
    %c0_i32_0 = arith.constant 0 : i32
    %c0_i32_1 = arith.constant 0 : i32
    return %c0_i32, %c0_i32_0 : i32, i32
  }
  func.func @transform_16(%arg0: i32) -> (i32, i32) {
    %c0_i32 = arith.constant 0 : i32
    %c0_i32_0 = arith.constant 0 : i32
    %c0_i32_1 = arith.constant 0 : i32
    return %c0_i32, %c0_i32_0 : i32, i32
  }
  func.func @transform_17(%arg0: i32) -> (i32, i32) {
    %c0_i32 = arith.constant 0 : i32
    %c0_i32_0 = arith.constant 0 : i32
    %c0_i32_1 = arith.constant 0 : i32
    return %c0_i32, %c0_i32_0 : i32, i32
  }
  func.func @transform_18(%arg0: i32) -> (i32, i32) {
    %c0_i32 = arith.constant 0 : i32
    %c0_i32_0 = arith.constant 0 : i32
    %c0_i32_1 = arith.constant 0 : i32
    return %c0_i32, %c0_i32_0 : i32, i32
  }
  func.func @transform_19(%arg0: i32) -> (i32, i32) {
    %c0_i32 = arith.constant 0 : i32
    %c0_i32_0 = arith.constant 0 : i32
    %c0_i32_1 = arith.constant 0 : i32
    return %c0_i32, %c0_i32_0 : i32, i32
  }
}

module attributes {stable_mosaic.version = 11 : i64} {
  func.func @kernel(%arg0: i32, %arg1: memref<512x2xi32, #tpu.memory_space<vmem>>, %arg2: memref<1x512xi32, #tpu.memory_space<vmem>>, %arg3: memref<16x64xf32, #tpu.memory_space<vmem>>, %arg4: memref<32x64xf32, #tpu.memory_space<vmem>>, %arg5: memref<32x1xf32, #tpu.memory_space<vmem>>, %arg6: memref<1x64xf32, #tpu.memory_space<vmem>>, %arg7: memref<64x64xf32, #tpu.memory_space<vmem>>, %arg8: memref<1x64xf32, #tpu.memory_space<vmem>>, %arg9: memref<64x64xf32, #tpu.memory_space<vmem>>, %arg10: memref<1x64xf32, #tpu.memory_space<vmem>>, %arg11: memref<1x64xf32, #tpu.memory_space<vmem>>, %arg12: memref<64x64xf32, #tpu.memory_space<vmem>>, %arg13: memref<1x64xf32, #tpu.memory_space<vmem>>, %arg14: memref<1x64xf32, #tpu.memory_space<vmem>>, %arg15: memref<1x64xf32, #tpu.memory_space<vmem>>, %arg16: memref<128x64xf32, #tpu.memory_space<vmem>>, %arg17: memref<1x64xf32, #tpu.memory_space<vmem>>, %arg18: memref<64x64xf32, #tpu.memory_space<vmem>>, %arg19: memref<1x64xf32, #tpu.memory_space<vmem>>, %arg20: memref<64x64xf32, #tpu.memory_space<vmem>>, %arg21: memref<1x64xf32, #tpu.memory_space<vmem>>, %arg22: memref<1x64xf32, #tpu.memory_space<vmem>>, %arg23: memref<32x1xf32, #tpu.memory_space<vmem>>, %arg24: memref<48x64xbf16, #tpu.memory_space<vmem>>, %arg25: memref<32x64xf32, #tpu.memory_space<vmem>>) attributes {dimension_semantics = [#tpu.dimension_semantics<arbitrary>], iteration_bounds = array<i64: 1>, scalar_prefetch = 0 : i64, scratch_operands = 2 : i64, tpu.core_type = #tpu.core_type<tc>, window_params = [{transform_indices = @transform_0, window_bounds = array<i64: 512, 2>}, {transform_indices = @transform_1, window_bounds = array<i64: 1, 512>}, {pipeline_mode = #tpu.pipeline_mode<synchronous>, transform_indices = @transform_2, window_bounds = array<i64: 16, 64>}, {pipeline_mode = #tpu.pipeline_mode<synchronous>, transform_indices = @transform_3, window_bounds = array<i64: 32, 64>}, {pipeline_mode = #tpu.pipeline_mode<synchronous>, transform_indices = @transform_4, window_bounds = array<i64: 32, 1>}, {pipeline_mode = #tpu.pipeline_mode<synchronous>, transform_indices = @transform_5, window_bounds = array<i64: 1, 64>}, {pipeline_mode = #tpu.pipeline_mode<synchronous>, transform_indices = @transform_6, window_bounds = array<i64: 64, 64>}, {pipeline_mode = #tpu.pipeline_mode<synchronous>, transform_indices = @transform_7, window_bounds = array<i64: 1, 64>}, {pipeline_mode = #tpu.pipeline_mode<synchronous>, transform_indices = @transform_8, window_bounds = array<i64: 64, 64>}, {pipeline_mode = #tpu.pipeline_mode<synchronous>, transform_indices = @transform_9, window_bounds = array<i64: 1, 64>}, {pipeline_mode = #tpu.pipeline_mode<synchronous>, transform_indices = @transform_10, window_bounds = array<i64: 1, 64>}, {pipeline_mode = #tpu.pipeline_mode<synchronous>, transform_indices = @transform_11, window_bounds = array<i64: 64, 64>}, {pipeline_mode = #tpu.pipeline_mode<synchronous>, transform_indices = @transform_12, window_bounds = array<i64: 1, 64>}, {pipeline_mode = #tpu.pipeline_mode<synchronous>, transform_indices = @transform_13, window_bounds = array<i64: 1, 64>}, {pipeline_mode = #tpu.pipeline_mode<synchronous>, transform_indices = @transform_14, window_bounds = array<i64: 1, 64>}, {pipeline_mode = #tpu.pipeline_mode<synchronous>, transform_indices = @transform_15, window_bounds = array<i64: 128, 64>}, {pipeline_mode = #tpu.pipeline_mode<synchronous>, transform_indices = @transform_16, window_bounds = array<i64: 1, 64>}, {pipeline_mode = #tpu.pipeline_mode<synchronous>, transform_indices = @transform_17, window_bounds = array<i64: 64, 64>}, {pipeline_mode = #tpu.pipeline_mode<synchronous>, transform_indices = @transform_18, window_bounds = array<i64: 1, 64>}, {pipeline_mode = #tpu.pipeline_mode<synchronous>, transform_indices = @transform_19, window_bounds = array<i64: 64, 64>}, {pipeline_mode = #tpu.pipeline_mode<synchronous>, transform_indices = @transform_20, window_bounds = array<i64: 1, 64>}, {pipeline_mode = #tpu.pipeline_mode<synchronous>, transform_indices = @transform_21, window_bounds = array<i64: 1, 64>}, {pipeline_mode = #tpu.pipeline_mode<synchronous>, transform_indices = @transform_22, window_bounds = array<i64: 32, 1>}]} {
    %c0_i32 = arith.constant 0 : i32
    %0 = arith.cmpi eq, %arg0, %c0_i32 : i32
    %1 = arith.extui %0 : i1 to i32
    %c0_i32_0 = arith.constant 0 : i32
    %2 = arith.cmpi ne, %1, %c0_i32_0 : i32
    scf.if %2 {
      %c0_25 = arith.constant 0 : index
      %c0_26 = arith.constant 0 : index
      %61 = vector.load %arg3[%c0_25, %c0_26] : memref<16x64xf32, #tpu.memory_space<vmem>>, vector<16x64xf32>
      %c0_27 = arith.constant 0 : index
      %c0_28 = arith.constant 0 : index
      %62 = vector.load %arg9[%c0_27, %c0_28] : memref<64x64xf32, #tpu.memory_space<vmem>>, vector<64x64xf32>
      %cst_29 = arith.constant dense<0.000000e+00> : vector<16x64xf32>
      %63 = tpu.matmul %61, %62, %cst_29 {dimension_numbers = #tpu.dot_dimension_numbers<[1], [0], [0], [1], [0, 0, 1, 1], [], []>} : vector<16x64xf32>, vector<64x64xf32>, vector<16x64xf32> -> vector<16x64xf32>
      %64 = arith.truncf %63 : vector<16x64xf32> to vector<16x64xbf16>
      %c0_30 = arith.constant 0 : index
      %c0_31 = arith.constant 0 : index
      %65 = vector.load %arg24[%c0_30, %c0_31] : memref<48x64xbf16, #tpu.memory_space<vmem>>, vector<16x64xbf16>
      tpu.vector_store %arg24[%c0_30, %c0_31], %64 {strides = array<i32>} : memref<48x64xbf16, #tpu.memory_space<vmem>>, vector<16x64xbf16>,
      %c0_32 = arith.constant 0 : index
      %c0_33 = arith.constant 0 : index
      %66 = vector.load %arg4[%c0_32, %c0_33] : memref<32x64xf32, #tpu.memory_space<vmem>>, vector<32x64xf32>
      %c0_34 = arith.constant 0 : index
      %c0_35 = arith.constant 0 : index
      %67 = vector.load %arg7[%c0_34, %c0_35] : memref<64x64xf32, #tpu.memory_space<vmem>>, vector<64x64xf32>
      %cst_36 = arith.constant dense<0.000000e+00> : vector<32x64xf32>
      %68 = tpu.matmul %66, %67, %cst_36 {dimension_numbers = #tpu.dot_dimension_numbers<[1], [0], [0], [1], [0, 0, 1, 1], [], []>} : vector<32x64xf32>, vector<64x64xf32>, vector<32x64xf32> -> vector<32x64xf32>
      %c0_37 = arith.constant 0 : index
      %c0_38 = arith.constant 0 : index
      %69 = vector.load %arg8[%c0_37, %c0_38] : memref<1x64xf32, #tpu.memory_space<vmem>>, vector<1x64xf32>
      %70 = vector.broadcast %69 : vector<1x64xf32> to vector<32x64xf32>
      %71 = arith.addf %68, %70 : vector<32x64xf32>
      %72 = arith.truncf %71 : vector<32x64xf32> to vector<32x64xbf16>
      %c16 = arith.constant 16 : index
      %c0_39 = arith.constant 0 : index
      %73 = vector.load %arg24[%c16, %c0_39] : memref<48x64xbf16, #tpu.memory_space<vmem>>, vector<32x64xbf16>
      tpu.vector_store %arg24[%c16, %c0_39], %72 {strides = array<i32>} : memref<48x64xbf16, #tpu.memory_space<vmem>>, vector<32x64xbf16>,
      %cst_40 = arith.constant 0.000000e+00 : f32
      %74 = vector.broadcast %cst_40 : f32 to vector<32x64xf32>
      %c0_41 = arith.constant 0 : index
      %c0_42 = arith.constant 0 : index
      %75 = vector.load %arg25[%c0_41, %c0_42] : memref<32x64xf32, #tpu.memory_space<vmem>>, vector<32x64xf32>
      tpu.vector_store %arg25[%c0_41, %c0_42], %74 {strides = array<i32>} : memref<32x64xf32, #tpu.memory_space<vmem>>, vector<32x64xf32>,
    } else {
    }
    %c0 = arith.constant 0 : index
    %c0_1 = arith.constant 0 : index
    %3 = vector.load %arg1[%c0, %c0_1] : memref<512x2xi32, #tpu.memory_space<vmem>>, vector<512x2xi32>
    %4 = tpu.iota {dimensions = array<i32: 1>} : vector<512x48xi32>
    %5 = vector.extract_strided_slice %3 {offsets = [0, 0], sizes = [512, 1], strides = [1, 1]} : vector<512x2xi32> to vector<512x1xi32>
    %6 = vector.broadcast %5 : vector<512x1xi32> to vector<512x48xi32>
    %7 = arith.cmpi eq, %6, %4 : vector<512x48xi32>
    %8 = vector.extract_strided_slice %3 {offsets = [0, 1], sizes = [512, 1], strides = [1, 1]} : vector<512x2xi32> to vector<512x1xi32>
    %9 = vector.broadcast %8 : vector<512x1xi32> to vector<512x48xi32>
    %10 = arith.cmpi eq, %9, %4 : vector<512x48xi32>
    %11 = arith.ori %7, %10 : vector<512x48xi1>
    %12 = arith.extui %11 : vector<512x48xi1> to vector<512x48xi32>
    %13 = arith.sitofp %12 : vector<512x48xi32> to vector<512x48xf32>
    %14 = arith.truncf %13 : vector<512x48xf32> to vector<512x48xbf16>
    %c0_2 = arith.constant 0 : index
    %c0_3 = arith.constant 0 : index
    %15 = vector.load %arg24[%c0_2, %c0_3] : memref<48x64xbf16, #tpu.memory_space<vmem>>, vector<48x64xbf16>
    %cst = arith.constant dense<0.000000e+00> : vector<512x64xf32>
    %16 = tpu.matmul %14, %15, %cst {dimension_numbers = #tpu.dot_dimension_numbers<[1], [0], [0], [1], [0, 0, 1, 1], [], []>} : vector<512x48xbf16>, vector<48x64xbf16>, vector<512x64xf32> -> vector<512x64xf32>
    %c0_4 = arith.constant 0 : index
    %c0_5 = arith.constant 0 : index
    %17 = vector.load %arg6[%c0_4, %c0_5] : memref<1x64xf32, #tpu.memory_space<vmem>>, vector<1x64xf32>
    %18 = vector.broadcast %17 : vector<1x64xf32> to vector<512x64xf32>
    %19 = arith.addf %16, %18 : vector<512x64xf32>
    %c0_6 = arith.constant 0 : index
    %c0_7 = arith.constant 0 : index
    %20 = vector.load %arg10[%c0_6, %c0_7] : memref<1x64xf32, #tpu.memory_space<vmem>>, vector<1x64xf32>
    %c0_8 = arith.constant 0 : index
    %c0_9 = arith.constant 0 : index
    %21 = vector.load %arg11[%c0_8, %c0_9] : memref<1x64xf32, #tpu.memory_space<vmem>>, vector<1x64xf32>
    %cst_10 = arith.constant dense<0.000000e+00> : vector<512xf32>
    %22 = vector.multi_reduction <add>, %19, %cst_10 [1] : vector<512x64xf32> to vector<512xf32>
    %23 = vector.shape_cast %22 : vector<512xf32> to vector<512x1xf32>
    %cst_11 = arith.constant 6.400000e+01 : f32
    %24 = vector.broadcast %cst_11 : f32 to vector<512x1xf32>
    %25 = arith.divf %23, %24 : vector<512x1xf32>
    %26 = vector.broadcast %25 : vector<512x1xf32> to vector<512x64xf32>
    %27 = arith.subf %19, %26 : vector<512x64xf32>
    %28 = arith.mulf %27, %27 : vector<512x64xf32>
    %cst_12 = arith.constant dense<0.000000e+00> : vector<512xf32>
    %29 = vector.multi_reduction <add>, %28, %cst_12 [1] : vector<512x64xf32> to vector<512xf32>
    %30 = vector.shape_cast %29 : vector<512xf32> to vector<512x1xf32>
    %cst_13 = arith.constant 6.400000e+01 : f32
    %31 = vector.broadcast %cst_13 : f32 to vector<512x1xf32>
    %32 = arith.divf %30, %31 : vector<512x1xf32>
    %33 = vector.broadcast %25 : vector<512x1xf32> to vector<512x64xf32>
    %34 = arith.subf %19, %33 : vector<512x64xf32>
    %cst_14 = arith.constant 9.99999974E-6 : f32
    %35 = vector.broadcast %cst_14 : f32 to vector<512x1xf32>
    %36 = arith.addf %32, %35 : vector<512x1xf32>
    %37 = math.rsqrt %36 : vector<512x1xf32>
    %38 = vector.broadcast %37 : vector<512x1xf32> to vector<512x64xf32>
    %39 = arith.mulf %34, %38 : vector<512x64xf32>
    %40 = vector.broadcast %20 : vector<1x64xf32> to vector<512x64xf32>
    %41 = arith.mulf %39, %40 : vector<512x64xf32>
    %42 = vector.broadcast %21 : vector<1x64xf32> to vector<512x64xf32>
    %43 = arith.addf %41, %42 : vector<512x64xf32>
    %cst_15 = arith.constant 0.000000e+00 : f32
    %44 = vector.broadcast %cst_15 : f32 to vector<512x64xf32>
    %45 = arith.maximumf %43, %44 : vector<512x64xf32>
    %c0_16 = arith.constant 0 : index
    %c0_17 = arith.constant 0 : index
    %46 = vector.load %arg2[%c0_16, %c0_17] : memref<1x512xi32, #tpu.memory_space<vmem>>, vector<1x512xi32>
    %47 = tpu.iota {dimensions = array<i32: 0>} : vector<32x512xi32>
    %48 = vector.broadcast %46 : vector<1x512xi32> to vector<32x512xi32>
    %49 = arith.cmpi eq, %48, %47 : vector<32x512xi32>
    %50 = arith.extui %49 : vector<32x512xi1> to vector<32x512xi32>
    %51 = arith.sitofp %50 : vector<32x512xi32> to vector<32x512xf32>
    %52 = arith.truncf %51 : vector<32x512xf32> to vector<32x512xbf16>
    %c0_18 = arith.constant 0 : index
    %c0_19 = arith.constant 0 : index
    %53 = vector.load %arg25[%c0_18, %c0_19] : memref<32x64xf32, #tpu.memory_space<vmem>>, vector<32x64xf32>
    %54 = arith.truncf %45 : vector<512x64xf32> to vector<512x64xbf16>
    %cst_20 = arith.constant dense<0.000000e+00> : vector<32x64xf32>
    %55 = tpu.matmul %52, %54, %cst_20 {dimension_numbers = #tpu.dot_dimension_numbers<[1], [0], [0], [1], [0, 0, 1, 1], [], []>} : vector<32x512xbf16>, vector<512x64xbf16>, vector<32x64xf32> -> vector<32x64xf32>
    %56 = arith.addf %53, %55 : vector<32x64xf32>
    %c0_21 = arith.constant 0 : index
    %c0_22 = arith.constant 0 : index
    %57 = vector.load %arg25[%c0_21, %c0_22] : memref<32x64xf32, #tpu.memory_space<vmem>>, vector<32x64xf32>
    tpu.vector_store %arg25[%c0_21, %c0_22], %56 {strides = array<i32>} : memref<32x64xf32, #tpu.memory_space<vmem>>, vector<32x64xf32>,
    %c0_i32_23 = arith.constant 0 : i32
    %58 = arith.cmpi eq, %arg0, %c0_i32_23 : i32
    %59 = arith.extui %58 : i1 to i32
    %c0_i32_24 = arith.constant 0 : i32
    %60 = arith.cmpi ne, %59, %c0_i32_24 : i32
    scf.if %60 {
      %c0_25 = arith.constant 0 : index
      %c0_26 = arith.constant 0 : index
      %61 = vector.load %arg25[%c0_25, %c0_26] : memref<32x64xf32, #tpu.memory_space<vmem>>, vector<32x64xf32>
      %c0_27 = arith.constant 0 : index
      %c0_28 = arith.constant 0 : index
      %62 = vector.load %arg12[%c0_27, %c0_28] : memref<64x64xf32, #tpu.memory_space<vmem>>, vector<64x64xf32>
      %cst_29 = arith.constant dense<0.000000e+00> : vector<32x64xf32>
      %63 = tpu.matmul %61, %62, %cst_29 {dimension_numbers = #tpu.dot_dimension_numbers<[1], [0], [0], [1], [0, 0, 1, 1], [], []>} : vector<32x64xf32>, vector<64x64xf32>, vector<32x64xf32> -> vector<32x64xf32>
      %c0_30 = arith.constant 0 : index
      %c0_31 = arith.constant 0 : index
      %64 = vector.load %arg5[%c0_30, %c0_31] : memref<32x1xf32, #tpu.memory_space<vmem>>, vector<32x1xf32>
      %c0_32 = arith.constant 0 : index
      %c0_33 = arith.constant 0 : index
      %65 = vector.load %arg13[%c0_32, %c0_33] : memref<1x64xf32, #tpu.memory_space<vmem>>, vector<1x64xf32>
      %66 = vector.broadcast %64 : vector<32x1xf32> to vector<32x64xf32>
      %67 = vector.broadcast %65 : vector<1x64xf32> to vector<32x64xf32>
      %68 = arith.mulf %66, %67 : vector<32x64xf32>
      %69 = arith.addf %63, %68 : vector<32x64xf32>
      %c0_34 = arith.constant 0 : index
      %c0_35 = arith.constant 0 : index
      %70 = vector.load %arg14[%c0_34, %c0_35] : memref<1x64xf32, #tpu.memory_space<vmem>>, vector<1x64xf32>
      %c0_36 = arith.constant 0 : index
      %c0_37 = arith.constant 0 : index
      %71 = vector.load %arg15[%c0_36, %c0_37] : memref<1x64xf32, #tpu.memory_space<vmem>>, vector<1x64xf32>
      %cst_38 = arith.constant dense<0.000000e+00> : vector<32xf32>
      %72 = vector.multi_reduction <add>, %69, %cst_38 [1] : vector<32x64xf32> to vector<32xf32>
      %73 = vector.shape_cast %72 : vector<32xf32> to vector<32x1xf32>
      %cst_39 = arith.constant 6.400000e+01 : f32
      %74 = vector.broadcast %cst_39 : f32 to vector<32x1xf32>
      %75 = arith.divf %73, %74 : vector<32x1xf32>
      %76 = vector.broadcast %75 : vector<32x1xf32> to vector<32x64xf32>
      %77 = arith.subf %69, %76 : vector<32x64xf32>
      %78 = arith.mulf %77, %77 : vector<32x64xf32>
      %cst_40 = arith.constant dense<0.000000e+00> : vector<32xf32>
      %79 = vector.multi_reduction <add>, %78, %cst_40 [1] : vector<32x64xf32> to vector<32xf32>
      %80 = vector.shape_cast %79 : vector<32xf32> to vector<32x1xf32>
      %cst_41 = arith.constant 6.400000e+01 : f32
      %81 = vector.broadcast %cst_41 : f32 to vector<32x1xf32>
      %82 = arith.divf %80, %81 : vector<32x1xf32>
      %83 = vector.broadcast %75 : vector<32x1xf32> to vector<32x64xf32>
      %84 = arith.subf %69, %83 : vector<32x64xf32>
      %cst_42 = arith.constant 9.99999974E-6 : f32
      %85 = vector.broadcast %cst_42 : f32 to vector<32x1xf32>
      %86 = arith.addf %82, %85 : vector<32x1xf32>
      %87 = math.rsqrt %86 : vector<32x1xf32>
      %88 = vector.broadcast %87 : vector<32x1xf32> to vector<32x64xf32>
      %89 = arith.mulf %84, %88 : vector<32x64xf32>
      %90 = vector.broadcast %70 : vector<1x64xf32> to vector<32x64xf32>
      %91 = arith.mulf %89, %90 : vector<32x64xf32>
      %92 = vector.broadcast %71 : vector<1x64xf32> to vector<32x64xf32>
      %93 = arith.addf %91, %92 : vector<32x64xf32>
      %c0_43 = arith.constant 0 : index
      %c0_44 = arith.constant 0 : index
      %94 = vector.load %arg4[%c0_43, %c0_44] : memref<32x64xf32, #tpu.memory_space<vmem>>, vector<32x64xf32>
      %95 = tpu.concatenate %93, %94 in 1 : vector<32x64xf32>, vector<32x64xf32> -> vector<32x128xf32>
      %c0_45 = arith.constant 0 : index
      %c0_46 = arith.constant 0 : index
      %96 = vector.load %arg16[%c0_45, %c0_46] : memref<128x64xf32, #tpu.memory_space<vmem>>, vector<128x64xf32>
      %cst_47 = arith.constant dense<0.000000e+00> : vector<32x64xf32>
      %97 = tpu.matmul %95, %96, %cst_47 {dimension_numbers = #tpu.dot_dimension_numbers<[1], [0], [0], [1], [0, 0, 1, 1], [], []>} : vector<32x128xf32>, vector<128x64xf32>, vector<32x64xf32> -> vector<32x64xf32>
      %c0_48 = arith.constant 0 : index
      %c0_49 = arith.constant 0 : index
      %98 = vector.load %arg17[%c0_48, %c0_49] : memref<1x64xf32, #tpu.memory_space<vmem>>, vector<1x64xf32>
      %99 = vector.broadcast %98 : vector<1x64xf32> to vector<32x64xf32>
      %100 = arith.addf %97, %99 : vector<32x64xf32>
      %cst_50 = arith.constant 0.000000e+00 : f32
      %101 = vector.broadcast %cst_50 : f32 to vector<32x64xf32>
      %102 = arith.maximumf %100, %101 : vector<32x64xf32>
      %c0_51 = arith.constant 0 : index
      %c0_52 = arith.constant 0 : index
      %103 = vector.load %arg18[%c0_51, %c0_52] : memref<64x64xf32, #tpu.memory_space<vmem>>, vector<64x64xf32>
      %cst_53 = arith.constant dense<0.000000e+00> : vector<32x64xf32>
      %104 = tpu.matmul %102, %103, %cst_53 {dimension_numbers = #tpu.dot_dimension_numbers<[1], [0], [0], [1], [0, 0, 1, 1], [], []>} : vector<32x64xf32>, vector<64x64xf32>, vector<32x64xf32> -> vector<32x64xf32>
      %c0_54 = arith.constant 0 : index
      %c0_55 = arith.constant 0 : index
      %105 = vector.load %arg19[%c0_54, %c0_55] : memref<1x64xf32, #tpu.memory_space<vmem>>, vector<1x64xf32>
      %106 = vector.broadcast %105 : vector<1x64xf32> to vector<32x64xf32>
      %107 = arith.addf %104, %106 : vector<32x64xf32>
      %c0_56 = arith.constant 0 : index
      %c0_57 = arith.constant 0 : index
      %108 = vector.load %arg20[%c0_56, %c0_57] : memref<64x64xf32, #tpu.memory_space<vmem>>, vector<64x64xf32>
      %cst_58 = arith.constant dense<0.000000e+00> : vector<32x64xf32>
      %109 = tpu.matmul %107, %108, %cst_58 {dimension_numbers = #tpu.dot_dimension_numbers<[1], [0], [0], [1], [0, 0, 1, 1], [], []>} : vector<32x64xf32>, vector<64x64xf32>, vector<32x64xf32> -> vector<32x64xf32>
      %c0_59 = arith.constant 0 : index
      %c0_60 = arith.constant 0 : index
      %110 = vector.load %arg21[%c0_59, %c0_60] : memref<1x64xf32, #tpu.memory_space<vmem>>, vector<1x64xf32>
      %111 = vector.broadcast %110 : vector<1x64xf32> to vector<32x64xf32>
      %112 = arith.addf %109, %111 : vector<32x64xf32>
      %cst_61 = arith.constant 0.000000e+00 : f32
      %113 = vector.broadcast %cst_61 : f32 to vector<32x64xf32>
      %114 = arith.maximumf %112, %113 : vector<32x64xf32>
      %c0_62 = arith.constant 0 : index
      %c0_63 = arith.constant 0 : index
      %115 = vector.load %arg22[%c0_62, %c0_63] : memref<1x64xf32, #tpu.memory_space<vmem>>, vector<1x64xf32>
      %116 = vector.broadcast %115 : vector<1x64xf32> to vector<32x64xf32>
      %117 = arith.mulf %114, %116 : vector<32x64xf32>
      %cst_64 = arith.constant dense<0.000000e+00> : vector<32xf32>
      %118 = vector.multi_reduction <add>, %117, %cst_64 [1] : vector<32x64xf32> to vector<32xf32>
      %119 = vector.shape_cast %118 : vector<32xf32> to vector<32x1xf32>
      %c0_65 = arith.constant 0 : index
      %c0_66 = arith.constant 0 : index
      %120 = vector.load %arg23[%c0_65, %c0_66] : memref<32x1xf32, #tpu.memory_space<vmem>>, vector<32x1xf32>
      tpu.vector_store %arg23[%c0_65, %c0_66], %119 {strides = array<i32>} : memref<32x1xf32, #tpu.memory_space<vmem>>, vector<32x1xf32>,
    } else {
    }
    return
  }
  func.func @transform_0(%arg0: i32) -> (i32, i32) {
    %c0_i32 = arith.constant 0 : i32
    %c0_i32_0 = arith.constant 0 : i32
    return %arg0, %c0_i32 : i32, i32
  }
  func.func @transform_1(%arg0: i32) -> (i32, i32) {
    %c0_i32 = arith.constant 0 : i32
    %c0_i32_0 = arith.constant 0 : i32
    return %c0_i32, %arg0 : i32, i32
  }
  func.func @transform_2(%arg0: i32) -> (i32, i32) {
    %c0_i32 = arith.constant 0 : i32
    %c0_i32_0 = arith.constant 0 : i32
    %c0_i32_1 = arith.constant 0 : i32
    return %c0_i32, %c0_i32_0 : i32, i32
  }
  func.func @transform_3(%arg0: i32) -> (i32, i32) {
    %c0_i32 = arith.constant 0 : i32
    %c0_i32_0 = arith.constant 0 : i32
    %c0_i32_1 = arith.constant 0 : i32
    return %c0_i32, %c0_i32_0 : i32, i32
  }
  func.func @transform_4(%arg0: i32) -> (i32, i32) {
    %c0_i32 = arith.constant 0 : i32
    %c0_i32_0 = arith.constant 0 : i32
    %c0_i32_1 = arith.constant 0 : i32
    return %c0_i32, %c0_i32_0 : i32, i32
  }
  func.func @transform_5(%arg0: i32) -> (i32, i32) {
    %c0_i32 = arith.constant 0 : i32
    %c0_i32_0 = arith.constant 0 : i32
    %c0_i32_1 = arith.constant 0 : i32
    return %c0_i32, %c0_i32_0 : i32, i32
  }
  func.func @transform_6(%arg0: i32) -> (i32, i32) {
    %c0_i32 = arith.constant 0 : i32
    %c0_i32_0 = arith.constant 0 : i32
    %c0_i32_1 = arith.constant 0 : i32
    return %c0_i32, %c0_i32_0 : i32, i32
  }
  func.func @transform_7(%arg0: i32) -> (i32, i32) {
    %c0_i32 = arith.constant 0 : i32
    %c0_i32_0 = arith.constant 0 : i32
    %c0_i32_1 = arith.constant 0 : i32
    return %c0_i32, %c0_i32_0 : i32, i32
  }
  func.func @transform_8(%arg0: i32) -> (i32, i32) {
    %c0_i32 = arith.constant 0 : i32
    %c0_i32_0 = arith.constant 0 : i32
    %c0_i32_1 = arith.constant 0 : i32
    return %c0_i32, %c0_i32_0 : i32, i32
  }
  func.func @transform_9(%arg0: i32) -> (i32, i32) {
    %c0_i32 = arith.constant 0 : i32
    %c0_i32_0 = arith.constant 0 : i32
    %c0_i32_1 = arith.constant 0 : i32
    return %c0_i32, %c0_i32_0 : i32, i32
  }
  func.func @transform_10(%arg0: i32) -> (i32, i32) {
    %c0_i32 = arith.constant 0 : i32
    %c0_i32_0 = arith.constant 0 : i32
    %c0_i32_1 = arith.constant 0 : i32
    return %c0_i32, %c0_i32_0 : i32, i32
  }
  func.func @transform_11(%arg0: i32) -> (i32, i32) {
    %c0_i32 = arith.constant 0 : i32
    %c0_i32_0 = arith.constant 0 : i32
    %c0_i32_1 = arith.constant 0 : i32
    return %c0_i32, %c0_i32_0 : i32, i32
  }
  func.func @transform_12(%arg0: i32) -> (i32, i32) {
    %c0_i32 = arith.constant 0 : i32
    %c0_i32_0 = arith.constant 0 : i32
    %c0_i32_1 = arith.constant 0 : i32
    return %c0_i32, %c0_i32_0 : i32, i32
  }
  func.func @transform_13(%arg0: i32) -> (i32, i32) {
    %c0_i32 = arith.constant 0 : i32
    %c0_i32_0 = arith.constant 0 : i32
    %c0_i32_1 = arith.constant 0 : i32
    return %c0_i32, %c0_i32_0 : i32, i32
  }
  func.func @transform_14(%arg0: i32) -> (i32, i32) {
    %c0_i32 = arith.constant 0 : i32
    %c0_i32_0 = arith.constant 0 : i32
    %c0_i32_1 = arith.constant 0 : i32
    return %c0_i32, %c0_i32_0 : i32, i32
  }
  func.func @transform_15(%arg0: i32) -> (i32, i32) {
    %c0_i32 = arith.constant 0 : i32
    %c0_i32_0 = arith.constant 0 : i32
    %c0_i32_1 = arith.constant 0 : i32
    return %c0_i32, %c0_i32_0 : i32, i32
  }
  func.func @transform_16(%arg0: i32) -> (i32, i32) {
    %c0_i32 = arith.constant 0 : i32
    %c0_i32_0 = arith.constant 0 : i32
    %c0_i32_1 = arith.constant 0 : i32
    return %c0_i32, %c0_i32_0 : i32, i32
  }
  func.func @transform_17(%arg0: i32) -> (i32, i32) {
    %c0_i32 = arith.constant 0 : i32
    %c0_i32_0 = arith.constant 0 : i32
    %c0_i32_1 = arith.constant 0 : i32
    return %c0_i32, %c0_i32_0 : i32, i32
  }
  func.func @transform_18(%arg0: i32) -> (i32, i32) {
    %c0_i32 = arith.constant 0 : i32
    %c0_i32_0 = arith.constant 0 : i32
    %c0_i32_1 = arith.constant 0 : i32
    return %c0_i32, %c0_i32_0 : i32, i32
  }
  func.func @transform_19(%arg0: i32) -> (i32, i32) {
    %c0_i32 = arith.constant 0 : i32
    %c0_i32_0 = arith.constant 0 : i32
    %c0_i32_1 = arith.constant 0 : i32
    return %c0_i32, %c0_i32_0 : i32, i32
  }
  func.func @transform_20(%arg0: i32) -> (i32, i32) {
    %c0_i32 = arith.constant 0 : i32
    %c0_i32_0 = arith.constant 0 : i32
    %c0_i32_1 = arith.constant 0 : i32
    return %c0_i32, %c0_i32_0 : i32, i32
  }
  func.func @transform_21(%arg0: i32) -> (i32, i32) {
    %c0_i32 = arith.constant 0 : i32
    %c0_i32_0 = arith.constant 0 : i32
    %c0_i32_1 = arith.constant 0 : i32
    return %c0_i32, %c0_i32_0 : i32, i32
  }
  func.func @transform_22(%arg0: i32) -> (i32, i32) {
    %c0_i32 = arith.constant 0 : i32
    %c0_i32_0 = arith.constant 0 : i32
    %c0_i32_1 = arith.constant 0 : i32
    return %c0_i32, %c0_i32_0 : i32, i32
  }
}

</mosaic_0001>

<bundles_post_ra>
// kernel: bipartite_gcn_forward.5
= control target key start
LH: loop header
LB: loop body
LE: loop exit
PB: predicated region body
PF: predicated region fallthrough
CT: control target
= control target key end

     0   :  { %vm32_vm0 = vcmask 154624   ;;  %vm128_vm1 = vcmask 1042432   ;;  %vm236_vm2 = vcmask 523264   ;;  %s564_s0 = inlined_call_operand.vmem [shape: f32[32,19], index: 0, kind: input, shape index: {}]   ;;  %s565_s3 = inlined_call_operand.vmem [shape: f32[19,64], index: 3, kind: input, shape index: {}]   ;;  %s566_s5 = inlined_call_operand.vmem [shape: f32[64,64], index: 5, kind: input, shape index: {}]   ;;  %s567_s1 = inlined_call_operand.vmem [shape: f32[1,19], index: 1, kind: input, shape index: {}]   ;;  %s568_s2 = inlined_call_operand.vmem [shape: f32[1,19], index: 2, kind: input, shape index: {}]   ;;  %s569_s4 = inlined_call_operand.vmem [shape: f32[1,64], index: 4, kind: input, shape index: {}]   ;;  %s570_s6 = inlined_call_operand.vmem [shape: f32[1,64], index: 6, kind: input, shape index: {}]   ;;  %s571_s7 = inlined_call_operand.vmem [shape: f32[32,64], index: 7, kind: output, shape index: {}]  }
   0x1   :  { %v26_v0 = vld [vmem:[%s564_s0] sm:$0xff]  ;;  %v28_v1 = vld [vmem:[%s564_s0 + $0x10] sm:$0xff]  ;;  %v27_v2 = vld [vmem:[%s564_s0 + $0x8] sm:$0xff] }
   0x2   :  { %v33_v3 = vsel %vm32_vm0, %v26_v0, 0.0  ;;  %v39_v4 = vsel %vm32_vm0, %v28_v1, 0.0  ;;  %v29_v5 = vld [vmem:[%s564_s0 + $0x18] sm:$0xff]  ;;  %v36_v6 = vsel %vm32_vm0, %v27_v2, 0.0  ;;  %v108_v28 = vld [vmem:[%s565_s3 + $0x10] sm:$0x7] }
   0x3   :  { %34 = vadd.xlane.f32.xlu0 %v33_v3  ;;  %40 = vadd.xlane.f32.xlu1 %v39_v4  ;;  %v42_v7 = vsel %vm32_vm0, %v29_v5, 0.0  ;;  %v107_v29 = vld [vmem:[%s565_s3 + $0x8] sm:$0xff]  ;;  %v106_v30 = vld [vmem:[%s565_s3] sm:$0xff]  ;;  %v228_v31 = vld [vmem:[%s566_s5 + $0x38] sm:$0xff] }
   0x4   :  { %378 = vmatprep.subr.msk.mxu0 %vm128_vm1, %v108_v28  ;;  %v227_v32 = vld [vmem:[%s566_s5 + $0x30] sm:$0xff]  ;;  %390 = vmatprep.subr.mxu1 %v228_v31  ;;  %v226_v33 = vld [vmem:[%s566_s5 + $0x28] sm:$0xff]  ;;  %v225_v34 = vld [vmem:[%s566_s5 + $0x20] sm:$0xff] }
   0x5   :  { %379 = vmatpush3.msk.msra.mxu0 %vm128_vm1, %v108_v28  ;;  %391 = vmatpush3.msra.mxu1 %v228_v31  ;;  %v346_v48 = vld [vmem:[%s567_s1] ss:$0 sm:$0xff]  ;;  %v222_v3 = vld [vmem:[%s566_s5 + $0x8] sm:$0xff] }
   0x6   :  { %380 = vmatprep.subr.mxu0 %v107_v29  ;;  %392 = vmatprep.subr.mxu1 %v227_v32  ;;  %v347_v50 = vld [vmem:[%s568_s2] ss:$0 sm:$0xff] }
   0x7   :  { %37 = vadd.xlane.f32.xlu0 %v36_v6  ;;  %43 = vadd.xlane.f32.xlu1 %v42_v7  ;;  %v221_v4 = vld [vmem:[%s566_s5] sm:$0xff] }
   0x8   :  { %381 = vmatpush3.msra.mxu0 %v107_v29  ;;  %393 = vmatpush3.msra.mxu1 %v227_v32 }
   0x9   :  { %382 = vmatprep.subr.mxu0 %v106_v30  ;;  %394 = vmatprep.subr.mxu1 %v226_v33 }
   0xa   :  { %383 = vmatpush3.msra.mxu0 %v106_v30  ;;  %395 = vmatpush3.msra.mxu1 %v226_v33 }
   0xb   :  { %396 = vmatprep.subr.mxu1 %v225_v34 }
   0xc   :  { %397 = vmatpush3.msra.mxu1 %v225_v34 }
  0x8c   :  { %v35_v8 = vpop.xlane.xlu0 %34  ;;  %v41_v9 = vpop.xlane.xlu1 %40 }
  0x8d   :  { %v46_v10 = vmul.f32 0.05263158, %v35_v8  ;;  %v48_v11 = vmul.f32 0.05263158, %v41_v9 }
  0x8f   :  { %v476_v12 = vsub.f32 %v26_v0, %v46_v10  ;;  %v478_v13 = vsub.f32 %v28_v1, %v48_v11  ;;  %v224_v1 = vld [vmem:[%s566_s5 + $0x18] sm:$0xff] }
  0x90   :  { %v38_v14 = vpop.xlane.xlu0 %37  ;;  %v44_v15 = vpop.xlane.xlu1 %43  ;;  %398 = vmatprep.subr.mxu1 %v224_v1 }
  0x91   :  { %v47_v16 = vmul.f32 0.05263158, %v38_v14  ;;  %v49_v17 = vmul.f32 0.05263158, %v44_v15  ;;  %v54_v18 = vmul.f32 %v476_v12, %v476_v12  ;;  %v56_v19 = vmul.f32 %v478_v13, %v478_v13  ;;  %399 = vmatpush3.msra.mxu1 %v224_v1 }
  0x93   :  { %v51_v20 = vsub.f32 %v27_v2, %v47_v16  ;;  %v484_v21 = vsub.f32 %v29_v5, %v49_v17  ;;  %v58_v22 = vsel %vm32_vm0, %v54_v18, 0.0  ;;  %v64_v23 = vsel %vm32_vm0, %v56_v19, 0.0  ;;  %v223_v2 = vld [vmem:[%s566_s5 + $0x10] sm:$0xff]  ;;  %v348_v5 = vld [vmem:[%s569_s4] ss:$0 sm:$0xff] }
  0x94   :  { %59 = vadd.xlane.f32.xlu0 %v58_v22  ;;  %400 = vmatprep.subr.mxu1 %v223_v2  ;;  %v354_v18 = vld [vmem:[%s570_s6] ss:$0 sm:$0xff] }
  0x95   :  { %v55_v24 = vmul.f32 %v51_v20, %v51_v20  ;;  %v57_v25 = vmul.f32 %v484_v21, %v484_v21  ;;  %401 = vmatpush3.msra.mxu1 %v223_v2 }
  0x96   :  { %402 = vmatprep.subr.mxu1 %v222_v3 }
  0x97   :  { %v61_v26 = vsel %vm32_vm0, %v55_v24, 0.0  ;;  %v67_v27 = vsel %vm32_vm0, %v57_v25, 0.0  ;;  %403 = vmatpush3.msra.mxu1 %v222_v3 }
  0x98   :  { %65 = vadd.xlane.f32.xlu0 %v64_v23  ;;  %62 = vadd.xlane.f32.xlu1 %v61_v26 }
  0x99   :  { %404 = vmatprep.subr.mxu1 %v221_v4 }
  0x9a   :  { %405 = vmatpush3.msra.mxu1 %v221_v4 }
  0x9c   :  { %68 = vadd.xlane.f32.xlu1 %v67_v27 }
 0x11d   :  { %v60_v35 = vpop.xlane.xlu0 %59 }
 0x11e   :  { %v70_v36 = vmul.f32 0.05263158, %v60_v35 }
 0x120   :  { %v74_v37 = vadd.f32 1e-05, %v70_v36 }
 0x121   :  { %v63_v38 = vpop.xlane.xlu1 %62  ;;  %v66_v39 = vpop.xlane.xlu0 %65 }
 0x122   :  { %412 = vrsqrt.f32 %v74_v37  ;;  %v71_v40 = vmul.f32 0.05263158, %v63_v38  ;;  %v72_v41 = vmul.f32 0.05263158, %v66_v39 }
 0x124   :  { %v75_v42 = vadd.f32 1e-05, %v71_v40  ;;  %v76_v43 = vadd.f32 1e-05, %v72_v41 }
 0x125   :  { %v69_v44 = vpop.xlane.xlu1 %68 }
 0x126   :  { %414 = vrsqrt.f32 %v75_v42  ;;  %v73_v45 = vmul.f32 0.05263158, %v69_v44 }
 0x127   :  { %416 = vrsqrt.f32 %v76_v43 }
 0x128   :  { %v77_v46 = vadd.f32 1e-05, %v73_v45 }
 0x12a   :  { %418 = vrsqrt.f32 %v77_v46 }
 0x12f   :  { %v413_v47 = vpop.eup %412 }
 0x130   :  { %v82_v49 = vmul.f32 %v413_v47, %v476_v12 }
 0x132   :  { %v92_v51 = vmul.f32 %v346_v48, %v82_v49 }
 0x133   :  { %v415_v52 = vpop.eup %414 }
 0x134   :  { %v417_v53 = vpop.eup %416  ;;  %v102_v54 = vadd.f32 %v347_v50, %v92_v51  ;;  %v83_v55 = vmul.f32 %v415_v52, %v51_v20 }
 0x135   :  { %v84_v56 = vmul.f32 %v417_v53, %v478_v13 }
 0x136   :  { %384 = vmatprep.mubr.msk.f32.mxu0 %vm32_vm0, %v102_v54  ;;  %v93_v57 = vmul.f32 %v346_v48, %v83_v55 }
 0x137   :  { %v419_v58 = vpop.eup %418  ;;  %v94_v59 = vmul.f32 %v346_v48, %v84_v56 }
 0x138   :  { %v103_v60 = vadd.f32 %v347_v50, %v93_v57  ;;  %v85_v61 = vmul.f32 %v419_v58, %v484_v21 }
 0x139   :  { %v104_v62 = vadd.f32 %v347_v50, %v94_v59 }
 0x13a   :  { %385 = vmatmul.mubr.msk.f32.vlgmr.msra.gmra.mxu0 %vm32_vm0, %v103_v60  ;;  %v95_v63 = vmul.f32 %v346_v48, %v85_v61 }
 0x13b   :  { %387 = vmatprep.mubr.msk.f32.mxu0 %vm32_vm0, %v104_v62 }
 0x13c   :  { %v105_v0 = vadd.f32 %v347_v50, %v95_v63 }
 0x13e   :  { %388 = vmatmul.mubr.msk.f32.gmra.mxu0 %vm32_vm0, %v105_v0 }
 0x1fa   :  { %v386_v6 = vpop.f32.mrf.mxu0 }
 0x1fb   :  { %v204_v7 = vadd.f32 %v386_v6, %v348_v5 }
 0x1fc   :  { %v198_v8 = vpop.f32.mrf.mxu0 }
 0x1fd   :  { %v199_v9 = vadd.f32 %v348_v5, %v198_v8  ;;  %v218_v12 = vmax.f32 %v204_v7, 0.0 }
 0x1fe   :  { %v389_v10 = vpop.f32.mrf.mxu0 }
 0x1ff   :  { %v217_v11 = vmax.f32 %v199_v9, 0.0  ;;  %v214_v13 = vadd.f32 %v389_v10, %v348_v5 }
 0x200   :  { %v208_v14 = vpop.f32.mrf.mxu0 }
 0x201   :  { %v209_v15 = vadd.f32 %v348_v5, %v208_v14  ;;  %406 = vmatprep.mubr.msk.f32.mxu1 %vm236_vm2, %v217_v11  ;;  %v220_v17 = vmax.f32 %v214_v13, 0.0 }
 0x202   :  { %407 = vmatmul.mubr.msk.f32.vlgmr.msra.gmra.mxu1 %vm236_vm2, %v218_v12 }
 0x203   :  { %v219_v16 = vmax.f32 %v209_v15, 0.0 }
 0x205   :  { %409 = vmatprep.mubr.msk.f32.mxu1 %vm236_vm2, %v219_v16 }
 0x206   :  { %410 = vmatmul.mubr.msk.f32.gmra.mxu1 %vm236_vm2, %v220_v17 }
 0x2c2   :  { %v408_v19 = vpop.f32.mrf.mxu1 }
 0x2c3   :  { %v321_v20 = vadd.f32 %v408_v19, %v354_v18 }
 0x2c4   :  { %v315_v21 = vpop.f32.mrf.mxu1 }
 0x2c5   :  { %v335_v22 = vmax.f32 %v321_v20, 0.0  ;;  %v316_v23 = vadd.f32 %v354_v18, %v315_v21 }
 0x2c6   :  { %v411_v24 = vpop.f32.mrf.mxu1 }
 0x2c7   :  { %339 = vst.msk [vmem:[%s571_s7 + $0x8] sm:$0xff] %vm236_vm2, %v335_v22  ;;  %v334_v25 = vmax.f32 %v316_v23, 0.0  ;;  %v331_v26 = vadd.f32 %v411_v24, %v354_v18 }
 0x2c8   :  { %v325_v27 = vpop.f32.mrf.mxu1 }
 0x2c9   :  { %338 = vst.msk [vmem:[%s571_s7] sm:$0xff] %vm236_vm2, %v334_v25  ;;  %v337_v28 = vmax.f32 %v331_v26, 0.0  ;;  %v326_v29 = vadd.f32 %v354_v18, %v325_v27 }
 0x2cb   :  { %341 = vst.msk [vmem:[%s571_s7 + $0x18] sm:$0xff] %vm236_vm2, %v337_v28  ;;  %v336_v30 = vmax.f32 %v326_v29, 0.0 }
 0x2cd   :  { %340 = vst.msk [vmem:[%s571_s7 + $0x10] sm:$0xff] %vm236_vm2, %v336_v30 }

// kernel: bipartite_gcn_forward.4
= control target key start
LH: loop header
LB: loop body
LE: loop exit
PB: predicated region body
PF: predicated region fallthrough
CT: control target
= control target key end

     0   :  { %vm30_vm0 = vcmask 39936   ;;  %vm88_vm1 = vcmask 1044480   ;;  %vm184_vm2 = vcmask 523264   ;;  %s421_s0 = inlined_call_operand.vmem [shape: f32[16,5], index: 0, kind: input, shape index: {}]   ;;  %s422_s3 = inlined_call_operand.vmem [shape: f32[5,64], index: 3, kind: input, shape index: {}]   ;;  %s423_s5 = inlined_call_operand.vmem [shape: f32[64,64], index: 5, kind: input, shape index: {}]   ;;  %s424_s1 = inlined_call_operand.vmem [shape: f32[1,5], index: 1, kind: input, shape index: {}]   ;;  %s425_s2 = inlined_call_operand.vmem [shape: f32[1,5], index: 2, kind: input, shape index: {}]   ;;  %s426_s4 = inlined_call_operand.vmem [shape: f32[1,64], index: 4, kind: input, shape index: {}]   ;;  %s427_s6 = inlined_call_operand.vmem [shape: f32[1,64], index: 6, kind: input, shape index: {}]   ;;  %s428_s7 = inlined_call_operand.vmem [shape: f32[16,64], index: 7, kind: output, shape index: {}]  }
   0x1   :  { %v26_v0 = vld [vmem:[%s421_s0] sm:$0xff]  ;;  %v27_v1 = vld [vmem:[%s421_s0 + $0x8] sm:$0xff]  ;;  %v176_v15 = vld [vmem:[%s423_s5 + $0x38] sm:$0xff] }
   0x2   :  { %v31_v2 = vsel %vm30_vm0, %v26_v0, 0.0  ;;  %v34_v3 = vsel %vm30_vm0, %v27_v1, 0.0  ;;  %v74_v14 = vld [vmem:[%s422_s3] sm:$0x1f]  ;;  %v175_v16 = vld [vmem:[%s423_s5 + $0x30] sm:$0xff]  ;;  %301 = vmatprep.subr.mxu1 %v176_v15  ;;  %v174_v17 = vld [vmem:[%s423_s5 + $0x28] sm:$0xff] }
   0x3   :  { %32 = vadd.xlane.f32.xlu0 %v31_v2  ;;  %296 = vmatprep.subr.msk.mxu0 %vm88_vm1, %v74_v14  ;;  %v173_v18 = vld [vmem:[%s423_s5 + $0x20] sm:$0xff]  ;;  %v172_v35 = vld [vmem:[%s423_s5 + $0x18] sm:$0xff]  ;;  %v171_v36 = vld [vmem:[%s423_s5 + $0x10] sm:$0xff] }
   0x4   :  { %297 = vmatpush3.msk.msra.mxu0 %vm88_vm1, %v74_v14  ;;  %302 = vmatpush3.msra.mxu1 %v176_v15  ;;  %v274_v26 = vld [vmem:[%s424_s1] ss:$0 sm:$0xff]  ;;  %v170_v37 = vld [vmem:[%s423_s5 + $0x8] sm:$0xff] }
   0x5   :  { %303 = vmatprep.subr.mxu1 %v175_v16  ;;  %v275_v28 = vld [vmem:[%s425_s2] ss:$0 sm:$0xff] }
   0x6   :  { %304 = vmatpush3.msra.mxu1 %v175_v16  ;;  %v169_v38 = vld [vmem:[%s423_s5] sm:$0xff] }
   0x7   :  { %35 = vadd.xlane.f32.xlu0 %v34_v3  ;;  %305 = vmatprep.subr.mxu1 %v174_v17  ;;  %v276_v39 = vld [vmem:[%s426_s4] ss:$0 sm:$0xff] }
   0x8   :  { %306 = vmatpush3.msra.mxu1 %v174_v17  ;;  %v280_v46 = vld [vmem:[%s427_s6] ss:$0 sm:$0xff] }
   0x9   :  { %307 = vmatprep.subr.mxu1 %v173_v18 }
   0xa   :  { %308 = vmatpush3.msra.mxu1 %v173_v18 }
   0xb   :  { %309 = vmatprep.subr.mxu1 %v172_v35 }
   0xc   :  { %310 = vmatpush3.msra.mxu1 %v172_v35 }
   0xd   :  { %311 = vmatprep.subr.mxu1 %v171_v36 }
   0xe   :  { %312 = vmatpush3.msra.mxu1 %v171_v36 }
   0xf   :  { %313 = vmatprep.subr.mxu1 %v170_v37 }
  0x10   :  { %314 = vmatpush3.msra.mxu1 %v170_v37 }
  0x11   :  { %315 = vmatprep.subr.mxu1 %v169_v38 }
  0x12   :  { %316 = vmatpush3.msra.mxu1 %v169_v38 }
  0x8c   :  { %v33_v4 = vpop.xlane.xlu0 %32 }
  0x8d   :  { %v38_v5 = vmul.f32 0.2, %v33_v4 }
  0x8f   :  { %v40_v6 = vsub.f32 %v26_v0, %v38_v5 }
  0x90   :  { %v36_v7 = vpop.xlane.xlu0 %35 }
  0x91   :  { %v39_v8 = vmul.f32 0.2, %v36_v7  ;;  %v42_v9 = vmul.f32 %v40_v6, %v40_v6 }
  0x93   :  { %v41_v10 = vsub.f32 %v27_v1, %v39_v8  ;;  %v44_v11 = vsel %vm30_vm0, %v42_v9, 0.0 }
  0x94   :  { %45 = vadd.xlane.f32.xlu1 %v44_v11 }
  0x95   :  { %v43_v12 = vmul.f32 %v41_v10, %v41_v10 }
  0x97   :  { %v47_v13 = vsel %vm30_vm0, %v43_v12, 0.0 }
  0x98   :  { %48 = vadd.xlane.f32.xlu1 %v47_v13 }
 0x11d   :  { %v46_v19 = vpop.xlane.xlu1 %45 }
 0x11e   :  { %v50_v20 = vmul.f32 0.2, %v46_v19 }
 0x120   :  { %v52_v21 = vadd.f32 1e-05, %v50_v20 }
 0x121   :  { %v49_v22 = vpop.xlane.xlu1 %48 }
 0x122   :  { %320 = vrsqrt.f32 %v52_v21  ;;  %v51_v23 = vmul.f32 0.2, %v49_v22 }
 0x124   :  { %v53_v24 = vadd.f32 1e-05, %v51_v23 }
 0x126   :  { %322 = vrsqrt.f32 %v53_v24 }
 0x12f   :  { %v321_v25 = vpop.eup %320 }
 0x130   :  { %v56_v27 = vmul.f32 %v321_v25, %v40_v6 }
 0x132   :  { %v64_v29 = vmul.f32 %v274_v26, %v56_v27 }
 0x133   :  { %v323_v30 = vpop.eup %322 }
 0x134   :  { %v57_v31 = vmul.f32 %v323_v30, %v41_v10  ;;  %v72_v32 = vadd.f32 %v275_v28, %v64_v29 }
 0x136   :  { %v65_v33 = vmul.f32 %v274_v26, %v57_v31  ;;  %298 = vmatprep.mubr.msk.f32.mxu0 %vm30_vm0, %v72_v32 }
 0x138   :  { %v73_v34 = vadd.f32 %v275_v28, %v65_v33 }
 0x13a   :  { %299 = vmatmul.mubr.msk.f32.vlgmr.msra.gmra.mxu0 %vm30_vm0, %v73_v34 }
 0x1fa   :  { %v300_v40 = vpop.f32.mrf.mxu0 }
 0x1fb   :  { %v164_v41 = vadd.f32 %v300_v40, %v276_v39 }
 0x1fc   :  { %v158_v42 = vpop.f32.mrf.mxu0 }
 0x1fd   :  { %v159_v43 = vadd.f32 %v276_v39, %v158_v42  ;;  %v168_v45 = vmax.f32 %v164_v41, 0.0 }
 0x1ff   :  { %v167_v44 = vmax.f32 %v159_v43, 0.0 }
 0x201   :  { %317 = vmatprep.mubr.msk.f32.mxu1 %vm184_vm2, %v167_v44 }
 0x202   :  { %318 = vmatmul.mubr.msk.f32.vlgmr.msra.gmra.mxu1 %vm184_vm2, %v168_v45 }
 0x2c2   :  { %v319_v47 = vpop.f32.mrf.mxu1 }
 0x2c3   :  { %v263_v48 = vadd.f32 %v319_v47, %v280_v46 }
 0x2c4   :  { %v257_v49 = vpop.f32.mrf.mxu1 }
 0x2c5   :  { %v267_v50 = vmax.f32 %v263_v48, 0.0  ;;  %v258_v51 = vadd.f32 %v280_v46, %v257_v49 }
 0x2c7   :  { %269 = vst.msk [vmem:[%s428_s7 + $0x8] sm:$0xff] %vm184_vm2, %v267_v50  ;;  %v266_v52 = vmax.f32 %v258_v51, 0.0 }
 0x2c9   :  { %268 = vst.msk [vmem:[%s428_s7] sm:$0xff] %vm184_vm2, %v266_v52 }

// kernel: bipartite_gcn_forward.6
= control target key start
LH: loop header
LB: loop body
LE: loop exit
PB: predicated region body
PF: predicated region fallthrough
CT: control target
= control target key end

     0   :  { %v3792_v0 = vmov 1   ;;  %v3793_v17 = vmov 0   ;;  %vm79_vm0 = vcmask 523264   ;;  %v3794_v24 = vmov 0.0   ;;  %s6009_s6 = inlined_call_operand.vmem [shape: f32[64,64], index: 6, kind: input, shape index: {}]   ;;  %s6010_s0 = inlined_call_operand.vmem [shape: s32[512,2], index: 0, kind: input, shape index: {}]   ;;  %s6011_s8 = inlined_call_operand.vmem [shape: f32[64,64], index: 8, kind: input, shape index: {}]   ;;  %s6012_s3 = inlined_call_operand.vmem [shape: f32[16,64], index: 3, kind: input, shape index: {}, may-alias: {3,19}]   ;;  %s6013_s2 = inlined_call_operand.vmem [shape: f32[32,64], index: 2, kind: input, shape index: {}]   ;;  %s6014_s7 = inlined_call_operand.vmem [shape: f32[1,64], index: 7, kind: input, shape index: {}]   ;;  %s6015_s5 = inlined_call_operand.vmem [shape: f32[1,64], index: 5, kind: input, shape index: {}]   ;;  %s6016_s9 = inlined_call_operand.vmem [shape: f32[1,64], index: 9, kind: input, shape index: {}]   ;;  %s6017_s10 = inlined_call_operand.vmem [shape: f32[1,64], index: 10, kind: input, shape index: {}]   ;;  %s6018_s1 = inlined_call_operand.vmem [shape: s32[1,512], index: 1, kind: input, shape index: {}]   ;;  %s6019_s11 = inlined_call_operand.vmem [shape: f32[64,64], index: 11, kind: input, shape index: {}]   ;;  %s6020_s4 = inlined_call_operand.vmem [shape: f32[16,1], index: 4, kind: input, shape index: {}]   ;;  %s6021_s12 = inlined_call_operand.vmem [shape: f32[1,64], index: 12, kind: input, shape index: {}]   ;;  %s6022_s15 = inlined_call_operand.vmem [shape: f32[128,64], index: 15, kind: input, shape index: {}]   ;;  %s6023_s17 = inlined_call_operand.vmem [shape: f32[64,64], index: 17, kind: input, shape index: {}]   ;;  %s6024_s13 = inlined_call_operand.vmem [shape: f32[1,64], index: 13, kind: input, shape index: {}]   ;;  %s6025_s14 = inlined_call_operand.vmem [shape: f32[1,64], index: 14, kind: input, shape index: {}]   ;;  %s6026_s16 = inlined_call_operand.vmem [shape: f32[1,64], index: 16, kind: input, shape index: {}]   ;;  %s6027_s18 = inlined_call_operand.vmem [shape: f32[1,64], index: 18, kind: input, shape index: {}]   ;;  %s6028_s19 = inlined_call_operand.vmem [shape: f32[16,64], index: 19, kind: output, shape index: {}, may-alias: {3,19}]  }
   0x1   :  { %6094 = sst [smem:[#allocation36_spill]] %s6009_s6  ;;  %3584 = vset.pattern.permute.xlu0 %v3792_v0  ;;  %3582 = vset.pattern.permute.xlu1 %v3792_v0  ;;  %306 = vst.msk [vmem:[#allocation3] sm:$0xff] %vm79_vm0, %v3794_v24  ;;  %307 = vst.msk [vmem:[#allocation3 + $0x8] sm:$0xff] %vm79_vm0, %v3794_v24  ;;  %v67_v29 = vld [vmem:[%s6013_s2] sm:$0xff]  ;;  %v68_v30 = vld [vmem:[%s6013_s2 + $0x8] sm:$0xff]  ;;  %vm1141_vm7 = vcmask 392192  }
   0x2   :  { %6095 = sst [smem:[#allocation37_spill]] %s6010_s0  ;;  %v69_v32 = vld [vmem:[%s6013_s2 + $0x10] sm:$0xff]  ;;  %3409 = vmatprep.mubr.msk.f32.mxu0 %vm79_vm0, %v67_v29  ;;  %v70_v34 = vld [vmem:[%s6013_s2 + $0x18] sm:$0xff]  ;;  %vm193_vm8 = vcmask 519168  }
   0x3   :  { %6096 = sst [smem:[#allocation38_spill]] %s6011_s8 }
   0x4   :  { %6097 = sst [smem:[#allocation39_spill]] %s6012_s3 }
   0x5   :  { %s6098_s20 = sld [smem:[#allocation36_spill]] }
   0x6   :  { %s6099_s22 = sld [smem:[#allocation37_spill]] }
   0x7   :  { %s6100_s3 = sld [smem:[#allocation38_spill]] }
   0x8   :  { %s6101_s28 = sld [smem:[#allocation39_spill]] }
   0xb   :  { %v207_v1 = vld [vmem:[%s6098_s20 + $0x38] sm:$0xff]  ;;  %v206_v5 = vld [vmem:[%s6098_s20 + $0x30] sm:$0xff]  ;;  %v205_v7 = vld [vmem:[%s6098_s20 + $0x28] sm:$0xff] }
   0xc   :  { %v3905_v2 = vld [vmem:[%s6099_s22 + $0x10] sm:$0xff]  ;;  %v3910_v3 = vld [vmem:[%s6099_s22] sm:$0xff]  ;;  %3415 = vmatprep.subr.mxu1 %v207_v1  ;;  %v3934_v9 = vld [vmem:[%s6099_s22 + $0x8] sm:$0xff] }
   0xd   :  { %637 = vperm.xlu0 %3584, %v3905_v2   ;;  %v78_v4 = vld [vmem:[%s6100_s3 + $0x38] sm:$0xff]  ;;  %631 = vperm.xlu1 %3582, %v3910_v3   ;;  %v77_v6 = vld [vmem:[%s6100_s3 + $0x30] sm:$0xff]  ;;  %v76_v10 = vld [vmem:[%s6100_s3 + $0x28] sm:$0xff] }
   0xe   :  { %3416 = vmatpush3.msra.mxu1 %v207_v1  ;;  %3393 = vmatprep.subr.mxu0 %v78_v4  ;;  %v3929_v8 = vld [vmem:[%s6099_s22 + $0x30] sm:$0xff]  ;;  %v204_v11 = vld [vmem:[%s6098_s20 + $0x20] sm:$0xff]  ;;  %v203_v13 = vld [vmem:[%s6098_s20 + $0x18] sm:$0xff] }
   0xf   :  { %3417 = vmatprep.subr.mxu1 %v206_v5  ;;  %3394 = vmatpush3.msra.mxu0 %v78_v4  ;;  %v75_v12 = vld [vmem:[%s6100_s3 + $0x20] sm:$0xff]  ;;  %v3953_v14 = vld [vmem:[%s6099_s22 + $0x50] sm:$0xff]  ;;  %v311_v15 = vld [vmem:[%s6099_s22 + $0x18] sm:$0xff] }
  0x10   :  { %3418 = vmatpush3.msra.mxu1 %v206_v5  ;;  %3395 = vmatprep.subr.mxu0 %v77_v6  ;;  %v74_v16 = vld [vmem:[%s6100_s3 + $0x18] sm:$0xff]  ;;  %v202_v18 = vld [vmem:[%s6098_s20 + $0x10] sm:$0xff]  ;;  %v201_v20 = vld [vmem:[%s6098_s20 + $0x8] sm:$0xff] }
  0x11   :  { %3419 = vmatprep.subr.mxu1 %v205_v7  ;;  %649 = vperm.xlu0 %3584, %v3929_v8   ;;  %v73_v19 = vld [vmem:[%s6100_s3 + $0x10] sm:$0xff]  ;;  %v72_v22 = vld [vmem:[%s6100_s3 + $0x8] sm:$0xff]  ;;  %v200_v23 = vld [vmem:[%s6098_s20] sm:$0xff] }
  0x12   :  { %634 = vperm.xlu1 %3582, %v3934_v9   ;;  %3396 = vmatpush3.msra.mxu0 %v77_v6  ;;  %v3975_v21 = vld [vmem:[%s6099_s22 + $0x70] sm:$0xff]  ;;  %v198_v25 = vld [vmem:[%s6101_s28] sm:$0xff]  ;;  %v199_v27 = vld [vmem:[%s6101_s28 + $0x8] sm:$0xff] }
  0x13   :  { %3420 = vmatpush3.msra.mxu1 %v205_v7  ;;  %3397 = vmatprep.subr.mxu0 %v76_v10  ;;  %v71_v26 = vld [vmem:[%s6100_s3] sm:$0xff]  ;;  %v4001_v28 = vld [vmem:[%s6099_s22 + $0x90] sm:$0xff]  ;;  %v313_v37 = vld [vmem:[%s6099_s22 + $0x28] sm:$0xff] }
  0x14   :  { %3421 = vmatprep.subr.mxu1 %v204_v11  ;;  %3398 = vmatpush3.msra.mxu0 %v76_v10  ;;  %v312_v31 = vld [vmem:[%s6099_s22 + $0x20] sm:$0xff]  ;;  %v4022_v33 = vld [vmem:[%s6099_s22 + $0xb0] sm:$0xff]  ;;  %v315_v39 = vld [vmem:[%s6099_s22 + $0x38] sm:$0xff] }
  0x15   :  { %3422 = vmatpush3.msra.mxu1 %v204_v11  ;;  %3399 = vmatprep.subr.mxu0 %v75_v12  ;;  %v4034_v35 = vld [vmem:[%s6099_s22 + $0xd0] sm:$0xff]  ;;  %v316_v42 = vld [vmem:[%s6099_s22 + $0x40] sm:$0xff]  ;;  %v317_v46 = vld [vmem:[%s6099_s22 + $0x48] sm:$0xff] }
  0x16   :  { %3423 = vmatprep.subr.mxu1 %v203_v13  ;;  %661 = vperm.xlu0 %3584, %v3953_v14   ;;  %v4042_v36 = vld [vmem:[%s6099_s22 + $0xf0] sm:$0xff]  ;;  %v319_v48 = vld [vmem:[%s6099_s22 + $0x58] sm:$0xff]  ;;  %v320_v49 = vld [vmem:[%s6099_s22 + $0x60] sm:$0xff] }
  0x17   :  { %3583 = vset.pattern.permute.xlu1 %v3793_v17  ;;  %3400 = vmatpush3.msra.mxu0 %v75_v12  ;;  %v4051_v38 = vld [vmem:[%s6099_s22 + $0x110] sm:$0xff]  ;;  %v321_v50 = vld [vmem:[%s6099_s22 + $0x68] sm:$0xff]  ;;  %v323_v51 = vld [vmem:[%s6099_s22 + $0x78] sm:$0xff] }
  0x18   :  { %3424 = vmatpush3.msra.mxu1 %v203_v13  ;;  %384 = vperm.xlu1 %3583, %v311_v15   ;;  %v4061_v40 = vld [vmem:[%s6099_s22 + $0x130] sm:$0xff]  ;;  %v324_v52 = vld [vmem:[%s6099_s22 + $0x80] sm:$0xff]  ;;  %v325_v53 = vld [vmem:[%s6099_s22 + $0x88] sm:$0xff] }
  0x19   :  { %3401 = vmatprep.subr.mxu0 %v74_v16  ;;  %3425 = vmatprep.subr.mxu1 %v202_v18  ;;  %v4068_v41 = vld [vmem:[%s6099_s22 + $0x150] sm:$0xff]  ;;  %v329_v54 = vld [vmem:[%s6099_s22 + $0xa8] sm:$0xff]  ;;  %v327_v55 = vld [vmem:[%s6099_s22 + $0x98] sm:$0xff] }
  0x1a   :  { %3402 = vmatpush3.msra.mxu0 %v74_v16  ;;  %3426 = vmatpush3.msra.mxu1 %v202_v18  ;;  %v4077_v43 = vld [vmem:[%s6099_s22 + $0x170] sm:$0xff]  ;;  %v333_v56 = vld [vmem:[%s6099_s22 + $0xc8] sm:$0xff]  ;;  %v328_v57 = vld [vmem:[%s6099_s22 + $0xa0] sm:$0xff] }
  0x1b   :  { %3403 = vmatprep.subr.mxu0 %v73_v19  ;;  %3427 = vmatprep.subr.mxu1 %v201_v20  ;;  %v4084_v44 = vld [vmem:[%s6099_s22 + $0x190] sm:$0xff]  ;;  %v4157_v58 = vld [vmem:[%s6099_s22 + $0xe8] sm:$0xff]  ;;  %v331_v1 = vld [vmem:[%s6099_s22 + $0xb8] sm:$0xff] }
  0x1c   :  { %673 = vperm.xlu0 %3584, %v3975_v21   ;;  %3404 = vmatpush3.msra.mxu0 %v73_v19  ;;  %v4091_v45 = vld [vmem:[%s6099_s22 + $0x1b0] sm:$0xff]  ;;  %v4173_v63 = vld [vmem:[%s6099_s22 + $0x108] sm:$0xff]  ;;  %v332_v7 = vld [vmem:[%s6099_s22 + $0xc0] sm:$0xff] }
  0x1d   :  { %3428 = vmatpush3.msra.mxu1 %v201_v20  ;;  %3585 = vset.pattern.permute.xlu1 %v3792_v0  ;;  %v4100_v47 = vld [vmem:[%s6099_s22 + $0x1d0] sm:$0xff]  ;;  %v4191_v5 = vld [vmem:[%s6099_s22 + $0x128] sm:$0xff] }
  0x1e   :  { %3405 = vmatprep.subr.mxu0 %v72_v22  ;;  %3429 = vmatprep.subr.mxu1 %v200_v23  ;;  %v4208_v10 = vld [vmem:[%s6099_s22 + $0x148] sm:$0xff] }
  0x1f   :  { %640 = vperm.xlu1 %3585, %v311_v15   ;;  %3406 = vmatpush3.msra.mxu0 %v72_v22  ;;  %v335_v15 = vld [vmem:[%s6099_s22 + $0xd8] sm:$0xff] }
  0x20   :  { %3430 = vmatpush3.msra.mxu1 %v200_v23  ;;  %3431 = vmatprep.mubr.msk.f32.mxu1 %vm79_vm0, %v198_v25  ;;  %v336_v23 = vld [vmem:[%s6099_s22 + $0xe0] sm:$0xff] }
  0x21   :  { %3407 = vmatprep.subr.mxu0 %v71_v26  ;;  %3432 = vmatmul.mubr.msk.f32.vlgmr.msra.gmra.mxu1 %vm79_vm0, %v199_v27 }
  0x22   :  { %685 = vperm.xlu0 %3584, %v4001_v28   ;;  %3408 = vmatpush3.msra.mxu0 %v71_v26 }
  0x23   :  { %3410 = vmatmul.mubr.msk.f32.vlgmr.msra.gmra.mxu0 %vm79_vm0, %v68_v30  ;;  %3586 = vset.pattern.permute.xlu1 %v3793_v17 }
  0x24   :  { %387 = vperm.xlu1 %3586, %v312_v31   ;;  %3412 = vmatprep.mubr.msk.f32.mxu0 %vm79_vm0, %v69_v32  ;;  %v4276_v32 = vld [vmem:[%s6099_s22 + $0x1c8] sm:$0xff] }
  0x26   :  { %697 = vperm.xlu0 %3584, %v4022_v33  }
  0x27   :  { %3413 = vmatmul.mubr.msk.f32.gmra.mxu0 %vm79_vm0, %v70_v34 }
  0x28   :  { %3587 = vset.pattern.permute.xlu1 %v3792_v0 }
  0x29   :  { %643 = vperm.xlu1 %3587, %v312_v31  }
  0x2a   :  { %709 = vperm.xlu0 %3584, %v4034_v35  }
  0x2d   :  { %646 = vperm.xlu1 %3587, %v313_v37  }
  0x2e   :  { %721 = vperm.xlu0 %3584, %v4042_v36  }
  0x31   :  { %3588 = vset.pattern.permute.xlu1 %v3793_v17 }
  0x32   :  { %733 = vperm.xlu0 %3584, %v4051_v38   ;;  %396 = vperm.xlu1 %3588, %v315_v39  }
  0x36   :  { %745 = vperm.xlu0 %3584, %v4061_v40   ;;  %3589 = vset.pattern.permute.xlu1 %v3792_v0 }
  0x37   :  { %652 = vperm.xlu1 %3589, %v315_v39   ;;  %v4296_v39 = vld [vmem:[%s6099_s22 + $0x1e8] sm:$0xff] }
  0x3a   :  { %757 = vperm.xlu0 %3584, %v4068_v41  }
  0x3b   :  { %3590 = vset.pattern.permute.xlu1 %v3793_v17 }
  0x3c   :  { %399 = vperm.xlu1 %3590, %v316_v42  }
  0x3e   :  { %769 = vperm.xlu0 %3584, %v4077_v43  }
  0x40   :  { %3591 = vset.pattern.permute.xlu1 %v3792_v0 }
  0x41   :  { %655 = vperm.xlu1 %3591, %v316_v42   ;;  %v340_v42 = vld [vmem:[%s6099_s22 + $0x100] sm:$0xff] }
  0x42   :  { %781 = vperm.xlu0 %3584, %v4084_v44  }
  0x45   :  { %658 = vperm.xlu1 %3591, %v317_v46  }
  0x46   :  { %793 = vperm.xlu0 %3584, %v4091_v45  }
  0x49   :  { %3592 = vset.pattern.permute.xlu1 %v3793_v17 }
  0x4a   :  { %805 = vperm.xlu0 %3584, %v4100_v47   ;;  %408 = vperm.xlu1 %3592, %v319_v48  }
  0x4e   :  { %3641 = vset.pattern.permute.xlu0 %v3793_v17  ;;  %3593 = vset.pattern.permute.xlu1 %v3792_v0 }
  0x4f   :  { %375 = vperm.xlu0 %3641, %v3910_v3   ;;  %664 = vperm.xlu1 %3593, %v319_v48  }
  0x53   :  { %378 = vperm.xlu0 %3641, %v3934_v9   ;;  %3594 = vset.pattern.permute.xlu1 %v3793_v17 }
  0x54   :  { %411 = vperm.xlu1 %3594, %v320_v49  }
  0x57   :  { %381 = vperm.xlu0 %3641, %v3905_v2  }
  0x58   :  { %3595 = vset.pattern.permute.xlu1 %v3792_v0 }
  0x59   :  { %667 = vperm.xlu1 %3595, %v320_v49  }
  0x5b   :  { %390 = vperm.xlu0 %3641, %v313_v37  }
  0x5d   :  { %670 = vperm.xlu1 %3595, %v321_v50  }
  0x5f   :  { %393 = vperm.xlu0 %3641, %v3929_v8  }
  0x61   :  { %3596 = vset.pattern.permute.xlu1 %v3793_v17 }
  0x62   :  { %420 = vperm.xlu1 %3596, %v323_v51  }
  0x63   :  { %402 = vperm.xlu0 %3641, %v317_v46  }
  0x66   :  { %3597 = vset.pattern.permute.xlu1 %v3792_v0 }
  0x67   :  { %405 = vperm.xlu0 %3641, %v3953_v14   ;;  %676 = vperm.xlu1 %3597, %v323_v51   ;;  %v4222_v14 = vld [vmem:[%s6099_s22 + $0x168] sm:$0xff]  ;;  %v343_v51 = vld [vmem:[%s6099_s22 + $0x118] sm:$0xff] }
  0x6b   :  { %414 = vperm.xlu0 %3641, %v321_v50   ;;  %3598 = vset.pattern.permute.xlu1 %v3793_v17 }
  0x6c   :  { %423 = vperm.xlu1 %3598, %v324_v52  }
  0x6f   :  { %417 = vperm.xlu0 %3641, %v3975_v21   ;;  %v4242_v21 = vld [vmem:[%s6099_s22 + $0x188] sm:$0xff] }
  0x70   :  { %3599 = vset.pattern.permute.xlu1 %v3792_v0 }
  0x71   :  { %679 = vperm.xlu1 %3599, %v324_v52  }
  0x73   :  { %426 = vperm.xlu0 %3641, %v325_v53  }
  0x75   :  { %682 = vperm.xlu1 %3599, %v325_v53  }
  0x77   :  { %429 = vperm.xlu0 %3641, %v4001_v28   ;;  %v4261_v28 = vld [vmem:[%s6099_s22 + $0x1a8] sm:$0xff] }
  0x79   :  { %3600 = vset.pattern.permute.xlu1 %v3793_v17 }
  0x7a   :  { %432 = vperm.xlu1 %3600, %v327_v55  }
  0x7b   :  { %438 = vperm.xlu0 %3641, %v329_v54  }
  0x7e   :  { %3601 = vset.pattern.permute.xlu1 %v3792_v0 }
  0x7f   :  { %441 = vperm.xlu0 %3641, %v4022_v33   ;;  %688 = vperm.xlu1 %3601, %v327_v55   ;;  %v339_v33 = vld [vmem:[%s6099_s22 + $0xf8] sm:$0xff]  ;;  %v3116_v55 = vld [vmem:[%s6014_s7] ss:$0 sm:$0xff] }
  0x83   :  { %450 = vperm.xlu0 %3641, %v333_v56   ;;  %3602 = vset.pattern.permute.xlu1 %v3793_v17 }
  0x84   :  { %435 = vperm.xlu1 %3602, %v328_v57  }
  0x87   :  { %453 = vperm.xlu0 %3641, %v4034_v35  }
  0x88   :  { %v4159_v59 = vpop.permute.xlu0 %637  ;;  %3603 = vset.pattern.permute.xlu1 %v3792_v0  ;;  %v4162_v60 = vpop.permute.xlu1 %631 }
  0x89   :  { %691 = vperm.xlu1 %3603, %v328_v57   ;;  %v344_v57 = vld [vmem:[%s6099_s22 + $0x120] sm:$0xff] }
  0x8b   :  { %462 = vperm.xlu0 %3641, %v4157_v58  }
  0x8c   :  { %v4165_v61 = vpop.permute.xlu0 %649 }
  0x8d   :  { %694 = vperm.xlu1 %3603, %v329_v54   ;;  %v4167_v62 = vpop.permute.xlu1 %634 }
  0x8f   :  { %465 = vperm.xlu0 %3641, %v4042_v36   ;;  %v6033_v36 = vlaneseq }
  0x91   :  { %3604 = vset.pattern.permute.xlu1 %v3793_v17  ;;  %v4179_v2 = vpop.permute.xlu0 %661 }
  0x92   :  { %444 = vperm.xlu1 %3604, %v331_v1  }
  0x93   :  { %474 = vperm.xlu0 %3641, %v4173_v63   ;;  %v4182_v3 = vpop.permute.xlu1 %384 }
  0x96   :  { %3605 = vset.pattern.permute.xlu1 %v3792_v0 }
  0x97   :  { %477 = vperm.xlu0 %3641, %v4051_v38   ;;  %v4186_v4 = vpop.permute.xlu0 %673  ;;  %700 = vperm.xlu1 %3605, %v331_v1  }
  0x9a   :  { %v4193_v6 = vpop.permute.xlu1 %640 }
  0x9b   :  { %486 = vperm.xlu0 %3641, %v4191_v5   ;;  %3606 = vset.pattern.permute.xlu1 %v3793_v17 }
  0x9c   :  { %447 = vperm.xlu1 %3606, %v332_v7  }
  0x9d   :  { %v4200_v8 = vpop.permute.xlu0 %685 }
  0x9f   :  { %489 = vperm.xlu0 %3641, %v4061_v40   ;;  %v4203_v9 = vpop.permute.xlu1 %387  ;;  %v4299_v40 = vand.u32 127, %v6033_v36 }
  0xa0   :  { %3607 = vset.pattern.permute.xlu1 %v3792_v0 }
  0xa1   :  { %v4211_v11 = vpop.permute.xlu0 %697  ;;  %703 = vperm.xlu1 %3607, %v332_v7   ;;  %vm822_vm2 = vcmp.eq.s32.totalorder %v4162_v60, %v4299_v40  ;;  %vm823_vm4 = vcmp.eq.s32.totalorder %v4167_v62, %v4299_v40  ;;  %vm824_vm9 = vcmp.eq.s32.totalorder %v4159_v59, %v4299_v40  ;;  %vm825_vm12 = vcmp.eq.s32.totalorder %v4193_v6, %v4299_v40 }
  0xa3   :  { %498 = vperm.xlu0 %3641, %v4208_v10  }
  0xa4   :  { %v4214_v12 = vpop.permute.xlu1 %643 }
  0xa5   :  { %v4216_v13 = vpop.permute.xlu0 %709  ;;  %706 = vperm.xlu1 %3607, %v333_v56   ;;  %vm826_vm13 = vcmp.eq.s32.totalorder %v4214_v12, %v4299_v40 }
  0xa7   :  { %501 = vperm.xlu0 %3641, %v4068_v41  }
  0xa8   :  { %v4227_v16 = vpop.permute.xlu1 %646 }
  0xa9   :  { %v4229_v18 = vpop.permute.xlu0 %721  ;;  %3608 = vset.pattern.permute.xlu1 %v3793_v17  ;;  %vm827_vm14 = vcmp.eq.s32.totalorder %v4227_v16, %v4299_v40  ;;  %v348_v16 = vld [vmem:[%s6099_s22 + $0x140] sm:$0xff] }
  0xaa   :  { %456 = vperm.xlu1 %3608, %v335_v15  }
  0xab   :  { %510 = vperm.xlu0 %3641, %v4222_v14  }
  0xad   :  { %v4233_v19 = vpop.permute.xlu0 %733  ;;  %v4235_v20 = vpop.permute.xlu1 %396 }
  0xae   :  { %3609 = vset.pattern.permute.xlu1 %v3792_v0 }
  0xaf   :  { %513 = vperm.xlu0 %3641, %v4077_v43   ;;  %712 = vperm.xlu1 %3609, %v335_v15  }
  0xb1   :  { %v4244_v22 = vpop.permute.xlu0 %745 }
  0xb2   :  { %v4250_v25 = vpop.permute.xlu1 %652 }
  0xb3   :  { %522 = vperm.xlu0 %3641, %v4242_v21   ;;  %3610 = vset.pattern.permute.xlu1 %v3793_v17 }
  0xb4   :  { %459 = vperm.xlu1 %3610, %v336_v23  }
  0xb5   :  { %v4253_v26 = vpop.permute.xlu0 %757 }
  0xb7   :  { %525 = vperm.xlu0 %3641, %v4084_v44   ;;  %v4256_v27 = vpop.permute.xlu1 %399  ;;  %v370_v44 = vld [vmem:[%s6099_s22 + $0x1f0] sm:$0xff] }
  0xb8   :  { %3611 = vset.pattern.permute.xlu1 %v3792_v0 }
  0xb9   :  { %v4264_v29 = vpop.permute.xlu0 %769  ;;  %715 = vperm.xlu1 %3611, %v336_v23  }
  0xbb   :  { %534 = vperm.xlu0 %3641, %v4261_v28  }
  0xbc   :  { %v4267_v30 = vpop.permute.xlu1 %655 }
  0xbd   :  { %v4269_v31 = vpop.permute.xlu0 %781  ;;  %718 = vperm.xlu1 %3611, %v4157_v58  }
  0xbf   :  { %537 = vperm.xlu0 %3641, %v4091_v45  }
  0xc0   :  { %v4281_v34 = vpop.permute.xlu1 %658 }
  0xc1   :  { %v4283_v35 = vpop.permute.xlu0 %793  ;;  %3612 = vset.pattern.permute.xlu1 %v3793_v17 }
  0xc2   :  { %468 = vperm.xlu1 %3612, %v339_v33  }
  0xc3   :  { %546 = vperm.xlu0 %3641, %v4276_v32  }
  0xc5   :  { %v4287_v37 = vpop.permute.xlu0 %805  ;;  %v4289_v38 = vpop.permute.xlu1 %408 }
  0xc6   :  { %3613 = vset.pattern.permute.xlu1 %v3792_v0 }
  0xc7   :  { %549 = vperm.xlu0 %3641, %v4100_v47   ;;  %724 = vperm.xlu1 %3613, %v339_v33  }
  0xca   :  { %v376_v41 = vpop.permute.xlu0 %375  ;;  %v4305_v43 = vpop.permute.xlu1 %664 }
  0xcb   :  { %vm566_vm1 = vcmp.eq.s32.totalorder %v376_v41, %v4299_v40  ;;  %558 = vperm.xlu0 %3641, %v4296_v39   ;;  %3614 = vset.pattern.permute.xlu1 %v3793_v17 }
  0xcc   :  { %471 = vperm.xlu1 %3614, %v340_v42   ;;  %vm886_vm3 = vmor %vm566_vm1, %vm822_vm2  ;;  %vm569_vm1 = vcmp.eq.s32.totalorder %v4182_v3, %v4299_v40 }
  0xcd   :  { %v3121_v47 = vsel %vm886_vm3, 1.0, %v3794_v24  ;;  %vm889_vm3 = vmor %vm569_vm1, %vm825_vm12  ;;  %vm831_vm12 = vcmp.eq.s32.totalorder %v4281_v34, %v4299_v40 }
  0xce   :  { %v379_v45 = vpop.permute.xlu0 %378  ;;  %v3124_v3 = vsel %vm889_vm3, 1.0, %v3794_v24 }
  0xcf   :  { %vm567_vm5 = vcmp.eq.s32.totalorder %v379_v45, %v4299_v40  ;;  %561 = vperm.xlu0 %3641, %v370_v44   ;;  %v4317_v46 = vpop.permute.xlu1 %411 }
  0xd0   :  { %vm887_vm6 = vmor %vm567_vm5, %vm823_vm4  ;;  %3615 = vset.pattern.permute.xlu1 %v3792_v0  ;;  %vm570_vm4 = vcmp.eq.s32.totalorder %v4203_v9, %v4299_v40 }
  0xd1   :  { %v3122_v48 = vsel %vm887_vm6, 1.0, %v3794_v24  ;;  %727 = vperm.xlu1 %3615, %v340_v42   ;;  %vm890_vm5 = vmor %vm570_vm4, %vm826_vm13  ;;  %vm828_vm6 = vcmp.eq.s32.totalorder %v4165_v61, %v4299_v40  ;;  %vm832_vm4 = vcmp.eq.s32.totalorder %v4179_v2, %v4299_v40 }
  0xd2   :  { %v1078_v49 = vpack.c.bf16 %v3122_v48, %v3121_v47  ;;  %v382_v53 = vpop.permute.xlu0 %381 }
  0xd3   :  { %3646 = vset.pattern.permute.xlu0 %v3792_v0  ;;  %vm568_vm10 = vcmp.eq.s32.totalorder %v382_v53, %v4299_v40 }
  0xd4   :  { %3440 = vmatprep.mubr.msk.bf16.mxu0 %vm1141_vm7, %v1078_v49  ;;  %817 = vperm.xlu0 %3646, %v370_v44   ;;  %v4324_v50 = vpop.permute.xlu1 %667  ;;  %vm888_vm15 = vmor %vm568_vm10, %vm824_vm9  ;;  %vm829_vm10 = vcmp.eq.s32.totalorder %v4250_v25, %v4299_v40 }
  0xd5   :  { %730 = vperm.xlu1 %3615, %v4173_v63   ;;  %v3123_v6 = vsel %vm888_vm15, 1.0, %v3794_v24 }
  0xd6   :  { %v391_v58 = vpop.permute.xlu0 %390 }
  0xd7   :  { %vm571_vm11 = vcmp.eq.s32.totalorder %v391_v58, %v4299_v40  ;;  %v3125_v58 = vsel %vm890_vm5, 1.0, %v3794_v24 }
  0xd8   :  { %3648 = vset.pattern.permute.xlu0 %v3793_v17  ;;  %v4331_v52 = vpop.permute.xlu1 %670  ;;  %vm891_vm2 = vmor %vm571_vm11, %vm827_vm14  ;;  %vm830_vm11 = vcmp.eq.s32.totalorder %v4267_v30, %v4299_v40  ;;  %vm573_vm14 = vcmp.eq.s32.totalorder %v4235_v20, %v4299_v40 }
  0xd9   :  { %3616 = vset.pattern.permute.xlu1 %v3793_v17  ;;  %v3126_v12 = vsel %vm891_vm2, 1.0, %v3794_v24  ;;  %vm893_vm1 = vmor %vm573_vm14, %vm829_vm10  ;;  %vm574_vm2 = vcmp.eq.s32.totalorder %v4256_v27, %v4299_v40  ;;  %vm835_vm10 = vcmp.eq.s32.totalorder %v4331_v52, %v4299_v40 }
  0xda   :  { %480 = vperm.xlu1 %3616, %v343_v51   ;;  %v394_v47 = vpop.permute.xlu0 %393  ;;  %vm894_vm3 = vmor %vm574_vm2, %vm830_vm11  ;;  %v3128_v20 = vsel %vm893_vm1, 1.0, %v3794_v24  ;;  %vm836_vm2 = vcmp.eq.s32.totalorder %v4186_v4, %v4299_v40 }
  0xdb   :  { %v3129_v27 = vsel %vm894_vm3, 1.0, %v3794_v24 }
  0xdd   :  { %v4334_v54 = vpop.permute.xlu1 %420 }
  0xde   :  { %3617 = vset.pattern.permute.xlu1 %v3792_v0 }
  0xdf   :  { %736 = vperm.xlu1 %3617, %v343_v51  }
  0xe1   :  { %v3433_v56 = vpop.f32.mrf.mxu1 }
  0xe2   :  { %v293_v60 = vadd.f32 %v3433_v56, %v3116_v55  ;;  %v4343_v62 = vpop.permute.xlu1 %676  ;;  %v403_v56 = vpop.permute.xlu0 %402 }
  0xe3   :  { %v3411_v63 = vpop.f32.mrf.mxu0  ;;  %v287_v1 = vpop.f32.mrf.mxu1  ;;  %3618 = vset.pattern.permute.xlu1 %v3793_v17  ;;  %vm575_vm9 = vcmp.eq.s32.totalorder %v403_v56, %v4299_v40 }
  0xe4   :  { %v3253_v7 = vpack.c.bf16 %v293_v60, %v293_v60  ;;  %v3249_v15 = vpack.c.bf16 %v3411_v63, %v3411_v63  ;;  %v288_v23 = vadd.f32 %v3116_v55, %v287_v1  ;;  %483 = vperm.xlu1 %3618, %v344_v57   ;;  %v347_v60 = vld [vmem:[%s6099_s22 + $0x138] sm:$0xff]  ;;  %vm895_vm15 = vmor %vm575_vm9, %vm831_vm12  ;;  %vm834_vm9 = vcmp.eq.s32.totalorder %v4324_v50, %v4299_v40 }
  0xe5   :  { %v158_v33 = vpop.f32.mrf.mxu0  ;;  %v3130_v61 = vsel %vm895_vm15, 1.0, %v3794_v24  ;;  %vm577_vm12 = vcmp.eq.s32.totalorder %v4289_v38, %v4299_v40  ;;  %vm578_vm15 = vcmp.eq.s32.totalorder %v4317_v46, %v4299_v40 }
  0xe6   :  { %305 = vst.msk [vmem:[#allocation2 + $0x14] sm:$0xf] %vm193_vm8, %v3253_v7  ;;  %195 = vst.msk [vmem:[#allocation2 + $0x4] sm:$0xf] %vm193_vm8, %v3249_v15  ;;  %v3252_v41 = vpack.c.bf16 %v288_v23, %v288_v23  ;;  %v3248_v42 = vpack.c.bf16 %v158_v33, %v158_v33  ;;  %v406_v7 = vpop.permute.xlu0 %405  ;;  %v1079_v15 = vpack.c.bf16 %v3124_v3, %v3123_v6  ;;  %v355_v3 = vld [vmem:[%s6099_s22 + $0x178] sm:$0xff] }
  0xe7   :  { %v3414_v44 = vpop.f32.mrf.mxu0  ;;  %v4348_v45 = vpop.permute.xlu1 %423  ;;  %v1080_v23 = vpack.c.bf16 %v3126_v12, %v3125_v58  ;;  %vm576_vm5 = vcmp.eq.s32.totalorder %v406_v7, %v4299_v40  ;;  %vm898_vm1 = vmor %vm578_vm15, %vm834_vm9  ;;  %vm840_vm15 = vcmp.eq.s32.totalorder %v4200_v8, %v4299_v40 }
  0xe8   :  { %304 = vst.msk [vmem:[#allocation2 + $0x10] sm:$0xf] %vm193_vm8, %v3252_v41  ;;  %194 = vst.msk [vmem:[#allocation2] sm:$0xf] %vm193_vm8, %v3248_v42  ;;  %v3251_v48 = vpack.c.bf16 %v3414_v44, %v3414_v44  ;;  %3619 = vset.pattern.permute.xlu1 %v3792_v0  ;;  %v1082_v41 = vpack.c.bf16 %v3130_v61, %v3129_v27  ;;  %v3133_v46 = vsel %vm898_vm1, 1.0, %v3794_v24  ;;  %v356_v61 = vld [vmem:[%s6099_s22 + $0x180] sm:$0xff] }
  0xe9   :  { %v168_v49 = vpop.f32.mrf.mxu0  ;;  %739 = vperm.xlu1 %3619, %v344_v57   ;;  %vm896_vm11 = vmor %vm576_vm5, %vm832_vm4 }
  0xea   :  { %197 = vst.msk [vmem:[#allocation2 + $0xc] sm:$0xf] %vm193_vm8, %v3251_v48  ;;  %v3250_v51 = vpack.c.bf16 %v168_v49, %v168_v49  ;;  %v415_v53 = vpop.permute.xlu0 %414 }
  0xec   :  { %196 = vst.msk [vmem:[#allocation2 + $0x8] sm:$0xf] %vm193_vm8, %v3250_v51  ;;  %v4355_v55 = vpop.permute.xlu1 %679  ;;  %vm572_vm8 = vcmp.eq.s32.totalorder %v394_v47, %v4299_v40 }
  0xed   :  { %742 = vperm.xlu1 %3619, %v4191_v5   ;;  %vm892_vm13 = vmor %vm572_vm8, %vm828_vm6  ;;  %vm579_vm6 = vcmp.eq.s32.totalorder %v415_v53, %v4299_v40  ;;  %vm833_vm8 = vcmp.eq.s32.totalorder %v4305_v43, %v4299_v40  ;;  %v351_v43 = vld [vmem:[%s6099_s22 + $0x158] sm:$0xff]  ;;  %vm838_vm9 = vcmp.eq.s32.totalorder %v4355_v55, %v4299_v40 }
  0xee   :  { %v3127_v30 = vsel %vm892_vm13, 1.0, %v3794_v24  ;;  %v418_v34 = vpop.permute.xlu0 %417  ;;  %vm899_vm13 = vmor %vm579_vm6, %vm835_vm10  ;;  %vm837_vm6 = vcmp.eq.s32.totalorder %v4343_v62, %v4299_v40  ;;  %vm581_vm10 = vcmp.eq.s32.totalorder %v4334_v54, %v4299_v40  ;;  %v352_v54 = vld [vmem:[%s6099_s22 + $0x160] sm:$0xff] }
  0xef   :  { %v3655_v63 = vld [vmem:[#allocation2 + $0x10] sm:$0xff]   ;;  %v3657_v57 = vld [vmem:[#allocation2] sm:$0xff]   ;;  %v1081_v33 = vpack.c.bf16 %v3128_v20, %v3127_v30  ;;  %vm897_vm14 = vmor %vm577_vm12, %vm833_vm8  ;;  %v3134_v52 = vsel %vm899_vm13, 1.0, %v3794_v24  ;;  %vm580_vm3 = vcmp.eq.s32.totalorder %v418_v34, %v4299_v40  ;;  %vm582_vm13 = vcmp.eq.s32.totalorder %v4348_v45, %v4299_v40 }
  0xf0   :  { %v4361_v1 = vpop.permute.xlu1 %682  ;;  %3434 = vmatprep.subr.bf16.mxu0 %v3655_v63  ;;  %v3132_v38 = vsel %vm897_vm14, 1.0, %v3794_v24  ;;  %v1084_v47 = vpack.c.bf16 %v3134_v52, %v3133_v46  ;;  %vm900_vm8 = vmor %vm580_vm3, %vm836_vm2 }
  0xf1   :  { %3620 = vset.pattern.permute.xlu1 %v3793_v17  ;;  %3435 = vmatpush3.bf16.msra.mxu0 %v3655_v63  ;;  %vm839_vm5 = vcmp.eq.s32.totalorder %v4361_v1, %v4299_v40  ;;  %vm901_vm12 = vmor %vm581_vm10, %vm837_vm6  ;;  %v3135_v62 = vsel %vm900_vm8, 1.0, %v3794_v24 }
  0xf2   :  { %492 = vperm.xlu1 %3620, %v347_v60   ;;  %v427_v2 = vpop.permute.xlu0 %426  ;;  %vm902_vm14 = vmor %vm582_vm13, %vm838_vm9  ;;  %v3136_v51 = vsel %vm901_vm12, 1.0, %v3794_v24  ;;  %vm844_vm13 = vcmp.eq.s32.totalorder %v4211_v11, %v4299_v40 }
  0xf3   :  { %v3656_v5 = vld [vmem:[#allocation2 + $0x8] sm:$0xff]   ;;  %vm583_vm4 = vcmp.eq.s32.totalorder %v427_v2, %v4299_v40  ;;  %v1085_v56 = vpack.c.bf16 %v3136_v51, %v3135_v62  ;;  %v363_v51 = vld [vmem:[%s6099_s22 + $0x1b8] sm:$0xff] }
  0xf4   :  { %3436 = vmatprep.subr.bf16.mxu0 %v3656_v5 }
  0xf5   :  { %v4374_v59 = vpop.permute.xlu1 %432  ;;  %3437 = vmatpush3.bf16.msra.mxu0 %v3656_v5 }
  0xf6   :  { %3621 = vset.pattern.permute.xlu1 %v3792_v0  ;;  %3438 = vmatprep.subr.bf16.mxu0 %v3657_v57  ;;  %v430_v48 = vpop.permute.xlu0 %429  ;;  %vm585_vm6 = vcmp.eq.s32.totalorder %v4374_v59, %v4299_v40 }
  0xf7   :  { %748 = vperm.xlu1 %3621, %v347_v60   ;;  %vm584_vm1 = vcmp.eq.s32.totalorder %v430_v48, %v4299_v40  ;;  %v3137_v60 = vsel %vm902_vm14, 1.0, %v3794_v24 }
  0xf9   :  { %3439 = vmatpush3.bf16.msra.mxu0 %v3657_v57 }
  0xfa   :  { %v4390_v9 = vpop.permute.xlu1 %688  ;;  %v439_v55 = vpop.permute.xlu0 %438 }
  0xfb   :  { %3622 = vset.pattern.permute.xlu1 %v3793_v17  ;;  %vm841_vm2 = vcmp.eq.s32.totalorder %v4390_v9, %v4299_v40  ;;  %vm587_vm3 = vcmp.eq.s32.totalorder %v439_v55, %v4299_v40 }
  0xfc   :  { %495 = vperm.xlu1 %3622, %v348_v16   ;;  %3441 = vmatmul.mubr.msk.bf16.vlgmr.msra.gmra.mxu0 %vm1141_vm7, %v1079_v15  ;;  %vm905_vm8 = vmor %vm585_vm6, %vm841_vm2 }
  0xfd   :  { %3444 = vmatprep.mubr.msk.bf16.mxu0 %vm1141_vm7, %v1080_v23  ;;  %v3140_v57 = vsel %vm905_vm8, 1.0, %v3794_v24 }
  0xfe   :  { %v442_v5 = vpop.permute.xlu0 %441 }
  0xff   :  { %v4410_v25 = vpop.permute.xlu1 %435  ;;  %vm588_vm14 = vcmp.eq.s32.totalorder %v442_v5, %v4299_v40 }
 0x100   :  { %3623 = vset.pattern.permute.xlu1 %v3792_v0 }
 0x101   :  { %751 = vperm.xlu1 %3623, %v348_v16  }
 0x102   :  { %v451_v11 = vpop.permute.xlu0 %450 }
 0x104   :  { %v4423_v42 = vpop.permute.xlu1 %691  ;;  %3445 = vmatmul.mubr.msk.bf16.gmra.mxu0 %vm1141_vm7, %v1081_v33 }
 0x105   :  { %754 = vperm.xlu1 %3623, %v4208_v10   ;;  %3448 = vmatprep.mubr.msk.bf16.mxu0 %vm1141_vm7, %v1082_v41  ;;  %v3131_v10 = vsel %vm896_vm11, 1.0, %v3794_v24  ;;  %vm903_vm11 = vmor %vm583_vm4, %vm839_vm5  ;;  %vm842_vm9 = vcmp.eq.s32.totalorder %v4423_v42, %v4299_v40 }
 0x106   :  { %v1083_v44 = vpack.c.bf16 %v3132_v38, %v3131_v10  ;;  %v3138_v49 = vsel %vm903_vm11, 1.0, %v3794_v24  ;;  %vm904_vm5 = vmor %vm584_vm1, %vm840_vm15  ;;  %vm586_vm11 = vcmp.eq.s32.totalorder %v4410_v25, %v4299_v40  ;;  %v454_v25 = vpop.permute.xlu0 %453 }
 0x107   :  { %v1086_v8 = vpack.c.bf16 %v3138_v49, %v3137_v60  ;;  %v3139_v1 = vsel %vm904_vm5, 1.0, %v3794_v24  ;;  %vm906_vm12 = vmor %vm586_vm11, %vm842_vm9  ;;  %vm591_vm5 = vcmp.eq.s32.totalorder %v451_v11, %v4299_v40  ;;  %vm848_vm11 = vcmp.eq.s32.totalorder %v4216_v13, %v4299_v40 }
 0x108   :  { %v695_v50 = vpop.permute.xlu1 %694  ;;  %v1087_v59 = vpack.c.bf16 %v3140_v57, %v3139_v1  ;;  %v3141_v6 = vsel %vm906_vm12, 1.0, %v3794_v24  ;;  %vm908_vm1 = vmor %vm588_vm14, %vm844_vm13  ;;  %vm592_vm12 = vcmp.eq.s32.totalorder %v454_v25, %v4299_v40 }
 0x109   :  { %3624 = vset.pattern.permute.xlu1 %v3793_v17  ;;  %vm843_vm4 = vcmp.eq.s32.totalorder %v695_v50, %v4299_v40  ;;  %v3143_v53 = vsel %vm908_vm1, 1.0, %v3794_v24  ;;  %vm912_vm13 = vmor %vm592_vm12, %vm848_vm11 }
 0x10a   :  { %504 = vperm.xlu1 %3624, %v351_v43   ;;  %vm907_vm10 = vmor %vm587_vm3, %vm843_vm4  ;;  %v3147_v27 = vsel %vm912_vm13, 1.0, %v3794_v24  ;;  %v463_v2 = vpop.permute.xlu0 %462 }
 0x10b   :  { %v3142_v7 = vsel %vm907_vm10, 1.0, %v3794_v24 }
 0x10c   :  { %3449 = vmatmul.mubr.msk.bf16.gmra.mxu0 %vm1141_vm7, %v1083_v44  ;;  %v1088_v12 = vpack.c.bf16 %v3142_v7, %v3141_v6  ;;  %v360_v44 = vld [vmem:[%s6099_s22 + $0x1a0] sm:$0xff] }
 0x10d   :  { %v445_v4 = vpop.permute.xlu1 %444  ;;  %3452 = vmatprep.mubr.msk.bf16.mxu0 %vm1141_vm7, %v1084_v47 }
 0x10e   :  { %3625 = vset.pattern.permute.xlu1 %v3792_v0  ;;  %vm589_vm2 = vcmp.eq.s32.totalorder %v445_v4, %v4299_v40  ;;  %v466_v46 = vpop.permute.xlu0 %465 }
 0x10f   :  { %760 = vperm.xlu1 %3625, %v351_v43   ;;  %v359_v43 = vld [vmem:[%s6099_s22 + $0x198] sm:$0xff] }
 0x112   :  { %v701_v45 = vpop.permute.xlu1 %700 }
 0x113   :  { %3626 = vset.pattern.permute.xlu1 %v3793_v17  ;;  %vm845_vm15 = vcmp.eq.s32.totalorder %v701_v45, %v4299_v40 }
 0x114   :  { %507 = vperm.xlu1 %3626, %v352_v54   ;;  %3453 = vmatmul.mubr.msk.bf16.gmra.mxu0 %vm1141_vm7, %v1085_v56  ;;  %vm909_vm3 = vmor %vm589_vm2, %vm845_vm15 }
 0x115   :  { %3456 = vmatprep.mubr.msk.bf16.mxu0 %vm1141_vm7, %v1086_v8  ;;  %v3144_v9 = vsel %vm909_vm3, 1.0, %v3794_v24  ;;  %vm595_vm3 = vcmp.eq.s32.totalorder %v463_v2, %v4299_v40 }
 0x117   :  { %v448_v63 = vpop.permute.xlu1 %447 }
 0x118   :  { %3627 = vset.pattern.permute.xlu1 %v3792_v0  ;;  %vm590_vm6 = vcmp.eq.s32.totalorder %v448_v63, %v4299_v40  ;;  %v364_v63 = vld [vmem:[%s6099_s22 + $0x1c0] sm:$0xff] }
 0x119   :  { %763 = vperm.xlu1 %3627, %v352_v54   ;;  %v475_v54 = vpop.permute.xlu0 %474 }
 0x11c   :  { %v704_v16 = vpop.permute.xlu1 %703  ;;  %3457 = vmatmul.mubr.msk.bf16.gmra.mxu0 %vm1141_vm7, %v1087_v59 }
 0x11d   :  { %vm846_vm4 = vcmp.eq.s32.totalorder %v704_v16, %v4299_v40  ;;  %766 = vperm.xlu1 %3627, %v4222_v14   ;;  %3460 = vmatprep.mubr.msk.bf16.mxu0 %vm1141_vm7, %v1088_v12  ;;  %v1089_v14 = vpack.c.bf16 %v3144_v9, %v3143_v53  ;;  %v478_v8 = vpop.permute.xlu0 %477  ;;  %v367_v12 = vld [vmem:[%s6099_s22 + $0x1d8] sm:$0xff] }
 0x11e   :  { %vm910_vm8 = vmor %vm590_vm6, %vm846_vm4 }
 0x11f   :  { %v3145_v15 = vsel %vm910_vm8, 1.0, %v3794_v24 }
 0x120   :  { %v707_v58 = vpop.permute.xlu1 %706 }
 0x121   :  { %vm847_vm9 = vcmp.eq.s32.totalorder %v707_v58, %v4299_v40  ;;  %3628 = vset.pattern.permute.xlu1 %v3793_v17  ;;  %v487_v6 = vpop.permute.xlu0 %486  ;;  %v368_v58 = vld [vmem:[%s6099_s22 + $0x1e0] sm:$0xff] }
 0x122   :  { %vm911_vm10 = vmor %vm591_vm5, %vm847_vm9  ;;  %516 = vperm.xlu1 %3628, %v355_v3   ;;  %vm852_vm9 = vcmp.eq.s32.totalorder %v4229_v18, %v4299_v40 }
 0x123   :  { %v3146_v23 = vsel %vm911_vm10, 1.0, %v3794_v24  ;;  %vm596_vm10 = vcmp.eq.s32.totalorder %v466_v46, %v4299_v40 }
 0x124   :  { %v1090_v30 = vpack.c.bf16 %v3146_v23, %v3145_v15  ;;  %3461 = vmatmul.mubr.msk.bf16.gmra.mxu0 %vm1141_vm7, %v1089_v14  ;;  %vm916_vm11 = vmor %vm596_vm10, %vm852_vm9 }
 0x125   :  { %v457_v34 = vpop.permute.xlu1 %456  ;;  %v3151_v48 = vsel %vm916_vm11, 1.0, %v3794_v24  ;;  %v490_v9 = vpop.permute.xlu0 %489 }
 0x126   :  { %3629 = vset.pattern.permute.xlu1 %v3792_v0  ;;  %3464 = vmatprep.mubr.msk.bf16.mxu0 %vm1141_vm7, %v1090_v30  ;;  %vm593_vm14 = vcmp.eq.s32.totalorder %v457_v34, %v4299_v40  ;;  %v371_v34 = vld [vmem:[%s6099_s22 + $0x1f8] sm:$0xff] }
 0x127   :  { %772 = vperm.xlu1 %3629, %v355_v3  }
 0x12a   :  { %v713_v20 = vpop.permute.xlu1 %712 }
 0x12b   :  { %vm849_vm15 = vcmp.eq.s32.totalorder %v713_v20, %v4299_v40  ;;  %3630 = vset.pattern.permute.xlu1 %v3793_v17 }
 0x12c   :  { %vm913_vm1 = vmor %vm593_vm14, %vm849_vm15  ;;  %519 = vperm.xlu1 %3630, %v356_v61  }
 0x12d   :  { %v3148_v13 = vsel %vm913_vm1, 1.0, %v3794_v24  ;;  %vm599_vm1 = vcmp.eq.s32.totalorder %v475_v54, %v4299_v40 }
 0x12e   :  { %v1091_v33 = vpack.c.bf16 %v3148_v13, %v3147_v27 }
 0x12f   :  { %v460_v41 = vpop.permute.xlu1 %459 }
 0x130   :  { %3631 = vset.pattern.permute.xlu1 %v3792_v0  ;;  %3465 = vmatmul.mubr.msk.bf16.gmra.mxu0 %vm1141_vm7, %v1091_v33  ;;  %vm594_vm4 = vcmp.eq.s32.totalorder %v460_v41, %v4299_v40 }
 0x131   :  { %775 = vperm.xlu1 %3631, %v356_v61   ;;  %v499_v61 = vpop.permute.xlu0 %498 }
 0x134   :  { %v716_v42 = vpop.permute.xlu1 %715 }
 0x135   :  { %vm850_vm2 = vcmp.eq.s32.totalorder %v716_v42, %v4299_v40  ;;  %778 = vperm.xlu1 %3631, %v4242_v21   ;;  %v502_v41 = vpop.permute.xlu0 %501 }
 0x136   :  { %vm914_vm5 = vmor %vm594_vm4, %vm850_vm2 }
 0x137   :  { %v3149_v50 = vsel %vm914_vm5, 1.0, %v3794_v24 }
 0x138   :  { %v719_v10 = vpop.permute.xlu1 %718 }
 0x139   :  { %vm851_vm6 = vcmp.eq.s32.totalorder %v719_v10, %v4299_v40  ;;  %3632 = vset.pattern.permute.xlu1 %v3793_v17 }
 0x13a   :  { %vm915_vm8 = vmor %vm595_vm3, %vm851_vm6  ;;  %528 = vperm.xlu1 %3632, %v359_v43   ;;  %vm856_vm6 = vcmp.eq.s32.totalorder %v4233_v19, %v4299_v40 }
 0x13b   :  { %v3150_v21 = vsel %vm915_vm8, 1.0, %v3794_v24  ;;  %vm600_vm8 = vcmp.eq.s32.totalorder %v478_v8, %v4299_v40  ;;  %v4655_v8 = vld [vmem:[%s6015_s5] ss:$0 sm:$0xff] }
 0x13c   :  { %v1092_v52 = vpack.c.bf16 %v3150_v21, %v3149_v50  ;;  %vm920_vm9 = vmor %vm600_vm8, %vm856_vm6  ;;  %v511_v50 = vpop.permute.xlu0 %510 }
 0x13d   :  { %v469_v38 = vpop.permute.xlu1 %468  ;;  %v3155_v5 = vsel %vm920_vm9, 1.0, %v3794_v24 }
 0x13e   :  { %3633 = vset.pattern.permute.xlu1 %v3792_v0  ;;  %3468 = vmatprep.mubr.msk.bf16.mxu0 %vm1141_vm7, %v1092_v52  ;;  %vm597_vm12 = vcmp.eq.s32.totalorder %v469_v38, %v4299_v40 }
 0x13f   :  { %784 = vperm.xlu1 %3633, %v359_v43  }
 0x142   :  { %v725_v47 = vpop.permute.xlu1 %724 }
 0x143   :  { %vm853_vm13 = vcmp.eq.s32.totalorder %v725_v47, %v4299_v40  ;;  %3634 = vset.pattern.permute.xlu1 %v3793_v17 }
 0x144   :  { %vm917_vm14 = vmor %vm597_vm12, %vm853_vm13  ;;  %531 = vperm.xlu1 %3634, %v360_v44  }
 0x145   :  { %v3152_v18 = vsel %vm917_vm14, 1.0, %v3794_v24  ;;  %vm603_vm14 = vcmp.eq.s32.totalorder %v487_v6, %v4299_v40 }
 0x146   :  { %v1093_v4 = vpack.c.bf16 %v3152_v18, %v3151_v48 }
 0x147   :  { %v472_v62 = vpop.permute.xlu1 %471 }
 0x148   :  { %3635 = vset.pattern.permute.xlu1 %v3792_v0  ;;  %3469 = vmatmul.mubr.msk.bf16.gmra.mxu0 %vm1141_vm7, %v1093_v4  ;;  %vm598_vm2 = vcmp.eq.s32.totalorder %v472_v62, %v4299_v40 }
 0x149   :  { %787 = vperm.xlu1 %3635, %v360_v44   ;;  %v514_v44 = vpop.permute.xlu0 %513 }
 0x14c   :  { %v728_v49 = vpop.permute.xlu1 %727 }
 0x14d   :  { %vm854_vm15 = vcmp.eq.s32.totalorder %v728_v49, %v4299_v40  ;;  %790 = vperm.xlu1 %3635, %v4261_v28  }
 0x14e   :  { %vm918_vm3 = vmor %vm598_vm2, %vm854_vm15 }
 0x14f   :  { %v3153_v45 = vsel %vm918_vm3, 1.0, %v3794_v24 }
 0x150   :  { %v731_v55 = vpop.permute.xlu1 %730 }
 0x151   :  { %vm855_vm4 = vcmp.eq.s32.totalorder %v731_v55, %v4299_v40  ;;  %3636 = vset.pattern.permute.xlu1 %v3793_v17 }
 0x152   :  { %vm919_vm5 = vmor %vm599_vm1, %vm855_vm4  ;;  %540 = vperm.xlu1 %3636, %v363_v51   ;;  %vm860_vm4 = vcmp.eq.s32.totalorder %v4244_v22, %v4299_v40 }
 0x153   :  { %v3154_v28 = vsel %vm919_vm5, 1.0, %v3794_v24  ;;  %vm604_vm5 = vcmp.eq.s32.totalorder %v490_v9, %v4299_v40 }
 0x154   :  { %v1094_v56 = vpack.c.bf16 %v3154_v28, %v3153_v45  ;;  %vm924_vm6 = vmor %vm604_vm5, %vm860_vm4 }
 0x155   :  { %v481_v60 = vpop.permute.xlu1 %480  ;;  %v3159_v15 = vsel %vm924_vm6, 1.0, %v3794_v24 }
 0x156   :  { %3637 = vset.pattern.permute.xlu1 %v3792_v0  ;;  %3472 = vmatprep.mubr.msk.bf16.mxu0 %vm1141_vm7, %v1094_v56  ;;  %vm601_vm10 = vcmp.eq.s32.totalorder %v481_v60, %v4299_v40 }
 0x157   :  { %796 = vperm.xlu1 %3637, %v363_v51  }
 0x15a   :  { %v737_v1 = vpop.permute.xlu1 %736 }
 0x15b   :  { %vm857_vm11 = vcmp.eq.s32.totalorder %v737_v1, %v4299_v40  ;;  %3638 = vset.pattern.permute.xlu1 %v3793_v17 }
 0x15c   :  { %vm921_vm12 = vmor %vm601_vm10, %vm857_vm11  ;;  %543 = vperm.xlu1 %3638, %v364_v63  }
 0x15d   :  { %v3156_v19 = vsel %vm921_vm12, 1.0, %v3794_v24 }
 0x15e   :  { %v1095_v57 = vpack.c.bf16 %v3156_v19, %v3155_v5 }
 0x15f   :  { %v484_v7 = vpop.permute.xlu1 %483 }
 0x160   :  { %3639 = vset.pattern.permute.xlu1 %v3792_v0  ;;  %3473 = vmatmul.mubr.msk.bf16.gmra.mxu0 %vm1141_vm7, %v1095_v57  ;;  %vm602_vm15 = vcmp.eq.s32.totalorder %v484_v7, %v4299_v40 }
 0x161   :  { %799 = vperm.xlu1 %3639, %v364_v63  }
 0x164   :  { %v740_v59 = vpop.permute.xlu1 %739 }
 0x165   :  { %vm858_vm13 = vcmp.eq.s32.totalorder %v740_v59, %v4299_v40  ;;  %802 = vperm.xlu1 %3639, %v4276_v32  }
 0x166   :  { %vm922_vm1 = vmor %vm602_vm15, %vm858_vm13 }
 0x167   :  { %v3157_v11 = vsel %vm922_vm1, 1.0, %v3794_v24 }
 0x168   :  { %v743_v16 = vpop.permute.xlu1 %742 }
 0x169   :  { %vm859_vm2 = vcmp.eq.s32.totalorder %v743_v16, %v4299_v40  ;;  %3640 = vset.pattern.permute.xlu1 %v3793_v17 }
 0x16a   :  { %vm923_vm3 = vmor %vm603_vm14, %vm859_vm2  ;;  %552 = vperm.xlu1 %3640, %v367_v12   ;;  %vm607_vm14 = vcmp.eq.s32.totalorder %v499_v61, %v4299_v40  ;;  %vm864_vm2 = vcmp.eq.s32.totalorder %v4253_v26, %v4299_v40 }
 0x16b   :  { %v3158_v32 = vsel %vm923_vm3, 1.0, %v3794_v24  ;;  %vm608_vm3 = vcmp.eq.s32.totalorder %v502_v41, %v4299_v40 }
 0x16c   :  { %v1096_v3 = vpack.c.bf16 %v3158_v32, %v3157_v11  ;;  %vm928_vm4 = vmor %vm608_vm3, %vm864_vm2 }
 0x16d   :  { %v493_v53 = vpop.permute.xlu1 %492  ;;  %v3163_v2 = vsel %vm928_vm4, 1.0, %v3794_v24 }
 0x16e   :  { %3642 = vset.pattern.permute.xlu1 %v3792_v0  ;;  %3476 = vmatprep.mubr.msk.bf16.mxu0 %vm1141_vm7, %v1096_v3  ;;  %vm605_vm8 = vcmp.eq.s32.totalorder %v493_v53, %v4299_v40 }
 0x16f   :  { %808 = vperm.xlu1 %3642, %v367_v12  }
 0x172   :  { %v749_v14 = vpop.permute.xlu1 %748 }
 0x173   :  { %vm861_vm9 = vcmp.eq.s32.totalorder %v749_v14, %v4299_v40  ;;  %3643 = vset.pattern.permute.xlu1 %v3793_v17 }
 0x174   :  { %vm925_vm10 = vmor %vm605_vm8, %vm861_vm9  ;;  %555 = vperm.xlu1 %3643, %v368_v58  }
 0x175   :  { %v3160_v22 = vsel %vm925_vm10, 1.0, %v3794_v24 }
 0x176   :  { %v1097_v23 = vpack.c.bf16 %v3160_v22, %v3159_v15 }
 0x177   :  { %v496_v25 = vpop.permute.xlu1 %495 }
 0x178   :  { %3644 = vset.pattern.permute.xlu1 %v3792_v0  ;;  %3477 = vmatmul.mubr.msk.bf16.gmra.mxu0 %vm1141_vm7, %v1097_v23  ;;  %vm606_vm12 = vcmp.eq.s32.totalorder %v496_v25, %v4299_v40 }
 0x179   :  { %811 = vperm.xlu1 %3644, %v368_v58  }
 0x17c   :  { %v752_v30 = vpop.permute.xlu1 %751 }
 0x17d   :  { %vm862_vm11 = vcmp.eq.s32.totalorder %v752_v30, %v4299_v40  ;;  %814 = vperm.xlu1 %3644, %v4296_v39  }
 0x17e   :  { %vm926_vm13 = vmor %vm606_vm12, %vm862_vm11  ;;  %vm611_vm12 = vcmp.eq.s32.totalorder %v511_v50, %v4299_v40 }
 0x17f   :  { %v3161_v27 = vsel %vm926_vm13, 1.0, %v3794_v24 }
 0x180   :  { %v755_v20 = vpop.permute.xlu1 %754 }
 0x181   :  { %vm863_vm15 = vcmp.eq.s32.totalorder %v755_v20, %v4299_v40  ;;  %3645 = vset.pattern.permute.xlu1 %v3793_v17 }
 0x182   :  { %vm927_vm1 = vmor %vm607_vm14, %vm863_vm15  ;;  %564 = vperm.xlu1 %3645, %v371_v34   ;;  %vm868_vm15 = vcmp.eq.s32.totalorder %v4264_v29, %v4299_v40  ;;  %v523_v29 = vpop.permute.xlu0 %522 }
 0x183   :  { %v3162_v39 = vsel %vm927_vm1, 1.0, %v3794_v24  ;;  %vm612_vm1 = vcmp.eq.s32.totalorder %v514_v44, %v4299_v40 }
 0x184   :  { %v1098_v13 = vpack.c.bf16 %v3162_v39, %v3161_v27  ;;  %vm932_vm2 = vmor %vm612_vm1, %vm868_vm15 }
 0x185   :  { %v505_v33 = vpop.permute.xlu1 %504  ;;  %v3167_v48 = vsel %vm932_vm2, 1.0, %v3794_v24 }
 0x186   :  { %3647 = vset.pattern.permute.xlu1 %v3792_v0  ;;  %3480 = vmatprep.mubr.msk.bf16.mxu0 %vm1141_vm7, %v1098_v13  ;;  %vm609_vm5 = vcmp.eq.s32.totalorder %v505_v33, %v4299_v40  ;;  %v526_v56 = vpop.permute.xlu0 %525 }
 0x187   :  { %820 = vperm.xlu1 %3647, %v371_v34  }
 0x18a   :  { %v761_v42 = vpop.permute.xlu1 %760  ;;  %v535_v22 = vpop.permute.xlu0 %534 }
 0x18b   :  { %vm865_vm6 = vcmp.eq.s32.totalorder %v761_v42, %v4299_v40  ;;  %3649 = vset.pattern.permute.xlu1 %v3793_v17 }
 0x18c   :  { %vm929_vm8 = vmor %vm609_vm5, %vm865_vm6 }
 0x18d   :  { %v3164_v0 = vsel %vm929_vm8, 1.0, %v3794_v24 }
 0x18e   :  { %v1099_v43 = vpack.c.bf16 %v3164_v0, %v3163_v2 }
 0x18f   :  { %v508_v10 = vpop.permute.xlu1 %507 }
 0x190   :  { %3481 = vmatmul.mubr.msk.bf16.gmra.mxu0 %vm1141_vm7, %v1099_v43  ;;  %vm610_vm10 = vcmp.eq.s32.totalorder %v508_v10, %v4299_v40  ;;  %v538_v10 = vpop.permute.xlu0 %537 }
 0x194   :  { %v764_v26 = vpop.permute.xlu1 %763 }
 0x195   :  { %vm866_vm9 = vcmp.eq.s32.totalorder %v764_v26, %v4299_v40 }
 0x196   :  { %vm930_vm11 = vmor %vm610_vm10, %vm866_vm9  ;;  %vm615_vm10 = vcmp.eq.s32.totalorder %v523_v29, %v4299_v40 }
 0x197   :  { %v3165_v17 = vsel %vm930_vm11, 1.0, %v3794_v24 }
 0x198   :  { %v767_v21 = vpop.permute.xlu1 %766 }
 0x199   :  { %vm867_vm13 = vcmp.eq.s32.totalorder %v767_v21, %v4299_v40 }
 0x19a   :  { %vm931_vm14 = vmor %vm611_vm12, %vm867_vm13  ;;  %vm872_vm13 = vcmp.eq.s32.totalorder %v4269_v31, %v4299_v40 }
 0x19b   :  { %v3166_v52 = vsel %vm931_vm14, 1.0, %v3794_v24  ;;  %vm616_vm14 = vcmp.eq.s32.totalorder %v526_v56, %v4299_v40 }
 0x19c   :  { %v1100_v38 = vpack.c.bf16 %v3166_v52, %v3165_v17  ;;  %vm936_vm15 = vmor %vm616_vm14, %vm872_vm13 }
 0x19d   :  { %v517_v46 = vpop.permute.xlu1 %516  ;;  %v3171_v63 = vsel %vm936_vm15, 1.0, %v3794_v24 }
 0x19e   :  { %3484 = vmatprep.mubr.msk.bf16.mxu0 %vm1141_vm7, %v1100_v38  ;;  %vm613_vm3 = vcmp.eq.s32.totalorder %v517_v46, %v4299_v40 }
 0x1a2   :  { %v773_v47 = vpop.permute.xlu1 %772 }
 0x1a3   :  { %vm869_vm4 = vcmp.eq.s32.totalorder %v773_v47, %v4299_v40 }
 0x1a4   :  { %vm933_vm5 = vmor %vm613_vm3, %vm869_vm4 }
 0x1a5   :  { %v3168_v18 = vsel %vm933_vm5, 1.0, %v3794_v24 }
 0x1a6   :  { %v1101_v4 = vpack.c.bf16 %v3168_v18, %v3167_v48 }
 0x1a7   :  { %v520_v62 = vpop.permute.xlu1 %519 }
 0x1a8   :  { %3485 = vmatmul.mubr.msk.bf16.gmra.mxu0 %vm1141_vm7, %v1101_v4  ;;  %vm614_vm8 = vcmp.eq.s32.totalorder %v520_v62, %v4299_v40 }
 0x1ac   :  { %v776_v49 = vpop.permute.xlu1 %775 }
 0x1ad   :  { %vm870_vm6 = vcmp.eq.s32.totalorder %v776_v49, %v4299_v40 }
 0x1ae   :  { %vm934_vm9 = vmor %vm614_vm8, %vm870_vm6  ;;  %vm619_vm8 = vcmp.eq.s32.totalorder %v535_v22, %v4299_v40 }
 0x1af   :  { %v3169_v51 = vsel %vm934_vm9, 1.0, %v3794_v24 }
 0x1b0   :  { %v779_v54 = vpop.permute.xlu1 %778 }
 0x1b1   :  { %vm871_vm11 = vcmp.eq.s32.totalorder %v779_v54, %v4299_v40 }
 0x1b2   :  { %vm935_vm12 = vmor %vm615_vm10, %vm871_vm11  ;;  %vm876_vm11 = vcmp.eq.s32.totalorder %v4283_v35, %v4299_v40 }
 0x1b3   :  { %v3170_v55 = vsel %vm935_vm12, 1.0, %v3794_v24  ;;  %vm620_vm12 = vcmp.eq.s32.totalorder %v538_v10, %v4299_v40 }
 0x1b4   :  { %v1102_v45 = vpack.c.bf16 %v3170_v55, %v3169_v51  ;;  %vm940_vm13 = vmor %vm620_vm12, %vm876_vm11 }
 0x1b5   :  { %v529_v28 = vpop.permute.xlu1 %528  ;;  %v3175_v4 = vsel %vm940_vm13, 1.0, %v3794_v24 }
 0x1b6   :  { %3488 = vmatprep.mubr.msk.bf16.mxu0 %vm1141_vm7, %v1102_v45  ;;  %vm617_vm1 = vcmp.eq.s32.totalorder %v529_v28, %v4299_v40 }
 0x1ba   :  { %v785_v60 = vpop.permute.xlu1 %784 }
 0x1bb   :  { %vm873_vm2 = vcmp.eq.s32.totalorder %v785_v60, %v4299_v40 }
 0x1bc   :  { %vm937_vm3 = vmor %vm617_vm1, %vm873_vm2  ;;  %v3442_v5 = vpop.f32.mrf.mxu0 }
 0x1bd   :  { %v3172_v1 = vsel %vm937_vm3, 1.0, %v3794_v24  ;;  %v4660_v19 = vadd.f32 %v3442_v5, %v4655_v8 }
 0x1be   :  { %v1103_v31 = vpack.c.bf16 %v3172_v1, %v3171_v63  ;;  %v1272_v7 = vpop.f32.mrf.mxu0 }
 0x1bf   :  { %v532_v57 = vpop.permute.xlu1 %531  ;;  %v4663_v59 = vadd.f32 %v4655_v8, %v1272_v7  ;;  %v1536_v6 = vsel %vm79_vm0, %v4660_v19, 0.0 }
 0x1c0   :  { %3489 = vmatmul.mubr.msk.bf16.gmra.mxu0 %vm1141_vm7, %v1103_v31  ;;  %1537 = vadd.xlane.f32.xlu0 %v1536_v6  ;;  %v3443_v12 = vpop.f32.mrf.mxu0  ;;  %vm618_vm5 = vcmp.eq.s32.totalorder %v532_v57, %v4299_v40 }
 0x1c1   :  { %v4669_v16 = vadd.f32 %v3443_v12, %v4655_v8  ;;  %v1530_v53 = vsel %vm79_vm0, %v4663_v59, 0.0  ;;  %v547_v12 = vpop.permute.xlu0 %546 }
 0x1c2   :  { %v1275_v11 = vpop.f32.mrf.mxu0 }
 0x1c3   :  { %v4672_v32 = vadd.f32 %v4655_v8, %v1275_v11  ;;  %v1539_v9 = vsel %vm79_vm0, %v4669_v16, 0.0 }
 0x1c4   :  { %v788_v3 = vpop.permute.xlu1 %787  ;;  %1531 = vadd.xlane.f32.xlu0 %v1530_v53  ;;  %v3446_v58 = vpop.f32.mrf.mxu0  ;;  %1540 = vadd.xlane.f32.xlu1 %v1539_v9 }
 0x1c5   :  { %vm874_vm4 = vcmp.eq.s32.totalorder %v788_v3, %v4299_v40  ;;  %v4680_v14 = vadd.f32 %v3446_v58, %v4655_v8  ;;  %v1533_v34 = vsel %vm79_vm0, %v4672_v32, 0.0 }
 0x1c6   :  { %v1288_v15 = vpop.f32.mrf.mxu0  ;;  %vm938_vm6 = vmor %vm618_vm5, %vm874_vm4  ;;  %vm623_vm5 = vcmp.eq.s32.totalorder %v547_v12, %v4299_v40 }
 0x1c7   :  { %v4684_v23 = vadd.f32 %v4655_v8, %v1288_v15  ;;  %v1548_v30 = vsel %vm79_vm0, %v4680_v14, 0.0  ;;  %v3173_v27 = vsel %vm938_vm6, 1.0, %v3794_v24 }
 0x1c8   :  { %v791_v25 = vpop.permute.xlu1 %790  ;;  %1549 = vadd.xlane.f32.xlu0 %v1548_v30  ;;  %v3447_v61 = vpop.f32.mrf.mxu0  ;;  %1534 = vadd.xlane.f32.xlu1 %v1533_v34 }
 0x1c9   :  { %vm875_vm9 = vcmp.eq.s32.totalorder %v791_v25, %v4299_v40  ;;  %v4693_v20 = vadd.f32 %v3447_v61, %v4655_v8  ;;  %v1542_v42 = vsel %vm79_vm0, %v4684_v23, 0.0 }
 0x1ca   :  { %vm939_vm10 = vmor %vm619_vm8, %vm875_vm9  ;;  %v1291_v13 = vpop.f32.mrf.mxu0  ;;  %vm880_vm9 = vcmp.eq.s32.totalorder %v4287_v37, %v4299_v40 }
 0x1cb   :  { %v3174_v39 = vsel %vm939_vm10, 1.0, %v3794_v24  ;;  %v4698_v41 = vadd.f32 %v4655_v8, %v1291_v13  ;;  %v1551_v2 = vsel %vm79_vm0, %v4693_v20, 0.0 }
 0x1cc   :  { %v1104_v33 = vpack.c.bf16 %v3174_v39, %v3173_v27  ;;  %1543 = vadd.xlane.f32.xlu0 %v1542_v42  ;;  %v3450_v43 = vpop.f32.mrf.mxu0  ;;  %1552 = vadd.xlane.f32.xlu1 %v1551_v2  ;;  %v550_v27 = vpop.permute.xlu0 %549 }
 0x1cd   :  { %v541_v0 = vpop.permute.xlu1 %540  ;;  %v4705_v26 = vadd.f32 %v3450_v43, %v4655_v8  ;;  %v1545_v52 = vsel %vm79_vm0, %v4698_v41, 0.0  ;;  %vm624_vm10 = vcmp.eq.s32.totalorder %v550_v27, %v4299_v40 }
 0x1ce   :  { %3492 = vmatprep.mubr.msk.bf16.mxu0 %vm1141_vm7, %v1104_v33  ;;  %v1304_v50 = vpop.f32.mrf.mxu0  ;;  %vm621_vm14 = vcmp.eq.s32.totalorder %v541_v0, %v4299_v40  ;;  %vm944_vm11 = vmor %vm624_vm10, %vm880_vm9 }
 0x1cf   :  { %v4712_v21 = vadd.f32 %v4655_v8, %v1304_v50  ;;  %v1560_v17 = vsel %vm79_vm0, %v4705_v26, 0.0 }
 0x1d0   :  { %1561 = vadd.xlane.f32.xlu0 %v1560_v17  ;;  %v3451_v38 = vpop.f32.mrf.mxu0  ;;  %1546 = vadd.xlane.f32.xlu1 %v1545_v52 }
 0x1d1   :  { %v4719_v46 = vadd.f32 %v3451_v38, %v4655_v8  ;;  %v1554_v48 = vsel %vm79_vm0, %v4712_v21, 0.0 }
 0x1d2   :  { %v797_v35 = vpop.permute.xlu1 %796  ;;  %v1307_v44 = vpop.f32.mrf.mxu0 }
 0x1d3   :  { %vm877_vm15 = vcmp.eq.s32.totalorder %v797_v35, %v4299_v40  ;;  %v4724_v47 = vadd.f32 %v4655_v8, %v1307_v44  ;;  %v1563_v18 = vsel %vm79_vm0, %v4719_v46, 0.0 }
 0x1d4   :  { %vm941_vm1 = vmor %vm621_vm14, %vm877_vm15  ;;  %1555 = vadd.xlane.f32.xlu0 %v1554_v48  ;;  %v3454_v49 = vpop.f32.mrf.mxu0  ;;  %1564 = vadd.xlane.f32.xlu1 %v1563_v18 }
 0x1d5   :  { %v3176_v62 = vsel %vm941_vm1, 1.0, %v3794_v24  ;;  %v4733_v54 = vadd.f32 %v3454_v49, %v4655_v8  ;;  %v1557_v56 = vsel %vm79_vm0, %v4724_v47, 0.0 }
 0x1d6   :  { %v1105_v29 = vpack.c.bf16 %v3176_v62, %v3175_v4  ;;  %v1320_v55 = vpop.f32.mrf.mxu0  ;;  %v3179_v62 = vsel %vm944_vm11, 1.0, %v3794_v24 }
 0x1d7   :  { %v544_v51 = vpop.permute.xlu1 %543  ;;  %v4736_v45 = vadd.f32 %v4655_v8, %v1320_v55  ;;  %v1572_v28 = vsel %vm79_vm0, %v4733_v54, 0.0  ;;  %v559_v55 = vpop.permute.xlu0 %558 }
 0x1d8   :  { %3493 = vmatmul.mubr.msk.bf16.gmra.mxu0 %vm1141_vm7, %v1105_v29  ;;  %1573 = vadd.xlane.f32.xlu0 %v1572_v28  ;;  %v3455_v60 = vpop.f32.mrf.mxu0  ;;  %vm622_vm3 = vcmp.eq.s32.totalorder %v544_v51, %v4299_v40 }
 0x1d9   :  { %1558 = vadd.xlane.f32.xlu1 %v1557_v56  ;;  %v4744_v63 = vadd.f32 %v3455_v60, %v4655_v8  ;;  %v1566_v57 = vsel %vm79_vm0, %v4736_v45, 0.0 }
 0x1da   :  { %v1323_v1 = vpop.f32.mrf.mxu0 }
 0x1db   :  { %v4747_v5 = vadd.f32 %v4655_v8, %v1323_v1  ;;  %v1575_v7 = vsel %vm79_vm0, %v4744_v63, 0.0 }
 0x1dc   :  { %v800_v31 = vpop.permute.xlu1 %799  ;;  %1567 = vadd.xlane.f32.xlu0 %v1566_v57  ;;  %v3458_v6 = vpop.f32.mrf.mxu0 }
 0x1dd   :  { %vm878_vm2 = vcmp.eq.s32.totalorder %v800_v31, %v4299_v40  ;;  %1576 = vadd.xlane.f32.xlu1 %v1575_v7  ;;  %v4755_v11 = vadd.f32 %v3458_v6, %v4655_v8  ;;  %v1569_v15 = vsel %vm79_vm0, %v4747_v5, 0.0 }
 0x1de   :  { %v1336_v3 = vpop.f32.mrf.mxu0  ;;  %vm942_vm4 = vmor %vm622_vm3, %vm878_vm2  ;;  %vm627_vm3 = vcmp.eq.s32.totalorder %v559_v55, %v4299_v40 }
 0x1df   :  { %v4759_v53 = vadd.f32 %v4655_v8, %v1336_v3  ;;  %v1584_v58 = vsel %vm79_vm0, %v4755_v11, 0.0  ;;  %v3177_v30 = vsel %vm942_vm4, 1.0, %v3794_v24  ;;  %v562_v3 = vpop.permute.xlu0 %561 }
 0x1e0   :  { %v803_v9 = vpop.permute.xlu1 %802  ;;  %1585 = vadd.xlane.f32.xlu0 %v1584_v58  ;;  %v3459_v22 = vpop.f32.mrf.mxu0 }
 0x1e1   :  { %vm879_vm6 = vcmp.eq.s32.totalorder %v803_v9, %v4299_v40  ;;  %1570 = vadd.xlane.f32.xlu1 %v1569_v15  ;;  %v4768_v25 = vadd.f32 %v3459_v22, %v4655_v8  ;;  %v1578_v33 = vsel %vm79_vm0, %v4759_v53, 0.0 }
 0x1e2   :  { %vm943_vm8 = vmor %vm623_vm5, %vm879_vm6  ;;  %v1339_v61 = vpop.f32.mrf.mxu0  ;;  %vm628_vm6 = vcmp.eq.s32.totalorder %v562_v3, %v4299_v40 }
 0x1e3   :  { %v3178_v34 = vsel %vm943_vm8, 1.0, %v3794_v24  ;;  %v4773_v13 = vadd.f32 %v4655_v8, %v1339_v61  ;;  %v1587_v42 = vsel %vm79_vm0, %v4768_v25, 0.0 }
 0x1e4   :  { %v1106_v39 = vpack.c.bf16 %v3178_v34, %v3177_v30  ;;  %1579 = vadd.xlane.f32.xlu0 %v1578_v33  ;;  %v3462_v0 = vpop.f32.mrf.mxu0 }
 0x1e5   :  { %v553_v2 = vpop.permute.xlu1 %552  ;;  %1588 = vadd.xlane.f32.xlu1 %v1587_v42  ;;  %v4780_v43 = vadd.f32 %v3462_v0, %v4655_v8  ;;  %v1581_v52 = vsel %vm79_vm0, %v4773_v13, 0.0 }
 0x1e6   :  { %3496 = vmatprep.mubr.msk.bf16.mxu0 %vm1141_vm7, %v1106_v39  ;;  %v1352_v10 = vpop.f32.mrf.mxu0  ;;  %vm625_vm12 = vcmp.eq.s32.totalorder %v553_v2, %v4299_v40  ;;  %v818_v39 = vpop.permute.xlu0 %817 }
 0x1e7   :  { %v4787_v50 = vadd.f32 %v4655_v8, %v1352_v10  ;;  %v1596_v17 = vsel %vm79_vm0, %v4780_v43, 0.0  ;;  %vm884_vm8 = vcmp.eq.s32.totalorder %v818_v39, %v4299_v40 }
 0x1e8   :  { %1597 = vadd.xlane.f32.xlu0 %v1596_v17  ;;  %v3463_v38 = vpop.f32.mrf.mxu0  ;;  %vm948_vm9 = vmor %vm628_vm6, %vm884_vm8 }
 0x1e9   :  { %1582 = vadd.xlane.f32.xlu1 %v1581_v52  ;;  %v4794_v35 = vadd.f32 %v3463_v38, %v4655_v8  ;;  %v1590_v18 = vsel %vm79_vm0, %v4787_v50, 0.0  ;;  %v3183_v0 = vsel %vm948_vm9, 1.0, %v3794_v24 }
 0x1ea   :  { %v809_v37 = vpop.permute.xlu1 %808  ;;  %v1355_v44 = vpop.f32.mrf.mxu0 }
 0x1eb   :  { %vm881_vm13 = vcmp.eq.s32.totalorder %v809_v37, %v4299_v40  ;;  %v4799_v48 = vadd.f32 %v4655_v8, %v1355_v44  ;;  %v1599_v4 = vsel %vm79_vm0, %v4794_v35, 0.0 }
 0x1ec   :  { %vm945_vm14 = vmor %vm625_vm12, %vm881_vm13  ;;  %1591 = vadd.xlane.f32.xlu0 %v1590_v18 }
 0x1ed   :  { %v3180_v49 = vsel %vm945_vm14, 1.0, %v3794_v24  ;;  %1600 = vadd.xlane.f32.xlu1 %v1599_v4  ;;  %v1593_v56 = vsel %vm79_vm0, %v4799_v48, 0.0 }
 0x1ee   :  { %v1107_v29 = vpack.c.bf16 %v3180_v49, %v3179_v62 }
 0x1ef   :  { %v556_v51 = vpop.permute.xlu1 %555 }
 0x1f0   :  { %v3466_v28 = vpop.f32.mrf.mxu0  ;;  %3497 = vmatmul.mubr.msk.bf16.gmra.mxu0 %vm1141_vm7, %v1107_v29  ;;  %vm626_vm1 = vcmp.eq.s32.totalorder %v556_v51, %v4299_v40 }
 0x1f1   :  { %v4811_v60 = vadd.f32 %v3466_v28, %v4655_v8  ;;  %1594 = vadd.xlane.f32.xlu1 %v1593_v56 }
 0x1f2   :  { %v1368_v1 = vpop.f32.mrf.mxu0 }
 0x1f3   :  { %v4814_v31 = vadd.f32 %v4655_v8, %v1368_v1  ;;  %v1608_v57 = vsel %vm79_vm0, %v4811_v60, 0.0 }
 0x1f4   :  { %1609 = vadd.xlane.f32.xlu0 %v1608_v57  ;;  %v3467_v7 = vpop.f32.mrf.mxu0  ;;  %v812_v6 = vpop.permute.xlu1 %811 }
 0x1f5   :  { %v4819_v12 = vadd.f32 %v3467_v7, %v4655_v8  ;;  %vm882_vm15 = vcmp.eq.s32.totalorder %v812_v6, %v4299_v40  ;;  %v1602_v15 = vsel %vm79_vm0, %v4814_v31, 0.0 }
 0x1f6   :  { %v1371_v9 = vpop.f32.mrf.mxu0  ;;  %vm946_vm2 = vmor %vm626_vm1, %vm882_vm15 }
 0x1f7   :  { %v4824_v58 = vadd.f32 %v4655_v8, %v1371_v9  ;;  %v1611_v22 = vsel %vm79_vm0, %v4819_v12, 0.0  ;;  %v3181_v34 = vsel %vm946_vm2, 1.0, %v3794_v24 }
 0x1f8   :  { %1603 = vadd.xlane.f32.xlu0 %v1602_v15  ;;  %1612 = vadd.xlane.f32.xlu1 %v1611_v22  ;;  %v815_v30 = vpop.permute.xlu1 %814 }
 0x1f9   :  { %vm883_vm4 = vcmp.eq.s32.totalorder %v815_v30, %v4299_v40  ;;  %v1605_v27 = vsel %vm79_vm0, %v4824_v58, 0.0 }
 0x1fa   :  { %vm947_vm5 = vmor %vm627_vm3, %vm883_vm4 }
 0x1fb   :  { %v3182_v61 = vsel %vm947_vm5, 1.0, %v3794_v24 }
 0x1fc   :  { %v1108_v33 = vpack.c.bf16 %v3182_v61, %v3181_v34  ;;  %1606 = vadd.xlane.f32.xlu1 %v1605_v27 }
 0x1fd   :  { %v565_v42 = vpop.permute.xlu1 %564 }
 0x1fe   :  { %3500 = vmatprep.mubr.msk.bf16.mxu0 %vm1141_vm7, %v1108_v33  ;;  %vm629_vm10 = vcmp.eq.s32.totalorder %v565_v42, %v4299_v40 }
 0x202   :  { %v821_v2 = vpop.permute.xlu1 %820 }
 0x203   :  { %vm885_vm11 = vcmp.eq.s32.totalorder %v821_v2, %v4299_v40 }
 0x204   :  { %vm949_vm12 = vmor %vm629_vm10, %vm885_vm11 }
 0x205   :  { %v3184_v10 = vsel %vm949_vm12, 1.0, %v3794_v24 }
 0x206   :  { %v1109_v17 = vpack.c.bf16 %v3184_v10, %v3183_v0 }
 0x208   :  { %v3470_v52 = vpop.f32.mrf.mxu0  ;;  %3501 = vmatmul.mubr.msk.bf16.gmra.mxu0 %vm1141_vm7, %v1109_v17 }
 0x209   :  { %v4845_v38 = vadd.f32 %v3470_v52, %v4655_v8 }
 0x20a   :  { %v1384_v37 = vpop.f32.mrf.mxu0 }
 0x20b   :  { %v4848_v44 = vadd.f32 %v4655_v8, %v1384_v37  ;;  %v1620_v18 = vsel %vm79_vm0, %v4845_v38, 0.0 }
 0x20c   :  { %v3471_v40 = vpop.f32.mrf.mxu0  ;;  %1621 = vadd.xlane.f32.xlu1 %v1620_v18 }
 0x20d   :  { %v4853_v4 = vadd.f32 %v3471_v40, %v4655_v8  ;;  %v1614_v24 = vsel %vm79_vm0, %v4848_v44, 0.0 }
 0x20e   :  { %v1387_v62 = vpop.f32.mrf.mxu0  ;;  %1615 = vadd.xlane.f32.xlu0 %v1614_v24 }
 0x20f   :  { %v4858_v49 = vadd.f32 %v4655_v8, %v1387_v62  ;;  %v1623_v29 = vsel %vm79_vm0, %v4853_v4, 0.0 }
 0x211   :  { %v1617_v51 = vsel %vm79_vm0, %v4858_v49, 0.0 }
 0x212   :  { %1624 = vadd.xlane.f32.xlu0 %v1623_v29  ;;  %1618 = vadd.xlane.f32.xlu1 %v1617_v51 }
 0x220   :  { %v3474_v55 = vpop.f32.mrf.mxu0 }
 0x221   :  { %v4865_v28 = vadd.f32 %v3474_v55, %v4655_v8 }
 0x222   :  { %v1400_v56 = vpop.f32.mrf.mxu0 }
 0x223   :  { %6102 = vst [vmem:[#allocation4_spill] sm:$0xff] %v4865_v28  ;;  %v4868_v1 = vadd.f32 %v4655_v8, %v1400_v56  ;;  %v1632_v57 = vsel %vm79_vm0, %v4865_v28, 0.0 }
 0x224   :  { %1633 = vadd.xlane.f32.xlu0 %v1632_v57  ;;  %v3475_v7 = vpop.f32.mrf.mxu0 }
 0x225   :  { %6103 = vst [vmem:[#allocation5_spill] sm:$0xff] %v4868_v1  ;;  %v4873_v6 = vadd.f32 %v3475_v7, %v4655_v8  ;;  %v1626_v15 = vsel %vm79_vm0, %v4868_v1, 0.0 }
 0x226   :  { %v1403_v3 = vpop.f32.mrf.mxu0 }
 0x227   :  { %6104 = vst [vmem:[#allocation6_spill] sm:$0xff] %v4873_v6  ;;  %v4876_v9 = vadd.f32 %v4655_v8, %v1403_v3  ;;  %v1635_v22 = vsel %vm79_vm0, %v4873_v6, 0.0 }
 0x228   :  { %1627 = vadd.xlane.f32.xlu0 %v1626_v15  ;;  %1636 = vadd.xlane.f32.xlu1 %v1635_v22 }
 0x229   :  { %6105 = vst [vmem:[#allocation7_spill] sm:$0xff] %v4876_v9  ;;  %v1629_v30 = vsel %vm79_vm0, %v4876_v9, 0.0 }
 0x22c   :  { %1630 = vadd.xlane.f32.xlu1 %v1629_v30 }
 0x238   :  { %v3478_v34 = vpop.f32.mrf.mxu0 }
 0x239   :  { %v4885_v61 = vadd.f32 %v3478_v34, %v4655_v8 }
 0x23a   :  { %v1416_v27 = vpop.f32.mrf.mxu0 }
 0x23b   :  { %6106 = vst [vmem:[#allocation8_spill] sm:$0xff] %v4885_v61  ;;  %v4888_v39 = vadd.f32 %v4655_v8, %v1416_v27  ;;  %v1644_v33 = vsel %vm79_vm0, %v4885_v61, 0.0 }
 0x23c   :  { %1645 = vadd.xlane.f32.xlu0 %v1644_v33  ;;  %v3479_v42 = vpop.f32.mrf.mxu0 }
 0x23d   :  { %6107 = vst [vmem:[#allocation9_spill] sm:$0xff] %v4888_v39  ;;  %v4893_v2 = vadd.f32 %v3479_v42, %v4655_v8  ;;  %v1638_v52 = vsel %vm79_vm0, %v4888_v39, 0.0 }
 0x23e   :  { %v1419_v0 = vpop.f32.mrf.mxu0 }
 0x23f   :  { %6108 = vst [vmem:[#allocation10_spill] sm:$0xff] %v4893_v2  ;;  %v4896_v10 = vadd.f32 %v4655_v8, %v1419_v0  ;;  %v1647_v17 = vsel %vm79_vm0, %v4893_v2, 0.0 }
 0x240   :  { %1648 = vadd.xlane.f32.xlu1 %v1647_v17  ;;  %1639 = vadd.xlane.f32.xlu0 %v1638_v52 }
 0x241   :  { %6109 = vst [vmem:[#allocation11_spill] sm:$0xff] %v4896_v10  ;;  %v1641_v37 = vsel %vm79_vm0, %v4896_v10, 0.0 }
 0x244   :  { %1642 = vadd.xlane.f32.xlu1 %v1641_v37 }
 0x250   :  { %v3482_v18 = vpop.f32.mrf.mxu0 }
 0x251   :  { %v4905_v40 = vadd.f32 %v3482_v18, %v4655_v8 }
 0x252   :  { %v1432_v24 = vpop.f32.mrf.mxu0 }
 0x253   :  { %v4908_v62 = vadd.f32 %v4655_v8, %v1432_v24  ;;  %v1656_v29 = vsel %vm79_vm0, %v4905_v40, 0.0 }
 0x254   :  { %1657 = vadd.xlane.f32.xlu0 %v1656_v29  ;;  %v3483_v51 = vpop.f32.mrf.mxu0 }
 0x255   :  { %6110 = vst [vmem:[#allocation12_spill] sm:$0xff] %v4908_v62  ;;  %v4913_v55 = vadd.f32 %v3483_v51, %v4655_v8  ;;  %v1650_v3 = vsel %vm79_vm0, %v4908_v62, 0.0 }
 0x256   :  { %v1435_v56 = vpop.f32.mrf.mxu0 }
 0x257   :  { %6111 = vst [vmem:[#allocation13_spill] sm:$0xff] %v4913_v55  ;;  %v4916_v57 = vadd.f32 %v4655_v8, %v1435_v56  ;;  %v1659_v7 = vsel %vm79_vm0, %v4913_v55, 0.0 }
 0x258   :  { %1660 = vadd.xlane.f32.xlu1 %v1659_v7  ;;  %1651 = vadd.xlane.f32.xlu0 %v1650_v3 }
 0x259   :  { %6112 = vst [vmem:[#allocation14_spill] sm:$0xff] %v4916_v57  ;;  %v1653_v15 = vsel %vm79_vm0, %v4916_v57, 0.0 }
 0x25c   :  { %1654 = vadd.xlane.f32.xlu1 %v1653_v15 }
 0x268   :  { %v3486_v22 = vpop.f32.mrf.mxu0 }
 0x269   :  { %v4925_v30 = vadd.f32 %v3486_v22, %v4655_v8 }
 0x26a   :  { %v1448_v34 = vpop.f32.mrf.mxu0 }
 0x26b   :  { %6113 = vst [vmem:[#allocation15_spill] sm:$0xff] %v4925_v30  ;;  %v4928_v27 = vadd.f32 %v4655_v8, %v1448_v34  ;;  %v1668_v33 = vsel %vm79_vm0, %v4925_v30, 0.0 }
 0x26c   :  { %1669 = vadd.xlane.f32.xlu0 %v1668_v33  ;;  %v3487_v42 = vpop.f32.mrf.mxu0 }
 0x26d   :  { %6114 = vst [vmem:[#allocation16_spill] sm:$0xff] %v4928_v27  ;;  %v4933_v0 = vadd.f32 %v3487_v42, %v4655_v8  ;;  %v1662_v18 = vsel %vm79_vm0, %v4928_v27, 0.0 }
 0x26e   :  { %v1451_v17 = vpop.f32.mrf.mxu0 }
 0x26f   :  { %6115 = vst [vmem:[#allocation17_spill] sm:$0xff] %v4933_v0  ;;  %v4936_v52 = vadd.f32 %v4655_v8, %v1451_v17  ;;  %v1671_v37 = vsel %vm79_vm0, %v4933_v0, 0.0 }
 0x270   :  { %1672 = vadd.xlane.f32.xlu1 %v1671_v37  ;;  %1663 = vadd.xlane.f32.xlu0 %v1662_v18  ;;  %v1538_v18 = vpop.xlane.xlu0 %1537 }
 0x271   :  { %6116 = vst [vmem:[#allocation18_spill] sm:$0xff] %v4936_v52  ;;  %v1665_v24 = vsel %vm79_vm0, %v4936_v52, 0.0  ;;  %v1725_v52 = vmul.f32 0.015625, %v1538_v18 }
 0x274   :  { %1666 = vadd.xlane.f32.xlu1 %v1665_v24  ;;  %v1532_v24 = vpop.xlane.xlu0 %1531 }
 0x280   :  { %v3490_v29 = vpop.f32.mrf.mxu0 }
 0x281   :  { %v4945_v51 = vadd.f32 %v3490_v29, %v4655_v8  ;;  %v1541_v29 = vpop.xlane.xlu1 %1540 }
 0x282   :  { %v1464_v56 = vpop.f32.mrf.mxu0  ;;  %v1726_v27 = vmul.f32 0.015625, %v1541_v29 }
 0x283   :  { %6117 = vst [vmem:[#allocation19_spill] sm:$0xff] %v4945_v51  ;;  %v4948_v7 = vadd.f32 %v4655_v8, %v1464_v56  ;;  %v1680_v3 = vsel %vm79_vm0, %v4945_v51, 0.0 }
 0x284   :  { %1681 = vadd.xlane.f32.xlu0 %v1680_v3  ;;  %v3491_v15 = vpop.f32.mrf.mxu0 }
 0x285   :  { %6118 = vst [vmem:[#allocation20_spill] sm:$0xff] %v4948_v7  ;;  %v4953_v22 = vadd.f32 %v3491_v15, %v4655_v8  ;;  %v1674_v17 = vsel %vm79_vm0, %v4948_v7, 0.0 }
 0x286   :  { %v1467_v34 = vpop.f32.mrf.mxu0 }
 0x287   :  { %6119 = vst [vmem:[#allocation21_spill] sm:$0xff] %v4953_v22  ;;  %v4956_v33 = vadd.f32 %v4655_v8, %v1467_v34  ;;  %v1683_v42 = vsel %vm79_vm0, %v4953_v22, 0.0 }
 0x288   :  { %1684 = vadd.xlane.f32.xlu1 %v1683_v42  ;;  %1675 = vadd.xlane.f32.xlu0 %v1674_v17  ;;  %v1550_v17 = vpop.xlane.xlu0 %1549 }
 0x289   :  { %6120 = vst [vmem:[#allocation22_spill] sm:$0xff] %v4956_v33  ;;  %v1677_v37 = vsel %vm79_vm0, %v4956_v33, 0.0 }
 0x28c   :  { %1678 = vadd.xlane.f32.xlu1 %v1677_v37  ;;  %v1535_v37 = vpop.xlane.xlu1 %1534  ;;  %v1544_v7 = vpop.xlane.xlu0 %1543 }
 0x290   :  { %v1553_v6 = vpop.xlane.xlu1 %1552 }
 0x294   :  { %v4986_v22 = vpop.xlane.xlu1 %1546 }
 0x298   :  { %v3494_v56 = vpop.f32.mrf.mxu0  ;;  %v4990_v28 = vpop.xlane.xlu1 %1564 }
 0x299   :  { %v4965_v3 = vadd.f32 %v3494_v56, %v4655_v8 }
 0x29a   :  { %v1480_v15 = vpop.f32.mrf.mxu0 }
 0x29b   :  { %6121 = vst [vmem:[#allocation23_spill] sm:$0xff] %v4965_v3  ;;  %v4968_v34 = vadd.f32 %v4655_v8, %v1480_v15  ;;  %v1692_v36 = vsel %vm79_vm0, %v4965_v3, 0.0 }
 0x29c   :  { %1693 = vadd.xlane.f32.xlu0 %v1692_v36  ;;  %v3495_v42 = vpop.f32.mrf.mxu0  ;;  %v5005_v2 = vpop.xlane.xlu1 %1558 }
 0x29d   :  { %6122 = vst [vmem:[#allocation24_spill] sm:$0xff] %v4968_v34  ;;  %v4973_v9 = vadd.f32 %v3495_v42, %v4655_v8  ;;  %v1686_v15 = vsel %vm79_vm0, %v4968_v34, 0.0  ;;  %v4984_v42 = vpop.xlane.xlu0 %1561 }
 0x29e   :  { %v1483_v33 = vpop.f32.mrf.mxu0 }
 0x29f   :  { %6123 = vst [vmem:[#allocation25_spill] sm:$0xff] %v4973_v9  ;;  %v4976_v1 = vadd.f32 %v4655_v8, %v1483_v33  ;;  %v1695_v56 = vsel %vm79_vm0, %v4973_v9, 0.0 }
 0x2a0   :  { %1696 = vadd.xlane.f32.xlu1 %v1695_v56  ;;  %1687 = vadd.xlane.f32.xlu0 %v1686_v15 }
 0x2a1   :  { %6124 = vst [vmem:[#allocation26_spill] sm:$0xff] %v4976_v1  ;;  %v1689_v36 = vsel %vm79_vm0, %v4976_v1, 0.0  ;;  %v4988_v33 = vpop.xlane.xlu0 %1555 }
 0x2a4   :  { %1690 = vadd.xlane.f32.xlu1 %v1689_v36 }
 0x2a5   :  { %v5000_v39 = vpop.xlane.xlu0 %1573 }
 0x2b0   :  { %v3498_v51 = vpop.f32.mrf.mxu0 }
 0x2b1   :  { %v4993_v10 = vadd.f32 %v3498_v51, %v4655_v8 }
 0x2b2   :  { %v1496_v56 = vpop.f32.mrf.mxu0 }
 0x2b3   :  { %6125 = vst [vmem:[#allocation27_spill] sm:$0xff] %v4993_v10  ;;  %v4996_v15 = vadd.f32 %v4655_v8, %v1496_v56  ;;  %v1704_v1 = vsel %vm79_vm0, %v4993_v10, 0.0  ;;  %v5018_v10 = vpop.xlane.xlu1 %1576 }
 0x2b4   :  { %1705 = vadd.xlane.f32.xlu0 %v1704_v1  ;;  %v3499_v36 = vpop.f32.mrf.mxu0  ;;  %v5014_v1 = vpop.xlane.xlu0 %1567 }
 0x2b5   :  { %6126 = vst [vmem:[#allocation28_spill] sm:$0xff] %v4996_v15  ;;  %v5003_v34 = vadd.f32 %v3499_v36, %v4655_v8  ;;  %v1698_v9 = vsel %vm79_vm0, %v4996_v15, 0.0 }
 0x2b6   :  { %v1499_v61 = vpop.f32.mrf.mxu0 }
 0x2b7   :  { %6127 = vst [vmem:[#allocation29_spill] sm:$0xff] %v5003_v34  ;;  %v5008_v51 = vadd.f32 %v4655_v8, %v1499_v61  ;;  %v1707_v56 = vsel %vm79_vm0, %v5003_v34, 0.0  ;;  %v5022_v61 = vpop.xlane.xlu1 %1570 }
 0x2b8   :  { %1708 = vadd.xlane.f32.xlu1 %v1707_v56  ;;  %1699 = vadd.xlane.f32.xlu0 %v1698_v9  ;;  %v5020_v3 = vpop.xlane.xlu0 %1585  ;;  %v5032_v56 = vsub.f32 %v4660_v19, %v1725_v52  ;;  %v5048_v19 = vsub.f32 %v4669_v16, %v1726_v27  ;;  %v1729_v52 = vmul.f32 0.015625, %v1550_v17 }
 0x2b9   :  { %6128 = vst [vmem:[#allocation30_spill] sm:$0xff] %v5008_v51  ;;  %v1701_v36 = vsel %vm79_vm0, %v5008_v51, 0.0  ;;  %v1723_v51 = vmul.f32 0.015625, %v1532_v24 }
 0x2ba   :  { %6130 = vst [vmem:[#allocation32_spill] sm:$0xff] %v5048_v19  ;;  %v1853_v29 = vmul.f32 %v5032_v56, %v5032_v56  ;;  %v5062_v16 = vsub.f32 %v4680_v14, %v1729_v52  ;;  %v1733_v52 = vmul.f32 0.015625, %v4984_v42 }
 0x2bb   :  { %v5026_v34 = vpop.xlane.xlu1 %1588 }
 0x2bc   :  { %1702 = vadd.xlane.f32.xlu1 %v1701_v36  ;;  %v5024_v0 = vpop.xlane.xlu0 %1579  ;;  %v1921_v27 = vsel %vm79_vm0, %v1853_v29, 0.0  ;;  %v5095_v42 = vsub.f32 %v4705_v26, %v1733_v52 }
 0x2bf   :  { %v5050_v24 = vpop.xlane.xlu1 %1582 }
 0x2c0   :  { %v5039_v55 = vpop.xlane.xlu0 %1597 }
 0x2c3   :  { %v5076_v14 = vpop.xlane.xlu1 %1600 }
 0x2c8   :  { %v3502_v15 = vpop.f32.mrf.mxu0 }
 0x2c9   :  { %v5029_v9 = vadd.f32 %v3502_v15, %v4655_v8  ;;  %v5045_v15 = vsub.f32 %v4663_v59, %v1723_v51  ;;  %v1727_v51 = vmul.f32 0.015625, %v1544_v7 }
 0x2ca   :  { %v1512_v30 = vpop.f32.mrf.mxu0 }
 0x2cb   :  { %6129 = vst [vmem:[#allocation31_spill] sm:$0xff] %v5029_v9  ;;  %v5035_v36 = vadd.f32 %v4655_v8, %v1512_v30  ;;  %v1716_v18 = vsel %vm79_vm0, %v5029_v9, 0.0  ;;  %v1851_v17 = vmul.f32 %v5045_v15, %v5045_v15 }
 0x2cc   :  { %1717 = vadd.xlane.f32.xlu0 %v1716_v18  ;;  %v3503_v57 = vpop.f32.mrf.mxu0  ;;  %v1724_v18 = vmul.f32 0.015625, %v1535_v37 }
 0x2cd   :  { %v5042_v62 = vadd.f32 %v3503_v57, %v4655_v8  ;;  %v1710_v59 = vsel %vm79_vm0, %v5035_v36, 0.0  ;;  %v1915_v29 = vsel %vm79_vm0, %v1851_v17, 0.0  ;;  %v1731_v17 = vmul.f32 0.015625, %v4988_v33 }
 0x2ce   :  { %v1515_v30 = vpop.f32.mrf.mxu0  ;;  %v5070_v37 = vsub.f32 %v4672_v32, %v1724_v18  ;;  %v1857_v32 = vmul.f32 %v5062_v16, %v5062_v16  ;;  %v1728_v18 = vmul.f32 0.015625, %v4986_v22 }
 0x2cf   :  { %v5055_v9 = vadd.f32 %v4655_v8, %v1515_v30  ;;  %v1719_v57 = vsel %vm79_vm0, %v5042_v62, 0.0  ;;  %v1854_v8 = vmul.f32 %v5048_v19, %v5048_v19  ;;  %v1730_v30 = vmul.f32 0.015625, %v1553_v6 }
 0x2d0   :  { %1720 = vadd.xlane.f32.xlu1 %v1719_v57  ;;  %1711 = vadd.xlane.f32.xlu0 %v1710_v59  ;;  %v5074_v59 = vpop.xlane.xlu0 %1591  ;;  %v5084_v6 = vsub.f32 %v4684_v23, %v1727_v51  ;;  %v1734_v23 = vmul.f32 0.015625, %v4990_v28  ;;  %v5103_v22 = vsub.f32 %v4698_v41, %v1728_v18  ;;  %v5111_v33 = vsub.f32 %v4712_v21, %v1731_v17 }
 0x2d1   :  { %v1713_v57 = vsel %vm79_vm0, %v5055_v9, 0.0  ;;  %v1924_v19 = vsel %vm79_vm0, %v1854_v8, 0.0  ;;  %v5087_v7 = vsub.f32 %v4693_v20, %v1730_v30  ;;  %v5099_v8 = vpop.xlane.xlu1 %1594  ;;  %v1933_v20 = vsel %vm79_vm0, %v1857_v32, 0.0 }
 0x2d2   :  { %v1855_v30 = vmul.f32 %v5084_v6, %v5084_v6  ;;  %v5114_v28 = vsub.f32 %v4719_v46, %v1734_v23  ;;  %v1732_v32 = vmul.f32 0.015625, %v5005_v2  ;;  %v1856_v21 = vmul.f32 %v5103_v22, %v5103_v22 }
 0x2d3   :  { %v1858_v26 = vmul.f32 %v5087_v7, %v5087_v7  ;;  %v1859_v23 = vmul.f32 %v5111_v33, %v5111_v33 }
 0x2d4   :  { %1714 = vadd.xlane.f32.xlu1 %v1713_v57  ;;  %1922 = vadd.xlane.f32.xlu0 %v1921_v27  ;;  %v1852_v27 = vmul.f32 %v5070_v37, %v5070_v37  ;;  %v5092_v57 = vpop.xlane.xlu0 %1609  ;;  %v1927_v18 = vsel %vm79_vm0, %v1855_v30, 0.0  ;;  %v1862_v2 = vmul.f32 %v5114_v28, %v5114_v28  ;;  %v1738_v30 = vmul.f32 0.015625, %v5018_v10 }
 0x2d5   :  { %v5119_v52 = vpop.xlane.xlu1 %1612 }
 0x2d6   :  { %v1918_v51 = vsel %vm79_vm0, %v1852_v27, 0.0  ;;  %v1936_v27 = vsel %vm79_vm0, %v1858_v26, 0.0  ;;  %v5155_v10 = vsub.f32 %v4744_v63, %v1738_v30 }
 0x2d8   :  { %1916 = vadd.xlane.f32.xlu0 %v1915_v29  ;;  %1925 = vadd.xlane.f32.xlu1 %v1924_v19  ;;  %v1737_v19 = vmul.f32 0.015625, %v5000_v39  ;;  %v5117_v41 = vpop.xlane.xlu0 %1603  ;;  %v1861_v29 = vmul.f32 %v5095_v42, %v5095_v42  ;;  %v1866_v30 = vmul.f32 %v5155_v10, %v5155_v10 }
 0x2d9   :  { %v5144_v26 = vpop.xlane.xlu1 %1606 }
 0x2da   :  { %v5129_v46 = vsub.f32 %v4733_v54, %v1737_v19  ;;  %v1945_v17 = vsel %vm79_vm0, %v1861_v29, 0.0  ;;  %v1930_v54 = vsel %vm79_vm0, %v1856_v21, 0.0  ;;  %v1741_v19 = vmul.f32 0.015625, %v5020_v3 }
 0x2db   :  { %v1939_v29 = vsel %vm79_vm0, %v1859_v23, 0.0  ;;  %v1742_v23 = vmul.f32 0.015625, %v5026_v34  ;;  %v1745_v34 = vmul.f32 0.015625, %v5039_v55 }
 0x2dc   :  { %1934 = vadd.xlane.f32.xlu0 %v1933_v20  ;;  %1919 = vadd.xlane.f32.xlu1 %v1918_v51  ;;  %v5131_v39 = vpop.xlane.xlu0 %1615  ;;  %v5139_v20 = vsub.f32 %v4724_v47, %v1732_v32  ;;  %v1735_v51 = vmul.f32 0.015625, %v5014_v1  ;;  %v1865_v47 = vmul.f32 %v5129_v46, %v5129_v46  ;;  %v1736_v1 = vmul.f32 0.015625, %v5022_v61 }
 0x2dd   :  { %v5160_v21 = vpop.xlane.xlu1 %1621 }
 0x2de   :  { %v5152_v32 = vsub.f32 %v4736_v45, %v1735_v51  ;;  %v1739_v45 = vmul.f32 0.015625, %v5024_v0  ;;  %v1957_v63 = vsel %vm79_vm0, %v1865_v47, 0.0  ;;  %v5171_v61 = vsub.f32 %v4747_v5, %v1736_v1 }
 0x2df   :  { %v5186_v5 = vsub.f32 %v4768_v25, %v1742_v23  ;;  %v1960_v47 = vsel %vm79_vm0, %v1866_v30, 0.0 }
 0x2e0   :  { %1928 = vadd.xlane.f32.xlu0 %v1927_v18  ;;  %1937 = vadd.xlane.f32.xlu1 %v1936_v27  ;;  %v1948_v18 = vsel %vm79_vm0, %v1862_v2, 0.0  ;;  %v1860_v27 = vmul.f32 %v5139_v20, %v5139_v20  ;;  %v5162_v3 = vpop.xlane.xlu0 %1624  ;;  %v1863_v51 = vmul.f32 %v5152_v32, %v5152_v32  ;;  %v5183_v0 = vsub.f32 %v4759_v53, %v1739_v45 }
 0x2e1   :  { %v1864_v1 = vmul.f32 %v5171_v61, %v5171_v61  ;;  %v5199_v53 = vsub.f32 %v4780_v43, %v1745_v34  ;;  %v1870_v45 = vmul.f32 %v5186_v5, %v5186_v5 }
 0x2e2   :  { %v1942_v2 = vsel %vm79_vm0, %v1860_v27, 0.0 }
 0x2e3   :  { %v1954_v43 = vsel %vm79_vm0, %v1864_v1, 0.0  ;;  %v1747_v1 = vmul.f32 0.015625, %v5117_v41 }
 0x2e4   :  { %1946 = vadd.xlane.f32.xlu0 %v1945_v17  ;;  %1931 = vadd.xlane.f32.xlu1 %v1930_v54  ;;  %v5165_v17 = vsub.f32 %v4755_v11, %v1741_v19  ;;  %v5178_v54 = vpop.xlane.xlu1 %1618  ;;  %v5180_v11 = vpop.xlane.xlu0 %1633 }
 0x2e5   :  { %v5251_v41 = vsub.f32 %v4814_v31, %v1747_v1  ;;  %v1751_v1 = vmul.f32 0.015625, %v5131_v39 }
 0x2e6   :  { %v1869_v19 = vmul.f32 %v5165_v17, %v5165_v17 }
 0x2e8   :  { %1940 = vadd.xlane.f32.xlu0 %v1939_v29  ;;  %1949 = vadd.xlane.f32.xlu1 %v1948_v18  ;;  %v1740_v29 = vmul.f32 0.015625, %v5050_v24  ;;  %v1951_v18 = vsel %vm79_vm0, %v1863_v51, 0.0  ;;  %v5196_v27 = vpop.xlane.xlu1 %1636  ;;  %v5201_v25 = vpop.xlane.xlu0 %1627  ;;  %v1969_v55 = vsel %vm79_vm0, %v1869_v19, 0.0  ;;  %v1867_v24 = vmul.f32 %v5183_v0, %v5183_v0 }
 0x2e9   :  { %v1744_v51 = vmul.f32 0.015625, %v5099_v8 }
 0x2ea   :  { %v5209_v23 = vsub.f32 %v4773_v13, %v1740_v29  ;;  %v1963_v19 = vsel %vm79_vm0, %v1867_v24, 0.0  ;;  %v1873_v13 = vmul.f32 %v5199_v53, %v5199_v53  ;;  %v1749_v29 = vmul.f32 0.015625, %v5092_v57 }
 0x2ec   :  { %1958 = vadd.xlane.f32.xlu0 %v1957_v63  ;;  %1943 = vadd.xlane.f32.xlu1 %v1942_v2  ;;  %v1743_v63 = vmul.f32 0.015625, %v5074_v59  ;;  %v1746_v2 = vmul.f32 0.015625, %v5076_v14  ;;  %v5215_v30 = vpop.xlane.xlu1 %1630  ;;  %v5217_v34 = vpop.xlane.xlu0 %1645  ;;  %v1868_v8 = vmul.f32 %v5209_v23, %v5209_v23 }
 0x2ee   :  { %v5224_v59 = vsub.f32 %v4787_v50, %v1743_v63  ;;  %v5227_v14 = vsub.f32 %v4794_v35, %v1746_v2  ;;  %v1981_v50 = vsel %vm79_vm0, %v1873_v13, 0.0  ;;  %v5241_v35 = vsub.f32 %v4811_v60, %v1749_v29 }
 0x2ef   :  { %v1966_v57 = vsel %vm79_vm0, %v1868_v8, 0.0  ;;  %v1748_v60 = vmul.f32 0.015625, %v5144_v26 }
 0x2f0   :  { %1952 = vadd.xlane.f32.xlu0 %v1951_v18  ;;  %1961 = vadd.xlane.f32.xlu1 %v1960_v47  ;;  %v1972_v18 = vsel %vm79_vm0, %v1870_v45, 0.0  ;;  %v5233_v47 = vsub.f32 %v4799_v48, %v1744_v51  ;;  %v5237_v24 = vpop.xlane.xlu1 %1648  ;;  %v1871_v45 = vmul.f32 %v5224_v59, %v5224_v59  ;;  %v1874_v48 = vmul.f32 %v5227_v14, %v5227_v14  ;;  %v5248_v63 = vpop.xlane.xlu0 %1639 }
 0x2f2   :  { %v1872_v2 = vmul.f32 %v5233_v47, %v5233_v47  ;;  %v1975_v51 = vsel %vm79_vm0, %v1871_v45, 0.0 }
 0x2f4   :  { %1970 = vadd.xlane.f32.xlu0 %v1969_v55  ;;  %1955 = vadd.xlane.f32.xlu1 %v1954_v43  ;;  %v1750_v55 = vmul.f32 0.015625, %v5119_v52  ;;  %v1753_v43 = vmul.f32 0.015625, %v5160_v21  ;;  %v5264_v13 = vpop.xlane.xlu1 %1642  ;;  %v1658_v31 = vpop.xlane.xlu0 %1657  ;;  %v1978_v26 = vsel %vm79_vm0, %v1872_v2, 0.0  ;;  %v1875_v21 = vmul.f32 %v5251_v41, %v5251_v41 }
 0x2f5   :  { %v5286_v2 = vsub.f32 %v4848_v44, %v1751_v1 }
 0x2f6   :  { %v5254_v52 = vsub.f32 %v4819_v12, %v1750_v55  ;;  %v5267_v12 = vsub.f32 %v4824_v58, %v1748_v60  ;;  %v5275_v8 = vsub.f32 %v4845_v38, %v1753_v43  ;;  %v1754_v55 = vmul.f32 0.015625, %v5162_v3 }
 0x2f7   :  { %v1752_v58 = vmul.f32 0.015625, %v5178_v54  ;;  %v1765_v3 = vmul.f32 0.015625, %v1658_v31 }
 0x2f8   :  { %1964 = vadd.xlane.f32.xlu0 %v1963_v19  ;;  %1973 = vadd.xlane.f32.xlu1 %v1972_v18  ;;  %v1984_v19 = vsel %vm79_vm0, %v1874_v48, 0.0  ;;  %v1877_v18 = vmul.f32 %v5241_v35, %v5241_v35  ;;  %v1878_v29 = vmul.f32 %v5254_v52, %v5254_v52  ;;  %v1652_v45 = vpop.xlane.xlu0 %1651  ;;  %v1987_v48 = vsel %vm79_vm0, %v1875_v21, 0.0 }
 0x2f9   :  { %v1876_v38 = vmul.f32 %v5267_v12, %v5267_v12  ;;  %v5289_v39 = vsub.f32 %v4853_v4, %v1754_v55  ;;  %v1881_v43 = vmul.f32 %v5275_v8, %v5275_v8  ;;  %v5294_v54 = vsub.f32 %v4858_v49, %v1752_v58  ;;  %v6131_v49 = vld [vmem:[#allocation12_spill] sm:$0xff]  ;;  %v6133_v55 = vld [vmem:[#allocation13_spill] sm:$0xff] }
 0x2fa   :  { %v1996_v60 = vsel %vm79_vm0, %v1878_v29, 0.0  ;;  %v5298_v44 = vsub.f32 %v4905_v40, %v1765_v3  ;;  %v1879_v29 = vmul.f32 %v5286_v2, %v5286_v2 }
 0x2fb   :  { %v1990_v21 = vsel %vm79_vm0, %v1876_v38, 0.0  ;;  %v2005_v4 = vsel %vm79_vm0, %v1881_v43, 0.0  ;;  %v1882_v31 = vmul.f32 %v5289_v39, %v5289_v39  ;;  %v1880_v40 = vmul.f32 %v5294_v54, %v5294_v54  ;;  %v6135_v43 = vld [vmem:[#allocation14_spill] sm:$0xff] }
 0x2fc   :  { %1982 = vadd.xlane.f32.xlu0 %v1981_v50  ;;  %1967 = vadd.xlane.f32.xlu1 %v1966_v57  ;;  %v1993_v50 = vsel %vm79_vm0, %v1877_v18, 0.0  ;;  %v1661_v57 = vpop.xlane.xlu1 %1660  ;;  %v1893_v38 = vmul.f32 %v5298_v44, %v5298_v44 }
 0x300   :  { %1976 = vadd.xlane.f32.xlu0 %v1975_v51  ;;  %1985 = vadd.xlane.f32.xlu1 %v1984_v19  ;;  %v1763_v51 = vmul.f32 0.015625, %v1652_v45  ;;  %v1766_v19 = vmul.f32 0.015625, %v1661_v57  ;;  %v1655_v18 = vpop.xlane.xlu1 %1654 }
 0x301   :  { %v1764_v57 = vmul.f32 0.015625, %v1655_v18 }
 0x302   :  { %v5306_v1 = vsub.f32 %v6131_v49, %v1763_v51  ;;  %v2041_v49 = vsel %vm79_vm0, %v1893_v38, 0.0 }
 0x303   :  { %v5318_v51 = vsub.f32 %v6135_v43, %v1764_v57 }
 0x304   :  { %1994 = vadd.xlane.f32.xlu0 %v1993_v50  ;;  %1979 = vadd.xlane.f32.xlu1 %v1978_v26  ;;  %v1670_v26 = vpop.xlane.xlu0 %1669  ;;  %6132 = vst [vmem:[#allocation12_spill] sm:$0xff] %v5306_v1  ;;  %v5309_v50 = vsub.f32 %v6133_v55, %v1766_v19  ;;  %v1673_v58 = vpop.xlane.xlu1 %1672  ;;  %v2002_v19 = vsel %vm79_vm0, %v1880_v40, 0.0  ;;  %v1891_v18 = vmul.f32 %v5306_v1, %v5306_v1  ;;  %v6141_v1 = vld [vmem:[#allocation17_spill] sm:$0xff] }
 0x305   :  { %v1769_v45 = vmul.f32 0.015625, %v1670_v26  ;;  %6136 = vst [vmem:[#allocation14_spill] sm:$0xff] %v5318_v51 }
 0x306   :  { %6134 = vst [vmem:[#allocation13_spill] sm:$0xff] %v5309_v50  ;;  %v1894_v26 = vmul.f32 %v5309_v50, %v5309_v50  ;;  %v2035_v57 = vsel %vm79_vm0, %v1891_v18, 0.0 }
 0x308   :  { %1988 = vadd.xlane.f32.xlu0 %v1987_v48  ;;  %1997 = vadd.xlane.f32.xlu1 %v1996_v60  ;;  %v2008_v48 = vsel %vm79_vm0, %v1882_v31, 0.0  ;;  %v1999_v60 = vsel %vm79_vm0, %v1879_v29, 0.0  ;;  %v1664_v3 = vpop.xlane.xlu0 %1663  ;;  %v1770_v29 = vmul.f32 0.015625, %v1673_v58  ;;  %v1667_v55 = vpop.xlane.xlu1 %1666  ;;  %v2044_v40 = vsel %vm79_vm0, %v1894_v26, 0.0 }
 0x309   :  { %v1767_v31 = vmul.f32 0.015625, %v1664_v3  ;;  %v1768_v3 = vmul.f32 0.015625, %v1667_v55 }
 0x30c   :  { %1991 = vadd.xlane.f32.xlu1 %v1990_v21  ;;  %2006 = vadd.xlane.f32.xlu0 %v2005_v4  ;;  %v6137_v21 = vld [vmem:[#allocation15_spill] sm:$0xff] }
 0x30d   :  { %v5326_v4 = vsub.f32 %v6137_v21, %v1769_v45  ;;  %v5337_v45 = vsub.f32 %v6141_v1, %v1770_v29  ;;  %v5345_v26 = vpop.xlane.xlu0 %1681 }
 0x30f   :  { %6138 = vst [vmem:[#allocation15_spill] sm:$0xff] %v5326_v4  ;;  %6142 = vst [vmem:[#allocation17_spill] sm:$0xff] %v5337_v45  ;;  %v1897_v58 = vmul.f32 %v5326_v4, %v5326_v4  ;;  %v1898_v1 = vmul.f32 %v5337_v45, %v5337_v45 }
 0x310   :  { %2009 = vadd.xlane.f32.xlu1 %v2008_v48  ;;  %2000 = vadd.xlane.f32.xlu0 %v1999_v60  ;;  %v1892_v48 = vmul.f32 %v5318_v51, %v5318_v51  ;;  %v6139_v60 = vld [vmem:[#allocation16_spill] sm:$0xff]  ;;  %v6147_v51 = vld [vmem:[#allocation25_spill] sm:$0xff] }
 0x311   :  { %v5334_v43 = vsub.f32 %v6139_v60, %v1767_v31  ;;  %v2053_v21 = vsel %vm79_vm0, %v1897_v58, 0.0  ;;  %v5352_v29 = vpop.xlane.xlu1 %1684  ;;  %v2056_v55 = vsel %vm79_vm0, %v1898_v1, 0.0 }
 0x312   :  { %v2038_v38 = vsel %vm79_vm0, %v1892_v48, 0.0 }
 0x313   :  { %6140 = vst [vmem:[#allocation16_spill] sm:$0xff] %v5334_v43  ;;  %v1895_v31 = vmul.f32 %v5334_v43, %v5334_v43 }
 0x314   :  { %2042 = vadd.xlane.f32.xlu0 %v2041_v49  ;;  %2003 = vadd.xlane.f32.xlu1 %v2002_v19  ;;  %v6143_v19 = vld [vmem:[#allocation18_spill] sm:$0xff] }
 0x315   :  { %v5343_v18 = vsub.f32 %v6143_v19, %v1768_v3  ;;  %v2047_v49 = vsel %vm79_vm0, %v1895_v31, 0.0  ;;  %v5361_v60 = vpop.xlane.xlu1 %1678 }
 0x317   :  { %6144 = vst [vmem:[#allocation18_spill] sm:$0xff] %v5343_v18 }
 0x318   :  { %2036 = vadd.xlane.f32.xlu0 %v2035_v57  ;;  %2045 = vadd.xlane.f32.xlu1 %v2044_v40  ;;  %v1896_v57 = vmul.f32 %v5343_v18, %v5343_v18  ;;  %v5358_v40 = vpop.xlane.xlu0 %1675 }
 0x31a   :  { %v2050_v48 = vsel %vm79_vm0, %v1896_v57, 0.0 }
 0x31c   :  { %2054 = vadd.xlane.f32.xlu0 %v2053_v21  ;;  %2039 = vadd.xlane.f32.xlu1 %v2038_v38  ;;  %v6145_v38 = vld [vmem:[#allocation23_spill] sm:$0xff] }
 0x320   :  { %2048 = vadd.xlane.f32.xlu0 %v2047_v49  ;;  %2057 = vadd.xlane.f32.xlu1 %v2056_v55 }
 0x324   :  { %2051 = vadd.xlane.f32.xlu1 %v2050_v48 }
 0x325   :  { %v1694_v3 = vpop.xlane.xlu0 %1693 }
 0x326   :  { %v1777_v58 = vmul.f32 0.015625, %v1694_v3 }
 0x328   :  { %v5364_v19 = vsub.f32 %v6145_v38, %v1777_v58 }
 0x329   :  { %v1697_v21 = vpop.xlane.xlu1 %1696  ;;  %v1688_v3 = vpop.xlane.xlu0 %1687 }
 0x32a   :  { %6146 = vst [vmem:[#allocation23_spill] sm:$0xff] %v5364_v19  ;;  %v1778_v31 = vmul.f32 0.015625, %v1697_v21  ;;  %v1905_v1 = vmul.f32 %v5364_v19, %v5364_v19  ;;  %v6149_v21 = vld [vmem:[#allocation27_spill] sm:$0xff] }
 0x32c   :  { %v5369_v49 = vsub.f32 %v6147_v51, %v1778_v31  ;;  %v2077_v55 = vsel %vm79_vm0, %v1905_v1, 0.0 }
 0x32d   :  { %2078 = vadd.xlane.f32.xlu0 %v2077_v55  ;;  %v1691_v58 = vpop.xlane.xlu1 %1690  ;;  %v6151_v55 = vld [vmem:[#allocation28_spill] sm:$0xff] }
 0x32e   :  { %6148 = vst [vmem:[#allocation25_spill] sm:$0xff] %v5369_v49  ;;  %v1906_v57 = vmul.f32 %v5369_v49, %v5369_v49  ;;  %v6153_v49 = vld [vmem:[#allocation29_spill] sm:$0xff] }
 0x330   :  { %v2080_v48 = vsel %vm79_vm0, %v1906_v57, 0.0 }
 0x331   :  { %2081 = vadd.xlane.f32.xlu1 %v2080_v48 }
 0x33d   :  { %v1706_v38 = vpop.xlane.xlu0 %1705 }
 0x33e   :  { %v1781_v43 = vmul.f32 0.015625, %v1706_v38 }
 0x340   :  { %v5376_v18 = vsub.f32 %v6149_v21, %v1781_v43 }
 0x341   :  { %v1700_v19 = vpop.xlane.xlu0 %1699  ;;  %v1709_v45 = vpop.xlane.xlu1 %1708 }
 0x342   :  { %6150 = vst [vmem:[#allocation27_spill] sm:$0xff] %v5376_v18  ;;  %v1779_v51 = vmul.f32 0.015625, %v1700_v19  ;;  %v1782_v31 = vmul.f32 0.015625, %v1709_v45  ;;  %v1909_v1 = vmul.f32 %v5376_v18, %v5376_v18  ;;  %v6155_v19 = vld [vmem:[#allocation30_spill] sm:$0xff] }
 0x344   :  { %v5381_v4 = vsub.f32 %v6151_v55, %v1779_v51  ;;  %v5384_v57 = vsub.f32 %v6153_v49, %v1782_v31  ;;  %v2089_v48 = vsel %vm79_vm0, %v1909_v1, 0.0 }
 0x345   :  { %2090 = vadd.xlane.f32.xlu0 %v2089_v48  ;;  %v1703_v38 = vpop.xlane.xlu1 %1702 }
 0x346   :  { %6152 = vst [vmem:[#allocation28_spill] sm:$0xff] %v5381_v4  ;;  %6154 = vst [vmem:[#allocation29_spill] sm:$0xff] %v5384_v57  ;;  %v1780_v50 = vmul.f32 0.015625, %v1703_v38  ;;  %v1907_v43 = vmul.f32 %v5381_v4, %v5381_v4  ;;  %v1910_v45 = vmul.f32 %v5384_v57, %v5384_v57  ;;  %v1761_v38 = vmul.f32 0.015625, %v5217_v34  ;;  %v6157_v4 = vld [vmem:[#allocation31_spill] sm:$0xff] }
 0x348   :  { %v5392_v21 = vsub.f32 %v6155_v19, %v1780_v50  ;;  %v2083_v51 = vsel %vm79_vm0, %v1907_v43, 0.0  ;;  %v2092_v55 = vsel %vm79_vm0, %v1910_v45, 0.0 }
 0x349   :  { %2084 = vadd.xlane.f32.xlu0 %v2083_v51  ;;  %2093 = vadd.xlane.f32.xlu1 %v2092_v55  ;;  %v6159_v51 = vld [vmem:[#allocation8_spill] sm:$0xff] }
 0x34a   :  { %6156 = vst [vmem:[#allocation30_spill] sm:$0xff] %v5392_v21  ;;  %v1908_v49 = vmul.f32 %v5392_v21, %v5392_v21  ;;  %v5406_v55 = vsub.f32 %v6159_v51, %v1761_v38 }
 0x34c   :  { %v2086_v31 = vsel %vm79_vm0, %v1908_v49, 0.0  ;;  %6160 = vst [vmem:[#allocation8_spill] sm:$0xff] %v5406_v55  ;;  %v1762_v49 = vmul.f32 0.015625, %v5237_v24 }
 0x34d   :  { %2087 = vadd.xlane.f32.xlu1 %v2086_v31  ;;  %v1775_v31 = vmul.f32 0.015625, %v1688_v3 }
 0x355   :  { %v1718_v1 = vpop.xlane.xlu0 %1717 }
 0x356   :  { %v1785_v48 = vmul.f32 0.015625, %v1718_v1 }
 0x358   :  { %v5401_v18 = vsub.f32 %v6157_v4, %v1785_v48  ;;  %v1759_v48 = vmul.f32 0.015625, %v5248_v63  ;;  %v1889_v63 = vmul.f32 %v5406_v55, %v5406_v55 }
 0x359   :  { %v1712_v50 = vpop.xlane.xlu0 %1711  ;;  %v1721_v19 = vpop.xlane.xlu1 %1720 }
 0x35a   :  { %6158 = vst [vmem:[#allocation31_spill] sm:$0xff] %v5401_v18  ;;  %v1783_v43 = vmul.f32 0.015625, %v1712_v50  ;;  %v1786_v57 = vmul.f32 0.015625, %v1721_v19  ;;  %v1913_v45 = vmul.f32 %v5401_v18, %v5401_v18 }
 0x35c   :  { %v5410_v1 = vsub.f32 %v5035_v36, %v1783_v43  ;;  %v5413_v34 = vsub.f32 %v5042_v62, %v1786_v57  ;;  %v2101_v4 = vsel %vm79_vm0, %v1913_v45, 0.0  ;;  %v6163_v36 = vld [vmem:[#allocation10_spill] sm:$0xff]  ;;  %v6165_v62 = vld [vmem:[#allocation24_spill] sm:$0xff]  ;;  %v1776_v43 = vmul.f32 0.015625, %v1691_v58 }
 0x35d   :  { %v1923_v50 = vpop.xlane.xlu0 %1922  ;;  %2102 = vadd.xlane.f32.xlu0 %v2101_v4  ;;  %v1715_v19 = vpop.xlane.xlu1 %1714  ;;  %v5422_v3 = vsub.f32 %v6163_v36, %v1762_v49  ;;  %v5425_v57 = vsub.f32 %v6165_v62, %v1775_v31  ;;  %v1760_v49 = vmul.f32 0.015625, %v5264_v13 }
 0x35e   :  { %6161 = vst [vmem:[#allocation33_spill] sm:$0xff] %v5410_v1  ;;  %6162 = vst [vmem:[#allocation34_spill] sm:$0xff] %v5413_v34  ;;  %v2109_v21 = vmul.f32 0.015625, %v1923_v50  ;;  %v1784_v18 = vmul.f32 0.015625, %v1715_v19  ;;  %v1911_v38 = vmul.f32 %v5410_v1, %v5410_v1  ;;  %v1914_v24 = vmul.f32 %v5413_v34, %v5413_v34  ;;  %v6168_v19 = vld [vmem:[#allocation9_spill] sm:$0xff] }
 0x35f   :  { %6164 = vst [vmem:[#allocation10_spill] sm:$0xff] %v5422_v3  ;;  %6166 = vst [vmem:[#allocation24_spill] sm:$0xff] %v5425_v57  ;;  %v5435_v34 = vsub.f32 %v6168_v19, %v1759_v48  ;;  %v1903_v48 = vmul.f32 %v5425_v57, %v5425_v57  ;;  %v1890_v13 = vmul.f32 %v5422_v3, %v5422_v3  ;;  %v1757_v19 = vmul.f32 0.015625, %v5180_v11 }
 0x360   :  { %v2173_v45 = vadd.f32 1e-05, %v2109_v21  ;;  %v5430_v51 = vsub.f32 %v5055_v9, %v1784_v18  ;;  %v2095_v4 = vsel %vm79_vm0, %v1911_v38, 0.0  ;;  %v2104_v50 = vsel %vm79_vm0, %v1914_v24, 0.0  ;;  %v6170_v38 = vld [vmem:[#allocation26_spill] sm:$0xff] }
 0x361   :  { %6169 = vst [vmem:[#allocation9_spill] sm:$0xff] %v5435_v34  ;;  %v1917_v36 = vpop.xlane.xlu0 %1916  ;;  %2096 = vadd.xlane.f32.xlu0 %v2095_v4  ;;  %2105 = vadd.xlane.f32.xlu1 %v2104_v50  ;;  %v1926_v58 = vpop.xlane.xlu1 %1925  ;;  %v1773_v18 = vmul.f32 0.015625, %v5345_v26  ;;  %v2029_v21 = vsel %vm79_vm0, %v1889_v63, 0.0  ;;  %v5447_v24 = vsub.f32 %v6170_v38, %v1776_v43  ;;  %v1887_v63 = vmul.f32 %v5435_v34, %v5435_v34  ;;  %v6174_v38 = vld [vmem:[#allocation19_spill] sm:$0xff] }
 0x362   :  { %6167 = vst [vmem:[#allocation35_spill] sm:$0xff] %v5430_v51  ;;  %3658 = vrsqrt.f32 %v2173_v45  ;;  %v2107_v31 = vmul.f32 0.015625, %v1917_v36  ;;  %v2110_v62 = vmul.f32 0.015625, %v1926_v58  ;;  %v1912_v9 = vmul.f32 %v5430_v51, %v5430_v51  ;;  %v6172_v58 = vld [vmem:[#allocation11_spill] sm:$0xff] }
 0x363   :  { %6171 = vst [vmem:[#allocation26_spill] sm:$0xff] %v5447_v24  ;;  %v5454_v57 = vsub.f32 %v6172_v58, %v1760_v49  ;;  %v2032_v11 = vsel %vm79_vm0, %v1890_v13, 0.0  ;;  %v1904_v34 = vmul.f32 %v5447_v24, %v5447_v24  ;;  %v6176_v49 = vld [vmem:[#allocation4_spill] sm:$0xff]  ;;  %v1771_v13 = vmul.f32 0.015625, %v5358_v40 }
 0x364   :  { %v2171_v4 = vadd.f32 1e-05, %v2107_v31  ;;  %v2174_v45 = vadd.f32 1e-05, %v2110_v62  ;;  %v2098_v50 = vsel %vm79_vm0, %v1912_v9, 0.0  ;;  %v5457_v31 = vsub.f32 %v6174_v38, %v1773_v18 }
 0x365   :  { %v1935_v36 = vpop.xlane.xlu0 %1934  ;;  %2030 = vadd.xlane.f32.xlu0 %v2029_v21  ;;  %2099 = vadd.xlane.f32.xlu1 %v2098_v50  ;;  %v1920_v26 = vpop.xlane.xlu1 %1919  ;;  %6173 = vst [vmem:[#allocation11_spill] sm:$0xff] %v5454_v57  ;;  %v1774_v62 = vmul.f32 0.015625, %v5352_v29  ;;  %v2071_v50 = vsel %vm79_vm0, %v1903_v48, 0.0  ;;  %v5465_v58 = vsub.f32 %v6176_v49, %v1757_v19  ;;  %v1888_v19 = vmul.f32 %v5454_v57, %v5454_v57 }
 0x366   :  { %3660 = vrsqrt.f32 %v2171_v4  ;;  %v2113_v55 = vmul.f32 0.015625, %v1935_v36  ;;  %v2108_v43 = vmul.f32 0.015625, %v1920_v26  ;;  %6175 = vst [vmem:[#allocation19_spill] sm:$0xff] %v5457_v31  ;;  %v1758_v4 = vmul.f32 0.015625, %v5196_v27  ;;  %v6178_v26 = vld [vmem:[#allocation21_spill] sm:$0xff] }
 0x367   :  { %3662 = vrsqrt.f32 %v2174_v45  ;;  %6177 = vst [vmem:[#allocation4_spill] sm:$0xff] %v5465_v58  ;;  %v1901_v48 = vmul.f32 %v5457_v31, %v5457_v31  ;;  %v5475_v27 = vsub.f32 %v6178_v26, %v1774_v62  ;;  %v1885_v62 = vmul.f32 %v5465_v58, %v5465_v58  ;;  %v5497_v26 = vld [vmem:[%s6016_s9] ss:$0 sm:$0xff] }
 0x368   :  { %v2177_v9 = vadd.f32 1e-05, %v2113_v55  ;;  %v2172_v21 = vadd.f32 1e-05, %v2108_v43  ;;  %v2023_v55 = vsel %vm79_vm0, %v1887_v63, 0.0  ;;  %v6180_v63 = vld [vmem:[#allocation6_spill] sm:$0xff] }
 0x369   :  { %v1929_v36 = vpop.xlane.xlu0 %1928  ;;  %2072 = vadd.xlane.f32.xlu0 %v2071_v50  ;;  %2033 = vadd.xlane.f32.xlu1 %v2032_v11  ;;  %v1938_v18 = vpop.xlane.xlu1 %1937  ;;  %6179 = vst [vmem:[#allocation21_spill] sm:$0xff] %v5475_v27  ;;  %v2074_v11 = vsel %vm79_vm0, %v1904_v34, 0.0  ;;  %v2026_v34 = vsel %vm79_vm0, %v1888_v19, 0.0  ;;  %v6184_v19 = vld [vmem:[#allocation5_spill] sm:$0xff] }
 0x36a   :  { %3664 = vrsqrt.f32 %v2177_v9  ;;  %v2111_v29 = vmul.f32 0.015625, %v1929_v36  ;;  %v2114_v45 = vmul.f32 0.015625, %v1938_v18  ;;  %v1755_v9 = vmul.f32 0.015625, %v5201_v25  ;;  %v6182_v18 = vld [vmem:[#allocation20_spill] sm:$0xff] }
 0x36b   :  { %3666 = vrsqrt.f32 %v2172_v21  ;;  %v5482_v21 = vsub.f32 %v6180_v63, %v1758_v4  ;;  %v2065_v25 = vsel %vm79_vm0, %v1901_v48, 0.0  ;;  %v1902_v4 = vmul.f32 %v5475_v27, %v5475_v27 }
 0x36c   :  { %v2175_v43 = vadd.f32 1e-05, %v2111_v29  ;;  %v2178_v38 = vadd.f32 1e-05, %v2114_v45  ;;  %v5487_v29 = vsub.f32 %v6182_v18, %v1771_v13  ;;  %v1772_v45 = vmul.f32 0.015625, %v5361_v60 }
 0x36d   :  { %v5479_v50 = vpop.xlane.xlu0 %1946  ;;  %2024 = vadd.xlane.f32.xlu0 %v2023_v55  ;;  %2075 = vadd.xlane.f32.xlu1 %v2074_v11  ;;  %v1932_v40 = vpop.xlane.xlu1 %1931  ;;  %6181 = vst [vmem:[#allocation6_spill] sm:$0xff] %v5482_v21  ;;  %v2017_v60 = vsel %vm79_vm0, %v1885_v62, 0.0  ;;  %v1886_v63 = vmul.f32 %v5482_v21, %v5482_v21  ;;  %v5521_v62 = vld [vmem:[%s6017_s10] ss:$0 sm:$0xff] }
 0x36e   :  { %3668 = vrsqrt.f32 %v2175_v43  ;;  %v2112_v49 = vmul.f32 0.015625, %v1932_v40  ;;  %6183 = vst [vmem:[#allocation20_spill] sm:$0xff] %v5487_v29  ;;  %v1756_v40 = vmul.f32 0.015625, %v5215_v30 }
 0x36f   :  { %v3659_v36 = vpop.eup %3658  ;;  %3670 = vrsqrt.f32 %v2178_v38  ;;  %v5505_v38 = vsub.f32 %v6184_v19, %v1755_v9  ;;  %v1899_v9 = vmul.f32 %v5487_v29, %v5487_v29 }
 0x370   :  { %v2176_v55 = vadd.f32 1e-05, %v2112_v49  ;;  %v2301_v43 = vmul.f32 %v3659_v36, %v5032_v56  ;;  %v6186_v36 = vld [vmem:[#allocation22_spill] sm:$0xff] }
 0x371   :  { %v5500_v13 = vpop.xlane.xlu0 %1940  ;;  %2066 = vadd.xlane.f32.xlu0 %v2065_v25  ;;  %2027 = vadd.xlane.f32.xlu1 %v2026_v34  ;;  %v5502_v48 = vpop.xlane.xlu1 %1949  ;;  %6185 = vst [vmem:[#allocation5_spill] sm:$0xff] %v5505_v38  ;;  %v5513_v18 = vsub.f32 %v6186_v36, %v1772_v45  ;;  %v2068_v25 = vsel %vm79_vm0, %v1902_v4, 0.0  ;;  %v6188_v45 = vld [vmem:[#allocation32_spill] sm:$0xff]  ;;  %v1883_v4 = vmul.f32 %v5505_v38, %v5505_v38  ;;  %v6189_v36 = vld [vmem:[#allocation7_spill] sm:$0xff] }
 0x372   :  { %3672 = vrsqrt.f32 %v2176_v55  ;;  %v2371_v56 = vmul.f32 %v5497_v26, %v2301_v43  ;;  %v5532_v21 = vsub.f32 %v6189_v36, %v1756_v40  ;;  %v2115_v1 = vmul.f32 0.015625, %v5500_v13 }
 0x373   :  { %v3661_v11 = vpop.eup %3660  ;;  %6187 = vst [vmem:[#allocation22_spill] sm:$0xff] %v5513_v18 }
 0x374   :  { %v3663_v49 = vpop.eup %3662  ;;  %v2299_v30 = vmul.f32 %v3661_v11, %v5045_v15  ;;  %6190 = vst [vmem:[#allocation32_spill] sm:$0xff] %v5532_v21  ;;  %v2441_v27 = vadd.f32 %v5521_v62, %v2371_v56 }
 0x375   :  { %v5524_v34 = vpop.xlane.xlu0 %1958  ;;  %2018 = vadd.xlane.f32.xlu0 %v2017_v60  ;;  %2069 = vadd.xlane.f32.xlu1 %v2068_v25  ;;  %v5526_v55 = vpop.xlane.xlu1 %1943  ;;  %v2302_v43 = vmul.f32 %v3663_v49, %v6188_v45  ;;  %v2059_v60 = vsel %vm79_vm0, %v1899_v9, 0.0  ;;  %v2020_v25 = vsel %vm79_vm0, %v1886_v63, 0.0  ;;  %v1900_v49 = vmul.f32 %v5513_v18, %v5513_v18 }
 0x376   :  { %v2369_v15 = vmul.f32 %v5497_v26, %v2299_v30  ;;  %v2505_v58 = vmax.f32 %v2441_v27, 0.0 }
 0x377   :  { %v3665_v19 = vpop.eup %3664  ;;  %v2372_v29 = vmul.f32 %v5497_v26, %v2302_v43 }
 0x378   :  { %v3667_v11 = vpop.eup %3666  ;;  %v2305_v45 = vmul.f32 %v3665_v19, %v5062_v16  ;;  %v2439_v30 = vadd.f32 %v5521_v62, %v2369_v15  ;;  %v2011_v16 = vsel %vm79_vm0, %v1883_v4, 0.0  ;;  %v2062_v19 = vsel %vm79_vm0, %v1900_v49, 0.0 }
 0x379   :  { %v1953_v38 = vpop.xlane.xlu0 %1952  ;;  %2060 = vadd.xlane.f32.xlu0 %v2059_v60  ;;  %2021 = vadd.xlane.f32.xlu1 %v2020_v25  ;;  %v1962_v40 = vpop.xlane.xlu1 %1961  ;;  %v2442_v43 = vadd.f32 %v5521_v62, %v2372_v29  ;;  %v2300_v56 = vmul.f32 %v3667_v11, %v5070_v37  ;;  %v1884_v60 = vmul.f32 %v5532_v21, %v5532_v21  ;;  %v6191_v21 = vlaneseq }
 0x37a   :  { %v2375_v9 = vmul.f32 %v5497_v26, %v2305_v45  ;;  %v2503_v45 = vmax.f32 %v2439_v30, 0.0 }
 0x37b   :  { %v3669_v36 = vpop.eup %3668  ;;  %v2506_v63 = vmax.f32 %v2442_v43, 0.0  ;;  %v2370_v31 = vmul.f32 %v5497_v26, %v2300_v56 }
 0x37c   :  { %v3671_v18 = vpop.eup %3670  ;;  %v2303_v29 = vmul.f32 %v3669_v36, %v5084_v6  ;;  %v2445_v49 = vadd.f32 %v5521_v62, %v2375_v9  ;;  %v2014_v36 = vsel %vm79_vm0, %v1884_v60, 0.0 }
 0x37d   :  { %v5552_v37 = vpop.xlane.xlu0 %1970  ;;  %2012 = vadd.xlane.f32.xlu0 %v2011_v16  ;;  %2063 = vadd.xlane.f32.xlu1 %v2062_v19  ;;  %v1956_v15 = vpop.xlane.xlu1 %1955  ;;  %v2306_v27 = vmul.f32 %v3671_v18, %v5087_v7  ;;  %v5555_v11 = vpack.c.bf16 %v2506_v63, %v2505_v58  ;;  %v2440_v25 = vadd.f32 %v5521_v62, %v2370_v31 }
 0x37e   :  { %v2373_v43 = vmul.f32 %v5497_v26, %v2303_v29  ;;  %v2509_v18 = vmax.f32 %v2445_v49, 0.0 }
 0x37f   :  { %v2376_v4 = vmul.f32 %v5497_v26, %v2306_v27  ;;  %v2504_v56 = vmax.f32 %v2440_v25, 0.0  ;;  %v3673_v6 = vpop.eup %3672 }
 0x380   :  { %v2304_v31 = vmul.f32 %v3673_v6, %v5103_v22  ;;  %v2443_v63 = vadd.f32 %v5521_v62, %v2373_v43  ;;  %v5580_v22 = vshrl.u32 %v6191_v21, 7  ;;  %v2118_v43 = vmul.f32 0.015625, %v5502_v48 }
 0x381   :  { %v5562_v16 = vpop.xlane.xlu0 %1964  ;;  %2015 = vadd.xlane.f32.xlu1 %v2014_v36  ;;  %v5564_v19 = vpop.xlane.xlu1 %1973  ;;  %v2446_v7 = vadd.f32 %v5521_v62, %v2376_v4  ;;  %v5568_v58 = vpack.c.bf16 %v2504_v56, %v2503_v45  ;;  %v2121_v45 = vmul.f32 0.015625, %v5524_v34  ;;  %v2117_v21 = vmul.f32 0.015625, %v5479_v50 }
 0x382   :  { %v2374_v9 = vmul.f32 %v5497_v26, %v2304_v31  ;;  %v2507_v36 = vmax.f32 %v2443_v63, 0.0  ;;  %v2577_v31 = vsub.s32 1, %v5580_v22  ;;  %v2182_v63 = vadd.f32 1e-05, %v2118_v43 }
 0x383   :  { %v2510_v30 = vmax.f32 %v2446_v7, 0.0  ;;  %v2122_v7 = vmul.f32 0.015625, %v1962_v40  ;;  %v2120_v40 = vmul.f32 0.015625, %v1956_v15  ;;  %v2181_v57 = vadd.f32 1e-05, %v2117_v21 }
 0x384   :  { %v2444_v25 = vadd.f32 %v5521_v62, %v2374_v9  ;;  %v5598_v51 = vadd.s32 8, %v5580_v22 }
 0x385   :  { %v5572_v29 = vpop.xlane.xlu0 %1982  ;;  %v5574_v60 = vpop.xlane.xlu1 %1967  ;;  %v5576_v27 = vpack.c.bf16 %v2510_v30, %v2509_v18  ;;  %v5592_v18 = vld [vmem:[%s6018_s1] sm:$0xf]  ;;  %v2185_v30 = vadd.f32 1e-05, %v2121_v45 }
 0x386   :  { %v2508_v4 = vmax.f32 %v2444_v25, 0.0  ;;  %v2116_v25 = vmul.f32 0.015625, %v5526_v55  ;;  %v2578_v48 = vrot.slane %v5592_v18, %v2577_v31 }
 0x387   :  { %3674 = vrsqrt.f32 %v2185_v30 }
 0x388   :  { %v5585_v6 = vpack.c.bf16 %v2508_v4, %v2507_v36  ;;  %v2119_v36 = vmul.f32 0.015625, %v1953_v38  ;;  %v2186_v4 = vadd.f32 1e-05, %v2122_v7  ;;  %3676 = vrsqrt.f32 %v2182_v63 }
 0x389   :  { %v5583_v49 = vpop.xlane.xlu0 %1976  ;;  %v1986_v56 = vpop.xlane.xlu1 %1985  ;;  %v2180_v50 = vadd.f32 1e-05, %v2116_v25  ;;  %vm2588_vm7 = vcmp.eq.s32.totalorder %v2578_v48, %v5580_v22  ;;  %v2184_v38 = vadd.f32 1e-05, %v2120_v40  ;;  %vm2592_vm13 = vcmp.eq.s32.totalorder %v2578_v48, %v5598_v51 }
 0x38a   :  { %v2183_v43 = vadd.f32 1e-05, %v2119_v36  ;;  %3678 = vrsqrt.f32 %v2186_v4  ;;  %vm3231_vm14 = vmpackc.low %vm2592_vm13, %vm2588_vm7  ;;  %v2179_v63 = vadd.f32 1e-05, %v2115_v1  ;;  %v3795_v40 = vmov 1.0|1.0  }
 0x38b   :  { %3680 = vrsqrt.f32 %v2181_v57  ;;  %3232 = vmatprep.mubr.msk.bf16.mxu1 %vm3231_vm14, %v3795_v40 }
 0x38c   :  { %3682 = vrsqrt.f32 %v2180_v50 }
 0x38d   :  { %v1995_v9 = vpop.xlane.xlu0 %1994  ;;  %v1980_v34 = vpop.xlane.xlu1 %1979  ;;  %3684 = vrsqrt.f32 %v2183_v43 }
 0x38e   :  { %v2133_v55 = vmul.f32 0.015625, %v1995_v9  ;;  %3686 = vrsqrt.f32 %v2184_v38 }
 0x390   :  { %v2197_v13 = vadd.f32 1e-05, %v2133_v55 }
 0x391   :  { %v1989_v24 = vpop.xlane.xlu0 %1988  ;;  %v1998_v3 = vpop.xlane.xlu1 %1997 }
 0x392   :  { %v2134_v45 = vmul.f32 0.015625, %v1998_v3  ;;  %v2130_v3 = vmul.f32 0.015625, %v1986_v56  ;;  %v2131_v36 = vmul.f32 0.015625, %v1989_v24 }
 0x394   :  { %v2198_v15 = vadd.f32 1e-05, %v2134_v45  ;;  %v2129_v45 = vmul.f32 0.015625, %v5572_v29  ;;  %v2194_v1 = vadd.f32 1e-05, %v2130_v3  ;;  %v3675_v55 = vpop.eup %3674  ;;  %v2127_v29 = vmul.f32 0.015625, %v5583_v49 }
 0x395   :  { %v2007_v7 = vpop.xlane.xlu0 %2006  ;;  %v1992_v31 = vpop.xlane.xlu1 %1991  ;;  %v2195_v38 = vadd.f32 1e-05, %v2131_v36  ;;  %v2313_v3 = vmul.f32 %v3675_v55, %v5129_v46  ;;  %v2126_v36 = vmul.f32 0.015625, %v5564_v19  ;;  %v2124_v49 = vmul.f32 0.015625, %v5574_v60 }
 0x396   :  { %v2137_v21 = vmul.f32 0.015625, %v2007_v7  ;;  %v2132_v30 = vmul.f32 0.015625, %v1992_v31  ;;  %3688 = vrsqrt.f32 %v2198_v15  ;;  %v2128_v15 = vmul.f32 0.015625, %v1980_v34  ;;  %v3677_v31 = vpop.eup %3676 }
 0x397   :  { %v2383_v46 = vmul.f32 %v5497_v26, %v2313_v3  ;;  %v2188_v55 = vadd.f32 1e-05, %v2124_v49 }
 0x398   :  { %v2201_v25 = vadd.f32 1e-05, %v2137_v21  ;;  %v2196_v4 = vadd.f32 1e-05, %v2132_v30  ;;  %v3679_v21 = vpop.eup %3678  ;;  %v2125_v30 = vmul.f32 0.015625, %v5552_v37  ;;  %v2310_v37 = vmul.f32 %v3677_v31, %v5114_v28 }
 0x399   :  { %v2001_v9 = vpop.xlane.xlu0 %2000  ;;  %v2010_v57 = vpop.xlane.xlu1 %2009 }
 0x39a   :  { %3690 = vrsqrt.f32 %v2201_v25  ;;  %v2135_v48 = vmul.f32 0.015625, %v2001_v9  ;;  %v2138_v50 = vmul.f32 0.015625, %v2010_v57  ;;  %v2193_v25 = vadd.f32 1e-05, %v2129_v45 }
 0x39b   :  { %3692 = vrsqrt.f32 %v2179_v63  ;;  %v2123_v9 = vmul.f32 0.015625, %v5562_v16  ;;  %v2314_v57 = vmul.f32 %v3679_v21, %v5155_v10  ;;  %v2380_v28 = vmul.f32 %v5497_v26, %v2310_v37 }
 0x39c   :  { %3694 = vrsqrt.f32 %v2197_v13  ;;  %v2199_v56 = vadd.f32 1e-05, %v2135_v48  ;;  %v2202_v43 = vadd.f32 1e-05, %v2138_v50  ;;  %v3681_v13 = vpop.eup %3680  ;;  %v2189_v50 = vadd.f32 1e-05, %v2125_v30 }
 0x39d   :  { %3696 = vrsqrt.f32 %v2196_v4  ;;  %v2004_v24 = vpop.xlane.xlu1 %2003  ;;  %v2192_v4 = vadd.f32 1e-05, %v2128_v15  ;;  %v3683_v34 = vpop.eup %3682  ;;  %v2309_v19 = vmul.f32 %v3681_v13, %v5095_v42  ;;  %v2384_v10 = vmul.f32 %v5497_v26, %v2314_v57 }
 0x39e   :  { %3698 = vrsqrt.f32 %v2199_v56  ;;  %v2136_v7 = vmul.f32 0.015625, %v2004_v24  ;;  %v3685_v48 = vpop.eup %3684  ;;  %v2453_v42 = vadd.f32 %v5521_v62, %v2383_v46  ;;  %v2308_v21 = vmul.f32 %v3683_v34, %v5139_v20 }
 0x39f   :  { %3700 = vrsqrt.f32 %v2202_v43  ;;  %v3687_v45 = vpop.eup %3686  ;;  %v2190_v43 = vadd.f32 1e-05, %v2126_v36  ;;  %v5621_v31 = vmul.f32 %v5497_v26, %v2309_v19  ;;  %v5629_v3 = vadd.f32 %v5521_v62, %v2380_v28 }
 0x3a0   :  { %3702 = vrsqrt.f32 %v2194_v1  ;;  %v2200_v63 = vadd.f32 1e-05, %v2136_v7  ;;  %v2191_v1 = vadd.f32 1e-05, %v2127_v29  ;;  %v2312_v15 = vmul.f32 %v3687_v45, %v5171_v61 }
 0x3a1   :  { %3704 = vrsqrt.f32 %v2195_v38  ;;  %v2187_v38 = vadd.f32 1e-05, %v2123_v9  ;;  %v2454_v61 = vadd.f32 %v5521_v62, %v2384_v10  ;;  %v2517_v9 = vmax.f32 %v2453_v42, 0.0 }
 0x3a2   :  { %3706 = vrsqrt.f32 %v2200_v63  ;;  %v2311_v63 = vmul.f32 %v3685_v48, %v5152_v32  ;;  %v5639_v57 = vmul.f32 %v5497_v26, %v2308_v21  ;;  %v2585_v37 = vsub.s32 3, %v5580_v22 }
 0x3a3   :  { %3708 = vrsqrt.f32 %v2193_v25  ;;  %v3689_v56 = vpop.eup %3688  ;;  %v2518_v45 = vmax.f32 %v2454_v61, 0.0 }
 0x3a4   :  { %3710 = vrsqrt.f32 %v2192_v4  ;;  %v2326_v29 = vmul.f32 %v3689_v56, %v5254_v52  ;;  %v2382_v4 = vmul.f32 %v5497_v26, %v2312_v15 }
 0x3a5   :  { %3712 = vrsqrt.f32 %v2189_v50  ;;  %v2381_v50 = vmul.f32 %v5497_v26, %v2311_v63 }
 0x3a6   :  { %3714 = vrsqrt.f32 %v2191_v1  ;;  %v2586_v1 = vrot.slane %v5592_v18, %v2585_v37  ;;  %v2452_v19 = vadd.f32 %v5521_v62, %v2382_v4 }
 0x3a7   :  { %v3691_v16 = vpop.eup %3690  ;;  %3716 = vrsqrt.f32 %v2190_v43 }
 0x3a8   :  { %v3693_v24 = vpop.eup %3692  ;;  %v2329_v60 = vmul.f32 %v3691_v16, %v5275_v8  ;;  %3718 = vrsqrt.f32 %v2187_v38  ;;  %v2581_v16 = vsub.s32 2, %v5580_v22  ;;  %vm2590_vm15 = vcmp.eq.s32.totalorder %v2586_v1, %v5580_v22 }
 0x3a9   :  { %v3695_v7 = vpop.eup %3694  ;;  %v5632_v13 = vmul.f32 %v3693_v24, %v5111_v33  ;;  %3720 = vrsqrt.f32 %v2188_v55  ;;  %vm2594_vm1 = vcmp.eq.s32.totalorder %v2586_v1, %v5598_v51  ;;  %v2516_v4 = vmax.f32 %v2452_v19, 0.0 }
 0x3aa   :  { %v3697_v30 = vpop.eup %3696  ;;  %v2399_v25 = vmul.f32 %v5497_v26, %v2329_v60  ;;  %v2325_v32 = vmul.f32 %v3695_v7, %v5241_v35  ;;  %vm5662_vm2 = vmpackc.low %vm2594_vm1, %vm2590_vm15 }
 0x3ab   :  { %v3699_v8 = vpop.eup %3698  ;;  %v2324_v49 = vmul.f32 %v3697_v30, %v5267_v12  ;;  %v2451_v30 = vadd.f32 %v5521_v62, %v2381_v50 }
 0x3ac   :  { %v3701_v36 = vpop.eup %3700  ;;  %v2327_v20 = vmul.f32 %v3699_v8, %v5286_v2  ;;  %v2469_v33 = vadd.f32 %v5521_v62, %v2399_v25  ;;  %v2396_v2 = vmul.f32 %v5497_v26, %v2326_v29  ;;  %v2395_v56 = vmul.f32 %v5497_v26, %v2325_v32 }
 0x3ad   :  { %v3703_v34 = vpop.eup %3702  ;;  %v2330_v52 = vmul.f32 %v3701_v36, %v5289_v39  ;;  %v2394_v60 = vmul.f32 %v5497_v26, %v2324_v49  ;;  %v2449_v49 = vadd.f32 %v5521_v62, %v5621_v31 }
 0x3ae   :  { %v3705_v48 = vpop.eup %3704  ;;  %v2397_v39 = vmul.f32 %v5497_v26, %v2327_v20  ;;  %v2322_v43 = vmul.f32 %v3703_v34, %v5227_v14  ;;  %v2533_v24 = vmax.f32 %v2469_v33, 0.0  ;;  %v2466_v55 = vadd.f32 %v5521_v62, %v2396_v2  ;;  %v2743_v33 = vld [vmem:[%s6019_s11 + $0x18] sm:$0xff] }
 0x3af   :  { %v2400_v35 = vmul.f32 %v5497_v26, %v2330_v52  ;;  %v3707_v46 = vpop.eup %3706  ;;  %v2323_v28 = vmul.f32 %v3705_v48, %v5251_v41  ;;  %v2582_v41 = vrot.slane %v5592_v18, %v2581_v16  ;;  %v2465_v25 = vadd.f32 %v5521_v62, %v2395_v56 }
 0x3b0   :  { %v3709_v38 = vpop.eup %3708  ;;  %v2328_v12 = vmul.f32 %v3707_v46, %v5294_v54  ;;  %v2467_v42 = vadd.f32 %v5521_v62, %v2397_v39  ;;  %v2624_v54 = vpack.c.bf16 %v2518_v45, %v2517_v9  ;;  %v2392_v32 = vmul.f32 %v5497_v26, %v2322_v43 }
 0x3b1   :  { %v2470_v10 = vadd.f32 %v5521_v62, %v2400_v35  ;;  %v3711_v15 = vpop.eup %3710  ;;  %v2321_v63 = vmul.f32 %v3709_v38, %v5199_v53  ;;  %v2393_v36 = vmul.f32 %v5497_v26, %v2323_v28  ;;  %vm2589_vm3 = vcmp.eq.s32.totalorder %v2582_v41, %v5580_v22 }
 0x3b2   :  { %v2398_v7 = vmul.f32 %v5497_v26, %v2328_v12  ;;  %v3713_v29 = vpop.eup %3712  ;;  %v2320_v34 = vmul.f32 %v3711_v15, %v5233_v47  ;;  %vm2593_vm4 = vcmp.eq.s32.totalorder %v2582_v41, %v5598_v51  ;;  %v2531_v9 = vmax.f32 %v2467_v42, 0.0 }
 0x3b3   :  { %v2534_v14 = vmax.f32 %v2470_v10, 0.0  ;;  %v3715_v20 = vpop.eup %3714  ;;  %v2530_v37 = vmax.f32 %v2466_v55, 0.0  ;;  %v2464_v48 = vadd.f32 %v5521_v62, %v2394_v60  ;;  %vm5677_vm5 = vmpackc.low %vm2593_vm4, %vm2589_vm3  ;;  %v2515_v2 = vmax.f32 %v2451_v30, 0.0 }
 0x3b4   :  { %v2468_v61 = vadd.f32 %v5521_v62, %v2398_v7  ;;  %v3717_v52 = vpop.eup %3716  ;;  %v2377_v47 = vmul.f32 %v5497_v26, %v5632_v13  ;;  %v2391_v35 = vmul.f32 %v5497_v26, %v2321_v63  ;;  %v2529_v1 = vmax.f32 %v2465_v25, 0.0  ;;  %v2043_v25 = vpop.xlane.xlu0 %2042 }
 0x3b5   :  { %v2632_v8 = vpack.c.bf16 %v2534_v14, %v2533_v24  ;;  %v3719_v50 = vpop.eup %3718  ;;  %v2463_v46 = vadd.f32 %v5521_v62, %v2393_v36  ;;  %v2319_v19 = vmul.f32 %v3715_v20, %v5224_v59  ;;  %v2623_v56 = vpack.c.bf16 %v2516_v4, %v2515_v2  ;;  %v2046_v14 = vpop.xlane.xlu1 %2045 }
 0x3b6   :  { %v2532_v53 = vmax.f32 %v2468_v61, 0.0  ;;  %v3721_v45 = vpop.eup %3720  ;;  %v2514_v43 = vmax.f32 %v5629_v3, 0.0  ;;  %v2448_v16 = vadd.f32 %v5521_v62, %v5639_v57  ;;  %v2318_v31 = vmul.f32 %v3717_v52, %v5186_v5 }
 0x3b7   :  { %3311 = vmatprep.subr.bf16.mxu1 %v2632_v8  ;;  %v2630_v38 = vpack.c.bf16 %v2530_v37, %v2529_v1  ;;  %v2528_v13 = vmax.f32 %v2464_v48, 0.0  ;;  %v2462_v10 = vadd.f32 %v5521_v62, %v2392_v32  ;;  %v2390_v12 = vmul.f32 %v5497_v26, %v2320_v34 }
 0x3b8   :  { %3312 = vmatpush3.bf16.msra.mxu1 %v2624_v54  ;;  %v2631_v39 = vpack.c.bf16 %v2532_v53, %v2531_v9  ;;  %v2513_v28 = vmax.f32 %v2449_v49, 0.0  ;;  %v2447_v24 = vadd.f32 %v5521_v62, %v2377_v47  ;;  %v2527_v59 = vmax.f32 %v2463_v46, 0.0  ;;  %v2037_v53 = vpop.xlane.xlu0 %2036 }
 0x3b9   :  { %v2461_v3 = vadd.f32 %v5521_v62, %v2391_v35  ;;  %v2389_v55 = vmul.f32 %v5497_v26, %v2319_v19  ;;  %v2317_v57 = vmul.f32 %v3713_v29, %v5165_v17  ;;  %v2512_v60 = vmax.f32 %v2448_v16, 0.0 }
 0x3ba   :  { %3313 = vmatprep.subr.bf16.mxu1 %v2631_v39  ;;  %v2622_v5 = vpack.c.bf16 %v2514_v43, %v2513_v28  ;;  %v2388_v15 = vmul.f32 %v5497_v26, %v2318_v31  ;;  %v2629_v7 = vpack.c.bf16 %v2528_v13, %v2527_v59  ;;  %v2526_v42 = vmax.f32 %v2462_v10, 0.0 }
 0x3bb   :  { %v2460_v41 = vadd.f32 %v5521_v62, %v2390_v12  ;;  %v2316_v54 = vmul.f32 %v3721_v45, %v5209_v23  ;;  %v2511_v30 = vmax.f32 %v2447_v24, 0.0  ;;  %v2525_v63 = vmax.f32 %v2461_v3, 0.0  ;;  %v2040_v23 = vpop.xlane.xlu1 %2039 }
 0x3bc   :  { %3314 = vmatpush3.bf16.msra.mxu1 %v2623_v56  ;;  %v2459_v8 = vadd.f32 %v5521_v62, %v2389_v55  ;;  %v2387_v17 = vmul.f32 %v5497_v26, %v2317_v57  ;;  %v2315_v29 = vmul.f32 %v3719_v50, %v5183_v0  ;;  %v2458_v4 = vadd.f32 %v5521_v62, %v2388_v15  ;;  %v2055_v39 = vpop.xlane.xlu0 %2054 }
 0x3bd   :  { %3315 = vmatprep.subr.bf16.mxu1 %v2630_v38  ;;  %v2621_v61 = vpack.c.bf16 %v2512_v60, %v2511_v30  ;;  %v2628_v36 = vpack.c.bf16 %v2526_v42, %v2525_v63  ;;  %v2524_v20 = vmax.f32 %v2460_v41, 0.0  ;;  %v2386_v32 = vmul.f32 %v5497_v26, %v2316_v54 }
 0x3be   :  { %v2523_v34 = vmax.f32 %v2459_v8, 0.0  ;;  %v2457_v52 = vadd.f32 %v5521_v62, %v2387_v17  ;;  %v2385_v9 = vmul.f32 %v5497_v26, %v2315_v29  ;;  %v2522_v48 = vmax.f32 %v2458_v4, 0.0 }
 0x3bf   :  { %v2456_v0 = vadd.f32 %v5521_v62, %v2386_v32  ;;  %v2573_v49 = vsub.s32 0, %v5580_v22  ;;  %v2058_v47 = vpop.xlane.xlu1 %2057  ;;  %v2149_v56 = vmul.f32 0.015625, %v2043_v25  ;;  %v2153_v16 = vmul.f32 0.015625, %v2055_v39 }
 0x3c0   :  { %3316 = vmatpush3.bf16.msra.mxu1 %v2622_v5  ;;  %v2627_v37 = vpack.c.bf16 %v2524_v20, %v2523_v34  ;;  %v2521_v50 = vmax.f32 %v2457_v52, 0.0  ;;  %v2455_v2 = vadd.f32 %v5521_v62, %v2385_v9  ;;  %v2049_v31 = vpop.xlane.xlu0 %2048  ;;  %v2154_v38 = vmul.f32 0.015625, %v2058_v47  ;;  %v6197_v47 = vld [vmem:[#allocation15_spill] sm:$0xff] }
 0x3c1   :  { %3317 = vmatprep.subr.bf16.mxu1 %v2629_v7  ;;  %v2520_v45 = vmax.f32 %v2456_v0, 0.0  ;;  %v2574_v46 = vrot.slane %v5592_v18, %v2573_v49  ;;  %v2147_v18 = vmul.f32 0.015625, %v2037_v53  ;;  %v2217_v12 = vadd.f32 1e-05, %v2153_v16  ;;  %v6200_v16 = vld [vmem:[#allocation16_spill] sm:$0xff] }
 0x3c2   :  { %v2626_v35 = vpack.c.bf16 %v2522_v48, %v2521_v50  ;;  %v2519_v1 = vmax.f32 %v2455_v2, 0.0  ;;  %v2151_v28 = vmul.f32 0.015625, %v2049_v31  ;;  %v2148_v3 = vmul.f32 0.015625, %v2040_v23  ;;  %v6196_v2 = vld [vmem:[#allocation13_spill] sm:$0xff] }
 0x3c3   :  { %v2052_v43 = vpop.xlane.xlu1 %2051  ;;  %vm2587_vm6 = vcmp.eq.s32.totalorder %v2574_v46, %v5580_v22  ;;  %vm2591_vm8 = vcmp.eq.s32.totalorder %v2574_v46, %v5598_v51  ;;  %v2211_v51 = vadd.f32 1e-05, %v2147_v18 }
 0x3c4   :  { %3318 = vmatpush3.bf16.msra.mxu1 %v2621_v61  ;;  %v2625_v19 = vpack.c.bf16 %v2520_v45, %v2519_v1  ;;  %v2152_v13 = vmul.f32 0.015625, %v2052_v43  ;;  %vm3233_vm9 = vmpackc.low %vm2591_vm8, %vm2587_vm6  ;;  %v2079_v22 = vpop.xlane.xlu0 %2078  ;;  %v2212_v5 = vadd.f32 1e-05, %v2148_v3  ;;  %v6198_v45 = vld [vmem:[#allocation17_spill] sm:$0xff]  ;;  %v6199_v1 = vld [vmem:[#allocation18_spill] sm:$0xff] }
 0x3c5   :  { %3319 = vmatprep.subr.bf16.mxu1 %v2628_v36  ;;  %v2161_v60 = vmul.f32 0.015625, %v2079_v22 }
 0x3c6   :  { %v2216_v24 = vadd.f32 1e-05, %v2152_v13 }
 0x3c7   :  { %v2082_v59 = vpop.xlane.xlu1 %2081  ;;  %v2225_v41 = vadd.f32 1e-05, %v2161_v60 }
 0x3c8   :  { %3320 = vmatpush3.bf16.msra.mxu1 %v5576_v27  ;;  %v2150_v27 = vmul.f32 0.015625, %v2046_v14  ;;  %v2162_v54 = vmul.f32 0.015625, %v2082_v59 }
 0x3c9   :  { %3321 = vmatprep.subr.bf16.mxu1 %v2627_v37 }
 0x3ca   :  { %v2214_v10 = vadd.f32 1e-05, %v2150_v27  ;;  %v2226_v4 = vadd.f32 1e-05, %v2162_v54 }
 0x3cc   :  { %3322 = vmatpush3.bf16.msra.mxu1 %v5585_v6  ;;  %v2213_v6 = vadd.f32 1e-05, %v2149_v56 }
 0x3cd   :  { %3323 = vmatprep.subr.bf16.mxu1 %v2626_v35 }
 0x3ce   :  { %3722 = vrsqrt.f32 %v2213_v6  ;;  %v2091_v55 = vpop.xlane.xlu0 %2090  ;;  %v6201_v6 = vld [vmem:[#allocation12_spill] sm:$0xff] }
 0x3cf   :  { %3724 = vrsqrt.f32 %v2214_v10  ;;  %v2165_v21 = vmul.f32 0.015625, %v2091_v55 }
 0x3d0   :  { %3324 = vmatpush3.bf16.msra.mxu1 %v5555_v11  ;;  %v2218_v11 = vadd.f32 1e-05, %v2154_v38  ;;  %3726 = vrsqrt.f32 %v2217_v12 }
 0x3d1   :  { %3325 = vmatprep.subr.bf16.mxu1 %v2625_v19  ;;  %v2229_v36 = vadd.f32 1e-05, %v2165_v21 }
 0x3d2   :  { %3728 = vrsqrt.f32 %v2218_v11  ;;  %v2094_v57 = vpop.xlane.xlu1 %2093  ;;  %v2085_v15 = vpop.xlane.xlu0 %2084 }
 0x3d3   :  { %3730 = vrsqrt.f32 %v2216_v24  ;;  %v2166_v14 = vmul.f32 0.015625, %v2094_v57  ;;  %v2163_v32 = vmul.f32 0.015625, %v2085_v15 }
 0x3d4   :  { %3326 = vmatpush3.bf16.msra.mxu1 %v5568_v58  ;;  %v2215_v58 = vadd.f32 1e-05, %v2151_v28  ;;  %3732 = vrsqrt.f32 %v2211_v51 }
 0x3d5   :  { %v2230_v25 = vadd.f32 1e-05, %v2166_v14  ;;  %v2227_v19 = vadd.f32 1e-05, %v2163_v32  ;;  %v6202_v14 = vld [vmem:[#allocation14_spill] sm:$0xff] }
 0x3d6   :  { %3734 = vrsqrt.f32 %v2215_v58  ;;  %v2088_v7 = vpop.xlane.xlu1 %2087 }
 0x3d7   :  { %3234 = vmatmul.mubr.msk.bf16.vlgmr.msra.gmra.mxu1 %vm3233_vm9, %v3795_v40  ;;  %3736 = vrsqrt.f32 %v2212_v5  ;;  %v2164_v63 = vmul.f32 0.015625, %v2088_v7 }
 0x3d8   :  { %3236 = vmatprep.mubr.msk.bf16.mxu1 %vm5662_vm2, %v3795_v40  ;;  %3738 = vrsqrt.f32 %v2225_v41 }
 0x3d9   :  { %3740 = vrsqrt.f32 %v2230_v25  ;;  %v2228_v52 = vadd.f32 1e-05, %v2164_v63 }
 0x3db   :  { %v3723_v42 = vpop.eup %3722 }
 0x3dc   :  { %v3725_v30 = vpop.eup %3724  ;;  %v2341_v37 = vmul.f32 %v3723_v42, %v5298_v44 }
 0x3dd   :  { %v3727_v17 = vpop.eup %3726  ;;  %v2342_v49 = vmul.f32 %v3725_v30, %v6196_v2  ;;  %v6203_v2 = vld [vmem:[#allocation31_spill] sm:$0xff] }
 0x3de   :  { %v2345_v35 = vmul.f32 %v3727_v17, %v6197_v47  ;;  %v2411_v38 = vmul.f32 %v5497_v26, %v2341_v37 }
 0x3df   :  { %v3729_v61 = vpop.eup %3728  ;;  %v2412_v10 = vmul.f32 %v5497_v26, %v2342_v49 }
 0x3e0   :  { %v3731_v20 = vpop.eup %3730  ;;  %v2346_v39 = vmul.f32 %v3729_v61, %v6198_v45  ;;  %v2415_v28 = vmul.f32 %v5497_v26, %v2345_v35  ;;  %v5736_v55 = vadd.f32 %v5521_v62, %v2411_v38 }
 0x3e1   :  { %v3733_v34 = vpop.eup %3732  ;;  %v2344_v46 = vmul.f32 %v3731_v20, %v6199_v1  ;;  %v5740_v15 = vadd.f32 %v5521_v62, %v2412_v10  ;;  %v6204_v1 = vld [vmem:[#allocation29_spill] sm:$0xff] }
 0x3e2   :  { %v2339_v13 = vmul.f32 %v3733_v34, %v6201_v6  ;;  %v2416_v11 = vmul.f32 %v5497_v26, %v2346_v39  ;;  %v2485_v21 = vadd.f32 %v5521_v62, %v2415_v28  ;;  %v2545_v61 = vmax.f32 %v5736_v55, 0.0 }
 0x3e3   :  { %v3735_v48 = vpop.eup %3734  ;;  %v2414_v24 = vmul.f32 %v5497_v26, %v2344_v46 }
 0x3e4   :  { %v2343_v31 = vmul.f32 %v3735_v48, %v6200_v16  ;;  %v3737_v12 = vpop.eup %3736  ;;  %v2409_v57 = vmul.f32 %v5497_v26, %v2339_v13  ;;  %v2486_v42 = vadd.f32 %v5521_v62, %v2416_v11 }
 0x3e5   :  { %v2340_v7 = vmul.f32 %v3737_v12, %v6202_v14  ;;  %v2484_v41 = vadd.f32 %v5521_v62, %v2414_v24  ;;  %v3739_v25 = vpop.eup %3738  ;;  %v6207_v24 = vld [vmem:[#allocation33_spill] sm:$0xff] }
 0x3e6   :  { %v2103_v8 = vpop.xlane.xlu0 %2102  ;;  %v2413_v3 = vmul.f32 %v5497_v26, %v2343_v31  ;;  %v3741_v20 = vpop.eup %3740 }
 0x3e7   :  { %v2169_v29 = vmul.f32 0.015625, %v2103_v8  ;;  %v2410_v34 = vmul.f32 %v5497_v26, %v2340_v7  ;;  %v2548_v37 = vmax.f32 %v2484_v41, 0.0  ;;  %v2358_v46 = vmul.f32 %v3741_v20, %v6204_v1  ;;  %v5779_v20 = vld [vmem:[%s6016_s9] ss:$0 sm:$0xff]  ;;  %s3796_s9 = smov 64  }
 0x3e9   :  { %v2233_v23 = vadd.f32 1e-05, %v2169_v29  ;;  %v2483_v29 = vadd.f32 %v5521_v62, %v2413_v3  ;;  %v5758_v31 = vadd.f32 %v5521_v62, %v2410_v34  ;;  %v6208_v3 = vld [vmem:[#allocation34_spill] sm:$0xff] }
 0x3ea   :  { %v2097_v9 = vpop.xlane.xlu0 %2096  ;;  %v2106_v53 = vpop.xlane.xlu1 %2105 }
 0x3eb   :  { %3742 = vrsqrt.f32 %v2233_v23  ;;  %v2167_v0 = vmul.f32 0.015625, %v2097_v9  ;;  %v2170_v50 = vmul.f32 0.015625, %v2106_v53  ;;  %v2546_v23 = vmax.f32 %v5740_v15, 0.0 }
 0x3ec   :  { %3744 = vrsqrt.f32 %v2229_v36  ;;  %v5749_v36 = vadd.f32 %v5521_v62, %v2409_v57  ;;  %v2549_v9 = vmax.f32 %v2485_v21, 0.0  ;;  %v2550_v53 = vmax.f32 %v2486_v42, 0.0 }
 0x3ed   :  { %3746 = vrsqrt.f32 %v2226_v4  ;;  %v2231_v56 = vadd.f32 1e-05, %v2167_v0  ;;  %v2234_v27 = vadd.f32 1e-05, %v2170_v50  ;;  %v2547_v39 = vmax.f32 %v2483_v29, 0.0 }
 0x3ee   :  { %3748 = vrsqrt.f32 %v2228_v52  ;;  %v2031_v43 = vpop.xlane.xlu0 %2030  ;;  %v2100_v44 = vpop.xlane.xlu1 %2099  ;;  %v5760_v6 = vpack.c.bf16 %v2550_v53, %v2549_v9 }
 0x3ef   :  { %3750 = vrsqrt.f32 %v2231_v56  ;;  %v2168_v18 = vmul.f32 0.015625, %v2100_v44  ;;  %v2145_v22 = vmul.f32 0.015625, %v2031_v43  ;;  %v5762_v13 = vpack.c.bf16 %v2548_v37, %v2547_v39  ;;  %v6212_v37 = vld [vmem:[#allocation35_spill] sm:$0xff] }
 0x3f0   :  { %3752 = vrsqrt.f32 %v2234_v27 }
 0x3f1   :  { %3754 = vrsqrt.f32 %v2227_v19  ;;  %v2232_v51 = vadd.f32 1e-05, %v2168_v18  ;;  %v2209_v54 = vadd.f32 1e-05, %v2145_v22  ;;  %v6205_v19 = vld [vmem:[#allocation23_spill] sm:$0xff] }
 0x3f2   :  { %v2073_v59 = vpop.xlane.xlu0 %2072  ;;  %v2034_v58 = vpop.xlane.xlu1 %2033  ;;  %v2353_v56 = vmul.f32 %v3739_v25, %v6205_v19  ;;  %v6206_v18 = vld [vmem:[#allocation27_spill] sm:$0xff]  ;;  %v6210_v25 = vld [vmem:[#allocation25_spill] sm:$0xff] }
 0x3f3   :  { %v2159_v5 = vmul.f32 0.015625, %v2073_v59  ;;  %v2146_v60 = vmul.f32 0.015625, %v2034_v58  ;;  %3756 = vrsqrt.f32 %v2232_v51  ;;  %v5792_v19 = vld [vmem:[%s6017_s10] ss:$0 sm:$0xff] }
 0x3f4   :  { %v5770_v7 = vmul.f32 %v5497_v26, %v2353_v56 }
 0x3f5   :  { %v2210_v30 = vadd.f32 1e-05, %v2146_v60  ;;  %v2223_v63 = vadd.f32 1e-05, %v2159_v5  ;;  %v2428_v5 = vmul.f32 %v5497_v26, %v2358_v46  ;;  %v6209_v60 = vld [vmem:[#allocation30_spill] sm:$0xff] }
 0x3f6   :  { %v2025_v8 = vpop.xlane.xlu0 %2024  ;;  %v2076_v17 = vpop.xlane.xlu1 %2075 }
 0x3f7   :  { %v2143_v4 = vmul.f32 0.015625, %v2025_v8  ;;  %v2160_v32 = vmul.f32 0.015625, %v2076_v17  ;;  %3758 = vrsqrt.f32 %v2210_v30 }
 0x3f8   :  { %v3743_v52 = vpop.eup %3742  ;;  %3760 = vrsqrt.f32 %v2209_v54 }
 0x3f9   :  { %v3745_v48 = vpop.eup %3744  ;;  %v2207_v0 = vadd.f32 1e-05, %v2143_v4  ;;  %v2224_v50 = vadd.f32 1e-05, %v2160_v32  ;;  %v2361_v49 = vmul.f32 %v3743_v52, %v6203_v2  ;;  %3762 = vrsqrt.f32 %v2223_v63  ;;  %v6211_v32 = vld [vmem:[#allocation28_spill] sm:$0xff] }
 0x3fa   :  { %v3747_v47 = vpop.eup %3746  ;;  %v2067_v35 = vpop.xlane.xlu0 %2066  ;;  %v2357_v10 = vmul.f32 %v3745_v48, %v6206_v18  ;;  %v2498_v48 = vadd.f32 %v5521_v62, %v2428_v5 }
 0x3fb   :  { %v2028_v45 = vpop.xlane.xlu1 %2027  ;;  %v3749_v27 = vpop.eup %3748  ;;  %v2157_v43 = vmul.f32 0.015625, %v2067_v35  ;;  %v2431_v16 = vmul.f32 %v5497_v26, %v2361_v49  ;;  %3764 = vrsqrt.f32 %v2224_v50  ;;  %v2354_v63 = vmul.f32 %v3747_v47, %v6210_v25  ;;  %v6215_v25 = vld [vmem:[#allocation24_spill] sm:$0xff] }
 0x3fc   :  { %v2144_v44 = vmul.f32 0.015625, %v2028_v45  ;;  %v3751_v38 = vpop.eup %3750  ;;  %3766 = vrsqrt.f32 %v2207_v0  ;;  %v2356_v14 = vmul.f32 %v3749_v27, %v6209_v60  ;;  %v2427_v4 = vmul.f32 %v5779_v20, %v2357_v10 }
 0x3fd   :  { %v3753_v12 = vpop.eup %3752  ;;  %v2221_v28 = vadd.f32 1e-05, %v2157_v43  ;;  %v2359_v22 = vmul.f32 %v3751_v38, %v6207_v24  ;;  %v2501_v41 = vadd.f32 %v5521_v62, %v2431_v16  ;;  %v2424_v27 = vmul.f32 %v5779_v20, %v2354_v63  ;;  %v6213_v24 = vld [vmem:[#allocation10_spill] sm:$0xff] }
 0x3fe   :  { %v2208_v11 = vadd.f32 1e-05, %v2144_v44  ;;  %v3755_v51 = vpop.eup %3754  ;;  %v2019_v59 = vpop.xlane.xlu0 %2018  ;;  %v2362_v57 = vmul.f32 %v3753_v12, %v6208_v3  ;;  %v2426_v0 = vmul.f32 %v5779_v20, %v2356_v14  ;;  %v2497_v56 = vadd.f32 %v5792_v19, %v2427_v4  ;;  %v6214_v14 = vld [vmem:[#allocation8_spill] sm:$0xff] }
 0x3ff   :  { %v2070_v58 = vpop.xlane.xlu1 %2069  ;;  %3768 = vrsqrt.f32 %v2221_v28  ;;  %v2141_v21 = vmul.f32 0.015625, %v2019_v59  ;;  %v2429_v30 = vmul.f32 %v5497_v26, %v2359_v22  ;;  %v2355_v34 = vmul.f32 %v3755_v51, %v6211_v32 }
 0x400   :  { %v2158_v42 = vmul.f32 0.015625, %v2070_v58  ;;  %3770 = vrsqrt.f32 %v2208_v11  ;;  %v2432_v54 = vmul.f32 %v5497_v26, %v2362_v57  ;;  %v3757_v8 = vpop.eup %3756  ;;  %v2565_v49 = vmax.f32 %v2501_v41, 0.0 }
 0x401   :  { %v2205_v17 = vadd.f32 1e-05, %v2141_v21  ;;  %v2360_v26 = vmul.f32 %v3757_v8, %v6212_v37  ;;  %v2499_v45 = vadd.f32 %v5521_v62, %v2429_v30  ;;  %v2562_v10 = vmax.f32 %v2498_v48, 0.0  ;;  %v6216_v8 = vld [vmem:[#allocation26_spill] sm:$0xff] }
 0x402   :  { %v2222_v29 = vadd.f32 1e-05, %v2158_v42  ;;  %v2061_v52 = vpop.xlane.xlu0 %2060  ;;  %v2502_v53 = vadd.f32 %v5521_v62, %v2432_v54  ;;  %v2425_v62 = vmul.f32 %v5779_v20, %v2355_v34  ;;  %v2496_v58 = vadd.f32 %v5792_v19, %v2426_v0  ;;  %v6217_v0 = vld [vmem:[#allocation9_spill] sm:$0xff] }
 0x403   :  { %v2022_v9 = vpop.xlane.xlu1 %2021  ;;  %3772 = vrsqrt.f32 %v2205_v17  ;;  %v2155_v50 = vmul.f32 0.015625, %v2061_v52  ;;  %v2430_v35 = vmul.f32 %v5779_v20, %v2360_v26  ;;  %v2563_v51 = vmax.f32 %v2499_v45, 0.0  ;;  %v6219_v45 = vld [vmem:[#allocation19_spill] sm:$0xff] }
 0x404   :  { %v2142_v2 = vmul.f32 0.015625, %v2022_v9  ;;  %3774 = vrsqrt.f32 %v2222_v29  ;;  %v2566_v47 = vmax.f32 %v2502_v53, 0.0  ;;  %v3759_v39 = vpop.eup %3758  ;;  %v2561_v60 = vmax.f32 %v2497_v56, 0.0 }
 0x405   :  { %v2219_v1 = vadd.f32 1e-05, %v2155_v50  ;;  %v3761_v43 = vpop.eup %3760  ;;  %v2500_v18 = vadd.f32 %v5792_v19, %v2430_v35  ;;  %v2338_v22 = vmul.f32 %v3759_v39, %v6213_v24  ;;  %v2495_v30 = vadd.f32 %v5792_v19, %v2425_v62 }
 0x406   :  { %v2206_v46 = vadd.f32 1e-05, %v2142_v2  ;;  %v2013_v44 = vpop.xlane.xlu0 %2012  ;;  %v2648_v38 = vpack.c.bf16 %v2566_v47, %v2565_v49  ;;  %v3763_v12 = vpop.eup %3762  ;;  %v2337_v21 = vmul.f32 %v3761_v43, %v6214_v14  ;;  %v2494_v4 = vadd.f32 %v5792_v19, %v2424_v27  ;;  %v6218_v47 = vld [vmem:[#allocation11_spill] sm:$0xff] }
 0x407   :  { %v2064_v16 = vpop.xlane.xlu1 %2063  ;;  %3776 = vrsqrt.f32 %v2219_v1  ;;  %v2139_v28 = vmul.f32 0.015625, %v2013_v44  ;;  %v2564_v59 = vmax.f32 %v2500_v18, 0.0  ;;  %v2351_v63 = vmul.f32 %v3763_v12, %v6215_v25 }
 0x408   :  { %v2156_v11 = vmul.f32 0.015625, %v2064_v16  ;;  %3778 = vrsqrt.f32 %v2206_v46  ;;  %3333 = vmatprep.subr.bf16.mxu1 %v2648_v38  ;;  %v3765_v3 = vpop.eup %3764  ;;  %v2408_v32 = vmul.f32 %v5779_v20, %v2338_v22  ;;  %v2560_v52 = vmax.f32 %v2496_v58, 0.0 }
 0x409   :  { %v2203_v57 = vadd.f32 1e-05, %v2139_v28  ;;  %3334 = vmatpush3.bf16.msra.mxu1 %v5760_v6  ;;  %v3767_v42 = vpop.eup %3766  ;;  %v2647_v54 = vpack.c.bf16 %v2564_v59, %v2563_v51  ;;  %v2352_v17 = vmul.f32 %v3765_v3, %v6216_v8  ;;  %v2646_v6 = vpack.c.bf16 %v2562_v10, %v2561_v60  ;;  %v6221_v10 = vld [vmem:[#allocation21_spill] sm:$0xff]  ;;  %v6222_v60 = vld [vmem:[#allocation20_spill] sm:$0xff] }
 0x40a   :  { %v2220_v5 = vadd.f32 1e-05, %v2156_v11  ;;  %v2493_v26 = vadd.f32 %v5792_v19, %v5770_v7  ;;  %v2407_v48 = vmul.f32 %v5779_v20, %v2337_v21  ;;  %v2335_v50 = vmul.f32 %v3767_v42, %v6217_v0 }
 0x40b   :  { %v2016_v41 = vpop.xlane.xlu1 %2015  ;;  %3780 = vrsqrt.f32 %v2203_v57  ;;  %3335 = vmatprep.subr.bf16.mxu1 %v2647_v54  ;;  %v2422_v9 = vmul.f32 %v5779_v20, %v2352_v17  ;;  %v2559_v2 = vmax.f32 %v2495_v30, 0.0  ;;  %v2421_v49 = vmul.f32 %v5779_v20, %v2351_v63  ;;  %v6223_v54 = vld [vmem:[#allocation6_spill] sm:$0xff] }
 0x40c   :  { %v2140_v29 = vmul.f32 0.015625, %v2016_v41  ;;  %v3769_v34 = vpop.eup %3768  ;;  %3782 = vrsqrt.f32 %v2220_v5  ;;  %v2544_v7 = vmax.f32 %v5758_v31, 0.0  ;;  %v2478_v1 = vadd.f32 %v5792_v19, %v2408_v32 }
 0x40d   :  { %v3771_v53 = vpop.eup %3770  ;;  %3336 = vmatpush3.bf16.msra.mxu1 %v5762_v13  ;;  %v2349_v39 = vmul.f32 %v3769_v34, %v6219_v45  ;;  %v2638_v13 = vpack.c.bf16 %v2546_v23, %v2545_v61  ;;  %v2645_v56 = vpack.c.bf16 %v2560_v52, %v2559_v2  ;;  %v2558_v27 = vmax.f32 %v2494_v4, 0.0  ;;  %v6220_v61 = vld [vmem:[#allocation4_spill] sm:$0xff] }
 0x40e   :  { %v2204_v37 = vadd.f32 1e-05, %v2140_v29  ;;  %3337 = vmatprep.subr.bf16.mxu1 %v2646_v6  ;;  %v2336_v35 = vmul.f32 %v3771_v53, %v6218_v47  ;;  %v2492_v43 = vadd.f32 %v5792_v19, %v2422_v9  ;;  %v2543_v38 = vmax.f32 %v5749_v36, 0.0  ;;  %v6224_v9 = vld [vmem:[#allocation5_spill] sm:$0xff] }
 0x40f   :  { %v2477_v55 = vadd.f32 %v5792_v19, %v2407_v48  ;;  %v2405_v15 = vmul.f32 %v5779_v20, %v2335_v50  ;;  %v2557_v31 = vmax.f32 %v2493_v26, 0.0  ;;  %v2491_v18 = vadd.f32 %v5792_v19, %v2421_v49  ;;  %v6225_v48 = vld [vmem:[#allocation22_spill] sm:$0xff] }
 0x410   :  { %3784 = vrsqrt.f32 %v2204_v37  ;;  %v3773_v46 = vpop.eup %3772  ;;  %v2406_v44 = vmul.f32 %v5779_v20, %v2336_v35  ;;  %v2419_v12 = vmul.f32 %v5779_v20, %v2349_v39  ;;  %v2637_v28 = vpack.c.bf16 %v2544_v7, %v2543_v38  ;;  %v6226_v7 = vld [vmem:[#allocation32_spill] sm:$0xff] }
 0x411   :  { %v3775_v16 = vpop.eup %3774  ;;  %3338 = vmatpush3.bf16.msra.mxu1 %v2638_v13  ;;  %v2333_v23 = vmul.f32 %v3773_v46, %v6220_v61  ;;  %v2542_v11 = vmax.f32 %v2478_v1, 0.0  ;;  %v2644_v51 = vpack.c.bf16 %v2558_v27, %v2557_v31  ;;  %v2556_v59 = vmax.f32 %v2492_v43, 0.0  ;;  %v2745_v31 = vld [vmem:[%s6019_s11 + $0x28] sm:$0xff] }
 0x412   :  { %3339 = vmatprep.subr.bf16.mxu1 %v2645_v56  ;;  %v2350_v62 = vmul.f32 %v3775_v16, %v6221_v10  ;;  %v2476_v24 = vadd.f32 %v5792_v19, %v2406_v44  ;;  %v2541_v57 = vmax.f32 %v2477_v55, 0.0  ;;  %v2475_v5 = vadd.f32 %v5792_v19, %v2405_v15  ;;  %v2741_v10 = vld [vmem:[%s6019_s11 + $0x8] sm:$0xff] }
 0x413   :  { %v2403_v36 = vmul.f32 %v5779_v20, %v2333_v23  ;;  %v2555_v21 = vmax.f32 %v2491_v18, 0.0  ;;  %v2489_v42 = vadd.f32 %v5792_v19, %v2419_v12  ;;  %v2742_v18 = vld [vmem:[%s6019_s11 + $0x10] sm:$0xff]  ;;  %v2749_v12 = vld [vmem:[%s6020_s4 + $0x8] sm:$0xff] }
 0x414   :  { %v3777_v22 = vpop.eup %3776  ;;  %v2420_v58 = vmul.f32 %v5779_v20, %v2350_v62  ;;  %v2636_v25 = vpack.c.bf16 %v2542_v11, %v2541_v57  ;;  %v2540_v63 = vmax.f32 %v2476_v24, 0.0  ;;  %v2539_v52 = vmax.f32 %v2475_v5, 0.0  ;;  %v2740_v62 = vld [vmem:[%s6019_s11] sm:$0xff]  ;;  %2758 = vperm.xlu1 %3649, %v2749_v12   ;;  %v2615_v57 = vld [vmem:[#allocation3] sm:$0xff] }
 0x415   :  { %v3779_v3 = vpop.eup %3778  ;;  %3340 = vmatpush3.bf16.msra.mxu1 %v2637_v28  ;;  %v2347_v14 = vmul.f32 %v3777_v22, %v6222_v60  ;;  %v2473_v8 = vadd.f32 %v5792_v19, %v2403_v36  ;;  %v2643_v29 = vpack.c.bf16 %v2556_v59, %v2555_v21  ;;  %v2553_v37 = vmax.f32 %v2489_v42, 0.0  ;;  %v2748_v28 = vld [vmem:[%s6020_s4] sm:$0xff] }
 0x416   :  { %3341 = vmatprep.subr.bf16.mxu1 %v2644_v51  ;;  %v2490_v41 = vadd.f32 %v5792_v19, %v2420_v58  ;;  %v2334_v30 = vmul.f32 %v3779_v3, %v6223_v54  ;;  %v2635_v50 = vpack.c.bf16 %v2540_v63, %v2539_v52  ;;  %2753 = vperm.xlu0 %3648, %v2748_v28   ;;  %v2616_v54 = vld [vmem:[#allocation3 + $0x8] sm:$0xff] }
 0x417   :  { %v2417_v34 = vmul.f32 %v5779_v20, %v2347_v14  ;;  %v2537_v2 = vmax.f32 %v2473_v8, 0.0 }
 0x418   :  { %v3781_v17 = vpop.eup %3780  ;;  %v2554_v4 = vmax.f32 %v2490_v41, 0.0  ;;  %v2404_v32 = vmul.f32 %v5779_v20, %v2334_v30 }
 0x419   :  { %v3783_v6 = vpop.eup %3782  ;;  %3342 = vmatpush3.bf16.msra.mxu1 %v2636_v25  ;;  %v2331_v53 = vmul.f32 %v3781_v17, %v6224_v9  ;;  %v2487_v13 = vadd.f32 %v5792_v19, %v2417_v34  ;;  %v3239_v17 = vld [vmem:[%s6021_s12] ss:$0 sm:$0xff] }
 0x41a   :  { %3343 = vmatprep.subr.bf16.mxu1 %v2643_v29  ;;  %v2474_v26 = vadd.f32 %v5792_v19, %v2404_v32  ;;  %v2348_v0 = vmul.f32 %v3783_v6, %v6225_v48  ;;  %v2642_v35 = vpack.c.bf16 %v2554_v4, %v2553_v37  ;;  %v2921_v48 = vld [vmem:[%s6022_s15 + $0x78] sm:$0xff] }
 0x41b   :  { %v2401_v49 = vmul.f32 %v5779_v20, %v2331_v53  ;;  %v2551_v44 = vmax.f32 %v2487_v13, 0.0 }
 0x41c   :  { %v2538_v45 = vmax.f32 %v2474_v26, 0.0  ;;  %v2418_v39 = vmul.f32 %v5779_v20, %v2348_v0 }
 0x41d   :  { %v3785_v47 = vpop.eup %3784  ;;  %3344 = vmatpush3.bf16.msra.mxu1 %v2635_v50  ;;  %v2471_v43 = vadd.f32 %v5792_v19, %v2401_v49 }
 0x41e   :  { %v2332_v1 = vmul.f32 %v3785_v47, %v6226_v7  ;;  %3345 = vmatprep.subr.bf16.mxu1 %v2642_v35  ;;  %v2634_v46 = vpack.c.bf16 %v2538_v45, %v2537_v2  ;;  %v2488_v56 = vadd.f32 %v5792_v19, %v2418_v39 }
 0x41f   :  { %v2535_v15 = vmax.f32 %v2471_v43, 0.0  ;;  %v2918_v43 = vld [vmem:[%s6022_s15 + $0x60] sm:$0xff] }
 0x420   :  { %v2402_v27 = vmul.f32 %v5779_v20, %v2332_v1  ;;  %v2552_v16 = vmax.f32 %v2488_v56, 0.0  ;;  %v2747_v20 = vld [vmem:[%s6019_s11 + $0x38] sm:$0xff]  ;;  %v2920_v1 = vld [vmem:[%s6022_s15 + $0x70] sm:$0xff]  ;;  %v2894_v56 = vld [vmem:[%s6101_s28] sm:$0xff] }
 0x421   :  { %3346 = vmatpush3.bf16.msra.mxu1 %v2634_v46  ;;  %v2919_v46 = vld [vmem:[%s6022_s15 + $0x68] sm:$0xff] }
 0x422   :  { %v2472_v38 = vadd.f32 %v5792_v19, %v2402_v27  ;;  %v2641_v55 = vpack.c.bf16 %v2552_v16, %v2551_v44  ;;  %v2746_v19 = vld [vmem:[%s6019_s11 + $0x30] sm:$0xff]  ;;  %v2895_v27 = vld [vmem:[%s6101_s28 + $0x8] sm:$0xff]  ;;  %v2917_v44 = vld [vmem:[%s6022_s15 + $0x58] sm:$0xff] }
 0x423   :  { %v3650_v16 = vpack.i.bf16 %v2895_v27, %v2894_v56 }
 0x424   :  { %v2536_v61 = vmax.f32 %v2472_v38, 0.0  ;;  %3347 = vmatprep.subr.bf16.mxu1 %v2641_v55  ;;  %v2916_v38 = vld [vmem:[%s6022_s15 + $0x50] sm:$0xff]  ;;  %v2915_v55 = vld [vmem:[%s6022_s15 + $0x48] sm:$0xff] }
 0x426   :  { %v2633_v23 = vpack.c.bf16 %v2536_v61, %v2535_v15  ;;  %v2914_v15 = vld [vmem:[%s6022_s15 + $0x40] sm:$0xff]  ;;  %v2913_v61 = vld [vmem:[%s6022_s15 + $0x38] sm:$0xff] }
 0x428   :  { %3348 = vmatpush3.bf16.msra.mxu1 %v2633_v23  ;;  %v2912_v23 = vld [vmem:[%s6022_s15 + $0x30] sm:$0xff] }
 0x429   :  { %3504 = vmatprep.subr.mxu1 %v2747_v20 }
 0x42b   :  { %3238 = vmatmul.mubr.msk.bf16.vlgmr.msra.gmra.mxu1 %vm5677_vm5, %v3795_v40  ;;  %v2744_v40 = vld [vmem:[%s6019_s11 + $0x20] sm:$0xff] }
 0x42c   :  { %3505 = vmatpush3.msra.mxu1 %v2747_v20  ;;  %v2911_v20 = vld [vmem:[%s6022_s15 + $0x28] sm:$0xff] }
 0x42d   :  { %3506 = vmatprep.subr.mxu1 %v2746_v19 }
 0x42e   :  { %3507 = vmatpush3.msra.mxu1 %v2746_v19  ;;  %v2910_v19 = vld [vmem:[%s6022_s15 + $0x20] sm:$0xff] }
 0x42f   :  { %3508 = vmatprep.subr.mxu1 %v2745_v31 }
 0x430   :  { %3509 = vmatpush3.msra.mxu1 %v2745_v31  ;;  %v2909_v31 = vld [vmem:[%s6022_s15 + $0x18] sm:$0xff] }
 0x431   :  { %3510 = vmatprep.subr.mxu1 %v2744_v40 }
 0x432   :  { %3511 = vmatpush3.msra.mxu1 %v2744_v40  ;;  %v2908_v40 = vld [vmem:[%s6022_s15 + $0x10] sm:$0xff] }
 0x433   :  { %3512 = vmatprep.subr.mxu1 %v2743_v33 }
 0x434   :  { %3513 = vmatpush3.msra.mxu1 %v2743_v33  ;;  %v2907_v33 = vld [vmem:[%s6022_s15 + $0x8] sm:$0xff] }
 0x435   :  { %3514 = vmatprep.subr.mxu1 %v2742_v18 }
 0x436   :  { %3515 = vmatpush3.msra.mxu1 %v2742_v18  ;;  %v2906_v18 = vld [vmem:[%s6022_s15] sm:$0xff] }
 0x437   :  { %3516 = vmatprep.subr.mxu1 %v2741_v10 }
 0x438   :  { %3517 = vmatpush3.msra.mxu1 %v2741_v10  ;;  %v3013_v10 = vld [vmem:[%s6023_s17 + $0x38] sm:$0xff] }
 0x439   :  { %3518 = vmatprep.subr.mxu1 %v2740_v62 }
 0x43a   :  { %3519 = vmatpush3.msra.mxu1 %v2740_v62 }
 0x43b   :  { %3523 = vmatprep.subr.mxu1 %v2921_v48 }
 0x48f   :  { %v2759_v29 = vpop.permute.xlu1 %2758 }
 0x490   :  { %v2768_v32 = vmul.f32 %v3239_v17, %v2759_v29  ;;  %v3009_v29 = vld [vmem:[%s6023_s17 + $0x18] sm:$0xff] }
 0x491   :  { %v2754_v4 = vpop.permute.xlu0 %2753 }
 0x492   :  { %v2767_v34 = vmul.f32 %v3239_v17, %v2754_v4  ;;  %v3010_v17 = vld [vmem:[%s6023_s17 + $0x20] sm:$0xff]  ;;  %v3008_v4 = vld [vmem:[%s6023_s17 + $0x10] sm:$0xff] }
 0x497   :  { %v3327_v11 = vpop.f32.mrf.mxu1 }
 0x499   :  { %v3328_v24 = vpop.f32.mrf.mxu1 }
 0x49a   :  { %v3329_v58 = vadd.f32 %v3328_v24, %v3327_v11 }
 0x49b   :  { %v3330_v36 = vpop.f32.mrf.mxu1 }
 0x49d   :  { %v3331_v22 = vpop.f32.mrf.mxu1 }
 0x49e   :  { %v3332_v21 = vadd.f32 %v3331_v22, %v3330_v36 }
 0x4eb   :  { %v3349_v51 = vpop.f32.mrf.mxu1 }
 0x4ed   :  { %v3350_v59 = vpop.f32.mrf.mxu1 }
 0x4ee   :  { %v3351_v3 = vadd.f32 %v3350_v59, %v3349_v51  ;;  %v3242_v51 = vld [vmem:[%s6024_s13] ss:$0 sm:$0xff] }
 0x4ef   :  { %v3352_v5 = vpop.f32.mrf.mxu1 }
 0x4f0   :  { %v2725_v60 = vadd.f32 %v3351_v3, %v3329_v58 }
 0x4f1   :  { %v3353_v14 = vpop.f32.mrf.mxu1 }
 0x4f2   :  { %v2731_v42 = vadd.f32 %v2725_v60, %v2615_v57  ;;  %v3354_v41 = vadd.f32 %v3353_v14, %v3352_v5  ;;  %v3243_v5 = vld [vmem:[%s6025_s14] ss:$0 sm:$0xff] }
 0x4f4   :  { %2733 = vst.msk [vmem:[#allocation3] sm:$0xff] %vm79_vm0, %v2731_v42  ;;  %v2728_v30 = vadd.f32 %v3354_v41, %v3332_v21 }
 0x4f6   :  { %v2732_v25 = vadd.f32 %v2728_v30, %v2616_v54 }
 0x4f8   :  { %2734 = vst.msk [vmem:[#allocation3 + $0x8] sm:$0xff] %vm79_vm0, %v2732_v25 }
 0x4fb   :  { %v2738_v63 = vld [vmem:[#allocation3] sm:$0xff] }
 0x4fc   :  { %3520 = vmatprep.mubr.msk.f32.mxu1 %vm79_vm0, %v2738_v63  ;;  %v3012_v63 = vld [vmem:[%s6023_s17 + $0x30] sm:$0xff] }
 0x4ff   :  { %v2739_v8 = vld [vmem:[#allocation3 + $0x8] sm:$0xff] }
 0x500   :  { %3521 = vmatmul.mubr.msk.f32.vlgmr.msra.gmra.mxu1 %vm79_vm0, %v2739_v8  ;;  %v3011_v8 = vld [vmem:[%s6023_s17 + $0x28] sm:$0xff] }
 0x501   :  { %3524 = vmatpush3.msra.mxu1 %v2921_v48 }
 0x502   :  { %3525 = vmatprep.subr.mxu1 %v2920_v1 }
 0x503   :  { %3526 = vmatpush3.msra.mxu1 %v2920_v1 }
 0x504   :  { %3527 = vmatprep.subr.mxu1 %v2919_v46 }
 0x505   :  { %3528 = vmatpush3.msra.mxu1 %v2919_v46 }
 0x506   :  { %3529 = vmatprep.subr.mxu1 %v2918_v43 }
 0x507   :  { %3530 = vmatpush3.msra.mxu1 %v2918_v43 }
 0x508   :  { %3531 = vmatprep.subr.mxu1 %v2917_v44 }
 0x509   :  { %3532 = vmatpush3.msra.mxu1 %v2917_v44 }
 0x50a   :  { %3533 = vmatprep.subr.mxu1 %v2916_v38 }
 0x50b   :  { %3534 = vmatpush3.msra.mxu1 %v2916_v38 }
 0x50c   :  { %3535 = vmatprep.subr.mxu1 %v2915_v55 }
 0x50d   :  { %3536 = vmatpush3.msra.mxu1 %v2915_v55 }
 0x50e   :  { %3537 = vmatprep.subr.mxu1 %v2914_v15 }
 0x50f   :  { %3538 = vmatpush3.msra.mxu1 %v2914_v15 }
 0x510   :  { %3539 = vmatprep.subr.mxu1 %v2913_v61 }
 0x511   :  { %3540 = vmatpush3.msra.mxu1 %v2913_v61 }
 0x512   :  { %3541 = vmatprep.subr.mxu1 %v2912_v23 }
 0x513   :  { %3542 = vmatpush3.msra.mxu1 %v2912_v23 }
 0x514   :  { %3543 = vmatprep.subr.mxu1 %v2911_v20 }
 0x515   :  { %3544 = vmatpush3.msra.mxu1 %v2911_v20 }
 0x516   :  { %3545 = vmatprep.subr.mxu1 %v2910_v19 }
 0x517   :  { %3546 = vmatpush3.msra.mxu1 %v2910_v19 }
 0x518   :  { %3547 = vmatprep.subr.mxu1 %v2909_v31 }
 0x519   :  { %3548 = vmatpush3.msra.mxu1 %v2909_v31 }
 0x51a   :  { %3549 = vmatprep.subr.mxu1 %v2908_v40 }
 0x51b   :  { %3550 = vmatpush3.msra.mxu1 %v2908_v40 }
 0x51c   :  { %3551 = vmatprep.subr.mxu1 %v2907_v33 }
 0x51d   :  { %3552 = vmatpush3.msra.mxu1 %v2907_v33 }
 0x51e   :  { %3553 = vmatprep.subr.mxu1 %v2906_v18 }
 0x51f   :  { %3554 = vmatpush3.msra.mxu1 %v2906_v18 }
 0x520   :  { %3558 = vmatprep.subr.mxu1 %v3013_v10 }
 0x5c0   :  { %v3522_v6 = vpop.f32.mrf.mxu1 }
 0x5c1   :  { %v2847_v52 = vadd.f32 %v3522_v6, %v2768_v32  ;;  %v3007_v32 = vld [vmem:[%s6023_s17 + $0x8] sm:$0xff]  ;;  %v3244_v6 = vld [vmem:[%s6026_s16] ss:$0 sm:$0xff] }
 0x5c2   :  { %v2841_v9 = vpop.f32.mrf.mxu1 }
 0x5c3   :  { %v2842_v53 = vadd.f32 %v2841_v9, %v2767_v34  ;;  %v2855_v37 = vsel %vm79_vm0, %v2847_v52, 0.0  ;;  %v3006_v34 = vld [vmem:[%s6023_s17] sm:$0xff] }
 0x5c4   :  { %2856 = vadd.xlane.f32.xlu0 %v2855_v37 }
 0x5c5   :  { %v2852_v26 = vsel %vm79_vm0, %v2842_v53, 0.0 }
 0x5c6   :  { %2853 = vadd.xlane.f32.xlu1 %v2852_v26 }
 0x64d   :  { %v2857_v0 = vpop.xlane.xlu0 %2856 }
 0x64e   :  { %v2859_v50 = vmul.f32 0.015625, %v2857_v0  ;;  %v3245_v0 = vld [vmem:[%s6027_s18] ss:$0 sm:$0xff] }
 0x64f   :  { %v2854_v2 = vpop.xlane.xlu1 %2853 }
 0x650   :  { %v5898_v49 = vsub.f32 %v2847_v52, %v2859_v50  ;;  %v2858_v47 = vmul.f32 0.015625, %v2854_v2 }
 0x652   :  { %v5900_v35 = vsub.f32 %v2842_v53, %v2858_v47  ;;  %v2863_v45 = vmul.f32 %v5898_v49, %v5898_v49 }
 0x654   :  { %v2867_v39 = vsel %vm79_vm0, %v2863_v45, 0.0  ;;  %v2862_v13 = vmul.f32 %v5900_v35, %v5900_v35 }
 0x655   :  { %2868 = vadd.xlane.f32.xlu1 %v2867_v39 }
 0x656   :  { %v2864_v7 = vsel %vm79_vm0, %v2862_v13, 0.0 }
 0x659   :  { %2865 = vadd.xlane.f32.xlu1 %v2864_v7 }
 0x66a   :  { %3651 = vrot.lane.b32.xlu1 %v3650_v16, %s3796_s9 }
 0x6de   :  { %v2869_v62 = vpop.xlane.xlu1 %2868 }
 0x6df   :  { %v2871_v12 = vmul.f32 0.015625, %v2869_v62 }
 0x6e1   :  { %v2873_v28 = vadd.f32 1e-05, %v2871_v12 }
 0x6e2   :  { %v2866_v11 = vpop.xlane.xlu1 %2865 }
 0x6e3   :  { %3786 = vrsqrt.f32 %v2873_v28  ;;  %v2870_v24 = vmul.f32 0.015625, %v2866_v11 }
 0x6e5   :  { %v2872_v36 = vadd.f32 1e-05, %v2870_v24 }
 0x6e6   :  { %v3652_v57 = vpop.permute.xlu1 %3651 }
 0x6e7   :  { %3788 = vrsqrt.f32 %v2872_v36  ;;  %v3653_v14 = vunpack.i.l.bf16 %v3652_v57  ;;  %v3654_v42 = vunpack.i.h.bf16 %v3652_v57 }
 0x6f0   :  { %v3787_v22 = vpop.eup %3786 }
 0x6f1   :  { %v2877_v59 = vmul.f32 %v3787_v22, %v5898_v49 }
 0x6f3   :  { %v2885_v3 = vmul.f32 %v3242_v51, %v2877_v59 }
 0x6f4   :  { %v3789_v58 = vpop.eup %3788 }
 0x6f5   :  { %v2876_v60 = vmul.f32 %v3789_v58, %v5900_v35  ;;  %v2893_v41 = vadd.f32 %v3243_v5, %v2885_v3 }
 0x6f7   :  { %v2884_v21 = vmul.f32 %v3242_v51, %v2876_v60  ;;  %v2905_v25 = vsel %vm79_vm0, %v2893_v41, %v3654_v42 }
 0x6f9   :  { %v2892_v54 = vadd.f32 %v3243_v5, %v2884_v21 }
 0x6fb   :  { %v2904_v30 = vsel %vm79_vm0, %v2892_v54, %v3653_v14 }
 0x6fc   :  { %3555 = vmatprep.mubr.f32.mxu1 %v2904_v30 }
 0x6fd   :  { %3556 = vmatmul.mubr.f32.vlgmr.msra.gmra.mxu1 %v2905_v25 }
 0x6fe   :  { %3559 = vmatpush3.msra.mxu1 %v3013_v10 }
 0x6ff   :  { %3560 = vmatprep.subr.mxu1 %v3012_v63 }
 0x700   :  { %3561 = vmatpush3.msra.mxu1 %v3012_v63 }
 0x701   :  { %3562 = vmatprep.subr.mxu1 %v3011_v8 }
 0x702   :  { %3563 = vmatpush3.msra.mxu1 %v3011_v8 }
 0x703   :  { %3564 = vmatprep.subr.mxu1 %v3010_v17 }
 0x704   :  { %3565 = vmatpush3.msra.mxu1 %v3010_v17 }
 0x705   :  { %3566 = vmatprep.subr.mxu1 %v3009_v29 }
 0x706   :  { %3567 = vmatpush3.msra.mxu1 %v3009_v29 }
 0x707   :  { %3568 = vmatprep.subr.mxu1 %v3008_v4 }
 0x708   :  { %3569 = vmatpush3.msra.mxu1 %v3008_v4 }
 0x709   :  { %3570 = vmatprep.subr.mxu1 %v3007_v32 }
 0x70a   :  { %3571 = vmatpush3.msra.mxu1 %v3007_v32 }
 0x70b   :  { %3572 = vmatprep.subr.mxu1 %v3006_v34 }
 0x70c   :  { %3573 = vmatpush3.msra.mxu1 %v3006_v34 }
 0x7bd   :  { %v3557_v52 = vpop.f32.mrf.mxu1 }
 0x7be   :  { %v3001_v9 = vadd.f32 %v3557_v52, %v3244_v6 }
 0x7bf   :  { %v2995_v53 = vpop.f32.mrf.mxu1 }
 0x7c0   :  { %v2996_v37 = vadd.f32 %v3244_v6, %v2995_v53  ;;  %v3005_v48 = vmax.f32 %v3001_v9, 0.0 }
 0x7c2   :  { %v3004_v26 = vmax.f32 %v2996_v37, 0.0 }
 0x7c4   :  { %3574 = vmatprep.mubr.msk.f32.mxu1 %vm79_vm0, %v3004_v26 }
 0x7c5   :  { %3575 = vmatmul.mubr.msk.f32.vlgmr.msra.gmra.mxu1 %vm79_vm0, %v3005_v48 }
 0x885   :  { %v3576_v50 = vpop.f32.mrf.mxu1 }
 0x886   :  { %v3099_v2 = vadd.f32 %v3576_v50, %v3245_v0 }
 0x887   :  { %v3093_v49 = vpop.f32.mrf.mxu1 }
 0x888   :  { %3103 = vst.msk [vmem:[%s6028_s19 + $0x8] sm:$0xff] %vm79_vm0, %v3099_v2  ;;  %v3094_v47 = vadd.f32 %v3245_v0, %v3093_v49 }
 0x88a   :  { %3102 = vst.msk [vmem:[%s6028_s19] sm:$0xff] %vm79_vm0, %v3094_v47 }

// kernel: bipartite_gcn_forward.7
= control target key start
LH: loop header
LB: loop body
LE: loop exit
PB: predicated region body
PF: predicated region fallthrough
CT: control target
= control target key end

     0   :  { %v4195_v0 = vmov 1   ;;  %vm86_vm0 = vcmask 523264   ;;  %v4196_v15 = vmov 0   ;;  %v4197_v20 = vmov 0.0   ;;  %s6572_s6 = inlined_call_operand.vmem [shape: f32[64,64], index: 6, kind: input, shape index: {}]   ;;  %s6573_s0 = inlined_call_operand.vmem [shape: s32[512,2], index: 0, kind: input, shape index: {}]   ;;  %s6574_s8 = inlined_call_operand.vmem [shape: f32[64,64], index: 8, kind: input, shape index: {}]   ;;  %s6575_s3 = inlined_call_operand.vmem [shape: f32[32,64], index: 3, kind: input, shape index: {}]   ;;  %s6576_s2 = inlined_call_operand.vmem [shape: f32[16,64], index: 2, kind: input, shape index: {}]   ;;  %s6577_s7 = inlined_call_operand.vmem [shape: f32[1,64], index: 7, kind: input, shape index: {}]   ;;  %s6578_s5 = inlined_call_operand.vmem [shape: f32[1,64], index: 5, kind: input, shape index: {}]   ;;  %s6579_s9 = inlined_call_operand.vmem [shape: f32[1,64], index: 9, kind: input, shape index: {}]   ;;  %s6580_s10 = inlined_call_operand.vmem [shape: f32[1,64], index: 10, kind: input, shape index: {}]   ;;  %s6581_s1 = inlined_call_operand.vmem [shape: s32[1,512], index: 1, kind: input, shape index: {}]   ;;  %s6582_s11 = inlined_call_operand.vmem [shape: f32[64,64], index: 11, kind: input, shape index: {}]   ;;  %s6583_s4 = inlined_call_operand.vmem [shape: f32[32,1], index: 4, kind: input, shape index: {}]   ;;  %s6584_s12 = inlined_call_operand.vmem [shape: f32[1,64], index: 12, kind: input, shape index: {}]   ;;  %s6585_s15 = inlined_call_operand.vmem [shape: f32[128,64], index: 15, kind: input, shape index: {}]   ;;  %s6586_s17 = inlined_call_operand.vmem [shape: f32[64,64], index: 17, kind: input, shape index: {}]   ;;  %s6587_s13 = inlined_call_operand.vmem [shape: f32[1,64], index: 13, kind: input, shape index: {}]   ;;  %s6588_s14 = inlined_call_operand.vmem [shape: f32[1,64], index: 14, kind: input, shape index: {}]   ;;  %s6589_s19 = inlined_call_operand.vmem [shape: f32[64,64], index: 19, kind: input, shape index: {}]   ;;  %s6590_s16 = inlined_call_operand.vmem [shape: f32[1,64], index: 16, kind: input, shape index: {}]   ;;  %s6591_s18 = inlined_call_operand.vmem [shape: f32[1,64], index: 18, kind: input, shape index: {}]   ;;  %s6592_s20 = inlined_call_operand.vmem [shape: f32[1,64], index: 20, kind: input, shape index: {}]   ;;  %s6593_s21 = inlined_call_operand.vmem [shape: f32[1,64], index: 21, kind: input, shape index: {}]   ;;  %s6594_s22 = inlined_call_operand.vmem [shape: f32[32,1], index: 22, kind: output, shape index: {}]  }
   0x1   :  { %6663 = sst [smem:[#allocation35_spill]] %s6572_s6  ;;  %3978 = vset.pattern.permute.xlu0 %v4195_v0  ;;  %3976 = vset.pattern.permute.xlu1 %v4195_v0  ;;  %315 = vst.msk [vmem:[#allocation3] sm:$0xff] %vm86_vm0, %v4197_v20  ;;  %316 = vst.msk [vmem:[#allocation3 + $0x8] sm:$0xff] %vm86_vm0, %v4197_v20  ;;  %vm1152_vm7 = vcmask 392192   ;;  %vm176_vm8 = vcmask 519168  }
   0x2   :  { %6664 = sst [smem:[#allocation36_spill]] %s6573_s0  ;;  %317 = vst.msk [vmem:[#allocation3 + $0x10] sm:$0xff] %vm86_vm0, %v4197_v20  ;;  %318 = vst.msk [vmem:[#allocation3 + $0x18] sm:$0xff] %vm86_vm0, %v4197_v20 }
   0x3   :  { %6665 = sst [smem:[#allocation37_spill]] %s6574_s8 }
   0x4   :  { %6666 = sst [smem:[#allocation38_spill]] %s6575_s3 }
   0x5   :  { %6667 = sst [smem:[#allocation39_spill]] %s6576_s2 }
   0x6   :  { %6668 = sst [smem:[#allocation40_spill]] %s6577_s7 }
   0x7   :  { %6669 = sst [smem:[#allocation41_spill]] %s6578_s5 }
   0x8   :  { %s6670_s29 = sld [smem:[#allocation35_spill]] }
   0x9   :  { %s6671_s6 = sld [smem:[#allocation36_spill]] }
   0xa   :  { %s6672_s0 = sld [smem:[#allocation37_spill]] }
   0xb   :  { %s6673_s2 = sld [smem:[#allocation38_spill]] }
   0xc   :  { %s6674_s8 = sld [smem:[#allocation39_spill]] }
   0xd   :  { %s6675_s27 = sld [smem:[#allocation40_spill]] }
   0xe   :  { %v190_v1 = vld [vmem:[%s6670_s29 + $0x38] sm:$0xff]  ;;  %v189_v4 = vld [vmem:[%s6670_s29 + $0x30] sm:$0xff]  ;;  %v188_v5 = vld [vmem:[%s6670_s29 + $0x28] sm:$0xff]  ;;  %s6676_s28 = sld [smem:[#allocation41_spill]] }
   0xf   :  { %v4323_v2 = vld [vmem:[%s6671_s6 + $0x10] sm:$0xff]  ;;  %v4328_v3 = vld [vmem:[%s6671_s6] sm:$0xff]  ;;  %3775 = vmatprep.subr.mxu1 %v190_v1  ;;  %v4346_v7 = vld [vmem:[%s6671_s6 + $0x8] sm:$0xff] }
  0x10   :  { %648 = vperm.xlu0 %3978, %v4323_v2   ;;  %642 = vperm.xlu1 %3976, %v4328_v3   ;;  %v4341_v6 = vld [vmem:[%s6671_s6 + $0x30] sm:$0xff]  ;;  %v187_v8 = vld [vmem:[%s6670_s29 + $0x20] sm:$0xff]  ;;  %v85_v9 = vld [vmem:[%s6672_s0 + $0x38] sm:$0xff] }
  0x11   :  { %3776 = vmatpush3.msra.mxu1 %v190_v1  ;;  %v186_v10 = vld [vmem:[%s6670_s29 + $0x18] sm:$0xff]  ;;  %v4362_v11 = vld [vmem:[%s6671_s6 + $0x50] sm:$0xff]  ;;  %3756 = vmatprep.subr.mxu0 %v85_v9  ;;  %v179_v14 = vld [vmem:[%s6673_s2] sm:$0xff] }
  0x12   :  { %3777 = vmatprep.subr.mxu1 %v189_v4  ;;  %v322_v12 = vld [vmem:[%s6671_s6 + $0x18] sm:$0xff]  ;;  %v185_v13 = vld [vmem:[%s6670_s29 + $0x10] sm:$0xff]  ;;  %3757 = vmatpush3.msra.mxu0 %v85_v9  ;;  %v184_v16 = vld [vmem:[%s6670_s29 + $0x8] sm:$0xff] }
  0x13   :  { %3778 = vmatpush3.msra.mxu1 %v189_v4  ;;  %v4381_v17 = vld [vmem:[%s6671_s6 + $0x70] sm:$0xff]  ;;  %v183_v19 = vld [vmem:[%s6670_s29] sm:$0xff]  ;;  %3791 = vmatprep.mubr.msk.f32.mxu1 %vm86_vm0, %v179_v14  ;;  %v180_v21 = vld [vmem:[%s6673_s2 + $0x8] sm:$0xff]  ;;  %s4199_s29 = smov 64  }
  0x14   :  { %3779 = vmatprep.subr.mxu1 %v188_v5  ;;  %660 = vperm.xlu0 %3978, %v4341_v6   ;;  %v84_v18 = vld [vmem:[%s6672_s0 + $0x30] sm:$0xff]  ;;  %v83_v24 = vld [vmem:[%s6672_s0 + $0x28] sm:$0xff]  ;;  %v76_v25 = vld [vmem:[%s6674_s8] sm:$0xff] }
  0x15   :  { %645 = vperm.xlu1 %3976, %v4346_v7   ;;  %3780 = vmatpush3.msra.mxu1 %v188_v5  ;;  %v4405_v22 = vld [vmem:[%s6671_s6 + $0x90] sm:$0xff]  ;;  %v323_v26 = vld [vmem:[%s6671_s6 + $0x20] sm:$0xff]  ;;  %v182_v28 = vld [vmem:[%s6673_s2 + $0x18] sm:$0xff] }
  0x16   :  { %3781 = vmatprep.subr.mxu1 %v187_v8  ;;  %3758 = vmatprep.subr.mxu0 %v84_v18  ;;  %v181_v23 = vld [vmem:[%s6673_s2 + $0x10] sm:$0xff]  ;;  %v82_v27 = vld [vmem:[%s6672_s0 + $0x20] sm:$0xff]  ;;  %v81_v30 = vld [vmem:[%s6672_s0 + $0x18] sm:$0xff] }
  0x17   :  { %3782 = vmatpush3.msra.mxu1 %v187_v8  ;;  %3759 = vmatpush3.msra.mxu0 %v84_v18  ;;  %v4432_v29 = vld [vmem:[%s6671_s6 + $0xb0] sm:$0xff]  ;;  %v79_v33 = vld [vmem:[%s6672_s0 + $0x8] sm:$0xff]  ;;  %v78_v34 = vld [vmem:[%s6672_s0] sm:$0xff] }
  0x18   :  { %3783 = vmatprep.subr.mxu1 %v186_v10  ;;  %672 = vperm.xlu0 %3978, %v4362_v11   ;;  %v80_v31 = vld [vmem:[%s6672_s0 + $0x10] sm:$0xff]  ;;  %v324_v36 = vld [vmem:[%s6671_s6 + $0x28] sm:$0xff]  ;;  %v326_v39 = vld [vmem:[%s6671_s6 + $0x38] sm:$0xff] }
  0x19   :  { %3977 = vset.pattern.permute.xlu1 %v4196_v15  ;;  %3784 = vmatpush3.msra.mxu1 %v186_v10  ;;  %v4447_v32 = vld [vmem:[%s6671_s6 + $0xd0] sm:$0xff]  ;;  %v77_v37 = vld [vmem:[%s6674_s8 + $0x8] sm:$0xff]  ;;  %v327_v42 = vld [vmem:[%s6671_s6 + $0x40] sm:$0xff] }
  0x1a   :  { %395 = vperm.xlu1 %3977, %v322_v12   ;;  %3785 = vmatprep.subr.mxu1 %v185_v13  ;;  %v4460_v35 = vld [vmem:[%s6671_s6 + $0xf0] sm:$0xff]  ;;  %v328_v46 = vld [vmem:[%s6671_s6 + $0x48] sm:$0xff]  ;;  %v330_v48 = vld [vmem:[%s6671_s6 + $0x58] sm:$0xff] }
  0x1b   :  { %3786 = vmatpush3.msra.mxu1 %v185_v13  ;;  %3760 = vmatprep.subr.mxu0 %v83_v24  ;;  %v4472_v38 = vld [vmem:[%s6671_s6 + $0x110] sm:$0xff]  ;;  %v331_v49 = vld [vmem:[%s6671_s6 + $0x60] sm:$0xff]  ;;  %v332_v50 = vld [vmem:[%s6671_s6 + $0x68] sm:$0xff] }
  0x1c   :  { %3787 = vmatprep.subr.mxu1 %v184_v16  ;;  %684 = vperm.xlu0 %3978, %v4381_v17   ;;  %v4483_v40 = vld [vmem:[%s6671_s6 + $0x130] sm:$0xff]  ;;  %v334_v51 = vld [vmem:[%s6671_s6 + $0x78] sm:$0xff]  ;;  %v335_v52 = vld [vmem:[%s6671_s6 + $0x80] sm:$0xff] }
  0x1d   :  { %3788 = vmatpush3.msra.mxu1 %v184_v16  ;;  %3772 = vmatprep.mubr.msk.f32.mxu0 %vm86_vm0, %v76_v25  ;;  %v4489_v41 = vld [vmem:[%s6671_s6 + $0x150] sm:$0xff]  ;;  %v336_v53 = vld [vmem:[%s6671_s6 + $0x88] sm:$0xff]  ;;  %v338_v55 = vld [vmem:[%s6671_s6 + $0x98] sm:$0xff] }
  0x1e   :  { %3979 = vset.pattern.permute.xlu1 %v4195_v0  ;;  %3789 = vmatprep.subr.mxu1 %v183_v19  ;;  %v4499_v43 = vld [vmem:[%s6671_s6 + $0x170] sm:$0xff]  ;;  %v340_v54 = vld [vmem:[%s6671_s6 + $0xa8] sm:$0xff]  ;;  %v339_v57 = vld [vmem:[%s6671_s6 + $0xa0] sm:$0xff] }
  0x1f   :  { %651 = vperm.xlu1 %3979, %v322_v12   ;;  %3790 = vmatpush3.msra.mxu1 %v183_v19  ;;  %v4506_v44 = vld [vmem:[%s6671_s6 + $0x190] sm:$0xff]  ;;  %v344_v56 = vld [vmem:[%s6671_s6 + $0xc8] sm:$0xff]  ;;  %v342_v1 = vld [vmem:[%s6671_s6 + $0xb8] sm:$0xff] }
  0x20   :  { %3792 = vmatmul.mubr.msk.f32.vlgmr.msra.gmra.mxu1 %vm86_vm0, %v180_v21  ;;  %696 = vperm.xlu0 %3978, %v4405_v22   ;;  %v4513_v45 = vld [vmem:[%s6671_s6 + $0x1b0] sm:$0xff]  ;;  %v4579_v58 = vld [vmem:[%s6671_s6 + $0xe8] sm:$0xff] }
  0x21   :  { %3794 = vmatprep.mubr.msk.f32.mxu1 %vm86_vm0, %v181_v23  ;;  %3761 = vmatpush3.msra.mxu0 %v83_v24  ;;  %v4522_v47 = vld [vmem:[%s6671_s6 + $0x1d0] sm:$0xff]  ;;  %v4593_v62 = vld [vmem:[%s6671_s6 + $0x108] sm:$0xff]  ;;  %v347_v24 = vld [vmem:[%s6671_s6 + $0xe0] sm:$0xff] }
  0x22   :  { %3762 = vmatprep.subr.mxu0 %v82_v27  ;;  %v4613_v5 = vld [vmem:[%s6671_s6 + $0x128] sm:$0xff] }
  0x23   :  { %3980 = vset.pattern.permute.xlu1 %v4196_v15  ;;  %3763 = vmatpush3.msra.mxu0 %v82_v27  ;;  %v4630_v10 = vld [vmem:[%s6671_s6 + $0x148] sm:$0xff] }
  0x24   :  { %398 = vperm.xlu1 %3980, %v323_v26   ;;  %3795 = vmatmul.mubr.msk.f32.gmra.mxu1 %vm86_vm0, %v182_v28  ;;  %v4644_v14 = vld [vmem:[%s6671_s6 + $0x168] sm:$0xff] }
  0x25   :  { %708 = vperm.xlu0 %3978, %v4432_v29   ;;  %3764 = vmatprep.subr.mxu0 %v81_v30  ;;  %v4681_v27 = vld [vmem:[%s6671_s6 + $0x1a8] sm:$0xff] }
  0x26   :  { %3765 = vmatpush3.msra.mxu0 %v81_v30 }
  0x27   :  { %3766 = vmatprep.subr.mxu0 %v80_v31 }
  0x28   :  { %3981 = vset.pattern.permute.xlu1 %v4195_v0  ;;  %3767 = vmatpush3.msra.mxu0 %v80_v31 }
  0x29   :  { %720 = vperm.xlu0 %3978, %v4447_v32   ;;  %654 = vperm.xlu1 %3981, %v323_v26  }
  0x2a   :  { %3768 = vmatprep.subr.mxu0 %v79_v33 }
  0x2b   :  { %3769 = vmatpush3.msra.mxu0 %v79_v33 }
  0x2c   :  { %3770 = vmatprep.subr.mxu0 %v78_v34 }
  0x2d   :  { %732 = vperm.xlu0 %3978, %v4460_v35   ;;  %657 = vperm.xlu1 %3981, %v324_v36  }
  0x2e   :  { %3771 = vmatpush3.msra.mxu0 %v78_v34  ;;  %v350_v34 = vld [vmem:[%s6671_s6 + $0xf8] sm:$0xff] }
  0x2f   :  { %3773 = vmatmul.mubr.msk.f32.vlgmr.msra.gmra.mxu0 %vm86_vm0, %v77_v37 }
  0x31   :  { %744 = vperm.xlu0 %3978, %v4472_v38   ;;  %3982 = vset.pattern.permute.xlu1 %v4196_v15 }
  0x32   :  { %407 = vperm.xlu1 %3982, %v326_v39  }
  0x35   :  { %756 = vperm.xlu0 %3978, %v4483_v40  }
  0x36   :  { %3983 = vset.pattern.permute.xlu1 %v4195_v0 }
  0x37   :  { %663 = vperm.xlu1 %3983, %v326_v39   ;;  %v4718_v39 = vld [vmem:[%s6671_s6 + $0x1e8] sm:$0xff] }
  0x39   :  { %768 = vperm.xlu0 %3978, %v4489_v41  }
  0x3b   :  { %3984 = vset.pattern.permute.xlu1 %v4196_v15 }
  0x3c   :  { %410 = vperm.xlu1 %3984, %v327_v42  }
  0x3d   :  { %780 = vperm.xlu0 %3978, %v4499_v43  }
  0x40   :  { %3985 = vset.pattern.permute.xlu1 %v4195_v0 }
  0x41   :  { %792 = vperm.xlu0 %3978, %v4506_v44   ;;  %666 = vperm.xlu1 %3985, %v327_v42   ;;  %v351_v42 = vld [vmem:[%s6671_s6 + $0x100] sm:$0xff] }
  0x45   :  { %804 = vperm.xlu0 %3978, %v4513_v45   ;;  %669 = vperm.xlu1 %3985, %v328_v46  }
  0x49   :  { %816 = vperm.xlu0 %3978, %v4522_v47   ;;  %3986 = vset.pattern.permute.xlu1 %v4196_v15 }
  0x4a   :  { %419 = vperm.xlu1 %3986, %v330_v48  }
  0x4d   :  { %4035 = vset.pattern.permute.xlu0 %v4196_v15 }
  0x4e   :  { %386 = vperm.xlu0 %4035, %v4328_v3   ;;  %3987 = vset.pattern.permute.xlu1 %v4195_v0 }
  0x4f   :  { %675 = vperm.xlu1 %3987, %v330_v48  }
  0x52   :  { %389 = vperm.xlu0 %4035, %v4346_v7   ;;  %v343_v7 = vld [vmem:[%s6671_s6 + $0xc0] sm:$0xff] }
  0x53   :  { %3988 = vset.pattern.permute.xlu1 %v4196_v15 }
  0x54   :  { %422 = vperm.xlu1 %3988, %v331_v49  }
  0x56   :  { %392 = vperm.xlu0 %4035, %v4323_v2  }
  0x58   :  { %3989 = vset.pattern.permute.xlu1 %v4195_v0 }
  0x59   :  { %678 = vperm.xlu1 %3989, %v331_v49  }
  0x5a   :  { %401 = vperm.xlu0 %4035, %v324_v36   ;;  %v6600_v36 = vlaneseq }
  0x5d   :  { %681 = vperm.xlu1 %3989, %v332_v50  }
  0x5e   :  { %404 = vperm.xlu0 %4035, %v4341_v6  }
  0x61   :  { %3990 = vset.pattern.permute.xlu1 %v4196_v15 }
  0x62   :  { %413 = vperm.xlu0 %4035, %v328_v46   ;;  %431 = vperm.xlu1 %3990, %v334_v51  }
  0x66   :  { %416 = vperm.xlu0 %4035, %v4362_v11   ;;  %3991 = vset.pattern.permute.xlu1 %v4195_v0 }
  0x67   :  { %687 = vperm.xlu1 %3991, %v334_v51   ;;  %v354_v51 = vld [vmem:[%s6671_s6 + $0x118] sm:$0xff] }
  0x6a   :  { %425 = vperm.xlu0 %4035, %v332_v50  }
  0x6b   :  { %3992 = vset.pattern.permute.xlu1 %v4196_v15 }
  0x6c   :  { %434 = vperm.xlu1 %3992, %v335_v52  }
  0x6e   :  { %428 = vperm.xlu0 %4035, %v4381_v17   ;;  %v346_v17 = vld [vmem:[%s6671_s6 + $0xd8] sm:$0xff] }
  0x70   :  { %3993 = vset.pattern.permute.xlu1 %v4195_v0 }
  0x71   :  { %690 = vperm.xlu1 %3993, %v335_v52  }
  0x72   :  { %437 = vperm.xlu0 %4035, %v336_v53  }
  0x75   :  { %693 = vperm.xlu1 %3993, %v336_v53  }
  0x76   :  { %440 = vperm.xlu0 %4035, %v4405_v22   ;;  %v4664_v22 = vld [vmem:[%s6671_s6 + $0x188] sm:$0xff] }
  0x79   :  { %3994 = vset.pattern.permute.xlu1 %v4196_v15 }
  0x7a   :  { %449 = vperm.xlu0 %4035, %v340_v54   ;;  %443 = vperm.xlu1 %3994, %v338_v55  }
  0x7e   :  { %452 = vperm.xlu0 %4035, %v4432_v29   ;;  %3995 = vset.pattern.permute.xlu1 %v4195_v0 }
  0x7f   :  { %699 = vperm.xlu1 %3995, %v338_v55  }
  0x82   :  { %461 = vperm.xlu0 %4035, %v344_v56  }
  0x83   :  { %3996 = vset.pattern.permute.xlu1 %v4196_v15 }
  0x84   :  { %446 = vperm.xlu1 %3996, %v339_v57  }
  0x86   :  { %464 = vperm.xlu0 %4035, %v4447_v32   ;;  %v4698_v32 = vld [vmem:[%s6671_s6 + $0x1c8] sm:$0xff] }
  0x88   :  { %3997 = vset.pattern.permute.xlu1 %v4195_v0 }
  0x89   :  { %702 = vperm.xlu1 %3997, %v339_v57  }
  0x8a   :  { %473 = vperm.xlu0 %4035, %v4579_v58  }
  0x8b   :  { %v4583_v59 = vpop.permute.xlu0 %648  ;;  %v4585_v60 = vpop.permute.xlu1 %642 }
  0x8d   :  { %705 = vperm.xlu1 %3997, %v340_v54  }
  0x8e   :  { %476 = vperm.xlu0 %4035, %v4460_v35  }
  0x8f   :  { %v4588_v61 = vpop.permute.xlu0 %660 }
  0x90   :  { %v4595_v63 = vpop.permute.xlu1 %645 }
  0x91   :  { %3998 = vset.pattern.permute.xlu1 %v4196_v15 }
  0x92   :  { %485 = vperm.xlu0 %4035, %v4593_v62   ;;  %455 = vperm.xlu1 %3998, %v342_v1  }
  0x93   :  { %v4602_v2 = vpop.permute.xlu0 %672 }
  0x95   :  { %v4604_v3 = vpop.permute.xlu1 %395 }
  0x96   :  { %488 = vperm.xlu0 %4035, %v4472_v38   ;;  %3999 = vset.pattern.permute.xlu1 %v4195_v0 }
  0x97   :  { %v4608_v4 = vpop.permute.xlu0 %684  ;;  %711 = vperm.xlu1 %3999, %v342_v1  }
  0x9a   :  { %497 = vperm.xlu0 %4035, %v4613_v5   ;;  %v4616_v6 = vpop.permute.xlu1 %651 }
  0x9b   :  { %v4621_v8 = vpop.permute.xlu0 %696  ;;  %4000 = vset.pattern.permute.xlu1 %v4196_v15 }
  0x9c   :  { %458 = vperm.xlu1 %4000, %v343_v7  }
  0x9e   :  { %500 = vperm.xlu0 %4035, %v4483_v40   ;;  %v4721_v40 = vand.u32 127, %v6600_v36 }
  0x9f   :  { %v4625_v9 = vpop.permute.xlu1 %398 }
  0xa0   :  { %v4632_v11 = vpop.permute.xlu0 %708  ;;  %4001 = vset.pattern.permute.xlu1 %v4195_v0  ;;  %vm833_vm2 = vcmp.eq.s32.totalorder %v4585_v60, %v4721_v40  ;;  %vm834_vm4 = vcmp.eq.s32.totalorder %v4595_v63, %v4721_v40  ;;  %v355_v60 = vld [vmem:[%s6671_s6 + $0x120] sm:$0xff]  ;;  %vm835_vm9 = vcmp.eq.s32.totalorder %v4583_v59, %v4721_v40  ;;  %vm836_vm12 = vcmp.eq.s32.totalorder %v4616_v6, %v4721_v40 }
  0xa1   :  { %714 = vperm.xlu1 %4001, %v343_v7   ;;  %v359_v59 = vld [vmem:[%s6671_s6 + $0x140] sm:$0xff] }
  0xa2   :  { %509 = vperm.xlu0 %4035, %v4630_v10  }
  0xa4   :  { %v4636_v12 = vpop.permute.xlu0 %720  ;;  %v4638_v13 = vpop.permute.xlu1 %654 }
  0xa5   :  { %717 = vperm.xlu1 %4001, %v344_v56   ;;  %v3419_v56 = vld [vmem:[%s6675_s27] ss:$0 sm:$0xff]  ;;  %vm837_vm13 = vcmp.eq.s32.totalorder %v4638_v13, %v4721_v40 }
  0xa6   :  { %512 = vperm.xlu0 %4035, %v4489_v41  }
  0xa8   :  { %v4646_v16 = vpop.permute.xlu0 %732  ;;  %v4651_v18 = vpop.permute.xlu1 %657 }
  0xa9   :  { %4002 = vset.pattern.permute.xlu1 %v4196_v15  ;;  %vm838_vm14 = vcmp.eq.s32.totalorder %v4651_v18, %v4721_v40 }
  0xaa   :  { %521 = vperm.xlu0 %4035, %v4644_v14   ;;  %467 = vperm.xlu1 %4002, %v346_v17  }
  0xac   :  { %v4655_v19 = vpop.permute.xlu0 %744 }
  0xad   :  { %v4657_v21 = vpop.permute.xlu1 %407 }
  0xae   :  { %524 = vperm.xlu0 %4035, %v4499_v43   ;;  %4003 = vset.pattern.permute.xlu1 %v4195_v0 }
  0xaf   :  { %723 = vperm.xlu1 %4003, %v346_v17  }
  0xb0   :  { %v4666_v23 = vpop.permute.xlu0 %756 }
  0xb2   :  { %533 = vperm.xlu0 %4035, %v4664_v22   ;;  %v4672_v25 = vpop.permute.xlu1 %663 }
  0xb3   :  { %4004 = vset.pattern.permute.xlu1 %v4196_v15 }
  0xb4   :  { %v4675_v26 = vpop.permute.xlu0 %768  ;;  %470 = vperm.xlu1 %4004, %v347_v24  }
  0xb6   :  { %536 = vperm.xlu0 %4035, %v4506_v44   ;;  %v381_v44 = vld [vmem:[%s6671_s6 + $0x1f0] sm:$0xff] }
  0xb7   :  { %v4683_v28 = vpop.permute.xlu1 %410 }
  0xb8   :  { %v4685_v29 = vpop.permute.xlu0 %780  ;;  %4005 = vset.pattern.permute.xlu1 %v4195_v0 }
  0xb9   :  { %726 = vperm.xlu1 %4005, %v347_v24  }
  0xba   :  { %545 = vperm.xlu0 %4035, %v4681_v27  }
  0xbc   :  { %v4689_v30 = vpop.permute.xlu0 %792  ;;  %v4691_v31 = vpop.permute.xlu1 %666 }
  0xbd   :  { %729 = vperm.xlu1 %4005, %v4579_v58  }
  0xbe   :  { %548 = vperm.xlu0 %4035, %v4513_v45  }
  0xc0   :  { %v4700_v33 = vpop.permute.xlu0 %804  ;;  %v4705_v35 = vpop.permute.xlu1 %669 }
  0xc1   :  { %4006 = vset.pattern.permute.xlu1 %v4196_v15 }
  0xc2   :  { %557 = vperm.xlu0 %4035, %v4698_v32   ;;  %479 = vperm.xlu1 %4006, %v350_v34  }
  0xc4   :  { %v4709_v37 = vpop.permute.xlu0 %816 }
  0xc5   :  { %v4711_v38 = vpop.permute.xlu1 %419 }
  0xc6   :  { %560 = vperm.xlu0 %4035, %v4522_v47   ;;  %4007 = vset.pattern.permute.xlu1 %v4195_v0 }
  0xc7   :  { %735 = vperm.xlu1 %4007, %v350_v34  }
  0xc9   :  { %v387_v41 = vpop.permute.xlu0 %386 }
  0xca   :  { %vm577_vm1 = vcmp.eq.s32.totalorder %v387_v41, %v4721_v40  ;;  %569 = vperm.xlu0 %4035, %v4718_v39   ;;  %v4728_v43 = vpop.permute.xlu1 %675 }
  0xcb   :  { %4008 = vset.pattern.permute.xlu1 %v4196_v15  ;;  %vm897_vm3 = vmor %vm577_vm1, %vm833_vm2  ;;  %vm580_vm1 = vcmp.eq.s32.totalorder %v4604_v3, %v4721_v40 }
  0xcc   :  { %482 = vperm.xlu1 %4008, %v351_v42   ;;  %v3428_v46 = vsel %vm897_vm3, 1.0, %v4197_v20  ;;  %vm900_vm3 = vmor %vm580_vm1, %vm836_vm12  ;;  %vm842_vm12 = vcmp.eq.s32.totalorder %v4705_v35, %v4721_v40 }
  0xcd   :  { %v390_v45 = vpop.permute.xlu0 %389 }
  0xce   :  { %vm578_vm5 = vcmp.eq.s32.totalorder %v390_v45, %v4721_v40  ;;  %572 = vperm.xlu0 %4035, %v381_v44  }
  0xcf   :  { %vm898_vm6 = vmor %vm578_vm5, %vm834_vm4  ;;  %v4741_v48 = vpop.permute.xlu1 %422  ;;  %vm581_vm4 = vcmp.eq.s32.totalorder %v4625_v9, %v4721_v40 }
  0xd0   :  { %v3429_v47 = vsel %vm898_vm6, 1.0, %v4197_v20  ;;  %4009 = vset.pattern.permute.xlu1 %v4195_v0  ;;  %vm901_vm5 = vmor %vm581_vm4, %vm837_vm13  ;;  %vm839_vm6 = vcmp.eq.s32.totalorder %v4588_v61, %v4721_v40  ;;  %vm843_vm4 = vcmp.eq.s32.totalorder %v4602_v2, %v4721_v40  ;;  %v362_v2 = vld [vmem:[%s6671_s6 + $0x158] sm:$0xff] }
  0xd1   :  { %v1089_v49 = vpack.c.bf16 %v3429_v47, %v3428_v46  ;;  %738 = vperm.xlu1 %4009, %v351_v42   ;;  %v393_v53 = vpop.permute.xlu0 %392  ;;  %v3432_v9 = vsel %vm901_vm5, 1.0, %v4197_v20 }
  0xd2   :  { %4040 = vset.pattern.permute.xlu0 %v4195_v0  ;;  %vm579_vm10 = vcmp.eq.s32.totalorder %v393_v53, %v4721_v40 }
  0xd3   :  { %3803 = vmatprep.mubr.msk.bf16.mxu0 %vm1152_vm7, %v1089_v49  ;;  %828 = vperm.xlu0 %4040, %v381_v44   ;;  %vm899_vm15 = vmor %vm579_vm10, %vm835_vm9  ;;  %vm840_vm10 = vcmp.eq.s32.totalorder %v4672_v25, %v4721_v40 }
  0xd4   :  { %v4746_v50 = vpop.permute.xlu1 %678  ;;  %v3430_v18 = vsel %vm899_vm15, 1.0, %v4197_v20 }
  0xd5   :  { %741 = vperm.xlu1 %4009, %v4593_v62   ;;  %v402_v62 = vpop.permute.xlu0 %401 }
  0xd6   :  { %vm582_vm11 = vcmp.eq.s32.totalorder %v402_v62, %v4721_v40  ;;  %v3431_v62 = vsel %vm900_vm3, 1.0, %v4197_v20 }
  0xd7   :  { %4042 = vset.pattern.permute.xlu0 %v4196_v15  ;;  %vm902_vm2 = vmor %vm582_vm11, %vm838_vm14  ;;  %vm841_vm11 = vcmp.eq.s32.totalorder %v4691_v31, %v4721_v40  ;;  %vm584_vm14 = vcmp.eq.s32.totalorder %v4657_v21, %v4721_v40 }
  0xd8   :  { %v4753_v52 = vpop.permute.xlu1 %681  ;;  %v3433_v3 = vsel %vm902_vm2, 1.0, %v4197_v20  ;;  %vm904_vm1 = vmor %vm584_vm14, %vm840_vm10  ;;  %vm585_vm2 = vcmp.eq.s32.totalorder %v4683_v28, %v4721_v40 }
  0xd9   :  { %4010 = vset.pattern.permute.xlu1 %v4196_v15  ;;  %v405_v46 = vpop.permute.xlu0 %404  ;;  %vm905_vm3 = vmor %vm585_vm2, %vm841_vm11  ;;  %v3435_v21 = vsel %vm904_vm1, 1.0, %v4197_v20  ;;  %vm846_vm10 = vcmp.eq.s32.totalorder %v4753_v52, %v4721_v40  ;;  %vm847_vm2 = vcmp.eq.s32.totalorder %v4608_v4, %v4721_v40 }
  0xda   :  { %491 = vperm.xlu1 %4010, %v354_v51  }
  0xdd   :  { %v4756_v54 = vpop.permute.xlu1 %431 }
  0xde   :  { %4011 = vset.pattern.permute.xlu1 %v4195_v0 }
  0xdf   :  { %747 = vperm.xlu1 %4011, %v354_v51   ;;  %v414_v51 = vpop.permute.xlu0 %413 }
  0xe0   :  { %v3793_v55 = vpop.f32.mrf.mxu1  ;;  %vm586_vm9 = vcmp.eq.s32.totalorder %v414_v51, %v4721_v40 }
  0xe1   :  { %v282_v57 = vadd.f32 %v3793_v55, %v3419_v56  ;;  %vm906_vm15 = vmor %vm586_vm9, %vm842_vm12  ;;  %vm845_vm9 = vcmp.eq.s32.totalorder %v4746_v50, %v4721_v40  ;;  %vm588_vm12 = vcmp.eq.s32.totalorder %v4711_v38, %v4721_v40 }
  0xe2   :  { %v276_v58 = vpop.f32.mrf.mxu1  ;;  %v4765_v1 = vpop.permute.xlu1 %687  ;;  %v3437_v31 = vsel %vm906_vm15, 1.0, %v4197_v20  ;;  %vm589_vm15 = vcmp.eq.s32.totalorder %v4741_v48, %v4721_v40  ;;  %v363_v48 = vld [vmem:[%s6671_s6 + $0x160] sm:$0xff] }
  0xe3   :  { %v3584_v63 = vpack.c.bf16 %v282_v57, %v282_v57  ;;  %v277_v7 = vadd.f32 %v3419_v56, %v276_v58  ;;  %4012 = vset.pattern.permute.xlu1 %v4196_v15  ;;  %vm909_vm1 = vmor %vm589_vm15, %vm845_vm9  ;;  %vm851_vm15 = vcmp.eq.s32.totalorder %v4621_v8, %v4721_v40 }
  0xe4   :  { %494 = vperm.xlu1 %4012, %v355_v60   ;;  %v3796_v24 = vpop.f32.mrf.mxu1 }
  0xe5   :  { %312 = vst.msk [vmem:[#allocation2 + $0xc] sm:$0xf] %vm176_vm8, %v3584_v63  ;;  %v3583_v17 = vpack.c.bf16 %v277_v7, %v277_v7  ;;  %v292_v34 = vadd.f32 %v3796_v24, %v3419_v56 }
  0xe6   :  { %v286_v41 = vpop.f32.mrf.mxu1 }
  0xe7   :  { %311 = vst.msk [vmem:[#allocation2 + $0x8] sm:$0xf] %vm176_vm8, %v3583_v17  ;;  %v3586_v42 = vpack.c.bf16 %v292_v34, %v292_v34  ;;  %v287_v44 = vadd.f32 %v3419_v56, %v286_v41  ;;  %v4770_v45 = vpop.permute.xlu1 %434  ;;  %v358_v56 = vld [vmem:[%s6671_s6 + $0x138] sm:$0xff]  ;;  %v1090_v34 = vpack.c.bf16 %v3431_v62, %v3430_v18  ;;  %v1091_v41 = vpack.c.bf16 %v3433_v3, %v3432_v9 }
  0xe8   :  { %4013 = vset.pattern.permute.xlu1 %v4195_v0 }
  0xe9   :  { %314 = vst.msk [vmem:[#allocation2 + $0x14] sm:$0xf] %vm176_vm8, %v3586_v42  ;;  %v3585_v47 = vpack.c.bf16 %v287_v44, %v287_v44  ;;  %750 = vperm.xlu1 %4013, %v355_v60   ;;  %v3436_v44 = vsel %vm905_vm3, 1.0, %v4197_v20 }
  0xeb   :  { %313 = vst.msk [vmem:[#allocation2 + $0x10] sm:$0xf] %vm176_vm8, %v3585_v47  ;;  %v1093_v47 = vpack.c.bf16 %v3437_v31, %v3436_v44  ;;  %v367_v31 = vld [vmem:[%s6671_s6 + $0x180] sm:$0xff] }
  0xec   :  { %v4775_v49 = vpop.permute.xlu1 %690 }
  0xed   :  { %753 = vperm.xlu1 %4013, %v4613_v5   ;;  %v4786_v5 = vpop.permute.xlu0 %416  ;;  %vm849_vm9 = vcmp.eq.s32.totalorder %v4775_v49, %v4721_v40 }
  0xee   :  { %v4055_v17 = vld [vmem:[#allocation2 + $0x8] sm:$0xff]   ;;  %vm587_vm5 = vcmp.eq.s32.totalorder %v4786_v5, %v4721_v40 }
  0xef   :  { %v3774_v55 = vpop.f32.mrf.mxu0  ;;  %vm907_vm11 = vmor %vm587_vm5, %vm843_vm4 }
  0xf0   :  { %v3582_v57 = vpack.c.bf16 %v3774_v55, %v3774_v55  ;;  %v4781_v58 = vpop.permute.xlu1 %693  ;;  %v3440_v55 = vsel %vm909_vm1, 1.0, %v4197_v20 }
  0xf1   :  { %v159_v63 = vpop.f32.mrf.mxu0  ;;  %4014 = vset.pattern.permute.xlu1 %v4196_v15  ;;  %v426_v6 = vpop.permute.xlu0 %425  ;;  %vm850_vm5 = vcmp.eq.s32.totalorder %v4781_v58, %v4721_v40 }
  0xf2   :  { %178 = vst.msk [vmem:[#allocation2 + $0x4] sm:$0xf] %vm176_vm8, %v3582_v57  ;;  %v3581_v7 = vpack.c.bf16 %v159_v63, %v159_v63  ;;  %503 = vperm.xlu1 %4014, %v358_v56   ;;  %v4054_v60 = vld [vmem:[#allocation2 + $0x10] sm:$0xff]  }
  0xf3   :  { %3797 = vmatprep.subr.bf16.mxu0 %v4054_v60 }
  0xf4   :  { %177 = vst.msk [vmem:[#allocation2] sm:$0xf] %vm176_vm8, %v3581_v7  ;;  %3798 = vmatpush3.bf16.msra.mxu0 %v4054_v60  ;;  %vm583_vm8 = vcmp.eq.s32.totalorder %v405_v46, %v4721_v40 }
  0xf5   :  { %v4791_v24 = vpop.permute.xlu1 %443  ;;  %3799 = vmatprep.subr.bf16.mxu0 %v4055_v17  ;;  %vm903_vm13 = vmor %vm583_vm8, %vm839_vm6  ;;  %v429_v61 = vpop.permute.xlu0 %428  ;;  %vm590_vm6 = vcmp.eq.s32.totalorder %v426_v6, %v4721_v40  ;;  %vm844_vm8 = vcmp.eq.s32.totalorder %v4728_v43, %v4721_v40  ;;  %v3438_v43 = vsel %vm907_vm11, 1.0, %v4197_v20 }
  0xf6   :  { %4015 = vset.pattern.permute.xlu1 %v4195_v0  ;;  %v3434_v25 = vsel %vm903_vm13, 1.0, %v4197_v20  ;;  %vm910_vm13 = vmor %vm590_vm6, %vm846_vm10  ;;  %vm591_vm3 = vcmp.eq.s32.totalorder %v429_v61, %v4721_v40  ;;  %vm848_vm6 = vcmp.eq.s32.totalorder %v4765_v1, %v4721_v40  ;;  %vm592_vm10 = vcmp.eq.s32.totalorder %v4756_v54, %v4721_v40 }
  0xf7   :  { %759 = vperm.xlu1 %4015, %v358_v56   ;;  %v1092_v28 = vpack.c.bf16 %v3435_v21, %v3434_v25  ;;  %vm908_vm14 = vmor %vm588_vm12, %vm844_vm8  ;;  %v3441_v50 = vsel %vm910_vm13, 1.0, %v4197_v20  ;;  %vm593_vm13 = vcmp.eq.s32.totalorder %v4770_v45, %v4721_v40 }
  0xf8   :  { %3800 = vmatpush3.bf16.msra.mxu0 %v4055_v17  ;;  %v3439_v38 = vsel %vm908_vm14, 1.0, %v4197_v20  ;;  %v1095_v4 = vpack.c.bf16 %v3441_v50, %v3440_v55  ;;  %vm911_vm8 = vmor %vm591_vm3, %vm847_vm2 }
  0xf9   :  { %v438_v46 = vpop.permute.xlu0 %437  ;;  %v1094_v57 = vpack.c.bf16 %v3439_v38, %v3438_v43  ;;  %vm912_vm12 = vmor %vm592_vm10, %vm848_vm6  ;;  %v3442_v49 = vsel %vm911_vm8, 1.0, %v4197_v20  ;;  %vm596_vm6 = vcmp.eq.s32.totalorder %v4791_v24, %v4721_v40 }
  0xfa   :  { %v4808_v53 = vpop.permute.xlu1 %699  ;;  %vm594_vm4 = vcmp.eq.s32.totalorder %v438_v46, %v4721_v40  ;;  %vm913_vm14 = vmor %vm593_vm13, %vm849_vm9  ;;  %v3443_v58 = vsel %vm912_vm12, 1.0, %v4197_v20  ;;  %vm855_vm13 = vcmp.eq.s32.totalorder %v4632_v11, %v4721_v40  ;;  %v366_v11 = vld [vmem:[%s6671_s6 + $0x178] sm:$0xff] }
  0xfb   :  { %v4056_v13 = vld [vmem:[#allocation2] sm:$0xff]   ;;  %4016 = vset.pattern.permute.xlu1 %v4196_v15  ;;  %vm914_vm11 = vmor %vm594_vm4, %vm850_vm5  ;;  %vm852_vm2 = vcmp.eq.s32.totalorder %v4808_v53, %v4721_v40  ;;  %v1096_v45 = vpack.c.bf16 %v3443_v58, %v3442_v49  ;;  %v3444_v63 = vsel %vm913_vm14, 1.0, %v4197_v20  ;;  %v374_v49 = vld [vmem:[%s6671_s6 + $0x1b8] sm:$0xff] }
  0xfc   :  { %506 = vperm.xlu1 %4016, %v359_v59   ;;  %3801 = vmatprep.subr.bf16.mxu0 %v4056_v13  ;;  %v3445_v54 = vsel %vm914_vm11, 1.0, %v4197_v20  ;;  %vm916_vm8 = vmor %vm596_vm6, %vm852_vm2 }
  0xfd   :  { %3802 = vmatpush3.bf16.msra.mxu0 %v4056_v13  ;;  %v441_v52 = vpop.permute.xlu0 %440  ;;  %v1097_v7 = vpack.c.bf16 %v3445_v54, %v3444_v63  ;;  %v3447_v5 = vsel %vm916_vm8, 1.0, %v4197_v20 }
  0xfe   :  { %vm595_vm1 = vcmp.eq.s32.totalorder %v441_v52, %v4721_v40 }
  0xff   :  { %v4821_v42 = vpop.permute.xlu1 %446  ;;  %vm915_vm5 = vmor %vm595_vm1, %vm851_vm15 }
 0x100   :  { %4017 = vset.pattern.permute.xlu1 %v4195_v0  ;;  %3804 = vmatmul.mubr.msk.bf16.vlgmr.msra.gmra.mxu0 %vm1152_vm7, %v1090_v34  ;;  %vm597_vm11 = vcmp.eq.s32.totalorder %v4821_v42, %v4721_v40  ;;  %v3446_v17 = vsel %vm915_vm5, 1.0, %v4197_v20 }
 0x101   :  { %762 = vperm.xlu1 %4017, %v359_v59   ;;  %3807 = vmatprep.mubr.msk.bf16.mxu0 %vm1152_vm7, %v1091_v41  ;;  %v450_v1 = vpop.permute.xlu0 %449  ;;  %v1098_v6 = vpack.c.bf16 %v3447_v5, %v3446_v17 }
 0x102   :  { %vm598_vm3 = vcmp.eq.s32.totalorder %v450_v1, %v4721_v40 }
 0x104   :  { %v4836_v35 = vpop.permute.xlu1 %702 }
 0x105   :  { %765 = vperm.xlu1 %4017, %v4630_v10   ;;  %v453_v60 = vpop.permute.xlu0 %452  ;;  %vm853_vm9 = vcmp.eq.s32.totalorder %v4836_v35, %v4721_v40 }
 0x106   :  { %vm917_vm12 = vmor %vm597_vm11, %vm853_vm9  ;;  %vm599_vm14 = vcmp.eq.s32.totalorder %v453_v60, %v4721_v40  ;;  %vm859_vm11 = vcmp.eq.s32.totalorder %v4636_v12, %v4721_v40 }
 0x107   :  { %v3448_v13 = vsel %vm917_vm12, 1.0, %v4197_v20  ;;  %vm919_vm1 = vmor %vm599_vm14, %vm855_vm13 }
 0x108   :  { %v706_v10 = vpop.permute.xlu1 %705  ;;  %3808 = vmatmul.mubr.msk.bf16.gmra.mxu0 %vm1152_vm7, %v1092_v28 }
 0x109   :  { %4018 = vset.pattern.permute.xlu1 %v4196_v15  ;;  %3811 = vmatprep.mubr.msk.bf16.mxu0 %vm1152_vm7, %v1093_v47  ;;  %vm854_vm4 = vcmp.eq.s32.totalorder %v706_v10, %v4721_v40  ;;  %v462_v53 = vpop.permute.xlu0 %461 }
 0x10a   :  { %515 = vperm.xlu1 %4018, %v362_v2   ;;  %vm918_vm10 = vmor %vm598_vm3, %vm854_vm4  ;;  %vm602_vm2 = vcmp.eq.s32.totalorder %v462_v53, %v4721_v40  ;;  %v378_v53 = vld [vmem:[%s6671_s6 + $0x1d8] sm:$0xff] }
 0x10b   :  { %v3449_v24 = vsel %vm918_vm10, 1.0, %v4197_v20 }
 0x10c   :  { %v1099_v18 = vpack.c.bf16 %v3449_v24, %v3448_v13 }
 0x10d   :  { %v4868_v51 = vpop.permute.xlu1 %455  ;;  %v465_v9 = vpop.permute.xlu0 %464 }
 0x10e   :  { %4019 = vset.pattern.permute.xlu1 %v4195_v0  ;;  %vm600_vm3 = vcmp.eq.s32.totalorder %v4868_v51, %v4721_v40  ;;  %vm603_vm12 = vcmp.eq.s32.totalorder %v465_v9, %v4721_v40  ;;  %v371_v51 = vld [vmem:[%s6671_s6 + $0x1a0] sm:$0xff] }
 0x10f   :  { %771 = vperm.xlu1 %4019, %v362_v2   ;;  %vm923_vm13 = vmor %vm603_vm12, %vm859_vm11  ;;  %v370_v2 = vld [vmem:[%s6671_s6 + $0x198] sm:$0xff] }
 0x110   :  { %3812 = vmatmul.mubr.msk.bf16.gmra.mxu0 %vm1152_vm7, %v1094_v57  ;;  %v3454_v35 = vsel %vm923_vm13, 1.0, %v4197_v20 }
 0x111   :  { %3815 = vmatprep.mubr.msk.bf16.mxu0 %vm1152_vm7, %v1095_v4  ;;  %v474_v47 = vpop.permute.xlu0 %473 }
 0x112   :  { %v712_v56 = vpop.permute.xlu1 %711 }
 0x113   :  { %4020 = vset.pattern.permute.xlu1 %v4196_v15  ;;  %vm856_vm15 = vcmp.eq.s32.totalorder %v712_v56, %v4721_v40 }
 0x114   :  { %518 = vperm.xlu1 %4020, %v363_v48   ;;  %vm920_vm4 = vmor %vm600_vm3, %vm856_vm15  ;;  %vm606_vm3 = vcmp.eq.s32.totalorder %v474_v47, %v4721_v40 }
 0x115   :  { %v3451_v62 = vsel %vm920_vm4, 1.0, %v4197_v20  ;;  %v477_v38 = vpop.permute.xlu0 %476 }
 0x117   :  { %v459_v8 = vpop.permute.xlu1 %458 }
 0x118   :  { %4021 = vset.pattern.permute.xlu1 %v4195_v0  ;;  %3816 = vmatmul.mubr.msk.bf16.gmra.mxu0 %vm1152_vm7, %v1096_v45  ;;  %vm601_vm8 = vcmp.eq.s32.totalorder %v459_v8, %v4721_v40  ;;  %v375_v8 = vld [vmem:[%s6671_s6 + $0x1c0] sm:$0xff] }
 0x119   :  { %774 = vperm.xlu1 %4021, %v363_v48   ;;  %3819 = vmatprep.mubr.msk.bf16.mxu0 %vm1152_vm7, %v1097_v7  ;;  %v486_v56 = vpop.permute.xlu0 %485 }
 0x11c   :  { %v715_v59 = vpop.permute.xlu1 %714 }
 0x11d   :  { %777 = vperm.xlu1 %4021, %v4644_v14   ;;  %vm857_vm5 = vcmp.eq.s32.totalorder %v715_v59, %v4721_v40  ;;  %v3450_v14 = vsel %vm919_vm1, 1.0, %v4197_v20  ;;  %v489_v7 = vpop.permute.xlu0 %488 }
 0x11e   :  { %vm921_vm10 = vmor %vm601_vm8, %vm857_vm5  ;;  %v1100_v42 = vpack.c.bf16 %v3451_v62, %v3450_v14  ;;  %v379_v62 = vld [vmem:[%s6671_s6 + $0x1e0] sm:$0xff] }
 0x11f   :  { %v3452_v61 = vsel %vm921_vm10, 1.0, %v4197_v20  ;;  %vm607_vm10 = vcmp.eq.s32.totalorder %v477_v38, %v4721_v40 }
 0x120   :  { %v718_v3 = vpop.permute.xlu1 %717  ;;  %3820 = vmatmul.mubr.msk.bf16.gmra.mxu0 %vm1152_vm7, %v1098_v6 }
 0x121   :  { %vm858_vm6 = vcmp.eq.s32.totalorder %v718_v3, %v4721_v40  ;;  %4022 = vset.pattern.permute.xlu1 %v4196_v15  ;;  %3823 = vmatprep.mubr.msk.bf16.mxu0 %vm1152_vm7, %v1099_v18  ;;  %v498_v6 = vpop.permute.xlu0 %497 }
 0x122   :  { %vm922_vm9 = vmor %vm602_vm2, %vm858_vm6  ;;  %527 = vperm.xlu1 %4022, %v366_v11  }
 0x123   :  { %v3453_v34 = vsel %vm922_vm9, 1.0, %v4197_v20  ;;  %vm863_vm9 = vcmp.eq.s32.totalorder %v4646_v16, %v4721_v40 }
 0x124   :  { %v1101_v25 = vpack.c.bf16 %v3453_v34, %v3452_v61  ;;  %vm927_vm11 = vmor %vm607_vm10, %vm863_vm9 }
 0x125   :  { %v468_v41 = vpop.permute.xlu1 %467  ;;  %v3458_v57 = vsel %vm927_vm11, 1.0, %v4197_v20  ;;  %v501_v14 = vpop.permute.xlu0 %500 }
 0x126   :  { %4023 = vset.pattern.permute.xlu1 %v4195_v0  ;;  %vm604_vm14 = vcmp.eq.s32.totalorder %v468_v41, %v4721_v40 }
 0x127   :  { %783 = vperm.xlu1 %4023, %v366_v11  }
 0x128   :  { %3824 = vmatmul.mubr.msk.bf16.gmra.mxu0 %vm1152_vm7, %v1100_v42 }
 0x129   :  { %3827 = vmatprep.mubr.msk.bf16.mxu0 %vm1152_vm7, %v1101_v25  ;;  %v382_v25 = vld [vmem:[%s6671_s6 + $0x1f8] sm:$0xff] }
 0x12a   :  { %v724_v12 = vpop.permute.xlu1 %723 }
 0x12b   :  { %vm860_vm15 = vcmp.eq.s32.totalorder %v724_v12, %v4721_v40  ;;  %4024 = vset.pattern.permute.xlu1 %v4196_v15 }
 0x12c   :  { %vm924_vm1 = vmor %vm604_vm14, %vm860_vm15  ;;  %530 = vperm.xlu1 %4024, %v367_v31  }
 0x12d   :  { %v3455_v21 = vsel %vm924_vm1, 1.0, %v4197_v20  ;;  %vm610_vm1 = vcmp.eq.s32.totalorder %v486_v56, %v4721_v40 }
 0x12e   :  { %v1102_v44 = vpack.c.bf16 %v3455_v21, %v3454_v35 }
 0x12f   :  { %v471_v28 = vpop.permute.xlu1 %470 }
 0x130   :  { %4025 = vset.pattern.permute.xlu1 %v4195_v0  ;;  %3828 = vmatmul.mubr.msk.bf16.gmra.mxu0 %vm1152_vm7, %v1102_v44  ;;  %vm605_vm4 = vcmp.eq.s32.totalorder %v471_v28, %v4721_v40 }
 0x131   :  { %786 = vperm.xlu1 %4025, %v367_v31   ;;  %v510_v31 = vpop.permute.xlu0 %509 }
 0x134   :  { %v727_v46 = vpop.permute.xlu1 %726 }
 0x135   :  { %vm861_vm2 = vcmp.eq.s32.totalorder %v727_v46, %v4721_v40  ;;  %789 = vperm.xlu1 %4025, %v4664_v22   ;;  %v513_v28 = vpop.permute.xlu0 %512 }
 0x136   :  { %vm925_vm5 = vmor %vm605_vm4, %vm861_vm2 }
 0x137   :  { %v3456_v43 = vsel %vm925_vm5, 1.0, %v4197_v20 }
 0x138   :  { %v730_v10 = vpop.permute.xlu1 %729 }
 0x139   :  { %vm862_vm6 = vcmp.eq.s32.totalorder %v730_v10, %v4721_v40  ;;  %4026 = vset.pattern.permute.xlu1 %v4196_v15 }
 0x13a   :  { %vm926_vm8 = vmor %vm606_vm3, %vm862_vm6  ;;  %539 = vperm.xlu1 %4026, %v370_v2   ;;  %vm867_vm6 = vcmp.eq.s32.totalorder %v4655_v19, %v4721_v40 }
 0x13b   :  { %v3457_v22 = vsel %vm926_vm8, 1.0, %v4197_v20  ;;  %vm611_vm8 = vcmp.eq.s32.totalorder %v489_v7, %v4721_v40 }
 0x13c   :  { %v1103_v50 = vpack.c.bf16 %v3457_v22, %v3456_v43  ;;  %vm931_vm9 = vmor %vm611_vm8, %vm867_vm6  ;;  %v522_v43 = vpop.permute.xlu0 %521 }
 0x13d   :  { %v480_v52 = vpop.permute.xlu1 %479  ;;  %v3462_v17 = vsel %vm931_vm9, 1.0, %v4197_v20 }
 0x13e   :  { %4027 = vset.pattern.permute.xlu1 %v4195_v0  ;;  %3831 = vmatprep.mubr.msk.bf16.mxu0 %vm1152_vm7, %v1103_v50  ;;  %vm608_vm12 = vcmp.eq.s32.totalorder %v480_v52, %v4721_v40 }
 0x13f   :  { %795 = vperm.xlu1 %4027, %v370_v2  }
 0x142   :  { %v736_v55 = vpop.permute.xlu1 %735 }
 0x143   :  { %vm864_vm13 = vcmp.eq.s32.totalorder %v736_v55, %v4721_v40  ;;  %4028 = vset.pattern.permute.xlu1 %v4196_v15 }
 0x144   :  { %vm928_vm14 = vmor %vm608_vm12, %vm864_vm13  ;;  %542 = vperm.xlu1 %4028, %v371_v51  }
 0x145   :  { %v3459_v16 = vsel %vm928_vm14, 1.0, %v4197_v20  ;;  %vm614_vm14 = vcmp.eq.s32.totalorder %v498_v6, %v4721_v40 }
 0x146   :  { %v1104_v4 = vpack.c.bf16 %v3459_v16, %v3458_v57 }
 0x147   :  { %v483_v48 = vpop.permute.xlu1 %482 }
 0x148   :  { %4029 = vset.pattern.permute.xlu1 %v4195_v0  ;;  %3832 = vmatmul.mubr.msk.bf16.gmra.mxu0 %vm1152_vm7, %v1104_v4  ;;  %vm609_vm2 = vcmp.eq.s32.totalorder %v483_v48, %v4721_v40 }
 0x149   :  { %798 = vperm.xlu1 %4029, %v371_v51   ;;  %v525_v51 = vpop.permute.xlu0 %524 }
 0x14c   :  { %v739_v1 = vpop.permute.xlu1 %738 }
 0x14d   :  { %vm865_vm15 = vcmp.eq.s32.totalorder %v739_v1, %v4721_v40  ;;  %801 = vperm.xlu1 %4029, %v4681_v27  }
 0x14e   :  { %vm929_vm3 = vmor %vm609_vm2, %vm865_vm15 }
 0x14f   :  { %v3460_v58 = vsel %vm929_vm3, 1.0, %v4197_v20 }
 0x150   :  { %v742_v54 = vpop.permute.xlu1 %741 }
 0x151   :  { %vm866_vm4 = vcmp.eq.s32.totalorder %v742_v54, %v4721_v40  ;;  %4030 = vset.pattern.permute.xlu1 %v4196_v15 }
 0x152   :  { %vm930_vm5 = vmor %vm610_vm1, %vm866_vm4  ;;  %551 = vperm.xlu1 %4030, %v374_v49   ;;  %vm871_vm4 = vcmp.eq.s32.totalorder %v4666_v23, %v4721_v40 }
 0x153   :  { %v3461_v27 = vsel %vm930_vm5, 1.0, %v4197_v20  ;;  %vm615_vm5 = vcmp.eq.s32.totalorder %v501_v14, %v4721_v40 }
 0x154   :  { %v1105_v45 = vpack.c.bf16 %v3461_v27, %v3460_v58  ;;  %vm935_vm6 = vmor %vm615_vm5, %vm871_vm4 }
 0x155   :  { %v492_v63 = vpop.permute.xlu1 %491  ;;  %v3466_v34 = vsel %vm935_vm6, 1.0, %v4197_v20 }
 0x156   :  { %4031 = vset.pattern.permute.xlu1 %v4195_v0  ;;  %3835 = vmatprep.mubr.msk.bf16.mxu0 %vm1152_vm7, %v1105_v45  ;;  %vm612_vm10 = vcmp.eq.s32.totalorder %v492_v63, %v4721_v40 }
 0x157   :  { %807 = vperm.xlu1 %4031, %v374_v49  }
 0x15a   :  { %v748_v60 = vpop.permute.xlu1 %747 }
 0x15b   :  { %vm868_vm11 = vcmp.eq.s32.totalorder %v748_v60, %v4721_v40  ;;  %4032 = vset.pattern.permute.xlu1 %v4196_v15 }
 0x15c   :  { %vm932_vm12 = vmor %vm612_vm10, %vm868_vm11  ;;  %554 = vperm.xlu1 %4032, %v375_v8  }
 0x15d   :  { %v3463_v19 = vsel %vm932_vm12, 1.0, %v4197_v20 }
 0x15e   :  { %v1106_v5 = vpack.c.bf16 %v3463_v19, %v3462_v17  ;;  %v5082_v17 = vld [vmem:[%s6676_s28] ss:$0 sm:$0xff] }
 0x15f   :  { %v495_v24 = vpop.permute.xlu1 %494 }
 0x160   :  { %4033 = vset.pattern.permute.xlu1 %v4195_v0  ;;  %3836 = vmatmul.mubr.msk.bf16.gmra.mxu0 %vm1152_vm7, %v1106_v5  ;;  %vm613_vm15 = vcmp.eq.s32.totalorder %v495_v24, %v4721_v40 }
 0x161   :  { %810 = vperm.xlu1 %4033, %v375_v8  }
 0x164   :  { %v751_v59 = vpop.permute.xlu1 %750 }
 0x165   :  { %vm869_vm13 = vcmp.eq.s32.totalorder %v751_v59, %v4721_v40  ;;  %813 = vperm.xlu1 %4033, %v4698_v32  }
 0x166   :  { %vm933_vm1 = vmor %vm613_vm15, %vm869_vm13 }
 0x167   :  { %v3464_v18 = vsel %vm933_vm1, 1.0, %v4197_v20 }
 0x168   :  { %v754_v13 = vpop.permute.xlu1 %753 }
 0x169   :  { %vm870_vm2 = vcmp.eq.s32.totalorder %v754_v13, %v4721_v40  ;;  %4034 = vset.pattern.permute.xlu1 %v4196_v15 }
 0x16a   :  { %vm934_vm3 = vmor %vm614_vm14, %vm870_vm2  ;;  %563 = vperm.xlu1 %4034, %v378_v53   ;;  %vm618_vm14 = vcmp.eq.s32.totalorder %v510_v31, %v4721_v40  ;;  %vm875_vm2 = vcmp.eq.s32.totalorder %v4675_v26, %v4721_v40 }
 0x16b   :  { %v3465_v32 = vsel %vm934_vm3, 1.0, %v4197_v20  ;;  %vm619_vm3 = vcmp.eq.s32.totalorder %v513_v28, %v4721_v40 }
 0x16c   :  { %v1107_v11 = vpack.c.bf16 %v3465_v32, %v3464_v18  ;;  %vm939_vm4 = vmor %vm619_vm3, %vm875_vm2 }
 0x16d   :  { %v504_v3 = vpop.permute.xlu1 %503  ;;  %v3470_v47 = vsel %vm939_vm4, 1.0, %v4197_v20 }
 0x16e   :  { %4036 = vset.pattern.permute.xlu1 %v4195_v0  ;;  %3839 = vmatprep.mubr.msk.bf16.mxu0 %vm1152_vm7, %v1107_v11  ;;  %vm616_vm8 = vcmp.eq.s32.totalorder %v504_v3, %v4721_v40 }
 0x16f   :  { %819 = vperm.xlu1 %4036, %v378_v53  }
 0x172   :  { %v760_v9 = vpop.permute.xlu1 %759 }
 0x173   :  { %vm872_vm9 = vcmp.eq.s32.totalorder %v760_v9, %v4721_v40  ;;  %4037 = vset.pattern.permute.xlu1 %v4196_v15 }
 0x174   :  { %vm936_vm10 = vmor %vm616_vm8, %vm872_vm9  ;;  %566 = vperm.xlu1 %4037, %v379_v62  }
 0x175   :  { %v3467_v23 = vsel %vm936_vm10, 1.0, %v4197_v20 }
 0x176   :  { %v1108_v41 = vpack.c.bf16 %v3467_v23, %v3466_v34 }
 0x177   :  { %v507_v42 = vpop.permute.xlu1 %506 }
 0x178   :  { %4038 = vset.pattern.permute.xlu1 %v4195_v0  ;;  %3840 = vmatmul.mubr.msk.bf16.gmra.mxu0 %vm1152_vm7, %v1108_v41  ;;  %vm617_vm12 = vcmp.eq.s32.totalorder %v507_v42, %v4721_v40 }
 0x179   :  { %822 = vperm.xlu1 %4038, %v379_v62  }
 0x17c   :  { %v763_v61 = vpop.permute.xlu1 %762 }
 0x17d   :  { %vm873_vm11 = vcmp.eq.s32.totalorder %v763_v61, %v4721_v40  ;;  %825 = vperm.xlu1 %4038, %v4718_v39  }
 0x17e   :  { %vm937_vm13 = vmor %vm617_vm12, %vm873_vm11  ;;  %vm622_vm12 = vcmp.eq.s32.totalorder %v522_v43, %v4721_v40 }
 0x17f   :  { %v3468_v35 = vsel %vm937_vm13, 1.0, %v4197_v20 }
 0x180   :  { %v766_v12 = vpop.permute.xlu1 %765 }
 0x181   :  { %vm874_vm15 = vcmp.eq.s32.totalorder %v766_v12, %v4721_v40  ;;  %4039 = vset.pattern.permute.xlu1 %v4196_v15 }
 0x182   :  { %vm938_vm1 = vmor %vm618_vm14, %vm874_vm15  ;;  %575 = vperm.xlu1 %4039, %v382_v25   ;;  %vm879_vm15 = vcmp.eq.s32.totalorder %v4685_v29, %v4721_v40  ;;  %v534_v29 = vpop.permute.xlu0 %533 }
 0x183   :  { %v3469_v39 = vsel %vm938_vm1, 1.0, %v4197_v20  ;;  %vm623_vm1 = vcmp.eq.s32.totalorder %v525_v51, %v4721_v40 }
 0x184   :  { %v1109_v21 = vpack.c.bf16 %v3469_v39, %v3468_v35  ;;  %vm943_vm2 = vmor %vm623_vm1, %vm879_vm15 }
 0x185   :  { %v516_v44 = vpop.permute.xlu1 %515  ;;  %v3474_v57 = vsel %vm943_vm2, 1.0, %v4197_v20 }
 0x186   :  { %4041 = vset.pattern.permute.xlu1 %v4195_v0  ;;  %3843 = vmatprep.mubr.msk.bf16.mxu0 %vm1152_vm7, %v1109_v21  ;;  %vm620_vm5 = vcmp.eq.s32.totalorder %v516_v44, %v4721_v40  ;;  %v537_v45 = vpop.permute.xlu0 %536 }
 0x187   :  { %831 = vperm.xlu1 %4041, %v382_v25  }
 0x18a   :  { %v772_v46 = vpop.permute.xlu1 %771  ;;  %v546_v11 = vpop.permute.xlu0 %545 }
 0x18b   :  { %vm876_vm6 = vcmp.eq.s32.totalorder %v772_v46, %v4721_v40  ;;  %4043 = vset.pattern.permute.xlu1 %v4196_v15 }
 0x18c   :  { %vm940_vm8 = vmor %vm620_vm5, %vm876_vm6 }
 0x18d   :  { %v3471_v0 = vsel %vm940_vm8, 1.0, %v4197_v20 }
 0x18e   :  { %v1110_v2 = vpack.c.bf16 %v3471_v0, %v3470_v47  ;;  %v549_v28 = vpop.permute.xlu0 %548 }
 0x18f   :  { %v519_v10 = vpop.permute.xlu1 %518 }
 0x190   :  { %3844 = vmatmul.mubr.msk.bf16.gmra.mxu0 %vm1152_vm7, %v1110_v2  ;;  %vm621_vm10 = vcmp.eq.s32.totalorder %v519_v10, %v4721_v40 }
 0x194   :  { %v775_v26 = vpop.permute.xlu1 %774 }
 0x195   :  { %vm877_vm9 = vcmp.eq.s32.totalorder %v775_v26, %v4721_v40 }
 0x196   :  { %vm941_vm11 = vmor %vm621_vm10, %vm877_vm9  ;;  %vm626_vm10 = vcmp.eq.s32.totalorder %v534_v29, %v4721_v40 }
 0x197   :  { %v3472_v15 = vsel %vm941_vm11, 1.0, %v4197_v20 }
 0x198   :  { %v778_v22 = vpop.permute.xlu1 %777 }
 0x199   :  { %vm878_vm13 = vcmp.eq.s32.totalorder %v778_v22, %v4721_v40 }
 0x19a   :  { %vm942_vm14 = vmor %vm622_vm12, %vm878_vm13  ;;  %vm883_vm13 = vcmp.eq.s32.totalorder %v4689_v30, %v4721_v40 }
 0x19b   :  { %v3473_v50 = vsel %vm942_vm14, 1.0, %v4197_v20  ;;  %vm627_vm14 = vcmp.eq.s32.totalorder %v537_v45, %v4721_v40 }
 0x19c   :  { %v1111_v52 = vpack.c.bf16 %v3473_v50, %v3472_v15  ;;  %vm947_vm15 = vmor %vm627_vm14, %vm883_vm13 }
 0x19d   :  { %v528_v38 = vpop.permute.xlu1 %527  ;;  %v3478_v7 = vsel %vm947_vm15, 1.0, %v4197_v20 }
 0x19e   :  { %3847 = vmatprep.mubr.msk.bf16.mxu0 %vm1152_vm7, %v1111_v52  ;;  %vm624_vm3 = vcmp.eq.s32.totalorder %v528_v38, %v4721_v40 }
 0x1a2   :  { %v784_v55 = vpop.permute.xlu1 %783 }
 0x1a3   :  { %vm880_vm4 = vcmp.eq.s32.totalorder %v784_v55, %v4721_v40 }
 0x1a4   :  { %vm944_vm5 = vmor %vm624_vm3, %vm880_vm4 }
 0x1a5   :  { %v3475_v16 = vsel %vm944_vm5, 1.0, %v4197_v20 }
 0x1a6   :  { %v1112_v4 = vpack.c.bf16 %v3475_v16, %v3474_v57 }
 0x1a7   :  { %v531_v48 = vpop.permute.xlu1 %530 }
 0x1a8   :  { %3848 = vmatmul.mubr.msk.bf16.gmra.mxu0 %vm1152_vm7, %v1112_v4  ;;  %vm625_vm8 = vcmp.eq.s32.totalorder %v531_v48, %v4721_v40 }
 0x1ac   :  { %v787_v1 = vpop.permute.xlu1 %786 }
 0x1ad   :  { %vm881_vm6 = vcmp.eq.s32.totalorder %v787_v1, %v4721_v40 }
 0x1ae   :  { %vm945_vm9 = vmor %vm625_vm8, %vm881_vm6  ;;  %vm630_vm8 = vcmp.eq.s32.totalorder %v546_v11, %v4721_v40 }
 0x1af   :  { %v3476_v49 = vsel %vm945_vm9, 1.0, %v4197_v20 }
 0x1b0   :  { %v790_v56 = vpop.permute.xlu1 %789 }
 0x1b1   :  { %vm882_vm11 = vcmp.eq.s32.totalorder %v790_v56, %v4721_v40 }
 0x1b2   :  { %vm946_vm12 = vmor %vm626_vm10, %vm882_vm11  ;;  %vm887_vm11 = vcmp.eq.s32.totalorder %v4700_v33, %v4721_v40 }
 0x1b3   :  { %v3477_v54 = vsel %vm946_vm12, 1.0, %v4197_v20  ;;  %vm631_vm12 = vcmp.eq.s32.totalorder %v549_v28, %v4721_v40 }
 0x1b4   :  { %v1113_v58 = vpack.c.bf16 %v3477_v54, %v3476_v49  ;;  %vm951_vm13 = vmor %vm631_vm12, %vm887_vm11 }
 0x1b5   :  { %v540_v27 = vpop.permute.xlu1 %539  ;;  %v3482_v38 = vsel %vm951_vm13, 1.0, %v4197_v20 }
 0x1b6   :  { %3851 = vmatprep.mubr.msk.bf16.mxu0 %vm1152_vm7, %v1113_v58  ;;  %vm628_vm1 = vcmp.eq.s32.totalorder %v540_v27, %v4721_v40 }
 0x1ba   :  { %v796_v63 = vpop.permute.xlu1 %795 }
 0x1bb   :  { %vm884_vm2 = vcmp.eq.s32.totalorder %v796_v63, %v4721_v40 }
 0x1bc   :  { %vm948_vm3 = vmor %vm628_vm1, %vm884_vm2 }
 0x1bd   :  { %v3479_v8 = vsel %vm948_vm3, 1.0, %v4197_v20 }
 0x1be   :  { %v1114_v60 = vpack.c.bf16 %v3479_v8, %v3478_v7 }
 0x1bf   :  { %v543_v30 = vpop.permute.xlu1 %542 }
 0x1c0   :  { %3852 = vmatmul.mubr.msk.bf16.gmra.mxu0 %vm1152_vm7, %v1114_v60  ;;  %v3805_v19 = vpop.f32.mrf.mxu0  ;;  %vm629_vm5 = vcmp.eq.s32.totalorder %v543_v30, %v4721_v40  ;;  %v558_v60 = vpop.permute.xlu0 %557 }
 0x1c1   :  { %v5086_v5 = vadd.f32 %v3805_v19, %v5082_v17 }
 0x1c2   :  { %v1283_v24 = vpop.f32.mrf.mxu0 }
 0x1c3   :  { %v5089_v59 = vadd.f32 %v5082_v17, %v1283_v24  ;;  %v1547_v6 = vsel %vm86_vm0, %v5086_v5, 0.0 }
 0x1c4   :  { %v799_v53 = vpop.permute.xlu1 %798  ;;  %1548 = vadd.xlane.f32.xlu0 %v1547_v6  ;;  %v3806_v13 = vpop.f32.mrf.mxu0 }
 0x1c5   :  { %vm885_vm4 = vcmp.eq.s32.totalorder %v799_v53, %v4721_v40  ;;  %v5095_v18 = vadd.f32 %v3806_v13, %v5082_v17  ;;  %v1541_v14 = vsel %vm86_vm0, %v5089_v59, 0.0 }
 0x1c6   :  { %v1286_v32 = vpop.f32.mrf.mxu0  ;;  %vm949_vm6 = vmor %vm629_vm5, %vm885_vm4  ;;  %vm634_vm5 = vcmp.eq.s32.totalorder %v558_v60, %v4721_v40 }
 0x1c7   :  { %v5099_v3 = vadd.f32 %v5082_v17, %v1286_v32  ;;  %v1550_v62 = vsel %vm86_vm0, %v5095_v18, 0.0  ;;  %v3480_v41 = vsel %vm949_vm6, 1.0, %v4197_v20 }
 0x1c8   :  { %v802_v9 = vpop.permute.xlu1 %801  ;;  %1542 = vadd.xlane.f32.xlu0 %v1541_v14  ;;  %v3809_v34 = vpop.f32.mrf.mxu0  ;;  %1551 = vadd.xlane.f32.xlu1 %v1550_v62 }
 0x1c9   :  { %vm886_vm9 = vcmp.eq.s32.totalorder %v802_v9, %v4721_v40  ;;  %v5108_v23 = vadd.f32 %v3809_v34, %v5082_v17  ;;  %v1544_v12 = vsel %vm86_vm0, %v5099_v3, 0.0 }
 0x1ca   :  { %vm950_vm10 = vmor %vm630_vm8, %vm886_vm9  ;;  %v1299_v42 = vpop.f32.mrf.mxu0  ;;  %vm891_vm9 = vcmp.eq.s32.totalorder %v4709_v37, %v4721_v40 }
 0x1cb   :  { %v3481_v61 = vsel %vm950_vm10, 1.0, %v4197_v20  ;;  %v5113_v25 = vadd.f32 %v5082_v17, %v1299_v42  ;;  %v1559_v31 = vsel %vm86_vm0, %v5108_v23, 0.0 }
 0x1cc   :  { %v1115_v35 = vpack.c.bf16 %v3481_v61, %v3480_v41  ;;  %1560 = vadd.xlane.f32.xlu0 %v1559_v31  ;;  %v3810_v39 = vpop.f32.mrf.mxu0  ;;  %1545 = vadd.xlane.f32.xlu1 %v1544_v12  ;;  %v561_v41 = vpop.permute.xlu0 %560 }
 0x1cd   :  { %v552_v21 = vpop.permute.xlu1 %551  ;;  %v5120_v44 = vadd.f32 %v3810_v39, %v5082_v17  ;;  %v1553_v0 = vsel %vm86_vm0, %v5113_v25, 0.0  ;;  %vm635_vm10 = vcmp.eq.s32.totalorder %v561_v41, %v4721_v40 }
 0x1ce   :  { %3855 = vmatprep.mubr.msk.bf16.mxu0 %vm1152_vm7, %v1115_v35  ;;  %v1302_v46 = vpop.f32.mrf.mxu0  ;;  %vm632_vm14 = vcmp.eq.s32.totalorder %v552_v21, %v4721_v40  ;;  %vm955_vm11 = vmor %vm635_vm10, %vm891_vm9 }
 0x1cf   :  { %v5127_v47 = vadd.f32 %v5082_v17, %v1302_v46  ;;  %v1562_v2 = vsel %vm86_vm0, %v5120_v44, 0.0 }
 0x1d0   :  { %1554 = vadd.xlane.f32.xlu0 %v1553_v0  ;;  %v3813_v10 = vpop.f32.mrf.mxu0  ;;  %1563 = vadd.xlane.f32.xlu1 %v1562_v2 }
 0x1d1   :  { %v5134_v33 = vadd.f32 %v3813_v10, %v5082_v17  ;;  %v1556_v50 = vsel %vm86_vm0, %v5127_v47, 0.0 }
 0x1d2   :  { %v808_v26 = vpop.permute.xlu1 %807  ;;  %v1315_v43 = vpop.f32.mrf.mxu0 }
 0x1d3   :  { %vm888_vm15 = vcmp.eq.s32.totalorder %v808_v26, %v4721_v40  ;;  %v5139_v22 = vadd.f32 %v5082_v17, %v1315_v43  ;;  %v1571_v15 = vsel %vm86_vm0, %v5134_v33, 0.0 }
 0x1d4   :  { %vm952_vm1 = vmor %vm632_vm14, %vm888_vm15  ;;  %1572 = vadd.xlane.f32.xlu0 %v1571_v15  ;;  %v3814_v52 = vpop.f32.mrf.mxu0  ;;  %1557 = vadd.xlane.f32.xlu1 %v1556_v50 }
 0x1d5   :  { %v3483_v51 = vsel %vm952_vm1, 1.0, %v4197_v20  ;;  %v5148_v55 = vadd.f32 %v3814_v52, %v5082_v17  ;;  %v1565_v48 = vsel %vm86_vm0, %v5139_v22, 0.0  ;;  %v3486_v52 = vsel %vm955_vm11, 1.0, %v4197_v20 }
 0x1d6   :  { %v1116_v57 = vpack.c.bf16 %v3483_v51, %v3482_v38  ;;  %v1318_v16 = vpop.f32.mrf.mxu0 }
 0x1d7   :  { %v555_v4 = vpop.permute.xlu1 %554  ;;  %v1574_v1 = vsel %vm86_vm0, %v5148_v55, 0.0  ;;  %v5155_v29 = vadd.f32 %v5082_v17, %v1318_v16 }
 0x1d8   :  { %3856 = vmatmul.mubr.msk.bf16.gmra.mxu0 %vm1152_vm7, %v1116_v57  ;;  %1566 = vadd.xlane.f32.xlu0 %v1565_v48  ;;  %v3817_v56 = vpop.f32.mrf.mxu0  ;;  %vm633_vm3 = vcmp.eq.s32.totalorder %v555_v4, %v4721_v40 }
 0x1d9   :  { %v5159_v49 = vadd.f32 %v3817_v56, %v5082_v17  ;;  %1575 = vadd.xlane.f32.xlu1 %v1574_v1  ;;  %v1568_v7 = vsel %vm86_vm0, %v5155_v29, 0.0  ;;  %v570_v56 = vpop.permute.xlu0 %569 }
 0x1da   :  { %v1331_v54 = vpop.f32.mrf.mxu0 }
 0x1db   :  { %v5162_v58 = vadd.f32 %v5082_v17, %v1331_v54  ;;  %v1583_v27 = vsel %vm86_vm0, %v5159_v49, 0.0 }
 0x1dc   :  { %v811_v45 = vpop.permute.xlu1 %810  ;;  %1584 = vadd.xlane.f32.xlu0 %v1583_v27  ;;  %v3818_v63 = vpop.f32.mrf.mxu0 }
 0x1dd   :  { %vm889_vm2 = vcmp.eq.s32.totalorder %v811_v45, %v4721_v40  ;;  %v5170_v8 = vadd.f32 %v3818_v63, %v5082_v17  ;;  %1569 = vadd.xlane.f32.xlu1 %v1568_v7  ;;  %v1577_v19 = vsel %vm86_vm0, %v5162_v58, 0.0 }
 0x1de   :  { %v1334_v30 = vpop.f32.mrf.mxu0  ;;  %vm953_vm4 = vmor %vm633_vm3, %vm889_vm2  ;;  %vm638_vm3 = vcmp.eq.s32.totalorder %v570_v56, %v4721_v40 }
 0x1df   :  { %v1586_v24 = vsel %vm86_vm0, %v5170_v8, 0.0  ;;  %v5178_v6 = vadd.f32 %v5082_v17, %v1334_v30  ;;  %v3484_v14 = vsel %vm953_vm4, 1.0, %v4197_v20 }
 0x1e0   :  { %v814_v53 = vpop.permute.xlu1 %813  ;;  %1578 = vadd.xlane.f32.xlu0 %v1577_v19  ;;  %v3821_v13 = vpop.f32.mrf.mxu0 }
 0x1e1   :  { %vm890_vm6 = vcmp.eq.s32.totalorder %v814_v53, %v4721_v40  ;;  %v5183_v32 = vadd.f32 %v3821_v13, %v5082_v17  ;;  %1587 = vadd.xlane.f32.xlu1 %v1586_v24  ;;  %v1580_v31 = vsel %vm86_vm0, %v5178_v6, 0.0  ;;  %v573_v13 = vpop.permute.xlu0 %572 }
 0x1e2   :  { %vm954_vm8 = vmor %vm634_vm5, %vm890_vm6  ;;  %v1347_v11 = vpop.f32.mrf.mxu0  ;;  %vm639_vm6 = vcmp.eq.s32.totalorder %v573_v13, %v4721_v40 }
 0x1e3   :  { %v3485_v62 = vsel %vm954_vm8, 1.0, %v4197_v20  ;;  %v5188_v9 = vadd.f32 %v5082_v17, %v1347_v11  ;;  %v1595_v34 = vsel %vm86_vm0, %v5183_v32, 0.0 }
 0x1e4   :  { %v1117_v42 = vpack.c.bf16 %v3485_v62, %v3484_v14  ;;  %1596 = vadd.xlane.f32.xlu0 %v1595_v34  ;;  %v3822_v61 = vpop.f32.mrf.mxu0 }
 0x1e5   :  { %v564_v12 = vpop.permute.xlu1 %563  ;;  %v5195_v35 = vadd.f32 %v3822_v61, %v5082_v17  ;;  %1581 = vadd.xlane.f32.xlu1 %v1580_v31  ;;  %v1589_v21 = vsel %vm86_vm0, %v5188_v9, 0.0  ;;  %v829_v31 = vpop.permute.xlu0 %828 }
 0x1e6   :  { %3859 = vmatprep.mubr.msk.bf16.mxu0 %vm1152_vm7, %v1117_v42  ;;  %v1350_v39 = vpop.f32.mrf.mxu0  ;;  %vm636_vm12 = vcmp.eq.s32.totalorder %v564_v12, %v4721_v40  ;;  %vm895_vm8 = vcmp.eq.s32.totalorder %v829_v31, %v4721_v40 }
 0x1e7   :  { %v1598_v28 = vsel %vm86_vm0, %v5195_v35, 0.0  ;;  %v5206_v46 = vadd.f32 %v5082_v17, %v1350_v39  ;;  %vm959_vm9 = vmor %vm639_vm6, %vm895_vm8 }
 0x1e8   :  { %1590 = vadd.xlane.f32.xlu0 %v1589_v21  ;;  %v3825_v0 = vpop.f32.mrf.mxu0 }
 0x1e9   :  { %v5209_v2 = vadd.f32 %v3825_v0, %v5082_v17  ;;  %1599 = vadd.xlane.f32.xlu1 %v1598_v28  ;;  %v1592_v50 = vsel %vm86_vm0, %v5206_v46, 0.0  ;;  %v3490_v0 = vsel %vm959_vm9, 1.0, %v4197_v20 }
 0x1ea   :  { %v820_v10 = vpop.permute.xlu1 %819  ;;  %v1363_v37 = vpop.f32.mrf.mxu0 }
 0x1eb   :  { %vm892_vm13 = vcmp.eq.s32.totalorder %v820_v10, %v4721_v40  ;;  %v5214_v26 = vadd.f32 %v5082_v17, %v1363_v37  ;;  %v1607_v43 = vsel %vm86_vm0, %v5209_v2, 0.0 }
 0x1ec   :  { %vm956_vm14 = vmor %vm636_vm12, %vm892_vm13  ;;  %1608 = vadd.xlane.f32.xlu0 %v1607_v43  ;;  %v3826_v15 = vpop.f32.mrf.mxu0 }
 0x1ed   :  { %v3487_v38 = vsel %vm956_vm14, 1.0, %v4197_v20  ;;  %v5223_v51 = vadd.f32 %v3826_v15, %v5082_v17  ;;  %1593 = vadd.xlane.f32.xlu1 %v1592_v50  ;;  %v1601_v48 = vsel %vm86_vm0, %v5214_v26, 0.0 }
 0x1ee   :  { %v1118_v57 = vpack.c.bf16 %v3487_v38, %v3486_v52  ;;  %v1366_v16 = vpop.f32.mrf.mxu0 }
 0x1ef   :  { %v567_v4 = vpop.permute.xlu1 %566  ;;  %v1610_v1 = vsel %vm86_vm0, %v5223_v51, 0.0  ;;  %v5230_v54 = vadd.f32 %v5082_v17, %v1366_v16 }
 0x1f0   :  { %3860 = vmatmul.mubr.msk.bf16.gmra.mxu0 %vm1152_vm7, %v1118_v57  ;;  %1602 = vadd.xlane.f32.xlu0 %v1601_v48  ;;  %v3829_v27 = vpop.f32.mrf.mxu0  ;;  %vm637_vm1 = vcmp.eq.s32.totalorder %v567_v4, %v4721_v40 }
 0x1f1   :  { %v5234_v45 = vadd.f32 %v3829_v27, %v5082_v17  ;;  %1611 = vadd.xlane.f32.xlu1 %v1610_v1  ;;  %v1604_v24 = vsel %vm86_vm0, %v5230_v54, 0.0 }
 0x1f2   :  { %v1379_v63 = vpop.f32.mrf.mxu0 }
 0x1f3   :  { %v5237_v7 = vadd.f32 %v5082_v17, %v1379_v63  ;;  %v1619_v60 = vsel %vm86_vm0, %v5234_v45, 0.0 }
 0x1f4   :  { %v823_v30 = vpop.permute.xlu1 %822  ;;  %1620 = vadd.xlane.f32.xlu0 %v1619_v60  ;;  %v3830_v19 = vpop.f32.mrf.mxu0 }
 0x1f5   :  { %vm893_vm15 = vcmp.eq.s32.totalorder %v823_v30, %v4721_v40  ;;  %v5245_v53 = vadd.f32 %v3830_v19, %v5082_v17  ;;  %1605 = vadd.xlane.f32.xlu1 %v1604_v24  ;;  %v1613_v14 = vsel %vm86_vm0, %v5237_v7, 0.0 }
 0x1f6   :  { %v1382_v11 = vpop.f32.mrf.mxu0  ;;  %vm957_vm2 = vmor %vm637_vm1, %vm893_vm15 }
 0x1f7   :  { %v1622_v62 = vsel %vm86_vm0, %v5245_v53, 0.0  ;;  %v5253_v34 = vadd.f32 %v5082_v17, %v1382_v11  ;;  %v3488_v42 = vsel %vm957_vm2, 1.0, %v4197_v20 }
 0x1f8   :  { %v826_v41 = vpop.permute.xlu1 %825  ;;  %1614 = vadd.xlane.f32.xlu0 %v1613_v14 }
 0x1f9   :  { %vm894_vm4 = vcmp.eq.s32.totalorder %v826_v41, %v4721_v40  ;;  %1623 = vadd.xlane.f32.xlu1 %v1622_v62  ;;  %v1616_v39 = vsel %vm86_vm0, %v5253_v34, 0.0 }
 0x1fa   :  { %vm958_vm5 = vmor %vm638_vm3, %vm894_vm4 }
 0x1fb   :  { %v3489_v61 = vsel %vm958_vm5, 1.0, %v4197_v20 }
 0x1fc   :  { %v1119_v12 = vpack.c.bf16 %v3489_v61, %v3488_v42 }
 0x1fd   :  { %v576_v21 = vpop.permute.xlu1 %575  ;;  %1617 = vadd.xlane.f32.xlu1 %v1616_v39 }
 0x1fe   :  { %3863 = vmatprep.mubr.msk.bf16.mxu0 %vm1152_vm7, %v1119_v12  ;;  %vm640_vm10 = vcmp.eq.s32.totalorder %v576_v21, %v4721_v40 }
 0x202   :  { %v832_v28 = vpop.permute.xlu1 %831 }
 0x203   :  { %vm896_vm11 = vcmp.eq.s32.totalorder %v832_v28, %v4721_v40 }
 0x204   :  { %vm960_vm12 = vmor %vm640_vm10, %vm896_vm11 }
 0x205   :  { %v3491_v10 = vsel %vm960_vm12, 1.0, %v4197_v20 }
 0x206   :  { %v1120_v37 = vpack.c.bf16 %v3491_v10, %v3490_v0 }
 0x208   :  { %v3833_v43 = vpop.f32.mrf.mxu0  ;;  %3864 = vmatmul.mubr.msk.bf16.gmra.mxu0 %vm1152_vm7, %v1120_v37 }
 0x209   :  { %v5270_v15 = vadd.f32 %v3833_v43, %v5082_v17 }
 0x20a   :  { %v1395_v50 = vpop.f32.mrf.mxu0 }
 0x20b   :  { %v5273_v52 = vadd.f32 %v5082_v17, %v1395_v50  ;;  %v1631_v38 = vsel %vm86_vm0, %v5270_v15, 0.0 }
 0x20c   :  { %v3834_v40 = vpop.f32.mrf.mxu0  ;;  %1632 = vadd.xlane.f32.xlu1 %v1631_v38 }
 0x20d   :  { %v5278_v57 = vadd.f32 %v3834_v40, %v5082_v17  ;;  %v1625_v20 = vsel %vm86_vm0, %v5273_v52, 0.0 }
 0x20e   :  { %v1398_v16 = vpop.f32.mrf.mxu0  ;;  %1626 = vadd.xlane.f32.xlu0 %v1625_v20 }
 0x20f   :  { %v5283_v4 = vadd.f32 %v5082_v17, %v1398_v16  ;;  %v1634_v48 = vsel %vm86_vm0, %v5278_v57, 0.0 }
 0x211   :  { %v1628_v1 = vsel %vm86_vm0, %v5283_v4, 0.0 }
 0x212   :  { %1635 = vadd.xlane.f32.xlu0 %v1634_v48  ;;  %1629 = vadd.xlane.f32.xlu1 %v1628_v1 }
 0x220   :  { %v3837_v56 = vpop.f32.mrf.mxu0 }
 0x221   :  { %v5290_v27 = vadd.f32 %v3837_v56, %v5082_v17 }
 0x222   :  { %v1411_v63 = vpop.f32.mrf.mxu0 }
 0x223   :  { %6677 = vst [vmem:[#allocation4_spill] sm:$0xff] %v5290_v27  ;;  %v5293_v60 = vadd.f32 %v5082_v17, %v1411_v63  ;;  %v1643_v30 = vsel %vm86_vm0, %v5290_v27, 0.0 }
 0x224   :  { %1644 = vadd.xlane.f32.xlu0 %v1643_v30  ;;  %v3838_v19 = vpop.f32.mrf.mxu0 }
 0x225   :  { %6678 = vst [vmem:[#allocation5_spill] sm:$0xff] %v5293_v60  ;;  %v5298_v24 = vadd.f32 %v3838_v19, %v5082_v17  ;;  %v1637_v14 = vsel %vm86_vm0, %v5293_v60, 0.0 }
 0x226   :  { %v1414_v13 = vpop.f32.mrf.mxu0 }
 0x227   :  { %6679 = vst [vmem:[#allocation6_spill] sm:$0xff] %v5298_v24  ;;  %v5301_v11 = vadd.f32 %v5082_v17, %v1414_v13  ;;  %v1646_v62 = vsel %vm86_vm0, %v5298_v24, 0.0 }
 0x228   :  { %1638 = vadd.xlane.f32.xlu0 %v1637_v14  ;;  %1647 = vadd.xlane.f32.xlu1 %v1646_v62 }
 0x229   :  { %6680 = vst [vmem:[#allocation7_spill] sm:$0xff] %v5301_v11  ;;  %v1640_v41 = vsel %vm86_vm0, %v5301_v11, 0.0 }
 0x22c   :  { %1641 = vadd.xlane.f32.xlu1 %v1640_v41 }
 0x238   :  { %v3841_v42 = vpop.f32.mrf.mxu0 }
 0x239   :  { %v5310_v61 = vadd.f32 %v3841_v42, %v5082_v17 }
 0x23a   :  { %v1427_v31 = vpop.f32.mrf.mxu0 }
 0x23b   :  { %6681 = vst [vmem:[#allocation8_spill] sm:$0xff] %v5310_v61  ;;  %v5313_v12 = vadd.f32 %v5082_v17, %v1427_v31  ;;  %v1655_v39 = vsel %vm86_vm0, %v5310_v61, 0.0 }
 0x23c   :  { %1656 = vadd.xlane.f32.xlu0 %v1655_v39  ;;  %v3842_v21 = vpop.f32.mrf.mxu0 }
 0x23d   :  { %6682 = vst [vmem:[#allocation9_spill] sm:$0xff] %v5313_v12  ;;  %v5318_v28 = vadd.f32 %v3842_v21, %v5082_v17  ;;  %v1649_v43 = vsel %vm86_vm0, %v5313_v12, 0.0 }
 0x23e   :  { %v1430_v0 = vpop.f32.mrf.mxu0 }
 0x23f   :  { %6683 = vst [vmem:[#allocation10_spill] sm:$0xff] %v5318_v28  ;;  %v5321_v10 = vadd.f32 %v5082_v17, %v1430_v0  ;;  %v1658_v37 = vsel %vm86_vm0, %v5318_v28, 0.0 }
 0x240   :  { %1659 = vadd.xlane.f32.xlu1 %v1658_v37  ;;  %1650 = vadd.xlane.f32.xlu0 %v1649_v43 }
 0x241   :  { %6684 = vst [vmem:[#allocation11_spill] sm:$0xff] %v5321_v10  ;;  %v1652_v50 = vsel %vm86_vm0, %v5321_v10, 0.0 }
 0x244   :  { %1653 = vadd.xlane.f32.xlu1 %v1652_v50 }
 0x250   :  { %v3845_v38 = vpop.f32.mrf.mxu0 }
 0x251   :  { %v5330_v40 = vadd.f32 %v3845_v38, %v5082_v17 }
 0x252   :  { %v1443_v20 = vpop.f32.mrf.mxu0 }
 0x253   :  { %6685 = vst [vmem:[#allocation12_spill] sm:$0xff] %v5330_v40  ;;  %v5333_v16 = vadd.f32 %v5082_v17, %v1443_v20  ;;  %v1667_v48 = vsel %vm86_vm0, %v5330_v40, 0.0 }
 0x254   :  { %1668 = vadd.xlane.f32.xlu0 %v1667_v48  ;;  %v3846_v1 = vpop.f32.mrf.mxu0 }
 0x255   :  { %6686 = vst [vmem:[#allocation13_spill] sm:$0xff] %v5333_v16  ;;  %v5338_v56 = vadd.f32 %v3846_v1, %v5082_v17  ;;  %v1661_v13 = vsel %vm86_vm0, %v5333_v16, 0.0 }
 0x256   :  { %v1446_v63 = vpop.f32.mrf.mxu0 }
 0x257   :  { %6687 = vst [vmem:[#allocation14_spill] sm:$0xff] %v5338_v56  ;;  %v5341_v30 = vadd.f32 %v5082_v17, %v1446_v63  ;;  %v1670_v19 = vsel %vm86_vm0, %v5338_v56, 0.0 }
 0x258   :  { %1671 = vadd.xlane.f32.xlu1 %v1670_v19  ;;  %1662 = vadd.xlane.f32.xlu0 %v1661_v13 }
 0x259   :  { %6688 = vst [vmem:[#allocation15_spill] sm:$0xff] %v5341_v30  ;;  %v1664_v14 = vsel %vm86_vm0, %v5341_v30, 0.0 }
 0x25c   :  { %1665 = vadd.xlane.f32.xlu1 %v1664_v14 }
 0x268   :  { %v3849_v62 = vpop.f32.mrf.mxu0 }
 0x269   :  { %v5350_v41 = vadd.f32 %v3849_v62, %v5082_v17 }
 0x26a   :  { %v1459_v42 = vpop.f32.mrf.mxu0 }
 0x26b   :  { %6689 = vst [vmem:[#allocation16_spill] sm:$0xff] %v5350_v41  ;;  %v5353_v31 = vadd.f32 %v5082_v17, %v1459_v42  ;;  %v1679_v39 = vsel %vm86_vm0, %v5350_v41, 0.0 }
 0x26c   :  { %1680 = vadd.xlane.f32.xlu0 %v1679_v39  ;;  %v3850_v21 = vpop.f32.mrf.mxu0 }
 0x26d   :  { %6690 = vst [vmem:[#allocation17_spill] sm:$0xff] %v5353_v31  ;;  %v5358_v0 = vadd.f32 %v3850_v21, %v5082_v17  ;;  %v1673_v38 = vsel %vm86_vm0, %v5353_v31, 0.0 }
 0x26e   :  { %v1462_v37 = vpop.f32.mrf.mxu0 }
 0x26f   :  { %6691 = vst [vmem:[#allocation18_spill] sm:$0xff] %v5358_v0  ;;  %v5361_v43 = vadd.f32 %v5082_v17, %v1462_v37  ;;  %v1682_v50 = vsel %vm86_vm0, %v5358_v0, 0.0 }
 0x270   :  { %1683 = vadd.xlane.f32.xlu1 %v1682_v50  ;;  %1674 = vadd.xlane.f32.xlu0 %v1673_v38  ;;  %v1549_v38 = vpop.xlane.xlu0 %1548 }
 0x271   :  { %6692 = vst [vmem:[#allocation19_spill] sm:$0xff] %v5361_v43  ;;  %v1676_v20 = vsel %vm86_vm0, %v5361_v43, 0.0 }
 0x274   :  { %1677 = vadd.xlane.f32.xlu1 %v1676_v20  ;;  %v1543_v20 = vpop.xlane.xlu0 %1542 }
 0x275   :  { %v1734_v31 = vmul.f32 0.015625, %v1543_v20 }
 0x280   :  { %v3853_v48 = vpop.f32.mrf.mxu0 }
 0x281   :  { %v5370_v1 = vadd.f32 %v3853_v48, %v5082_v17  ;;  %v1552_v48 = vpop.xlane.xlu1 %1551 }
 0x282   :  { %v1475_v63 = vpop.f32.mrf.mxu0  ;;  %v1737_v41 = vmul.f32 0.015625, %v1552_v48 }
 0x283   :  { %6693 = vst [vmem:[#allocation20_spill] sm:$0xff] %v5370_v1  ;;  %v5373_v19 = vadd.f32 %v5082_v17, %v1475_v63  ;;  %v1691_v13 = vsel %vm86_vm0, %v5370_v1, 0.0 }
 0x284   :  { %1692 = vadd.xlane.f32.xlu0 %v1691_v13  ;;  %v3854_v14 = vpop.f32.mrf.mxu0 }
 0x285   :  { %6694 = vst [vmem:[#allocation21_spill] sm:$0xff] %v5373_v19  ;;  %v5378_v62 = vadd.f32 %v3854_v14, %v5082_v17  ;;  %v1685_v37 = vsel %vm86_vm0, %v5373_v19, 0.0 }
 0x286   :  { %v1478_v42 = vpop.f32.mrf.mxu0 }
 0x287   :  { %6695 = vst [vmem:[#allocation22_spill] sm:$0xff] %v5378_v62  ;;  %v5381_v39 = vadd.f32 %v5082_v17, %v1478_v42  ;;  %v1694_v21 = vsel %vm86_vm0, %v5378_v62, 0.0  ;;  %v1561_v42 = vpop.xlane.xlu0 %1560 }
 0x288   :  { %1695 = vadd.xlane.f32.xlu1 %v1694_v21  ;;  %1686 = vadd.xlane.f32.xlu0 %v1685_v37  ;;  %v1546_v37 = vpop.xlane.xlu1 %1545  ;;  %v1740_v20 = vmul.f32 0.015625, %v1561_v42 }
 0x289   :  { %6696 = vst [vmem:[#allocation23_spill] sm:$0xff] %v5381_v39  ;;  %v1688_v50 = vsel %vm86_vm0, %v5381_v39, 0.0  ;;  %v1735_v40 = vmul.f32 0.015625, %v1546_v37 }
 0x28b   :  { %v5407_v19 = vpop.xlane.xlu0 %1554  ;;  %v5503_v37 = vsub.f32 %v5099_v3, %v1735_v40 }
 0x28c   :  { %1689 = vadd.xlane.f32.xlu1 %v1688_v50  ;;  %v5409_v24 = vpop.xlane.xlu1 %1563 }
 0x298   :  { %v3857_v63 = vpop.f32.mrf.mxu0 }
 0x299   :  { %v5390_v13 = vadd.f32 %v3857_v63, %v5082_v17 }
 0x29a   :  { %v1491_v14 = vpop.f32.mrf.mxu0 }
 0x29b   :  { %6697 = vst [vmem:[#allocation24_spill] sm:$0xff] %v5390_v13  ;;  %v5393_v36 = vadd.f32 %v5082_v17, %v1491_v14  ;;  %v1703_v21 = vsel %vm86_vm0, %v5390_v13, 0.0 }
 0x29c   :  { %1704 = vadd.xlane.f32.xlu0 %v1703_v21  ;;  %v3858_v11 = vpop.f32.mrf.mxu0  ;;  %v5413_v21 = vpop.xlane.xlu0 %1572 }
 0x29d   :  { %6698 = vst [vmem:[#allocation25_spill] sm:$0xff] %v5393_v36  ;;  %v5398_v50 = vadd.f32 %v3858_v11, %v5082_v17  ;;  %v1697_v14 = vsel %vm86_vm0, %v5393_v36, 0.0 }
 0x29e   :  { %v1494_v39 = vpop.f32.mrf.mxu0 }
 0x29f   :  { %6699 = vst [vmem:[#allocation26_spill] sm:$0xff] %v5398_v50  ;;  %v5401_v60 = vadd.f32 %v5082_v17, %v1494_v39  ;;  %v1706_v63 = vsel %vm86_vm0, %v5398_v50, 0.0  ;;  %v5415_v39 = vpop.xlane.xlu1 %1557 }
 0x2a0   :  { %1707 = vadd.xlane.f32.xlu1 %v1706_v63  ;;  %1698 = vadd.xlane.f32.xlu0 %v1697_v14  ;;  %v5417_v62 = vpop.xlane.xlu0 %1566 }
 0x2a1   :  { %6700 = vst [vmem:[#allocation27_spill] sm:$0xff] %v5401_v60  ;;  %v1700_v11 = vsel %vm86_vm0, %v5401_v60, 0.0 }
 0x2a3   :  { %v5419_v27 = vpop.xlane.xlu1 %1575 }
 0x2a4   :  { %1701 = vadd.xlane.f32.xlu1 %v1700_v11  ;;  %v5424_v10 = vpop.xlane.xlu0 %1584 }
 0x2a7   :  { %v5431_v60 = vpop.xlane.xlu1 %1569 }
 0x2ab   :  { %v5445_v13 = vpop.xlane.xlu1 %1587 }
 0x2b0   :  { %v3861_v1 = vpop.f32.mrf.mxu0 }
 0x2b1   :  { %v5422_v63 = vadd.f32 %v3861_v1, %v5082_v17 }
 0x2b2   :  { %v1507_v14 = vpop.f32.mrf.mxu0 }
 0x2b3   :  { %6701 = vst [vmem:[#allocation28_spill] sm:$0xff] %v5422_v63  ;;  %v5427_v12 = vadd.f32 %v5082_v17, %v1507_v14  ;;  %v1715_v11 = vsel %vm86_vm0, %v5422_v63, 0.0  ;;  %v5443_v63 = vpop.xlane.xlu0 %1578 }
 0x2b4   :  { %1716 = vadd.xlane.f32.xlu0 %v1715_v11  ;;  %v3862_v36 = vpop.f32.mrf.mxu0 }
 0x2b5   :  { %6702 = vst [vmem:[#allocation29_spill] sm:$0xff] %v5427_v12  ;;  %v5434_v28 = vadd.f32 %v3862_v36, %v5082_v17  ;;  %v1709_v14 = vsel %vm86_vm0, %v5427_v12, 0.0 }
 0x2b6   :  { %v1510_v61 = vpop.f32.mrf.mxu0 }
 0x2b7   :  { %6703 = vst [vmem:[#allocation30_spill] sm:$0xff] %v5434_v28  ;;  %v5437_v1 = vadd.f32 %v5082_v17, %v1510_v61  ;;  %v1718_v50 = vsel %vm86_vm0, %v5434_v28, 0.0  ;;  %v5449_v11 = vpop.xlane.xlu0 %1596  ;;  %v5451_v61 = vpop.xlane.xlu1 %1581  ;;  %v1736_v28 = vmul.f32 0.015625, %v1549_v38 }
 0x2b8   :  { %1719 = vadd.xlane.f32.xlu1 %v1718_v50  ;;  %1710 = vadd.xlane.f32.xlu0 %v1709_v14 }
 0x2b9   :  { %6704 = vst [vmem:[#allocation31_spill] sm:$0xff] %v5437_v1  ;;  %v1712_v36 = vsel %vm86_vm0, %v5437_v1, 0.0  ;;  %v5461_v14 = vsub.f32 %v5086_v5, %v1736_v28  ;;  %v5476_v5 = vsub.f32 %v5089_v59, %v1734_v31  ;;  %v5479_v28 = vsub.f32 %v5095_v18, %v1737_v41 }
 0x2ba   :  { %v5491_v59 = vsub.f32 %v5108_v23, %v1740_v20  ;;  %v1741_v23 = vmul.f32 0.015625, %v5409_v24  ;;  %v1739_v24 = vmul.f32 0.015625, %v5415_v39 }
 0x2bb   :  { %v5453_v43 = vpop.xlane.xlu0 %1590  ;;  %v5455_v0 = vpop.xlane.xlu1 %1599  ;;  %6706 = vst [vmem:[#allocation33_spill] sm:$0xff] %v5479_v28  ;;  %v1865_v42 = vmul.f32 %v5479_v28, %v5479_v28 }
 0x2bc   :  { %1713 = vadd.xlane.f32.xlu1 %v1712_v36  ;;  %v1868_v28 = vmul.f32 %v5491_v59, %v5491_v59  ;;  %v5518_v40 = vsub.f32 %v5120_v44, %v1741_v23  ;;  %v5534_v39 = vsub.f32 %v5127_v47, %v1739_v24 }
 0x2be   :  { %v1944_v44 = vsel %vm86_vm0, %v1868_v28, 0.0 }
 0x2bf   :  { %v5463_v36 = vpop.xlane.xlu0 %1608  ;;  %v5470_v56 = vpop.xlane.xlu1 %1593 }
 0x2c3   :  { %v5493_v18 = vpop.xlane.xlu0 %1602  ;;  %v5495_v41 = vpop.xlane.xlu1 %1611 }
 0x2c8   :  { %v3865_v12 = vpop.f32.mrf.mxu0 }
 0x2c9   :  { %v5458_v50 = vadd.f32 %v3865_v12, %v5082_v17 }
 0x2ca   :  { %v1523_v1 = vpop.f32.mrf.mxu0 }
 0x2cb   :  { %6705 = vst [vmem:[#allocation32_spill] sm:$0xff] %v5458_v50  ;;  %v5466_v30 = vadd.f32 %v5082_v17, %v1523_v1  ;;  %v1727_v38 = vsel %vm86_vm0, %v5458_v50, 0.0  ;;  %v1864_v1 = vmul.f32 %v5461_v14, %v5461_v14 }
 0x2cc   :  { %1728 = vadd.xlane.f32.xlu0 %v1727_v38  ;;  %v3866_v16 = vpop.f32.mrf.mxu0 }
 0x2cd   :  { %v5473_v12 = vadd.f32 %v3866_v16, %v5082_v17  ;;  %v1721_v16 = vsel %vm86_vm0, %v5466_v30, 0.0  ;;  %v1932_v31 = vsel %vm86_vm0, %v1864_v1, 0.0  ;;  %v1744_v1 = vmul.f32 0.015625, %v5413_v21  ;;  %v5525_v21 = vpop.xlane.xlu1 %1605 }
 0x2ce   :  { %v1526_v48 = vpop.f32.mrf.mxu0 }
 0x2cf   :  { %v5484_v50 = vadd.f32 %v5082_v17, %v1526_v48  ;;  %v1730_v38 = vsel %vm86_vm0, %v5473_v12, 0.0  ;;  %v1862_v17 = vmul.f32 %v5476_v5, %v5476_v5  ;;  %v1738_v48 = vmul.f32 0.015625, %v5407_v19 }
 0x2d0   :  { %1731 = vadd.xlane.f32.xlu1 %v1730_v38  ;;  %1722 = vadd.xlane.f32.xlu0 %v1721_v16  ;;  %v1935_v16 = vsel %vm86_vm0, %v1865_v42, 0.0  ;;  %v1863_v19 = vmul.f32 %v5503_v37, %v5503_v37  ;;  %v1745_v42 = vmul.f32 0.015625, %v5419_v27 }
 0x2d1   :  { %v1724_v20 = vsel %vm86_vm0, %v5484_v50, 0.0  ;;  %v1926_v38 = vsel %vm86_vm0, %v1862_v17, 0.0  ;;  %v5515_v3 = vsub.f32 %v5113_v25, %v1738_v48  ;;  %v5528_v17 = vsub.f32 %v5134_v33, %v1744_v1  ;;  %v5550_v28 = vpop.xlane.xlu1 %1623 }
 0x2d2   :  { %v1742_v25 = vmul.f32 0.015625, %v5417_v62  ;;  %v1929_v48 = vsel %vm86_vm0, %v1863_v19, 0.0  ;;  %v5545_v27 = vsub.f32 %v5148_v55, %v1745_v42  ;;  %v1748_v62 = vmul.f32 0.015625, %v5424_v10 }
 0x2d3   :  { %v1866_v23 = vmul.f32 %v5515_v3, %v5515_v3  ;;  %v1872_v1 = vmul.f32 %v5528_v17, %v5528_v17 }
 0x2d4   :  { %1725 = vadd.xlane.f32.xlu1 %v1724_v20  ;;  %1933 = vadd.xlane.f32.xlu0 %v1932_v31  ;;  %v5523_v31 = vpop.xlane.xlu0 %1620  ;;  %v1869_v20 = vmul.f32 %v5518_v40, %v5518_v40  ;;  %v5542_v33 = vsub.f32 %v5139_v22, %v1742_v25  ;;  %v1867_v22 = vmul.f32 %v5534_v39, %v5534_v39 }
 0x2d5   :  { %v5560_v55 = vsub.f32 %v5159_v49, %v1748_v62  ;;  %v1956_v19 = vsel %vm86_vm0, %v1872_v1, 0.0 }
 0x2d6   :  { %v1947_v24 = vsel %vm86_vm0, %v1869_v20, 0.0  ;;  %v1870_v25 = vmul.f32 %v5542_v33, %v5542_v33  ;;  %v1941_v49 = vsel %vm86_vm0, %v1867_v22, 0.0  ;;  %v1752_v20 = vmul.f32 0.015625, %v5449_v11 }
 0x2d8   :  { %1927 = vadd.xlane.f32.xlu0 %v1926_v38  ;;  %1936 = vadd.xlane.f32.xlu1 %v1935_v16  ;;  %v5548_v47 = vpop.xlane.xlu0 %1614  ;;  %v1743_v38 = vmul.f32 0.015625, %v5431_v60  ;;  %v1938_v16 = vsel %vm86_vm0, %v1866_v23, 0.0  ;;  %v1873_v60 = vmul.f32 %v5545_v27, %v5545_v27  ;;  %v5575_v23 = vpop.xlane.xlu1 %1617  ;;  %v1950_v62 = vsel %vm86_vm0, %v1870_v25, 0.0 }
 0x2d9   :  { %v5596_v22 = vsub.f32 %v5183_v32, %v1752_v20  ;;  %v1751_v20 = vmul.f32 0.015625, %v5470_v56 }
 0x2da   :  { %v5570_v42 = vsub.f32 %v5155_v29, %v1743_v38  ;;  %v1959_v1 = vsel %vm86_vm0, %v1873_v60, 0.0  ;;  %v1876_v29 = vmul.f32 %v5560_v55, %v5560_v55 }
 0x2dc   :  { %1945 = vadd.xlane.f32.xlu0 %v1944_v44  ;;  %1930 = vadd.xlane.f32.xlu1 %v1929_v48  ;;  %v5562_v10 = vpop.xlane.xlu0 %1626  ;;  %v1746_v44 = vmul.f32 0.015625, %v5443_v63  ;;  %v1749_v48 = vmul.f32 0.015625, %v5445_v13  ;;  %v1747_v63 = vmul.f32 0.015625, %v5451_v61 }
 0x2de   :  { %v5583_v38 = vsub.f32 %v5162_v58, %v1746_v44  ;;  %v5586_v13 = vsub.f32 %v5170_v8, %v1749_v48  ;;  %v1750_v58 = vmul.f32 0.015625, %v5453_v43  ;;  %v1968_v8 = vsel %vm86_vm0, %v1876_v29, 0.0 }
 0x2df   :  { %v5602_v61 = vsub.f32 %v5178_v6, %v1747_v63  ;;  %v1756_v43 = vmul.f32 0.015625, %v5463_v36 }
 0x2e0   :  { %1939 = vadd.xlane.f32.xlu0 %v1938_v16  ;;  %1948 = vadd.xlane.f32.xlu1 %v1947_v24  ;;  %v1871_v16 = vmul.f32 %v5570_v42, %v5570_v42  ;;  %v5591_v24 = vpop.xlane.xlu1 %1632  ;;  %v5593_v11 = vpop.xlane.xlu0 %1635  ;;  %v1874_v60 = vmul.f32 %v5583_v38, %v5583_v38  ;;  %v1877_v44 = vmul.f32 %v5586_v13, %v5586_v13 }
 0x2e1   :  { %v1875_v29 = vmul.f32 %v5602_v61, %v5602_v61 }
 0x2e2   :  { %v1953_v25 = vsel %vm86_vm0, %v1871_v16, 0.0 }
 0x2e4   :  { %1957 = vadd.xlane.f32.xlu0 %v1956_v19  ;;  %1942 = vadd.xlane.f32.xlu1 %v1941_v49  ;;  %v1753_v19 = vmul.f32 0.015625, %v5455_v0  ;;  %v5609_v48 = vpop.xlane.xlu1 %1629  ;;  %v5611_v32 = vpop.xlane.xlu0 %1644  ;;  %v5614_v0 = vsub.f32 %v5188_v9, %v1750_v58  ;;  %v1880_v49 = vmul.f32 %v5596_v22, %v5596_v22  ;;  %v5630_v9 = vsub.f32 %v5209_v2, %v1756_v43 }
 0x2e5   :  { %v5640_v58 = vsub.f32 %v5206_v46, %v1751_v20  ;;  %v1965_v2 = vsel %vm86_vm0, %v1875_v29, 0.0  ;;  %v1755_v20 = vmul.f32 0.015625, %v5525_v21  ;;  %v1761_v29 = vmul.f32 0.015625, %v5550_v28 }
 0x2e6   :  { %v5617_v6 = vsub.f32 %v5195_v35, %v1753_v19  ;;  %v1980_v36 = vsel %vm86_vm0, %v1880_v49, 0.0  ;;  %v1878_v56 = vmul.f32 %v5614_v0, %v5614_v0  ;;  %v1754_v19 = vmul.f32 0.015625, %v5493_v18 }
 0x2e7   :  { %v1884_v46 = vmul.f32 %v5630_v9, %v5630_v9  ;;  %v5685_v28 = vsub.f32 %v5245_v53, %v1761_v29 }
 0x2e8   :  { %1951 = vadd.xlane.f32.xlu0 %v1950_v62  ;;  %1960 = vadd.xlane.f32.xlu1 %v1959_v1  ;;  %v1962_v62 = vsel %vm86_vm0, %v1874_v60, 0.0  ;;  %v1971_v1 = vsel %vm86_vm0, %v1877_v44, 0.0  ;;  %v5627_v63 = vpop.xlane.xlu1 %1647  ;;  %v5632_v35 = vpop.xlane.xlu0 %1638  ;;  %v1881_v16 = vmul.f32 %v5617_v6, %v5617_v6  ;;  %v1974_v43 = vsel %vm86_vm0, %v1878_v56, 0.0 }
 0x2e9   :  { %v5655_v18 = vsub.f32 %v5214_v26, %v1754_v19  ;;  %v1992_v26 = vsel %vm86_vm0, %v1884_v46, 0.0  ;;  %v1889_v46 = vmul.f32 %v5685_v28, %v5685_v28 }
 0x2ea   :  { %v1983_v49 = vsel %vm86_vm0, %v1881_v16, 0.0 }
 0x2eb   :  { %v1882_v56 = vmul.f32 %v5655_v18, %v5655_v18 }
 0x2ec   :  { %1969 = vadd.xlane.f32.xlu0 %v1968_v8  ;;  %1954 = vadd.xlane.f32.xlu1 %v1953_v25  ;;  %v1757_v8 = vmul.f32 0.015625, %v5495_v41  ;;  %v1760_v25 = vmul.f32 0.015625, %v5523_v31  ;;  %v5646_v60 = vpop.xlane.xlu1 %1641  ;;  %v5648_v44 = vpop.xlane.xlu0 %1656  ;;  %v1879_v31 = vmul.f32 %v5640_v58, %v5640_v58 }
 0x2ee   :  { %v5658_v41 = vsub.f32 %v5223_v51, %v1757_v8  ;;  %v5672_v51 = vsub.f32 %v5230_v54, %v1755_v20  ;;  %v1977_v21 = vsel %vm86_vm0, %v1879_v31, 0.0  ;;  %v1759_v54 = vmul.f32 0.015625, %v5575_v23 }
 0x2ef   :  { %v1764_v8 = vmul.f32 0.015625, %v5591_v24  ;;  %v1762_v31 = vmul.f32 0.015625, %v5562_v10 }
 0x2f0   :  { %1963 = vadd.xlane.f32.xlu0 %v1962_v62  ;;  %1972 = vadd.xlane.f32.xlu1 %v1971_v1  ;;  %v5664_v62 = vsub.f32 %v5234_v45, %v1760_v25  ;;  %v1758_v1 = vmul.f32 0.015625, %v5548_v47  ;;  %v1885_v45 = vmul.f32 %v5658_v41, %v5658_v41  ;;  %v5679_v16 = vpop.xlane.xlu0 %1650  ;;  %v5698_v53 = vsub.f32 %v5253_v34, %v1759_v54 }
 0x2f1   :  { %v5706_v20 = vsub.f32 %v5270_v15, %v1764_v8  ;;  %v1763_v34 = vmul.f32 0.015625, %v5609_v48  ;;  %v5717_v54 = vsub.f32 %v5273_v52, %v1762_v31  ;;  %v6707_v52 = vld [vmem:[#allocation12_spill] sm:$0xff] }
 0x2f2   :  { %v5682_v47 = vsub.f32 %v5237_v7, %v1758_v1  ;;  %v1888_v19 = vmul.f32 %v5664_v62, %v5664_v62  ;;  %v1995_v25 = vsel %vm86_vm0, %v1885_v45, 0.0  ;;  %v1765_v1 = vmul.f32 0.015625, %v5593_v11 }
 0x2f3   :  { %v2007_v45 = vsel %vm86_vm0, %v1889_v46, 0.0  ;;  %v1887_v15 = vmul.f32 %v5698_v53, %v5698_v53  ;;  %v5725_v48 = vsub.f32 %v5283_v4, %v1763_v34  ;;  %v1890_v46 = vmul.f32 %v5717_v54, %v5717_v54  ;;  %v6708_v4 = vld [vmem:[#allocation13_spill] sm:$0xff] }
 0x2f4   :  { %1981 = vadd.xlane.f32.xlu0 %v1980_v36  ;;  %1966 = vadd.xlane.f32.xlu1 %v1965_v2  ;;  %v5668_v36 = vpop.xlane.xlu1 %1659  ;;  %v1986_v2 = vsel %vm86_vm0, %v1882_v56, 0.0  ;;  %v1669_v7 = vpop.xlane.xlu0 %1668  ;;  %v2004_v23 = vsel %vm86_vm0, %v1888_v19, 0.0  ;;  %v1886_v24 = vmul.f32 %v5682_v47, %v5682_v47  ;;  %v5720_v10 = vsub.f32 %v5278_v57, %v1765_v1  ;;  %v6710_v1 = vld [vmem:[#allocation14_spill] sm:$0xff] }
 0x2f5   :  { %v1776_v11 = vmul.f32 0.015625, %v1669_v7  ;;  %v1892_v19 = vmul.f32 %v5706_v20, %v5706_v20 }
 0x2f6   :  { %v1998_v56 = vsel %vm86_vm0, %v1886_v24, 0.0  ;;  %v1893_v7 = vmul.f32 %v5720_v10, %v5720_v10 }
 0x2f7   :  { %v5729_v24 = vsub.f32 %v6707_v52, %v1776_v11  ;;  %v2016_v57 = vsel %vm86_vm0, %v1892_v19, 0.0  ;;  %v6714_v52 = vld [vmem:[#allocation16_spill] sm:$0xff] }
 0x2f8   :  { %1975 = vadd.xlane.f32.xlu0 %v1974_v43  ;;  %1984 = vadd.xlane.f32.xlu1 %v1983_v49  ;;  %v1883_v43 = vmul.f32 %v5672_v51, %v5672_v51  ;;  %v5695_v49 = vpop.xlane.xlu1 %1653 }
 0x2f9   :  { %v1904_v11 = vmul.f32 %v5729_v24, %v5729_v24 }
 0x2fa   :  { %v1989_v29 = vsel %vm86_vm0, %v1883_v43, 0.0 }
 0x2fc   :  { %1993 = vadd.xlane.f32.xlu0 %v1992_v26  ;;  %1978 = vadd.xlane.f32.xlu1 %v1977_v21  ;;  %v1672_v26 = vpop.xlane.xlu1 %1671  ;;  %v1663_v21 = vpop.xlane.xlu0 %1662 }
 0x2fd   :  { %v1774_v8 = vmul.f32 0.015625, %v1663_v21  ;;  %v1891_v21 = vmul.f32 %v5725_v48, %v5725_v48 }
 0x2ff   :  { %v5737_v31 = vsub.f32 %v6708_v4, %v1774_v8  ;;  %v6712_v8 = vld [vmem:[#allocation15_spill] sm:$0xff]  ;;  %v2052_v4 = vsel %vm86_vm0, %v1904_v11, 0.0 }
 0x300   :  { %1987 = vadd.xlane.f32.xlu0 %v1986_v2  ;;  %1996 = vadd.xlane.f32.xlu1 %v1995_v25  ;;  %v1777_v2 = vmul.f32 0.015625, %v1672_v26  ;;  %v1666_v25 = vpop.xlane.xlu1 %1665  ;;  %v1681_v43 = vpop.xlane.xlu0 %1680 }
 0x301   :  { %6709 = vst [vmem:[#allocation12_spill] sm:$0xff] %v5737_v31  ;;  %v1775_v26 = vmul.f32 0.015625, %v1666_v25  ;;  %v1902_v25 = vmul.f32 %v5737_v31, %v5737_v31  ;;  %v6718_v31 = vld [vmem:[#allocation18_spill] sm:$0xff] }
 0x304   :  { %2005 = vadd.xlane.f32.xlu0 %v2004_v23  ;;  %1990 = vadd.xlane.f32.xlu1 %v1989_v29  ;;  %v2001_v23 = vsel %vm86_vm0, %v1887_v15, 0.0  ;;  %v5740_v29 = vsub.f32 %v6710_v1, %v1777_v2  ;;  %v1684_v34 = vpop.xlane.xlu1 %1683  ;;  %v2010_v15 = vsel %vm86_vm0, %v1890_v46, 0.0  ;;  %v1675_v19 = vpop.xlane.xlu0 %1674  ;;  %v2013_v2 = vsel %vm86_vm0, %v1891_v21, 0.0 }
 0x305   :  { %v1781_v46 = vmul.f32 0.015625, %v1684_v34 }
 0x306   :  { %6711 = vst [vmem:[#allocation13_spill] sm:$0xff] %v5740_v29 }
 0x308   :  { %1999 = vadd.xlane.f32.xlu0 %v1998_v56  ;;  %2008 = vadd.xlane.f32.xlu1 %v2007_v45  ;;  %v1780_v56 = vmul.f32 0.015625, %v1681_v43  ;;  %v2019_v45 = vsel %vm86_vm0, %v1893_v7, 0.0  ;;  %v1905_v43 = vmul.f32 %v5740_v29, %v5740_v29  ;;  %v1778_v7 = vmul.f32 0.015625, %v1675_v19  ;;  %v1678_v1 = vpop.xlane.xlu1 %1677 }
 0x309   :  { %v1779_v19 = vmul.f32 0.015625, %v1678_v1 }
 0x30a   :  { %v2055_v21 = vsel %vm86_vm0, %v1905_v43, 0.0 }
 0x30c   :  { %2002 = vadd.xlane.f32.xlu1 %v2001_v23  ;;  %2017 = vadd.xlane.f32.xlu0 %v2016_v57  ;;  %v5749_v23 = vsub.f32 %v6712_v8, %v1775_v26  ;;  %v5757_v57 = vsub.f32 %v6714_v52, %v1780_v56  ;;  %v2046_v26 = vsel %vm86_vm0, %v1902_v25, 0.0  ;;  %v5768_v56 = vsub.f32 %v6718_v31, %v1781_v46 }
 0x30d   :  { %v5776_v43 = vpop.xlane.xlu0 %1692 }
 0x30e   :  { %6713 = vst [vmem:[#allocation14_spill] sm:$0xff] %v5749_v23  ;;  %6715 = vst [vmem:[#allocation15_spill] sm:$0xff] %v5757_v57  ;;  %v1908_v34 = vmul.f32 %v5757_v57, %v5757_v57  ;;  %v1909_v31 = vmul.f32 %v5768_v56, %v5768_v56 }
 0x310   :  { %2020 = vadd.xlane.f32.xlu1 %v2019_v45  ;;  %2011 = vadd.xlane.f32.xlu0 %v2010_v15  ;;  %v1903_v45 = vmul.f32 %v5749_v23, %v5749_v23  ;;  %v6716_v15 = vld [vmem:[#allocation17_spill] sm:$0xff]  ;;  %v2064_v52 = vsel %vm86_vm0, %v1908_v34, 0.0  ;;  %v2067_v1 = vsel %vm86_vm0, %v1909_v31, 0.0  ;;  %v6724_v23 = vld [vmem:[#allocation26_spill] sm:$0xff] }
 0x311   :  { %v5765_v8 = vsub.f32 %v6716_v15, %v1778_v7  ;;  %6719 = vst [vmem:[#allocation17_spill] sm:$0xff] %v5768_v56  ;;  %v5783_v46 = vpop.xlane.xlu1 %1695 }
 0x312   :  { %v2049_v11 = vsel %vm86_vm0, %v1903_v45, 0.0 }
 0x313   :  { %6717 = vst [vmem:[#allocation16_spill] sm:$0xff] %v5765_v8  ;;  %v1906_v7 = vmul.f32 %v5765_v8, %v5765_v8 }
 0x314   :  { %2053 = vadd.xlane.f32.xlu0 %v2052_v4  ;;  %2014 = vadd.xlane.f32.xlu1 %v2013_v2  ;;  %v6720_v2 = vld [vmem:[#allocation19_spill] sm:$0xff] }
 0x315   :  { %v5774_v25 = vsub.f32 %v6720_v2, %v1779_v19  ;;  %v2058_v4 = vsel %vm86_vm0, %v1906_v7, 0.0  ;;  %v5792_v15 = vpop.xlane.xlu1 %1689 }
 0x317   :  { %6721 = vst [vmem:[#allocation18_spill] sm:$0xff] %v5774_v25 }
 0x318   :  { %2047 = vadd.xlane.f32.xlu0 %v2046_v26  ;;  %2056 = vadd.xlane.f32.xlu1 %v2055_v21  ;;  %v1907_v26 = vmul.f32 %v5774_v25, %v5774_v25  ;;  %v5789_v21 = vpop.xlane.xlu0 %1686 }
 0x31a   :  { %v2061_v45 = vsel %vm86_vm0, %v1907_v26, 0.0 }
 0x31c   :  { %2065 = vadd.xlane.f32.xlu0 %v2064_v52  ;;  %2050 = vadd.xlane.f32.xlu1 %v2049_v11  ;;  %v6722_v11 = vld [vmem:[#allocation24_spill] sm:$0xff] }
 0x320   :  { %2059 = vadd.xlane.f32.xlu0 %v2058_v4  ;;  %2068 = vadd.xlane.f32.xlu1 %v2067_v1 }
 0x324   :  { %2062 = vadd.xlane.f32.xlu1 %v2061_v45 }
 0x325   :  { %v1705_v19 = vpop.xlane.xlu0 %1704 }
 0x326   :  { %v1788_v34 = vmul.f32 0.015625, %v1705_v19 }
 0x328   :  { %v5795_v2 = vsub.f32 %v6722_v11, %v1788_v34 }
 0x329   :  { %v1708_v52 = vpop.xlane.xlu1 %1707  ;;  %v1699_v19 = vpop.xlane.xlu0 %1698 }
 0x32a   :  { %6723 = vst [vmem:[#allocation19_spill] sm:$0xff] %v5795_v2  ;;  %v1789_v7 = vmul.f32 0.015625, %v1708_v52  ;;  %v1916_v31 = vmul.f32 %v5795_v2, %v5795_v2  ;;  %v6726_v52 = vld [vmem:[#allocation28_spill] sm:$0xff] }
 0x32c   :  { %v5800_v4 = vsub.f32 %v6724_v23, %v1789_v7  ;;  %v2088_v1 = vsel %vm86_vm0, %v1916_v31, 0.0 }
 0x32d   :  { %2089 = vadd.xlane.f32.xlu0 %v2088_v1  ;;  %v1702_v34 = vpop.xlane.xlu1 %1701  ;;  %v6728_v1 = vld [vmem:[#allocation29_spill] sm:$0xff] }
 0x32e   :  { %6725 = vst [vmem:[#allocation24_spill] sm:$0xff] %v5800_v4  ;;  %v1917_v26 = vmul.f32 %v5800_v4, %v5800_v4  ;;  %v6730_v4 = vld [vmem:[#allocation30_spill] sm:$0xff] }
 0x330   :  { %v2091_v45 = vsel %vm86_vm0, %v1917_v26, 0.0 }
 0x331   :  { %2092 = vadd.xlane.f32.xlu1 %v2091_v45 }
 0x33d   :  { %v1717_v11 = vpop.xlane.xlu0 %1716 }
 0x33e   :  { %v1792_v8 = vmul.f32 0.015625, %v1717_v11 }
 0x340   :  { %v5807_v25 = vsub.f32 %v6726_v52, %v1792_v8 }
 0x341   :  { %v1711_v2 = vpop.xlane.xlu0 %1710  ;;  %v1720_v56 = vpop.xlane.xlu1 %1719 }
 0x342   :  { %6727 = vst [vmem:[#allocation26_spill] sm:$0xff] %v5807_v25  ;;  %v1790_v23 = vmul.f32 0.015625, %v1711_v2  ;;  %v1793_v7 = vmul.f32 0.015625, %v1720_v56  ;;  %v1920_v31 = vmul.f32 %v5807_v25, %v5807_v25  ;;  %v6732_v2 = vld [vmem:[#allocation31_spill] sm:$0xff] }
 0x344   :  { %v5812_v57 = vsub.f32 %v6728_v1, %v1790_v23  ;;  %v5815_v26 = vsub.f32 %v6730_v4, %v1793_v7  ;;  %v2100_v45 = vsel %vm86_vm0, %v1920_v31, 0.0 }
 0x345   :  { %2101 = vadd.xlane.f32.xlu0 %v2100_v45  ;;  %v1714_v11 = vpop.xlane.xlu1 %1713 }
 0x346   :  { %6729 = vst [vmem:[#allocation28_spill] sm:$0xff] %v5812_v57  ;;  %6731 = vst [vmem:[#allocation29_spill] sm:$0xff] %v5815_v26  ;;  %v1791_v29 = vmul.f32 0.015625, %v1714_v11  ;;  %v1918_v8 = vmul.f32 %v5812_v57, %v5812_v57  ;;  %v1921_v56 = vmul.f32 %v5815_v26, %v5815_v26  ;;  %v1772_v11 = vmul.f32 0.015625, %v5648_v44  ;;  %v6734_v57 = vld [vmem:[#allocation32_spill] sm:$0xff] }
 0x348   :  { %v5823_v52 = vsub.f32 %v6732_v2, %v1791_v29  ;;  %v2094_v23 = vsel %vm86_vm0, %v1918_v8, 0.0  ;;  %v2103_v1 = vsel %vm86_vm0, %v1921_v56, 0.0 }
 0x349   :  { %2095 = vadd.xlane.f32.xlu0 %v2094_v23  ;;  %2104 = vadd.xlane.f32.xlu1 %v2103_v1  ;;  %v6736_v23 = vld [vmem:[#allocation8_spill] sm:$0xff] }
 0x34a   :  { %6733 = vst [vmem:[#allocation30_spill] sm:$0xff] %v5823_v52  ;;  %v1919_v4 = vmul.f32 %v5823_v52, %v5823_v52  ;;  %v5837_v1 = vsub.f32 %v6736_v23, %v1772_v11 }
 0x34c   :  { %v2097_v7 = vsel %vm86_vm0, %v1919_v4, 0.0  ;;  %6737 = vst [vmem:[#allocation32_spill] sm:$0xff] %v5837_v1  ;;  %v1773_v4 = vmul.f32 0.015625, %v5668_v36 }
 0x34d   :  { %2098 = vadd.xlane.f32.xlu1 %v2097_v7  ;;  %v1786_v7 = vmul.f32 0.015625, %v1699_v19 }
 0x355   :  { %v1729_v31 = vpop.xlane.xlu0 %1728 }
 0x356   :  { %v1796_v45 = vmul.f32 0.015625, %v1729_v31 }
 0x358   :  { %v5832_v25 = vsub.f32 %v6734_v57, %v1796_v45  ;;  %v1770_v45 = vmul.f32 0.015625, %v5679_v16  ;;  %v1900_v16 = vmul.f32 %v5837_v1, %v5837_v1 }
 0x359   :  { %v1723_v29 = vpop.xlane.xlu0 %1722  ;;  %v1732_v2 = vpop.xlane.xlu1 %1731 }
 0x35a   :  { %6735 = vst [vmem:[#allocation31_spill] sm:$0xff] %v5832_v25  ;;  %v1794_v8 = vmul.f32 0.015625, %v1723_v29  ;;  %v1797_v26 = vmul.f32 0.015625, %v1732_v2  ;;  %v1924_v56 = vmul.f32 %v5832_v25, %v5832_v25 }
 0x35c   :  { %v5841_v31 = vsub.f32 %v5466_v30, %v1794_v8  ;;  %v5844_v44 = vsub.f32 %v5473_v12, %v1797_v26  ;;  %v2112_v57 = vsel %vm86_vm0, %v1924_v56, 0.0  ;;  %v6739_v30 = vld [vmem:[#allocation10_spill] sm:$0xff]  ;;  %v6741_v12 = vld [vmem:[#allocation25_spill] sm:$0xff]  ;;  %v1787_v8 = vmul.f32 0.015625, %v1702_v34 }
 0x35d   :  { %v1934_v29 = vpop.xlane.xlu0 %1933  ;;  %2113 = vadd.xlane.f32.xlu0 %v2112_v57  ;;  %v1726_v2 = vpop.xlane.xlu1 %1725  ;;  %v5853_v19 = vsub.f32 %v6739_v30, %v1773_v4  ;;  %v5856_v26 = vsub.f32 %v6741_v12, %v1786_v7  ;;  %v1771_v4 = vmul.f32 0.015625, %v5695_v49 }
 0x35e   :  { %6738 = vst [vmem:[#allocation8_spill] sm:$0xff] %v5844_v44  ;;  %v2120_v52 = vmul.f32 0.015625, %v1934_v29  ;;  %v1795_v25 = vmul.f32 0.015625, %v1726_v2  ;;  %v1922_v11 = vmul.f32 %v5841_v31, %v5841_v31  ;;  %v1925_v36 = vmul.f32 %v5844_v44, %v5844_v44  ;;  %v6744_v2 = vld [vmem:[#allocation9_spill] sm:$0xff] }
 0x35f   :  { %6740 = vst [vmem:[#allocation10_spill] sm:$0xff] %v5853_v19  ;;  %6742 = vst [vmem:[#allocation25_spill] sm:$0xff] %v5856_v26  ;;  %v5866_v44 = vsub.f32 %v6744_v2, %v1770_v45  ;;  %v1914_v45 = vmul.f32 %v5856_v26, %v5856_v26  ;;  %v1901_v49 = vmul.f32 %v5853_v19, %v5853_v19  ;;  %v1768_v2 = vmul.f32 0.015625, %v5611_v32 }
 0x360   :  { %v2184_v56 = vadd.f32 1e-05, %v2120_v52  ;;  %v5861_v23 = vsub.f32 %v5484_v50, %v1795_v25  ;;  %v2106_v57 = vsel %vm86_vm0, %v1922_v11, 0.0  ;;  %v2115_v29 = vsel %vm86_vm0, %v1925_v36, 0.0  ;;  %v6746_v11 = vld [vmem:[#allocation27_spill] sm:$0xff] }
 0x361   :  { %6745 = vst [vmem:[#allocation9_spill] sm:$0xff] %v5866_v44  ;;  %v1928_v30 = vpop.xlane.xlu0 %1927  ;;  %2107 = vadd.xlane.f32.xlu0 %v2106_v57  ;;  %2116 = vadd.xlane.f32.xlu1 %v2115_v29  ;;  %v1937_v34 = vpop.xlane.xlu1 %1936  ;;  %v1784_v25 = vmul.f32 0.015625, %v5776_v43  ;;  %v2040_v52 = vsel %vm86_vm0, %v1900_v16, 0.0  ;;  %v5878_v36 = vsub.f32 %v6746_v11, %v1787_v8  ;;  %v1898_v16 = vmul.f32 %v5866_v44, %v5866_v44  ;;  %v6750_v11 = vld [vmem:[#allocation20_spill] sm:$0xff] }
 0x362   :  { %6743 = vst [vmem:[#allocation34_spill] sm:$0xff] %v5861_v23  ;;  %4057 = vrsqrt.f32 %v2184_v56  ;;  %v2118_v7 = vmul.f32 0.015625, %v1928_v30  ;;  %v2121_v12 = vmul.f32 0.015625, %v1937_v34  ;;  %v1923_v50 = vmul.f32 %v5861_v23, %v5861_v23  ;;  %v6748_v34 = vld [vmem:[#allocation11_spill] sm:$0xff] }
 0x363   :  { %6747 = vst [vmem:[#allocation27_spill] sm:$0xff] %v5878_v36  ;;  %v5885_v26 = vsub.f32 %v6748_v34, %v1771_v4  ;;  %v2043_v32 = vsel %vm86_vm0, %v1901_v49, 0.0  ;;  %v1915_v44 = vmul.f32 %v5878_v36, %v5878_v36  ;;  %v6752_v4 = vld [vmem:[#allocation4_spill] sm:$0xff]  ;;  %v1782_v49 = vmul.f32 0.015625, %v5789_v21 }
 0x364   :  { %v2182_v57 = vadd.f32 1e-05, %v2118_v7  ;;  %v2185_v56 = vadd.f32 1e-05, %v2121_v12  ;;  %v2109_v29 = vsel %vm86_vm0, %v1923_v50, 0.0  ;;  %v5888_v7 = vsub.f32 %v6750_v11, %v1784_v25 }
 0x365   :  { %v1946_v30 = vpop.xlane.xlu0 %1945  ;;  %2041 = vadd.xlane.f32.xlu0 %v2040_v52  ;;  %2110 = vadd.xlane.f32.xlu1 %v2109_v29  ;;  %v1931_v43 = vpop.xlane.xlu1 %1930  ;;  %6749 = vst [vmem:[#allocation11_spill] sm:$0xff] %v5885_v26  ;;  %v1785_v12 = vmul.f32 0.015625, %v5783_v46  ;;  %v2082_v29 = vsel %vm86_vm0, %v1914_v45, 0.0  ;;  %v5896_v34 = vsub.f32 %v6752_v4, %v1768_v2  ;;  %v1899_v2 = vmul.f32 %v5885_v26, %v5885_v26 }
 0x366   :  { %4059 = vrsqrt.f32 %v2182_v57  ;;  %v2124_v1 = vmul.f32 0.015625, %v1946_v30  ;;  %v2119_v8 = vmul.f32 0.015625, %v1931_v43  ;;  %6751 = vst [vmem:[#allocation20_spill] sm:$0xff] %v5888_v7  ;;  %v1769_v57 = vmul.f32 0.015625, %v5627_v63  ;;  %v6754_v43 = vld [vmem:[#allocation22_spill] sm:$0xff] }
 0x367   :  { %4061 = vrsqrt.f32 %v2185_v56  ;;  %6753 = vst [vmem:[#allocation4_spill] sm:$0xff] %v5896_v34  ;;  %v1912_v45 = vmul.f32 %v5888_v7, %v5888_v7  ;;  %v5906_v63 = vsub.f32 %v6754_v43, %v1785_v12  ;;  %v1896_v12 = vmul.f32 %v5896_v34, %v5896_v34  ;;  %v5928_v43 = vld [vmem:[%s6579_s9] ss:$0 sm:$0xff] }
 0x368   :  { %v2188_v50 = vadd.f32 1e-05, %v2124_v1  ;;  %v2183_v52 = vadd.f32 1e-05, %v2119_v8  ;;  %v2034_v1 = vsel %vm86_vm0, %v1898_v16, 0.0  ;;  %v6756_v16 = vld [vmem:[#allocation6_spill] sm:$0xff] }
 0x369   :  { %v1940_v30 = vpop.xlane.xlu0 %1939  ;;  %2083 = vadd.xlane.f32.xlu0 %v2082_v29  ;;  %2044 = vadd.xlane.f32.xlu1 %v2043_v32  ;;  %v1949_v25 = vpop.xlane.xlu1 %1948  ;;  %6755 = vst [vmem:[#allocation22_spill] sm:$0xff] %v5906_v63  ;;  %v2085_v32 = vsel %vm86_vm0, %v1915_v44, 0.0  ;;  %v2037_v44 = vsel %vm86_vm0, %v1899_v2, 0.0  ;;  %v6760_v2 = vld [vmem:[#allocation5_spill] sm:$0xff] }
 0x36a   :  { %4063 = vrsqrt.f32 %v2188_v50  ;;  %v2122_v46 = vmul.f32 0.015625, %v1940_v30  ;;  %v2125_v56 = vmul.f32 0.015625, %v1949_v25  ;;  %v1766_v50 = vmul.f32 0.015625, %v5632_v35  ;;  %v6758_v25 = vld [vmem:[#allocation21_spill] sm:$0xff] }
 0x36b   :  { %4065 = vrsqrt.f32 %v2183_v52  ;;  %v5913_v52 = vsub.f32 %v6756_v16, %v1769_v57  ;;  %v2076_v35 = vsel %vm86_vm0, %v1912_v45, 0.0  ;;  %v1913_v57 = vmul.f32 %v5906_v63, %v5906_v63 }
 0x36c   :  { %v2186_v8 = vadd.f32 1e-05, %v2122_v46  ;;  %v2189_v11 = vadd.f32 1e-05, %v2125_v56  ;;  %v5918_v46 = vsub.f32 %v6758_v25, %v1782_v49  ;;  %v1783_v56 = vmul.f32 0.015625, %v5792_v15 }
 0x36d   :  { %v5910_v29 = vpop.xlane.xlu0 %1957  ;;  %2035 = vadd.xlane.f32.xlu0 %v2034_v1  ;;  %2086 = vadd.xlane.f32.xlu1 %v2085_v32  ;;  %v1943_v21 = vpop.xlane.xlu1 %1942  ;;  %6757 = vst [vmem:[#allocation6_spill] sm:$0xff] %v5913_v52  ;;  %v2028_v15 = vsel %vm86_vm0, %v1896_v12, 0.0  ;;  %v1897_v16 = vmul.f32 %v5913_v52, %v5913_v52  ;;  %v5952_v12 = vld [vmem:[%s6580_s10] ss:$0 sm:$0xff] }
 0x36e   :  { %4067 = vrsqrt.f32 %v2186_v8  ;;  %v2123_v4 = vmul.f32 0.015625, %v1943_v21  ;;  %6759 = vst [vmem:[#allocation21_spill] sm:$0xff] %v5918_v46  ;;  %v1767_v21 = vmul.f32 0.015625, %v5646_v60 }
 0x36f   :  { %v4058_v30 = vpop.eup %4057  ;;  %4069 = vrsqrt.f32 %v2189_v11  ;;  %v5936_v11 = vsub.f32 %v6760_v2, %v1766_v50  ;;  %v1910_v50 = vmul.f32 %v5918_v46, %v5918_v46 }
 0x370   :  { %v2187_v1 = vadd.f32 1e-05, %v2123_v4  ;;  %v2312_v8 = vmul.f32 %v4058_v30, %v5461_v14  ;;  %v6762_v30 = vld [vmem:[#allocation23_spill] sm:$0xff] }
 0x371   :  { %v5931_v49 = vpop.xlane.xlu0 %1951  ;;  %2077 = vadd.xlane.f32.xlu0 %v2076_v35  ;;  %2038 = vadd.xlane.f32.xlu1 %v2037_v44  ;;  %v5933_v45 = vpop.xlane.xlu1 %1960  ;;  %6761 = vst [vmem:[#allocation5_spill] sm:$0xff] %v5936_v11  ;;  %v5944_v25 = vsub.f32 %v6762_v30, %v1783_v56  ;;  %v2079_v35 = vsel %vm86_vm0, %v1913_v57, 0.0  ;;  %v6764_v56 = vld [vmem:[#allocation33_spill] sm:$0xff]  ;;  %v1894_v57 = vmul.f32 %v5936_v11, %v5936_v11  ;;  %v6765_v30 = vld [vmem:[#allocation7_spill] sm:$0xff] }
 0x372   :  { %4071 = vrsqrt.f32 %v2187_v1  ;;  %v2382_v14 = vmul.f32 %v5928_v43, %v2312_v8  ;;  %v5963_v52 = vsub.f32 %v6765_v30, %v1767_v21 }
 0x373   :  { %v4060_v32 = vpop.eup %4059  ;;  %6763 = vst [vmem:[#allocation23_spill] sm:$0xff] %v5944_v25 }
 0x374   :  { %v4062_v4 = vpop.eup %4061  ;;  %v2310_v60 = vmul.f32 %v4060_v32, %v5476_v5  ;;  %6766 = vst [vmem:[#allocation33_spill] sm:$0xff] %v5963_v52  ;;  %v2452_v63 = vadd.f32 %v5952_v12, %v2382_v14 }
 0x375   :  { %v5955_v44 = vpop.xlane.xlu0 %1969  ;;  %2029 = vadd.xlane.f32.xlu0 %v2028_v15  ;;  %2080 = vadd.xlane.f32.xlu1 %v2079_v35  ;;  %v5957_v1 = vpop.xlane.xlu1 %1954  ;;  %v2313_v8 = vmul.f32 %v4062_v4, %v6764_v56  ;;  %v2070_v15 = vsel %vm86_vm0, %v1910_v50, 0.0  ;;  %v2031_v35 = vsel %vm86_vm0, %v1897_v16, 0.0  ;;  %v1911_v4 = vmul.f32 %v5944_v25, %v5944_v25 }
 0x376   :  { %v2380_v5 = vmul.f32 %v5928_v43, %v2310_v60  ;;  %v2516_v16 = vmax.f32 %v2452_v63, 0.0 }
 0x377   :  { %v4064_v2 = vpop.eup %4063  ;;  %v2383_v46 = vmul.f32 %v5928_v43, %v2313_v8 }
 0x378   :  { %v4066_v32 = vpop.eup %4065  ;;  %v2316_v56 = vmul.f32 %v4064_v2, %v5491_v59  ;;  %v2450_v60 = vadd.f32 %v5952_v12, %v2380_v5  ;;  %v2022_v59 = vsel %vm86_vm0, %v1894_v57, 0.0  ;;  %v2073_v2 = vsel %vm86_vm0, %v1911_v4, 0.0 }
 0x379   :  { %v5973_v11 = vpop.xlane.xlu0 %1963  ;;  %2071 = vadd.xlane.f32.xlu0 %v2070_v15  ;;  %2032 = vadd.xlane.f32.xlu1 %v2031_v35  ;;  %v1973_v21 = vpop.xlane.xlu1 %1972  ;;  %v2453_v8 = vadd.f32 %v5952_v12, %v2383_v46  ;;  %v2311_v14 = vmul.f32 %v4066_v32, %v5503_v37  ;;  %v1895_v15 = vmul.f32 %v5963_v52, %v5963_v52  ;;  %v6767_v52 = vlaneseq }
 0x37a   :  { %v2386_v50 = vmul.f32 %v5928_v43, %v2316_v56  ;;  %v2514_v56 = vmax.f32 %v2450_v60, 0.0 }
 0x37b   :  { %v4068_v30 = vpop.eup %4067  ;;  %v2517_v34 = vmax.f32 %v2453_v8, 0.0  ;;  %v2381_v25 = vmul.f32 %v5928_v43, %v2311_v14 }
 0x37c   :  { %v4070_v7 = vpop.eup %4069  ;;  %v2314_v46 = vmul.f32 %v4068_v30, %v5515_v3  ;;  %v2456_v4 = vadd.f32 %v5952_v12, %v2386_v50  ;;  %v2025_v30 = vsel %vm86_vm0, %v1895_v15, 0.0 }
 0x37d   :  { %v5985_v37 = vpop.xlane.xlu0 %1981  ;;  %2023 = vadd.xlane.f32.xlu0 %v2022_v59  ;;  %2074 = vadd.xlane.f32.xlu1 %v2073_v2  ;;  %v1967_v5 = vpop.xlane.xlu1 %1966  ;;  %v2317_v63 = vmul.f32 %v4070_v7, %v5518_v40  ;;  %v5988_v32 = vpack.c.bf16 %v2517_v34, %v2516_v16  ;;  %v2451_v35 = vadd.f32 %v5952_v12, %v2381_v25 }
 0x37e   :  { %v2384_v8 = vmul.f32 %v5928_v43, %v2314_v46  ;;  %v2520_v25 = vmax.f32 %v2456_v4, 0.0  ;;  %v2129_v4 = vmul.f32 0.015625, %v5933_v45  ;;  %v2127_v45 = vmul.f32 0.015625, %v5957_v1 }
 0x37f   :  { %v2387_v57 = vmul.f32 %v5928_v43, %v2317_v63  ;;  %v2515_v14 = vmax.f32 %v2451_v35, 0.0  ;;  %v4072_v3 = vpop.eup %4071 }
 0x380   :  { %v2315_v7 = vmul.f32 %v4072_v3, %v5534_v39  ;;  %v2454_v16 = vadd.f32 %v5952_v12, %v2384_v8  ;;  %v6013_v39 = vshrl.u32 %v6767_v52, 7  ;;  %v6026_v52 = vld [vmem:[%s6581_s1] sm:$0xf]  ;;  %v2191_v26 = vadd.f32 1e-05, %v2127_v45 }
 0x381   :  { %v5995_v59 = vpop.xlane.xlu0 %1975  ;;  %2026 = vadd.xlane.f32.xlu1 %v2025_v30  ;;  %v5997_v2 = vpop.xlane.xlu1 %1984  ;;  %v2457_v40 = vadd.f32 %v5952_v12, %v2387_v57  ;;  %v6001_v34 = vpack.c.bf16 %v2515_v14, %v2514_v56  ;;  %v2133_v56 = vmul.f32 0.015625, %v1973_v21  ;;  %v2193_v21 = vadd.f32 1e-05, %v2129_v4 }
 0x382   :  { %v2385_v50 = vmul.f32 %v5928_v43, %v2315_v7  ;;  %v2518_v30 = vmax.f32 %v2454_v16, 0.0  ;;  %v2128_v7 = vmul.f32 0.015625, %v5910_v29  ;;  %v6035_v4 = vadd.s32 8, %v6013_v39 }
 0x383   :  { %v2521_v60 = vmax.f32 %v2457_v40, 0.0  ;;  %v2132_v40 = vmul.f32 0.015625, %v5955_v44  ;;  %v2130_v44 = vmul.f32 0.015625, %v5973_v11 }
 0x384   :  { %v2455_v35 = vadd.f32 %v5952_v12, %v2385_v50 }
 0x385   :  { %v6005_v46 = vpop.xlane.xlu0 %1993  ;;  %v6007_v15 = vpop.xlane.xlu1 %1978  ;;  %v6009_v63 = vpack.c.bf16 %v2521_v60, %v2520_v25  ;;  %v2590_v25 = vsub.s32 1, %v6013_v39  ;;  %v2197_v60 = vadd.f32 1e-05, %v2133_v56  ;;  %v2131_v56 = vmul.f32 0.015625, %v1967_v5 }
 0x386   :  { %v2519_v57 = vmax.f32 %v2455_v35, 0.0  ;;  %v2126_v35 = vmul.f32 0.015625, %v5931_v49  ;;  %v2194_v49 = vadd.f32 1e-05, %v2130_v44 }
 0x387   :  { %v6032_v29 = vrot.slane %v6026_v52, %v2590_v25  ;;  %4073 = vrsqrt.f32 %v2197_v60  ;;  %v2195_v11 = vadd.f32 1e-05, %v2131_v56 }
 0x388   :  { %v6018_v8 = vpack.c.bf16 %v2519_v57, %v2518_v30  ;;  %v2196_v30 = vadd.f32 1e-05, %v2132_v40  ;;  %v2192_v57 = vadd.f32 1e-05, %v2128_v7  ;;  %4075 = vrsqrt.f32 %v2193_v21 }
 0x389   :  { %v6016_v14 = vpop.xlane.xlu0 %1987  ;;  %v1997_v3 = vpop.xlane.xlu1 %1996  ;;  %v2190_v1 = vadd.f32 1e-05, %v2126_v35  ;;  %vm2601_vm7 = vcmp.eq.s32.totalorder %v6032_v29, %v6013_v39  ;;  %vm2605_vm13 = vcmp.eq.s32.totalorder %v6032_v29, %v6035_v4 }
 0x38a   :  { %4077 = vrsqrt.f32 %v2196_v30  ;;  %vm3546_vm14 = vmpackc.low %vm2605_vm13, %vm2601_vm7 }
 0x38b   :  { %4079 = vrsqrt.f32 %v2192_v57 }
 0x38c   :  { %4081 = vrsqrt.f32 %v2191_v26  ;;  %v6661_v26 = vmov 1.0|1.0  }
 0x38d   :  { %v2006_v50 = vpop.xlane.xlu0 %2005  ;;  %v1991_v16 = vpop.xlane.xlu1 %1990  ;;  %4083 = vrsqrt.f32 %v2190_v1  ;;  %3547 = vmatprep.mubr.msk.bf16.mxu1 %vm3546_vm14, %v6661_v26  ;;  %v2140_v1 = vmul.f32 0.015625, %v6005_v46 }
 0x38e   :  { %v2144_v40 = vmul.f32 0.015625, %v2006_v50  ;;  %4085 = vrsqrt.f32 %v2194_v49 }
 0x38f   :  { %4087 = vrsqrt.f32 %v2195_v11  ;;  %v2204_v46 = vadd.f32 1e-05, %v2140_v1 }
 0x391   :  { %v2000_v36 = vpop.xlane.xlu0 %1999  ;;  %v2009_v19 = vpop.xlane.xlu1 %2008 }
 0x392   :  { %v2145_v23 = vmul.f32 0.015625, %v2009_v19  ;;  %v2208_v19 = vadd.f32 1e-05, %v2144_v40  ;;  %v2142_v35 = vmul.f32 0.015625, %v2000_v36  ;;  %v2136_v40 = vmul.f32 0.015625, %v5985_v37 }
 0x393   :  { %v2138_v37 = vmul.f32 0.015625, %v6016_v14 }
 0x394   :  { %v2209_v7 = vadd.f32 1e-05, %v2145_v23  ;;  %v2141_v23 = vmul.f32 0.015625, %v1997_v3  ;;  %v4074_v11 = vpop.eup %4073  ;;  %v2206_v36 = vadd.f32 1e-05, %v2142_v35 }
 0x395   :  { %v2018_v5 = vpop.xlane.xlu0 %2017  ;;  %v2003_v25 = vpop.xlane.xlu1 %2002 }
 0x396   :  { %v2148_v60 = vmul.f32 0.015625, %v2018_v5  ;;  %v2143_v21 = vmul.f32 0.015625, %v2003_v25  ;;  %4089 = vrsqrt.f32 %v2209_v7  ;;  %v4076_v25 = vpop.eup %4075 }
 0x397   :  { %v4078_v3 = vpop.eup %4077  ;;  %v2321_v35 = vmul.f32 %v4076_v25, %v5545_v27  ;;  %v2202_v27 = vadd.f32 1e-05, %v2138_v37 }
 0x398   :  { %v2212_v45 = vadd.f32 1e-05, %v2148_v60  ;;  %v2207_v30 = vadd.f32 1e-05, %v2143_v21  ;;  %v2205_v60 = vadd.f32 1e-05, %v2141_v23 }
 0x399   :  { %v2012_v57 = vpop.xlane.xlu0 %2011  ;;  %v2021_v50 = vpop.xlane.xlu1 %2020  ;;  %v2139_v21 = vmul.f32 0.015625, %v1991_v16  ;;  %v2137_v16 = vmul.f32 0.015625, %v5997_v2  ;;  %v2391_v2 = vmul.f32 %v5928_v43, %v2321_v35 }
 0x39a   :  { %4091 = vrsqrt.f32 %v2212_v45  ;;  %v2146_v44 = vmul.f32 0.015625, %v2012_v57  ;;  %v2149_v56 = vmul.f32 0.015625, %v2021_v50  ;;  %v4080_v45 = vpop.eup %4079  ;;  %v2134_v57 = vmul.f32 0.015625, %v5995_v59 }
 0x39b   :  { %4093 = vrsqrt.f32 %v2208_v19  ;;  %v2325_v50 = vmul.f32 %v4074_v11, %v5586_v13  ;;  %v2203_v23 = vadd.f32 1e-05, %v2139_v21  ;;  %v2135_v59 = vmul.f32 0.015625, %v6007_v15 }
 0x39c   :  { %v2210_v5 = vadd.f32 1e-05, %v2146_v44  ;;  %v2213_v49 = vadd.f32 1e-05, %v2149_v56  ;;  %4095 = vrsqrt.f32 %v2207_v30  ;;  %v2200_v44 = vadd.f32 1e-05, %v2136_v40  ;;  %v4082_v30 = vpop.eup %4081 }
 0x39d   :  { %v2015_v7 = vpop.xlane.xlu1 %2014  ;;  %v2324_v56 = vmul.f32 %v4078_v3, %v5560_v55  ;;  %v2198_v1 = vadd.f32 1e-05, %v2134_v57  ;;  %v2395_v14 = vmul.f32 %v5928_v43, %v2325_v50  ;;  %v2319_v11 = vmul.f32 %v4082_v30, %v5570_v42 }
 0x39e   :  { %4097 = vrsqrt.f32 %v2210_v5  ;;  %v2147_v26 = vmul.f32 0.015625, %v2015_v7  ;;  %v4084_v5 = vpop.eup %4083  ;;  %v2201_v55 = vadd.f32 1e-05, %v2137_v16  ;;  %v2199_v7 = vadd.f32 1e-05, %v2135_v59 }
 0x39f   :  { %4099 = vrsqrt.f32 %v2213_v49  ;;  %v4086_v13 = vpop.eup %4085  ;;  %v2394_v15 = vmul.f32 %v5928_v43, %v2324_v56  ;;  %v2465_v3 = vadd.f32 %v5952_v12, %v2395_v14  ;;  %v6063_v57 = vadd.f32 %v5952_v12, %v2391_v2 }
 0x3a0   :  { %v2211_v19 = vadd.f32 1e-05, %v2147_v26  ;;  %4101 = vrsqrt.f32 %v2206_v36  ;;  %v2320_v26 = vmul.f32 %v4080_v45, %v5528_v17  ;;  %v4088_v49 = vpop.eup %4087  ;;  %v2322_v17 = vmul.f32 %v4086_v13, %v5583_v38 }
 0x3a1   :  { %4103 = vrsqrt.f32 %v2205_v60  ;;  %v2318_v60 = vmul.f32 %v4084_v5, %v5542_v33  ;;  %v2323_v42 = vmul.f32 %v4088_v49, %v5602_v61  ;;  %v2464_v33 = vadd.f32 %v5952_v12, %v2394_v15 }
 0x3a2   :  { %4105 = vrsqrt.f32 %v2211_v19  ;;  %v2390_v25 = vmul.f32 %v5928_v43, %v2320_v26  ;;  %v2529_v30 = vmax.f32 %v2465_v3, 0.0  ;;  %v2525_v5 = vmax.f32 %v6063_v57, 0.0 }
 0x3a3   :  { %4107 = vrsqrt.f32 %v2204_v46  ;;  %v4090_v40 = vpop.eup %4089  ;;  %v2389_v46 = vmul.f32 %v5928_v43, %v2319_v11  ;;  %v6074_v37 = vmul.f32 %v5928_v43, %v2318_v60  ;;  %v6085_v26 = vadd.s32 16, %v6013_v39 }
 0x3a4   :  { %4109 = vrsqrt.f32 %v2200_v44  ;;  %v2337_v50 = vmul.f32 %v4090_v40, %v5685_v28  ;;  %v2392_v44 = vmul.f32 %v5928_v43, %v2322_v17  ;;  %v6071_v61 = vadd.f32 %v5952_v12, %v2390_v25 }
 0x3a5   :  { %4111 = vrsqrt.f32 %v2203_v23  ;;  %v2393_v23 = vmul.f32 %v5928_v43, %v2323_v42  ;;  %v6082_v59 = vadd.f32 %v5952_v12, %v2389_v46  ;;  %v2528_v14 = vmax.f32 %v2464_v33, 0.0 }
 0x3a6   :  { %4113 = vrsqrt.f32 %v2198_v1  ;;  %v2462_v2 = vadd.f32 %v5952_v12, %v2392_v44  ;;  %v6094_v11 = vadd.s32 24, %v6013_v39  ;;  %vm2609_vm15 = vcmp.eq.s32.totalorder %v6032_v29, %v6085_v26 }
 0x3a7   :  { %v4092_v36 = vpop.eup %4091  ;;  %4115 = vrsqrt.f32 %v2202_v27  ;;  %v2463_v15 = vadd.f32 %v5952_v12, %v2393_v23  ;;  %v2594_v44 = vsub.s32 2, %v6013_v39 }
 0x3a8   :  { %v2340_v21 = vmul.f32 %v4092_v36, %v5706_v20  ;;  %v4094_v45 = vpop.eup %4093  ;;  %4117 = vrsqrt.f32 %v2201_v55  ;;  %v2667_v55 = vpack.c.bf16 %v2529_v30, %v2528_v14  ;;  %vm2613_vm1 = vcmp.eq.s32.totalorder %v6032_v29, %v6094_v11 }
 0x3a9   :  { %v4096_v19 = vpop.eup %4095  ;;  %4119 = vrsqrt.f32 %v2199_v7  ;;  %v2336_v56 = vmul.f32 %v4094_v45, %v5664_v62  ;;  %vm6108_vm2 = vmpackc.low %vm2613_vm1, %vm2609_vm15  ;;  %v2598_v29 = vsub.s32 3, %v6013_v39  ;;  %v2527_v33 = vmax.f32 %v2463_v15, 0.0 }
 0x3aa   :  { %v2410_v38 = vmul.f32 %v5928_v43, %v2340_v21  ;;  %v2335_v49 = vmul.f32 %v4096_v19, %v5698_v53  ;;  %v2595_v14 = vrot.slane %v6026_v52, %v2594_v44  ;;  %v2808_v44 = vld [vmem:[%s6582_s11 + $0x18] sm:$0xff] }
 0x3ab   :  { %v4098_v20 = vpop.eup %4097  ;;  %v2406_v36 = vmul.f32 %v5928_v43, %v2336_v56  ;;  %v2599_v23 = vrot.slane %v6026_v52, %v2598_v29 }
 0x3ac   :  { %v4100_v35 = vpop.eup %4099  ;;  %v2338_v16 = vmul.f32 %v4098_v20, %v5717_v54  ;;  %v2480_v1 = vadd.f32 %v5952_v12, %v2410_v38  ;;  %v2407_v54 = vmul.f32 %v5928_v43, %v2337_v50  ;;  %v2405_v42 = vmul.f32 %v5928_v43, %v2335_v49 }
 0x3ad   :  { %v2341_v28 = vmul.f32 %v4100_v35, %v5720_v10  ;;  %v4102_v13 = vpop.eup %4101  ;;  %v2476_v50 = vadd.f32 %v5952_v12, %v2406_v36  ;;  %vm2603_vm3 = vcmp.eq.s32.totalorder %v2599_v23, %v6013_v39  ;;  %vm2607_vm4 = vcmp.eq.s32.totalorder %v2599_v23, %v6035_v4 }
 0x3ae   :  { %v4104_v27 = vpop.eup %4103  ;;  %v2408_v10 = vmul.f32 %v5928_v43, %v2338_v16  ;;  %v2334_v25 = vmul.f32 %v4102_v13, %v5682_v47  ;;  %v2544_v21 = vmax.f32 %v2480_v1, 0.0  ;;  %v2477_v3 = vadd.f32 %v5952_v12, %v2407_v54  ;;  %vm6133_vm6 = vmpackc.low %vm2607_vm4, %vm2603_vm3 }
 0x3af   :  { %v2411_v62 = vmul.f32 %v5928_v43, %v2341_v28  ;;  %v4106_v40 = vpop.eup %4105  ;;  %v2333_v45 = vmul.f32 %v4104_v27, %v5658_v41  ;;  %v2475_v27 = vadd.f32 %v5952_v12, %v2405_v42  ;;  %vm2602_vm5 = vcmp.eq.s32.totalorder %v2595_v14, %v6013_v39 }
 0x3b0   :  { %v4108_v53 = vpop.eup %4107  ;;  %v2339_v17 = vmul.f32 %v4106_v40, %v5725_v48  ;;  %v2478_v47 = vadd.f32 %v5952_v12, %v2408_v10  ;;  %v2404_v16 = vmul.f32 %v5928_v43, %v2334_v25  ;;  %v2541_v28 = vmax.f32 %v2477_v3, 0.0 }
 0x3b1   :  { %v2481_v7 = vadd.f32 %v5952_v12, %v2411_v62  ;;  %v4110_v60 = vpop.eup %4109  ;;  %v2332_v20 = vmul.f32 %v4108_v53, %v5630_v9  ;;  %v2403_v13 = vmul.f32 %v5928_v43, %v2333_v45  ;;  %v2526_v10 = vmax.f32 %v2462_v2, 0.0 }
 0x3b2   :  { %v4112_v19 = vpop.eup %4111  ;;  %v2409_v48 = vmul.f32 %v5928_v43, %v2339_v17  ;;  %v2542_v54 = vmax.f32 %v2478_v47, 0.0  ;;  %v2540_v15 = vmax.f32 %v2476_v50, 0.0  ;;  %v2474_v36 = vadd.f32 %v5952_v12, %v2404_v16  ;;  %v2809_v47 = vld [vmem:[%s6582_s11 + $0x20] sm:$0xff] }
 0x3b3   :  { %v2545_v38 = vmax.f32 %v2481_v7, 0.0  ;;  %v6118_v41 = vpop.eup %4113  ;;  %v2331_v1 = vmul.f32 %v4112_v19, %v5672_v51  ;;  %v2402_v40 = vmul.f32 %v5928_v43, %v2332_v20  ;;  %v2666_v17 = vpack.c.bf16 %v2527_v33, %v2526_v10  ;;  %v2057_v33 = vpop.xlane.xlu1 %2056 }
 0x3b4   :  { %v2479_v30 = vadd.f32 %v5952_v12, %v2409_v48  ;;  %v4116_v56 = vpop.eup %4115  ;;  %vm2606_vm8 = vcmp.eq.s32.totalorder %v2595_v14, %v6035_v4  ;;  %vm2611_vm9 = vcmp.eq.s32.totalorder %v2599_v23, %v6085_v26  ;;  %v2673_v2 = vpack.c.bf16 %v2541_v28, %v2540_v15 }
 0x3b5   :  { %v2675_v35 = vpack.c.bf16 %v2545_v38, %v2544_v21  ;;  %v4118_v9 = vpop.eup %4117  ;;  %v2330_v53 = vmul.f32 %v4116_v56, %v5655_v18  ;;  %v2539_v25 = vmax.f32 %v2475_v27, 0.0  ;;  %v2473_v21 = vadd.f32 %v5952_v12, %v2403_v13  ;;  %vm6144_vm10 = vmpackc.low %vm2606_vm8, %vm2602_vm5  ;;  %v2810_v18 = vld [vmem:[%s6582_s11 + $0x28] sm:$0xff] }
 0x3b6   :  { %v2543_v49 = vmax.f32 %v2479_v30, 0.0  ;;  %v4120_v62 = vpop.eup %4119  ;;  %v2401_v3 = vmul.f32 %v5928_v43, %v2331_v1  ;;  %v2458_v42 = vadd.f32 %v5952_v12, %v6074_v37  ;;  %vm2615_vm11 = vcmp.eq.s32.totalorder %v2599_v23, %v6094_v11 }
 0x3b7   :  { %3644 = vmatprep.subr.bf16.mxu1 %v2675_v35  ;;  %vm2610_vm12 = vcmp.eq.s32.totalorder %v2595_v14, %v6085_v26  ;;  %v2538_v45 = vmax.f32 %v2474_v36, 0.0  ;;  %v2472_v19 = vadd.f32 %v5952_v12, %v2402_v40  ;;  %v2400_v38 = vmul.f32 %v5928_v43, %v2330_v53  ;;  %vm6158_vm7 = vmpackc.low %vm2615_vm11, %vm2611_vm9  ;;  %v2051_v1 = vpop.xlane.xlu1 %2050 }
 0x3b8   :  { %3645 = vmatpush3.bf16.msra.mxu1 %v2667_v55  ;;  %v2674_v51 = vpack.c.bf16 %v2543_v49, %v2542_v54  ;;  %v2329_v55 = vmul.f32 %v4118_v9, %v5617_v6  ;;  %v2524_v6 = vmax.f32 %v6071_v61, 0.0  ;;  %v2328_v48 = vmul.f32 %v4110_v60, %v5596_v22 }
 0x3b9   :  { %v2523_v37 = vmax.f32 %v6082_v59, 0.0  ;;  %vm2614_vm13 = vcmp.eq.s32.totalorder %v2595_v14, %v6094_v11  ;;  %v2672_v50 = vpack.c.bf16 %v2539_v25, %v2538_v45  ;;  %v2537_v20 = vmax.f32 %v2473_v21, 0.0 }
 0x3ba   :  { %3646 = vmatprep.subr.bf16.mxu1 %v2674_v51  ;;  %v2665_v61 = vpack.c.bf16 %v2525_v5, %v2524_v6  ;;  %v2399_v29 = vmul.f32 %v5928_v43, %v2329_v55  ;;  %v2471_v22 = vadd.f32 %v5952_v12, %v2401_v3  ;;  %v2327_v60 = vmul.f32 %v4120_v62, %v5640_v58  ;;  %vm6171_vm14 = vmpackc.low %vm2614_vm13, %vm2610_vm12  ;;  %v2054_v5 = vpop.xlane.xlu0 %2053 }
 0x3bb   :  { %v2522_v57 = vmax.f32 %v2458_v42, 0.0  ;;  %v2536_v59 = vmax.f32 %v2472_v19, 0.0  ;;  %v2470_v35 = vadd.f32 %v5952_v12, %v2400_v38  ;;  %v2398_v30 = vmul.f32 %v5928_v43, %v2328_v48  ;;  %v2069_v51 = vpop.xlane.xlu1 %2068 }
 0x3bc   :  { %3647 = vmatpush3.bf16.msra.mxu1 %v2666_v17  ;;  %v2326_v16 = vmul.f32 %v6118_v41, %v5614_v0  ;;  %v2535_v56 = vmax.f32 %v2471_v22, 0.0  ;;  %v2469_v28 = vadd.f32 %v5952_v12, %v2399_v29  ;;  %v2397_v13 = vmul.f32 %v5928_v43, %v2327_v60 }
 0x3bd   :  { %3648 = vmatprep.subr.bf16.mxu1 %v2673_v2  ;;  %v2664_v23 = vpack.c.bf16 %v2523_v37, %v2522_v57  ;;  %v2671_v58 = vpack.c.bf16 %v2537_v20, %v2536_v59  ;;  %v2534_v14 = vmax.f32 %v2470_v35, 0.0  ;;  %v2468_v9 = vadd.f32 %v5952_v12, %v2398_v30 }
 0x3be   :  { %v2396_v54 = vmul.f32 %v5928_v43, %v2326_v16  ;;  %v2048_v49 = vpop.xlane.xlu0 %2047  ;;  %v2533_v62 = vmax.f32 %v2469_v28, 0.0  ;;  %v2467_v0 = vadd.f32 %v5952_v12, %v2397_v13  ;;  %v2586_v40 = vsub.s32 0, %v6013_v39 }
 0x3bf   :  { %v2670_v27 = vpack.c.bf16 %v2535_v56, %v2534_v14  ;;  %v2532_v41 = vmax.f32 %v2468_v9, 0.0  ;;  %v2160_v25 = vmul.f32 0.015625, %v2054_v5  ;;  %v2063_v21 = vpop.xlane.xlu1 %2062  ;;  %v2165_v42 = vmul.f32 0.015625, %v2069_v51 }
 0x3c0   :  { %3649 = vmatpush3.bf16.msra.mxu1 %v2665_v61  ;;  %v2466_v10 = vadd.f32 %v5952_v12, %v2396_v54  ;;  %v2531_v36 = vmax.f32 %v2467_v0, 0.0  ;;  %v2587_v55 = vrot.slane %v6026_v52, %v2586_v40  ;;  %v2163_v45 = vmul.f32 0.015625, %v2063_v21 }
 0x3c1   :  { %3650 = vmatprep.subr.bf16.mxu1 %v2672_v50  ;;  %v2669_v15 = vpack.c.bf16 %v2533_v62, %v2532_v41  ;;  %v2158_v52 = vmul.f32 0.015625, %v2048_v49  ;;  %v6778_v61 = vmov 1.0|1.0  }
 0x3c2   :  { %v2066_v53 = vpop.xlane.xlu0 %2065  ;;  %v2530_v17 = vmax.f32 %v2466_v10, 0.0  ;;  %vm2600_vm15 = vcmp.eq.s32.totalorder %v2587_v55, %v6013_v39  ;;  %vm2604_vm1 = vcmp.eq.s32.totalorder %v2587_v55, %v6035_v4  ;;  %v2227_v37 = vadd.f32 1e-05, %v2163_v45 }
 0x3c3   :  { %v2164_v3 = vmul.f32 0.015625, %v2066_v53  ;;  %vm3548_vm3 = vmpackc.low %vm2604_vm1, %vm2600_vm15  ;;  %v2222_v4 = vadd.f32 1e-05, %v2158_v52  ;;  %v2093_v29 = vpop.xlane.xlu1 %2092  ;;  %vm2608_vm4 = vcmp.eq.s32.totalorder %v2587_v55, %v6085_v26  ;;  %vm2612_vm5 = vcmp.eq.s32.totalorder %v2587_v55, %v6094_v11  ;;  %v6780_v53 = vld [vmem:[#allocation15_spill] sm:$0xff]  ;;  %v6781_v55 = vld [vmem:[#allocation17_spill] sm:$0xff] }
 0x3c4   :  { %3651 = vmatpush3.bf16.msra.mxu1 %v2664_v23  ;;  %v2668_v2 = vpack.c.bf16 %v2531_v36, %v2530_v17  ;;  %vm3552_vm8 = vmpackc.low %vm2612_vm5, %vm2608_vm4  ;;  %v2173_v35 = vmul.f32 0.015625, %v2093_v29 }
 0x3c5   :  { %3652 = vmatprep.subr.bf16.mxu1 %v2671_v58  ;;  %v2228_v38 = vadd.f32 1e-05, %v2164_v3 }
 0x3c6   :  { %v2060_v6 = vpop.xlane.xlu0 %2059  ;;  %v2237_v7 = vadd.f32 1e-05, %v2173_v35 }
 0x3c7   :  { %v2162_v48 = vmul.f32 0.015625, %v2060_v6 }
 0x3c8   :  { %3653 = vmatpush3.bf16.msra.mxu1 %v6009_v63  ;;  %v2161_v63 = vmul.f32 0.015625, %v2057_v33  ;;  %v2159_v33 = vmul.f32 0.015625, %v2051_v1 }
 0x3c9   :  { %3654 = vmatprep.subr.bf16.mxu1 %v2670_v27 }
 0x3ca   :  { %v2225_v19 = vadd.f32 1e-05, %v2161_v63  ;;  %v2090_v39 = vpop.xlane.xlu0 %2089  ;;  %v2223_v22 = vadd.f32 1e-05, %v2159_v33 }
 0x3cb   :  { %v2172_v26 = vmul.f32 0.015625, %v2090_v39 }
 0x3cc   :  { %3655 = vmatpush3.bf16.msra.mxu1 %v6018_v8  ;;  %v2224_v8 = vadd.f32 1e-05, %v2160_v25  ;;  %v6782_v25 = vld [vmem:[#allocation18_spill] sm:$0xff] }
 0x3cd   :  { %3656 = vmatprep.subr.bf16.mxu1 %v2669_v15  ;;  %v2236_v59 = vadd.f32 1e-05, %v2172_v26  ;;  %v6779_v15 = vld [vmem:[#allocation13_spill] sm:$0xff] }
 0x3ce   :  { %4121 = vrsqrt.f32 %v2224_v8  ;;  %v2102_v50 = vpop.xlane.xlu0 %2101  ;;  %v6783_v8 = vld [vmem:[#allocation16_spill] sm:$0xff] }
 0x3cf   :  { %4123 = vrsqrt.f32 %v2225_v19  ;;  %v2176_v57 = vmul.f32 0.015625, %v2102_v50  ;;  %v6784_v19 = vld [vmem:[#allocation12_spill] sm:$0xff] }
 0x3d0   :  { %3657 = vmatpush3.bf16.msra.mxu1 %v5988_v32  ;;  %v2229_v32 = vadd.f32 1e-05, %v2165_v42  ;;  %4125 = vrsqrt.f32 %v2228_v38 }
 0x3d1   :  { %3658 = vmatprep.subr.bf16.mxu1 %v2668_v2  ;;  %v2240_v1 = vadd.f32 1e-05, %v2176_v57 }
 0x3d2   :  { %4127 = vrsqrt.f32 %v2229_v32  ;;  %v2105_v20 = vpop.xlane.xlu1 %2104  ;;  %v2096_v46 = vpop.xlane.xlu0 %2095 }
 0x3d3   :  { %4129 = vrsqrt.f32 %v2227_v37  ;;  %v2177_v11 = vmul.f32 0.015625, %v2105_v20  ;;  %v2174_v9 = vmul.f32 0.015625, %v2096_v46 }
 0x3d4   :  { %3659 = vmatpush3.bf16.msra.mxu1 %v6001_v34  ;;  %v2226_v34 = vadd.f32 1e-05, %v2162_v48  ;;  %4131 = vrsqrt.f32 %v2222_v4 }
 0x3d5   :  { %v2241_v16 = vadd.f32 1e-05, %v2177_v11  ;;  %v2238_v21 = vadd.f32 1e-05, %v2174_v9 }
 0x3d6   :  { %4133 = vrsqrt.f32 %v2226_v34  ;;  %v2099_v60 = vpop.xlane.xlu1 %2098 }
 0x3d7   :  { %3549 = vmatmul.mubr.msk.bf16.vlgmr.msra.gmra.mxu1 %vm3548_vm3, %v6778_v61  ;;  %4135 = vrsqrt.f32 %v2223_v22  ;;  %v2175_v23 = vmul.f32 0.015625, %v2099_v60 }
 0x3d8   :  { %3551 = vmatprep.mubr.msk.bf16.mxu1 %vm6108_vm2, %v6778_v61  ;;  %4137 = vrsqrt.f32 %v2236_v59  ;;  %vm3406_vm2 = vcmask 7168  }
 0x3d9   :  { %4139 = vrsqrt.f32 %v2241_v16  ;;  %v2239_v27 = vadd.f32 1e-05, %v2175_v23 }
 0x3db   :  { %v4122_v5 = vpop.eup %4121 }
 0x3dc   :  { %v4124_v30 = vpop.eup %4123  ;;  %v2352_v41 = vmul.f32 %v4122_v5, %v5729_v24  ;;  %v6785_v5 = vld [vmem:[#allocation14_spill] sm:$0xff] }
 0x3dd   :  { %v4126_v56 = vpop.eup %4125  ;;  %v2353_v36 = vmul.f32 %v4124_v30, %v6779_v15 }
 0x3de   :  { %v2356_v17 = vmul.f32 %v4126_v56, %v6780_v53  ;;  %v2422_v52 = vmul.f32 %v5928_v43, %v2352_v41 }
 0x3df   :  { %3553 = vmatmul.mubr.msk.bf16.gmra.mxu1 %vm3552_vm8, %v6778_v61  ;;  %v4128_v13 = vpop.eup %4127  ;;  %v2423_v32 = vmul.f32 %v5928_v43, %v2353_v36 }
 0x3e0   :  { %3555 = vmatprep.mubr.msk.bf16.mxu1 %vm6133_vm6, %v6778_v61  ;;  %v4130_v14 = vpop.eup %4129  ;;  %v2357_v2 = vmul.f32 %v4128_v13, %v6781_v55  ;;  %v2426_v39 = vmul.f32 %v5928_v43, %v2356_v17  ;;  %v6217_v26 = vadd.f32 %v5952_v12, %v2422_v52  ;;  %v6786_v17 = vld [vmem:[#allocation31_spill] sm:$0xff] }
 0x3e1   :  { %v4132_v49 = vpop.eup %4131  ;;  %v2355_v63 = vmul.f32 %v4130_v14, %v6782_v25  ;;  %v6221_v57 = vadd.f32 %v5952_v12, %v2423_v32 }
 0x3e2   :  { %v2350_v38 = vmul.f32 %v4132_v49, %v6784_v19  ;;  %v2427_v4 = vmul.f32 %v5928_v43, %v2357_v2  ;;  %v2496_v35 = vadd.f32 %v5952_v12, %v2426_v39  ;;  %v6789_v39 = vld [vmem:[#allocation26_spill] sm:$0xff] }
 0x3e3   :  { %v4134_v10 = vpop.eup %4133  ;;  %v2425_v29 = vmul.f32 %v5928_v43, %v2355_v63 }
 0x3e4   :  { %v2354_v45 = vmul.f32 %v4134_v10, %v6783_v8  ;;  %v4136_v37 = vpop.eup %4135  ;;  %v2420_v46 = vmul.f32 %v5928_v43, %v2350_v38  ;;  %v2497_v30 = vadd.f32 %v5952_v12, %v2427_v4  ;;  %v2560_v10 = vmax.f32 %v2496_v35, 0.0 }
 0x3e5   :  { %v2351_v59 = vmul.f32 %v4136_v37, %v6785_v5  ;;  %v2495_v16 = vadd.f32 %v5952_v12, %v2425_v29  ;;  %v4138_v56 = vpop.eup %4137 }
 0x3e6   :  { %v2114_v58 = vpop.xlane.xlu0 %2113  ;;  %v2424_v22 = vmul.f32 %v5928_v43, %v2354_v45  ;;  %v6230_v9 = vadd.f32 %v5952_v12, %v2420_v46  ;;  %v6790_v46 = vld [vmem:[#allocation8_spill] sm:$0xff] }
 0x3e7   :  { %v2180_v28 = vmul.f32 0.015625, %v2114_v58 }
 0x3e8   :  { %v2494_v14 = vadd.f32 %v5952_v12, %v2424_v22 }
 0x3e9   :  { %v2244_v54 = vadd.f32 1e-05, %v2180_v28 }
 0x3ea   :  { %v2108_v62 = vpop.xlane.xlu0 %2107  ;;  %v2117_v0 = vpop.xlane.xlu1 %2116 }
 0x3eb   :  { %4141 = vrsqrt.f32 %v2244_v54  ;;  %v2178_v40 = vmul.f32 0.015625, %v2108_v62  ;;  %v2181_v51 = vmul.f32 0.015625, %v2117_v0  ;;  %v4140_v54 = vpop.eup %4139  ;;  %v2557_v62 = vmax.f32 %v6221_v57, 0.0 }
 0x3ec   :  { %4143 = vrsqrt.f32 %v2240_v1  ;;  %v2421_v0 = vmul.f32 %v5928_v43, %v2351_v59  ;;  %v6791_v59 = vld [vmem:[#allocation30_spill] sm:$0xff] }
 0x3ed   :  { %4145 = vrsqrt.f32 %v2237_v7  ;;  %v2242_v3 = vadd.f32 1e-05, %v2178_v40  ;;  %v2245_v6 = vadd.f32 1e-05, %v2181_v51  ;;  %v2556_v7 = vmax.f32 %v6217_v26, 0.0 }
 0x3ee   :  { %4147 = vrsqrt.f32 %v2239_v27  ;;  %v2042_v42 = vpop.xlane.xlu0 %2041  ;;  %v2111_v24 = vpop.xlane.xlu1 %2110  ;;  %v2561_v40 = vmax.f32 %v2497_v30, 0.0  ;;  %v2559_v51 = vmax.f32 %v2495_v16, 0.0  ;;  %v6239_v38 = vadd.f32 %v5952_v12, %v2421_v0 }
 0x3ef   :  { %4149 = vrsqrt.f32 %v2242_v3  ;;  %v2179_v48 = vmul.f32 0.015625, %v2111_v24  ;;  %v2156_v34 = vmul.f32 0.015625, %v2042_v42  ;;  %v6787_v3 = vld [vmem:[#allocation29_spill] sm:$0xff]  ;;  %v6788_v42 = vld [vmem:[#allocation19_spill] sm:$0xff] }
 0x3f0   :  { %4151 = vrsqrt.f32 %v2245_v6  ;;  %v2369_v6 = vmul.f32 %v4140_v54, %v6787_v3  ;;  %v2364_v24 = vmul.f32 %v4138_v56, %v6788_v42  ;;  %v6241_v32 = vpack.c.bf16 %v2561_v40, %v2560_v10 }
 0x3f1   :  { %4153 = vrsqrt.f32 %v2238_v21  ;;  %v2243_v33 = vadd.f32 1e-05, %v2179_v48  ;;  %v2220_v23 = vadd.f32 1e-05, %v2156_v34  ;;  %v2558_v21 = vmax.f32 %v2494_v14, 0.0 }
 0x3f2   :  { %v2084_v50 = vpop.xlane.xlu0 %2083  ;;  %v2045_v20 = vpop.xlane.xlu1 %2044 }
 0x3f3   :  { %v2170_v11 = vmul.f32 0.015625, %v2084_v50  ;;  %v2157_v60 = vmul.f32 0.015625, %v2045_v20  ;;  %4155 = vrsqrt.f32 %v2243_v33  ;;  %v6243_v37 = vpack.c.bf16 %v2559_v51, %v2558_v21  ;;  %v6794_v51 = vld [vmem:[#allocation34_spill] sm:$0xff] }
 0x3f5   :  { %v2221_v58 = vadd.f32 1e-05, %v2157_v60  ;;  %v2234_v28 = vadd.f32 1e-05, %v2170_v11  ;;  %v6251_v60 = vld [vmem:[%s6579_s9] ss:$0 sm:$0xff] }
 0x3f6   :  { %v2036_v13 = vpop.xlane.xlu0 %2035  ;;  %v2087_v1 = vpop.xlane.xlu1 %2086  ;;  %v2439_v5 = vmul.f32 %v6251_v60, %v2369_v6  ;;  %v6256_v30 = vmul.f32 %v6251_v60, %v2364_v24 }
 0x3f7   :  { %v2154_v49 = vmul.f32 0.015625, %v2036_v13  ;;  %v2171_v27 = vmul.f32 0.015625, %v2087_v1  ;;  %4157 = vrsqrt.f32 %v2221_v58 }
 0x3f8   :  { %v4142_v41 = vpop.eup %4141  ;;  %4159 = vrsqrt.f32 %v2220_v23 }
 0x3f9   :  { %v4144_v15 = vpop.eup %4143  ;;  %v2218_v36 = vadd.f32 1e-05, %v2154_v49  ;;  %v2235_v53 = vadd.f32 1e-05, %v2171_v27  ;;  %v2372_v55 = vmul.f32 %v4142_v41, %v6786_v17  ;;  %4161 = vrsqrt.f32 %v2234_v28  ;;  %v6792_v28 = vld [vmem:[#allocation24_spill] sm:$0xff] }
 0x3fa   :  { %v4146_v2 = vpop.eup %4145  ;;  %v2078_v25 = vpop.xlane.xlu0 %2077  ;;  %v2368_v4 = vmul.f32 %v4144_v15, %v6789_v39  ;;  %v6793_v27 = vld [vmem:[#allocation28_spill] sm:$0xff] }
 0x3fb   :  { %v2039_v63 = vpop.xlane.xlu1 %2038  ;;  %v4148_v8 = vpop.eup %4147  ;;  %v2168_v45 = vmul.f32 0.015625, %v2078_v25  ;;  %v2442_v19 = vmul.f32 %v5928_v43, %v2372_v55  ;;  %4163 = vrsqrt.f32 %v2235_v53  ;;  %v2365_v13 = vmul.f32 %v4146_v2, %v6792_v28 }
 0x3fc   :  { %v2155_v52 = vmul.f32 0.015625, %v2039_v63  ;;  %v4150_v48 = vpop.eup %4149  ;;  %4165 = vrsqrt.f32 %v2218_v36  ;;  %v2367_v35 = vmul.f32 %v4148_v8, %v6791_v59  ;;  %v2438_v49 = vmul.f32 %v6251_v60, %v2368_v4 }
 0x3fd   :  { %v4152_v29 = vpop.eup %4151  ;;  %v2232_v34 = vadd.f32 1e-05, %v2168_v45  ;;  %v2370_v50 = vmul.f32 %v4150_v48, %v5841_v31  ;;  %v2512_v23 = vadd.f32 %v5952_v12, %v2442_v19  ;;  %v6267_v12 = vld [vmem:[%s6580_s10] ss:$0 sm:$0xff]  ;;  %v2435_v8 = vmul.f32 %v6251_v60, %v2365_v13 }
 0x3fe   :  { %v2219_v33 = vadd.f32 1e-05, %v2155_v52  ;;  %v4154_v20 = vpop.eup %4153  ;;  %v2030_v22 = vpop.xlane.xlu0 %2029  ;;  %v2373_v11 = vmul.f32 %v4152_v29, %v6790_v46  ;;  %v2509_v36 = vadd.f32 %v6267_v12, %v2439_v5  ;;  %v2437_v53 = vmul.f32 %v6251_v60, %v2367_v35 }
 0x3ff   :  { %v2081_v43 = vpop.xlane.xlu1 %2080  ;;  %4167 = vrsqrt.f32 %v2232_v34  ;;  %v2152_v16 = vmul.f32 0.015625, %v2030_v22  ;;  %v2440_v56 = vmul.f32 %v6251_v60, %v2370_v50  ;;  %v2366_v0 = vmul.f32 %v4154_v20, %v6793_v27  ;;  %v6795_v20 = vld [vmem:[#allocation10_spill] sm:$0xff] }
 0x400   :  { %v2169_v31 = vmul.f32 0.015625, %v2081_v43  ;;  %4169 = vrsqrt.f32 %v2219_v33  ;;  %v2443_v58 = vmul.f32 %v6251_v60, %v2373_v11  ;;  %v4156_v1 = vpop.eup %4155  ;;  %v2576_v2 = vmax.f32 %v2512_v23, 0.0 }
 0x401   :  { %v2216_v14 = vadd.f32 1e-05, %v2152_v16  ;;  %v2371_v15 = vmul.f32 %v4156_v1, %v6794_v51  ;;  %v2510_v21 = vadd.f32 %v6267_v12, %v2440_v56  ;;  %v2508_v24 = vadd.f32 %v6267_v12, %v2438_v49  ;;  %v6797_v1 = vld [vmem:[#allocation25_spill] sm:$0xff] }
 0x402   :  { %v2233_v54 = vadd.f32 1e-05, %v2169_v31  ;;  %v2072_v41 = vpop.xlane.xlu0 %2071  ;;  %v2513_v40 = vadd.f32 %v6267_v12, %v2443_v58  ;;  %v2573_v4 = vmax.f32 %v2509_v36, 0.0  ;;  %v2436_v29 = vmul.f32 %v6251_v60, %v2366_v0  ;;  %v6796_v31 = vld [vmem:[#allocation32_spill] sm:$0xff] }
 0x403   :  { %v2033_v10 = vpop.xlane.xlu1 %2032  ;;  %4171 = vrsqrt.f32 %v2216_v14  ;;  %v2166_v17 = vmul.f32 0.015625, %v2072_v41  ;;  %v2441_v63 = vmul.f32 %v6251_v60, %v2371_v15  ;;  %v2574_v43 = vmax.f32 %v2510_v21, 0.0  ;;  %v6800_v21 = vld [vmem:[#allocation11_spill] sm:$0xff] }
 0x404   :  { %v2153_v55 = vmul.f32 0.015625, %v2033_v10  ;;  %4173 = vrsqrt.f32 %v2233_v54  ;;  %v2577_v25 = vmax.f32 %v2513_v40, 0.0  ;;  %v4158_v3 = vpop.eup %4157  ;;  %v2507_v11 = vadd.f32 %v6267_v12, %v2437_v53  ;;  %v6798_v54 = vld [vmem:[#allocation27_spill] sm:$0xff] }
 0x405   :  { %v2230_v6 = vadd.f32 1e-05, %v2166_v17  ;;  %v4160_v45 = vpop.eup %4159  ;;  %v2511_v39 = vadd.f32 %v6267_v12, %v2441_v63  ;;  %v2349_v22 = vmul.f32 %v4158_v3, %v6795_v20  ;;  %v2572_v16 = vmax.f32 %v2508_v24, 0.0 }
 0x406   :  { %v2217_v42 = vadd.f32 1e-05, %v2153_v55  ;;  %v2024_v52 = vpop.xlane.xlu0 %2023  ;;  %v2691_v48 = vpack.c.bf16 %v2577_v25, %v2576_v2  ;;  %v4162_v34 = vpop.eup %4161  ;;  %v2348_v23 = vmul.f32 %v4160_v45, %v6796_v31  ;;  %v2506_v13 = vadd.f32 %v6267_v12, %v2436_v29  ;;  %v6799_v55 = vld [vmem:[#allocation9_spill] sm:$0xff] }
 0x407   :  { %v2075_v19 = vpop.xlane.xlu1 %2074  ;;  %4175 = vrsqrt.f32 %v2230_v6  ;;  %v2150_v33 = vmul.f32 0.015625, %v2024_v52  ;;  %v2575_v46 = vmax.f32 %v2511_v39, 0.0  ;;  %v2362_v14 = vmul.f32 %v4162_v34, %v6797_v1  ;;  %v6801_v6 = vld [vmem:[#allocation20_spill] sm:$0xff]  ;;  %v6803_v34 = vld [vmem:[#allocation22_spill] sm:$0xff] }
 0x408   :  { %v2167_v50 = vmul.f32 0.015625, %v2075_v19  ;;  %4177 = vrsqrt.f32 %v2217_v42  ;;  %3672 = vmatprep.subr.bf16.mxu1 %v2691_v48  ;;  %v4164_v5 = vpop.eup %4163  ;;  %v2505_v0 = vadd.f32 %v6267_v12, %v2435_v8  ;;  %v2419_v41 = vmul.f32 %v6251_v60, %v2349_v22  ;;  %v6805_v1 = vld [vmem:[#allocation6_spill] sm:$0xff] }
 0x409   :  { %v2214_v59 = vadd.f32 1e-05, %v2150_v33  ;;  %3673 = vmatpush3.bf16.msra.mxu1 %v6241_v32  ;;  %v4166_v58 = vpop.eup %4165  ;;  %v2690_v28 = vpack.c.bf16 %v2575_v46, %v2574_v43  ;;  %v2363_v49 = vmul.f32 %v4164_v5, %v6798_v54  ;;  %v2689_v32 = vpack.c.bf16 %v2573_v4, %v2572_v16 }
 0x40a   :  { %v2231_v35 = vadd.f32 1e-05, %v2167_v50  ;;  %v2571_v40 = vmax.f32 %v2507_v11, 0.0  ;;  %v2504_v53 = vadd.f32 %v6267_v12, %v6256_v30  ;;  %v2418_v17 = vmul.f32 %v6251_v60, %v2348_v23  ;;  %v6804_v23 = vld [vmem:[#allocation21_spill] sm:$0xff] }
 0x40b   :  { %v2027_v56 = vpop.xlane.xlu1 %2026  ;;  %4179 = vrsqrt.f32 %v2214_v59  ;;  %3674 = vmatprep.subr.bf16.mxu1 %v2690_v28  ;;  %v2433_v51 = vmul.f32 %v6251_v60, %v2363_v49  ;;  %v2346_v2 = vmul.f32 %v4166_v58, %v6799_v55  ;;  %v2570_v25 = vmax.f32 %v2506_v13, 0.0 }
 0x40c   :  { %v2151_v27 = vmul.f32 0.015625, %v2027_v56  ;;  %v4168_v10 = vpop.eup %4167  ;;  %4181 = vrsqrt.f32 %v2231_v35  ;;  %v2432_v63 = vmul.f32 %v6251_v60, %v2362_v14  ;;  %v2555_v30 = vmax.f32 %v6239_v38, 0.0 }
 0x40d   :  { %v4170_v15 = vpop.eup %4169  ;;  %3675 = vmatpush3.bf16.msra.mxu1 %v6243_v37  ;;  %v2360_v42 = vmul.f32 %v4168_v10, %v6801_v6  ;;  %v2681_v37 = vpack.c.bf16 %v2557_v62, %v2556_v7  ;;  %v2489_v24 = vadd.f32 %v6267_v12, %v2419_v41  ;;  %v2688_v45 = vpack.c.bf16 %v2571_v40, %v2570_v25  ;;  %v6802_v7 = vld [vmem:[#allocation4_spill] sm:$0xff] }
 0x40e   :  { %v2215_v36 = vadd.f32 1e-05, %v2151_v27  ;;  %3676 = vmatprep.subr.bf16.mxu1 %v2689_v32  ;;  %v2347_v3 = vmul.f32 %v4170_v15, %v6800_v21  ;;  %v2569_v52 = vmax.f32 %v2505_v0, 0.0  ;;  %v2503_v19 = vadd.f32 %v6267_v12, %v2433_v51 }
 0x40f   :  { %v2554_v4 = vmax.f32 %v6230_v9, 0.0  ;;  %v2488_v26 = vadd.f32 %v6267_v12, %v2418_v17  ;;  %v2416_v57 = vmul.f32 %v6251_v60, %v2346_v2  ;;  %v2568_v38 = vmax.f32 %v2504_v53, 0.0  ;;  %v6807_v2 = vld [vmem:[#allocation23_spill] sm:$0xff] }
 0x410   :  { %4183 = vrsqrt.f32 %v2215_v36  ;;  %v4172_v8 = vpop.eup %4171  ;;  %v2417_v48 = vmul.f32 %v6251_v60, %v2347_v3  ;;  %v2502_v29 = vadd.f32 %v6267_v12, %v2432_v63  ;;  %v2430_v50 = vmul.f32 %v6251_v60, %v2360_v42  ;;  %v6806_v36 = vld [vmem:[#allocation5_spill] sm:$0xff] }
 0x411   :  { %v4174_v39 = vpop.eup %4173  ;;  %3677 = vmatpush3.bf16.msra.mxu1 %v2681_v37  ;;  %v2344_v62 = vmul.f32 %v4172_v8, %v6802_v7  ;;  %v2680_v20 = vpack.c.bf16 %v2555_v30, %v2554_v4  ;;  %v2553_v22 = vmax.f32 %v2489_v24, 0.0  ;;  %v2687_v11 = vpack.c.bf16 %v2569_v52, %v2568_v38  ;;  %v6808_v8 = vld [vmem:[#allocation33_spill] sm:$0xff] }
 0x412   :  { %3678 = vmatprep.subr.bf16.mxu1 %v2688_v45  ;;  %v2361_v33 = vmul.f32 %v4174_v39, %v6803_v34  ;;  %v2487_v43 = vadd.f32 %v6267_v12, %v2417_v48  ;;  %v2567_v5 = vmax.f32 %v2503_v19, 0.0  ;;  %v2552_v16 = vmax.f32 %v2488_v26, 0.0  ;;  %v2806_v34 = vld [vmem:[%s6582_s11 + $0x8] sm:$0xff] }
 0x413   :  { %v2414_v9 = vmul.f32 %v6251_v60, %v2344_v62  ;;  %v2486_v31 = vadd.f32 %v6267_v12, %v2416_v57  ;;  %v2566_v56 = vmax.f32 %v2502_v29, 0.0  ;;  %v2500_v28 = vadd.f32 %v6267_v12, %v2430_v50  ;;  %v2814_v50 = vld [vmem:[%s6583_s4 + $0x8] sm:$0xff] }
 0x414   :  { %v4176_v46 = vpop.eup %4175  ;;  %v2431_v59 = vmul.f32 %v6251_v60, %v2361_v33  ;;  %v2679_v54 = vpack.c.bf16 %v2553_v22, %v2552_v16  ;;  %v2551_v49 = vmax.f32 %v2487_v43, 0.0  ;;  %v2805_v33 = vld [vmem:[%s6582_s11] sm:$0xff]  ;;  %2825 = vperm.xlu1 %4043, %v2814_v50   ;;  %v2815_v22 = vld [vmem:[%s6583_s4 + $0x10] sm:$0xff]  ;;  %v2816_v43 = vld [vmem:[%s6583_s4 + $0x18] sm:$0xff] }
 0x415   :  { %v4178_v35 = vpop.eup %4177  ;;  %3679 = vmatpush3.bf16.msra.mxu1 %v2680_v20  ;;  %v2358_v58 = vmul.f32 %v4176_v46, %v6804_v23  ;;  %v2484_v27 = vadd.f32 %v6267_v12, %v2414_v9  ;;  %v2686_v41 = vpack.c.bf16 %v2567_v5, %v2566_v56  ;;  %v2550_v15 = vmax.f32 %v2486_v31, 0.0  ;;  %v2813_v20 = vld [vmem:[%s6583_s4] sm:$0xff] }
 0x416   :  { %3680 = vmatprep.subr.bf16.mxu1 %v2687_v11  ;;  %v2501_v13 = vadd.f32 %v6267_v12, %v2431_v59  ;;  %v2345_v14 = vmul.f32 %v4178_v35, %v6805_v1  ;;  %v2564_v17 = vmax.f32 %v2500_v28, 0.0  ;;  %2820 = vperm.xlu0 %4042, %v2813_v20   ;;  %v3058_v20 = vld [vmem:[%s6585_s15 + $0x78] sm:$0xff] }
 0x417   :  { %v2428_v40 = vmul.f32 %v6251_v60, %v2358_v58  ;;  %v2678_v63 = vpack.c.bf16 %v2551_v49, %v2550_v15  ;;  %v2548_v21 = vmax.f32 %v2484_v27, 0.0 }
 0x418   :  { %v4180_v0 = vpop.eup %4179  ;;  %v2565_v10 = vmax.f32 %v2501_v13, 0.0  ;;  %v2415_v32 = vmul.f32 %v6251_v60, %v2345_v14  ;;  %2830 = vperm.xlu1 %4043, %v2815_v22   ;;  %v2656_v13 = vld [vmem:[#allocation3] sm:$0xff] }
 0x419   :  { %v4182_v51 = vpop.eup %4181  ;;  %3681 = vmatpush3.bf16.msra.mxu1 %v2679_v54  ;;  %v2342_v53 = vmul.f32 %v4180_v0, %v6806_v36  ;;  %v2498_v24 = vadd.f32 %v6267_v12, %v2428_v40 }
 0x41a   :  { %3682 = vmatprep.subr.bf16.mxu1 %v2686_v41  ;;  %v2485_v55 = vadd.f32 %v6267_v12, %v2415_v32  ;;  %v2359_v25 = vmul.f32 %v4182_v51, %v6807_v2  ;;  %v2685_v42 = vpack.c.bf16 %v2565_v10, %v2564_v17  ;;  %v2657_v41 = vld [vmem:[#allocation3 + $0x8] sm:$0xff] }
 0x41b   :  { %v2412_v3 = vmul.f32 %v6251_v60, %v2342_v53  ;;  %v2562_v4 = vmax.f32 %v2498_v24, 0.0  ;;  %v2658_v53 = vld [vmem:[#allocation3 + $0x10] sm:$0xff] }
 0x41c   :  { %v2549_v37 = vmax.f32 %v2485_v55, 0.0  ;;  %v2429_v30 = vmul.f32 %v6251_v60, %v2359_v25  ;;  %2835 = vperm.xlu1 %4043, %v2816_v43  }
 0x41d   :  { %v4184_v6 = vpop.eup %4183  ;;  %3683 = vmatpush3.bf16.msra.mxu1 %v2678_v63  ;;  %v2482_v39 = vadd.f32 %v6267_v12, %v2412_v3  ;;  %v2659_v3 = vld [vmem:[#allocation3 + $0x18] sm:$0xff] }
 0x41e   :  { %v2343_v45 = vmul.f32 %v4184_v6, %v6808_v8  ;;  %3684 = vmatprep.subr.bf16.mxu1 %v2685_v42  ;;  %v2677_v52 = vpack.c.bf16 %v2549_v37, %v2548_v21  ;;  %v2499_v19 = vadd.f32 %v6267_v12, %v2429_v30 }
 0x41f   :  { %v2546_v62 = vmax.f32 %v2482_v39, 0.0 }
 0x420   :  { %v2413_v48 = vmul.f32 %v6251_v60, %v2343_v45  ;;  %v2563_v26 = vmax.f32 %v2499_v19, 0.0  ;;  %v2812_v60 = vld [vmem:[%s6582_s11 + $0x38] sm:$0xff]  ;;  %v3562_v45 = vld [vmem:[%s6584_s12] ss:$0 sm:$0xff] }
 0x421   :  { %3685 = vmatpush3.bf16.msra.mxu1 %v2677_v52 }
 0x422   :  { %v2483_v57 = vadd.f32 %v6267_v12, %v2413_v48  ;;  %v2684_v7 = vpack.c.bf16 %v2563_v26, %v2562_v4  ;;  %v2811_v12 = vld [vmem:[%s6582_s11 + $0x30] sm:$0xff] }
 0x424   :  { %v2547_v38 = vmax.f32 %v2483_v57, 0.0  ;;  %3686 = vmatprep.subr.bf16.mxu1 %v2684_v7 }
 0x426   :  { %v2676_v29 = vpack.c.bf16 %v2547_v38, %v2546_v62 }
 0x428   :  { %3687 = vmatpush3.bf16.msra.mxu1 %v2676_v29 }
 0x429   :  { %3867 = vmatprep.subr.mxu1 %v2812_v60 }
 0x42b   :  { %3557 = vmatmul.mubr.msk.bf16.vlgmr.msra.gmra.mxu1 %vm6144_vm10, %v6778_v61 }
 0x42c   :  { %3559 = vmatprep.mubr.msk.bf16.mxu1 %vm6158_vm7, %v6778_v61  ;;  %3868 = vmatpush3.msra.mxu1 %v2812_v60 }
 0x42d   :  { %3869 = vmatprep.subr.mxu1 %v2811_v12 }
 0x42e   :  { %3870 = vmatpush3.msra.mxu1 %v2811_v12 }
 0x42f   :  { %3871 = vmatprep.subr.mxu1 %v2810_v18 }
 0x430   :  { %3872 = vmatpush3.msra.mxu1 %v2810_v18 }
 0x431   :  { %3873 = vmatprep.subr.mxu1 %v2809_v47 }
 0x432   :  { %3874 = vmatpush3.msra.mxu1 %v2809_v47 }
 0x433   :  { %3561 = vmatmul.mubr.msk.bf16.gmra.mxu1 %vm6171_vm14, %v6778_v61  ;;  %3875 = vmatprep.subr.mxu1 %v2808_v44  ;;  %v2807_v61 = vld [vmem:[%s6582_s11 + $0x10] sm:$0xff] }
 0x434   :  { %3876 = vmatpush3.msra.mxu1 %v2808_v44 }
 0x435   :  { %3877 = vmatprep.subr.mxu1 %v2807_v61 }
 0x436   :  { %3878 = vmatpush3.msra.mxu1 %v2807_v61 }
 0x437   :  { %3879 = vmatprep.subr.mxu1 %v2806_v34 }
 0x438   :  { %3880 = vmatpush3.msra.mxu1 %v2806_v34 }
 0x439   :  { %3881 = vmatprep.subr.mxu1 %v2805_v33 }
 0x43a   :  { %3882 = vmatpush3.msra.mxu1 %v2805_v33 }
 0x43b   :  { %3889 = vmatprep.subr.mxu1 %v3058_v20 }
 0x48f   :  { %v2826_v52 = vpop.permute.xlu1 %2825 }
 0x490   :  { %v2845_v48 = vmul.f32 %v3562_v45, %v2826_v52 }
 0x491   :  { %v2821_v19 = vpop.permute.xlu0 %2820 }
 0x492   :  { %v2844_v39 = vmul.f32 %v3562_v45, %v2821_v19 }
 0x493   :  { %v2831_v57 = vpop.permute.xlu1 %2830 }
 0x494   :  { %v2846_v18 = vmul.f32 %v3562_v45, %v2831_v57 }
 0x497   :  { %v3660_v9 = vpop.f32.mrf.mxu1  ;;  %v2836_v60 = vpop.permute.xlu1 %2835 }
 0x498   :  { %v2847_v44 = vmul.f32 %v3562_v45, %v2836_v60 }
 0x499   :  { %v3661_v46 = vpop.f32.mrf.mxu1 }
 0x49a   :  { %v3662_v56 = vadd.f32 %v3661_v46, %v3660_v9 }
 0x49b   :  { %v3663_v11 = vpop.f32.mrf.mxu1 }
 0x49d   :  { %v3664_v5 = vpop.f32.mrf.mxu1 }
 0x49e   :  { %v3665_v49 = vadd.f32 %v3664_v5, %v3663_v11 }
 0x49f   :  { %v3666_v59 = vpop.f32.mrf.mxu1 }
 0x4a1   :  { %v3667_v35 = vpop.f32.mrf.mxu1 }
 0x4a2   :  { %v3668_v51 = vadd.f32 %v3667_v35, %v3666_v59 }
 0x4a3   :  { %v3669_v16 = vpop.f32.mrf.mxu1 }
 0x4a5   :  { %v3670_v31 = vpop.f32.mrf.mxu1 }
 0x4a6   :  { %v3671_v25 = vadd.f32 %v3670_v31, %v3669_v16 }
 0x4eb   :  { %v3688_v23 = vpop.f32.mrf.mxu1 }
 0x4ed   :  { %v3689_v58 = vpop.f32.mrf.mxu1 }
 0x4ee   :  { %v3690_v28 = vadd.f32 %v3689_v58, %v3688_v23 }
 0x4ef   :  { %v3691_v1 = vpop.f32.mrf.mxu1 }
 0x4f0   :  { %v2776_v14 = vadd.f32 %v3690_v28, %v3662_v56 }
 0x4f1   :  { %v3692_v54 = vpop.f32.mrf.mxu1 }
 0x4f2   :  { %v2790_v27 = vadd.f32 %v2776_v14, %v2656_v13  ;;  %v3693_v0 = vadd.f32 %v3692_v54, %v3691_v1 }
 0x4f3   :  { %v3694_v10 = vpop.f32.mrf.mxu1 }
 0x4f4   :  { %2794 = vst.msk [vmem:[#allocation3] sm:$0xff] %vm86_vm0, %v2790_v27  ;;  %v2779_v32 = vadd.f32 %v3693_v0, %v3665_v49  ;;  %v3057_v49 = vld [vmem:[%s6585_s15 + $0x70] sm:$0xff]  ;;  %v3056_v0 = vld [vmem:[%s6585_s15 + $0x68] sm:$0xff] }
 0x4f5   :  { %v3695_v40 = vpop.f32.mrf.mxu1 }
 0x4f6   :  { %v2791_v15 = vadd.f32 %v2779_v32, %v2657_v41  ;;  %v3696_v36 = vadd.f32 %v3695_v40, %v3694_v10  ;;  %v3055_v10 = vld [vmem:[%s6585_s15 + $0x60] sm:$0xff]  ;;  %v3054_v32 = vld [vmem:[%s6585_s15 + $0x58] sm:$0xff]  ;;  %v3053_v40 = vld [vmem:[%s6585_s15 + $0x50] sm:$0xff] }
 0x4f7   :  { %v3697_v17 = vpop.f32.mrf.mxu1 }
 0x4f8   :  { %2795 = vst.msk [vmem:[#allocation3 + $0x8] sm:$0xff] %vm86_vm0, %v2791_v15  ;;  %v2784_v55 = vadd.f32 %v3696_v36, %v3668_v51  ;;  %v3052_v51 = vld [vmem:[%s6585_s15 + $0x48] sm:$0xff]  ;;  %v3051_v15 = vld [vmem:[%s6585_s15 + $0x40] sm:$0xff]  ;;  %v3021_v36 = vld [vmem:[%s6673_s2 + $0x10] sm:$0xff] }
 0x4f9   :  { %v3698_v2 = vpop.f32.mrf.mxu1 }
 0x4fa   :  { %v2792_v63 = vadd.f32 %v2784_v55, %v2658_v53  ;;  %v3699_v21 = vadd.f32 %v3698_v2, %v3697_v17  ;;  %v3022_v53 = vld [vmem:[%s6673_s2 + $0x18] sm:$0xff]  ;;  %v3019_v55 = vld [vmem:[%s6673_s2] sm:$0xff]  ;;  %v3020_v2 = vld [vmem:[%s6673_s2 + $0x8] sm:$0xff] }
 0x4fb   :  { %v2801_v6 = vld [vmem:[#allocation3] sm:$0xff] }
 0x4fc   :  { %2796 = vst.msk [vmem:[#allocation3 + $0x10] sm:$0xff] %vm86_vm0, %v2792_v63  ;;  %v2787_v42 = vadd.f32 %v3699_v21, %v3671_v25  ;;  %3883 = vmatprep.mubr.msk.f32.mxu1 %vm86_vm0, %v2801_v6  ;;  %v3050_v17 = vld [vmem:[%s6585_s15 + $0x38] sm:$0xff]  ;;  %v3049_v25 = vld [vmem:[%s6585_s15 + $0x30] sm:$0xff]  ;;  %v4049_v63 = vpack.i.bf16 %v3022_v53, %v3021_v36  ;;  %v4044_v21 = vpack.i.bf16 %v3020_v2, %v3019_v55  ;;  %v3047_v6 = vld [vmem:[%s6585_s15 + $0x20] sm:$0xff] }
 0x4fd   :  { %v3272_v36 = vld [vmem:[%s6589_s19 + $0x28] sm:$0xff]  ;;  %v3271_v53 = vld [vmem:[%s6589_s19 + $0x20] sm:$0xff]  ;;  %v3269_v55 = vld [vmem:[%s6589_s19 + $0x10] sm:$0xff] }
 0x4fe   :  { %v2793_v37 = vadd.f32 %v2787_v42, %v2659_v3  ;;  %v3048_v3 = vld [vmem:[%s6585_s15 + $0x28] sm:$0xff]  ;;  %v3046_v42 = vld [vmem:[%s6585_s15 + $0x18] sm:$0xff] }
 0x4ff   :  { %v2802_v30 = vld [vmem:[#allocation3 + $0x8] sm:$0xff]  ;;  %v3268_v2 = vld [vmem:[%s6589_s19 + $0x8] sm:$0xff] }
 0x500   :  { %2797 = vst.msk [vmem:[#allocation3 + $0x18] sm:$0xff] %vm86_vm0, %v2793_v37  ;;  %3884 = vmatmul.mubr.msk.f32.vlgmr.msra.gmra.mxu1 %vm86_vm0, %v2802_v30  ;;  %v3045_v37 = vld [vmem:[%s6585_s15 + $0x10] sm:$0xff]  ;;  %v3044_v30 = vld [vmem:[%s6585_s15 + $0x8] sm:$0xff] }
 0x501   :  { %3890 = vmatpush3.msra.mxu1 %v3058_v20 }
 0x502   :  { %3891 = vmatprep.subr.mxu1 %v3057_v49 }
 0x503   :  { %v2803_v24 = vld [vmem:[#allocation3 + $0x10] sm:$0xff]  ;;  %3892 = vmatpush3.msra.mxu1 %v3057_v49 }
 0x504   :  { %3886 = vmatprep.mubr.msk.f32.mxu1 %vm86_vm0, %v2803_v24  ;;  %3893 = vmatprep.subr.mxu1 %v3056_v0  ;;  %v3043_v24 = vld [vmem:[%s6585_s15] sm:$0xff] }
 0x505   :  { %3894 = vmatpush3.msra.mxu1 %v3056_v0 }
 0x506   :  { %3895 = vmatprep.subr.mxu1 %v3055_v10 }
 0x507   :  { %v2804_v8 = vld [vmem:[#allocation3 + $0x18] sm:$0xff]  ;;  %3896 = vmatpush3.msra.mxu1 %v3055_v10 }
 0x508   :  { %3887 = vmatmul.mubr.msk.f32.gmra.mxu1 %vm86_vm0, %v2804_v8  ;;  %3897 = vmatprep.subr.mxu1 %v3054_v32  ;;  %v3162_v8 = vld [vmem:[%s6586_s17 + $0x38] sm:$0xff]  ;;  %v3157_v10 = vld [vmem:[%s6586_s17 + $0x10] sm:$0xff] }
 0x509   :  { %3898 = vmatpush3.msra.mxu1 %v3054_v32  ;;  %v3156_v32 = vld [vmem:[%s6586_s17 + $0x8] sm:$0xff] }
 0x50a   :  { %3899 = vmatprep.subr.mxu1 %v3053_v40 }
 0x50b   :  { %3900 = vmatpush3.msra.mxu1 %v3053_v40  ;;  %v3155_v40 = vld [vmem:[%s6586_s17] sm:$0xff] }
 0x50c   :  { %3901 = vmatprep.subr.mxu1 %v3052_v51 }
 0x50d   :  { %3902 = vmatpush3.msra.mxu1 %v3052_v51  ;;  %v3274_v51 = vld [vmem:[%s6589_s19 + $0x38] sm:$0xff] }
 0x50e   :  { %3903 = vmatprep.subr.mxu1 %v3051_v15  ;;  %3949 = vmatprep.subr.mxu0 %v3274_v51 }
 0x50f   :  { %3904 = vmatpush3.msra.mxu1 %v3051_v15  ;;  %v3273_v15 = vld [vmem:[%s6589_s19 + $0x30] sm:$0xff]  ;;  %3950 = vmatpush3.msra.mxu0 %v3274_v51 }
 0x510   :  { %3905 = vmatprep.subr.mxu1 %v3050_v17  ;;  %3951 = vmatprep.subr.mxu0 %v3273_v15 }
 0x511   :  { %3906 = vmatpush3.msra.mxu1 %v3050_v17  ;;  %3952 = vmatpush3.msra.mxu0 %v3273_v15  ;;  %v3270_v17 = vld [vmem:[%s6589_s19 + $0x18] sm:$0xff] }
 0x512   :  { %3907 = vmatprep.subr.mxu1 %v3049_v25  ;;  %3953 = vmatprep.subr.mxu0 %v3272_v36 }
 0x513   :  { %3908 = vmatpush3.msra.mxu1 %v3049_v25  ;;  %3954 = vmatpush3.msra.mxu0 %v3272_v36  ;;  %v3267_v25 = vld [vmem:[%s6589_s19] sm:$0xff] }
 0x514   :  { %3909 = vmatprep.subr.mxu1 %v3048_v3  ;;  %3955 = vmatprep.subr.mxu0 %v3271_v53 }
 0x515   :  { %3910 = vmatpush3.msra.mxu1 %v3048_v3  ;;  %3956 = vmatpush3.msra.mxu0 %v3271_v53 }
 0x516   :  { %3911 = vmatprep.subr.mxu1 %v3047_v6  ;;  %3957 = vmatprep.subr.mxu0 %v3270_v17 }
 0x517   :  { %3912 = vmatpush3.msra.mxu1 %v3047_v6  ;;  %3958 = vmatpush3.msra.mxu0 %v3270_v17 }
 0x518   :  { %3913 = vmatprep.subr.mxu1 %v3046_v42  ;;  %3959 = vmatprep.subr.mxu0 %v3269_v55 }
 0x519   :  { %3914 = vmatpush3.msra.mxu1 %v3046_v42  ;;  %3960 = vmatpush3.msra.mxu0 %v3269_v55 }
 0x51a   :  { %3915 = vmatprep.subr.mxu1 %v3045_v37  ;;  %3961 = vmatprep.subr.mxu0 %v3268_v2 }
 0x51b   :  { %3916 = vmatpush3.msra.mxu1 %v3045_v37  ;;  %3962 = vmatpush3.msra.mxu0 %v3268_v2 }
 0x51c   :  { %3917 = vmatprep.subr.mxu1 %v3044_v30  ;;  %3963 = vmatprep.subr.mxu0 %v3267_v25 }
 0x51d   :  { %3918 = vmatpush3.msra.mxu1 %v3044_v30  ;;  %3964 = vmatpush3.msra.mxu0 %v3267_v25 }
 0x51e   :  { %3919 = vmatprep.subr.mxu1 %v3043_v24 }
 0x51f   :  { %3920 = vmatpush3.msra.mxu1 %v3043_v24 }
 0x520   :  { %3927 = vmatprep.subr.mxu1 %v3162_v8 }
 0x5c0   :  { %v3885_v4 = vpop.f32.mrf.mxu1 }
 0x5c1   :  { %v2932_v26 = vadd.f32 %v3885_v4, %v2845_v48 }
 0x5c2   :  { %v2926_v7 = vpop.f32.mrf.mxu1 }
 0x5c3   :  { %v2927_v62 = vadd.f32 %v2926_v7, %v2844_v39  ;;  %v2950_v38 = vsel %vm86_vm0, %v2932_v26, 0.0 }
 0x5c4   :  { %2951 = vadd.xlane.f32.xlu0 %v2950_v38 }
 0x5c5   :  { %v2947_v29 = vsel %vm86_vm0, %v2927_v62, 0.0 }
 0x5c6   :  { %2948 = vadd.xlane.f32.xlu1 %v2947_v29 }
 0x5c8   :  { %v3888_v12 = vpop.f32.mrf.mxu1 }
 0x5c9   :  { %v2942_v34 = vadd.f32 %v3888_v12, %v2847_v44  ;;  %v3567_v12 = vld [vmem:[%s6587_s13] ss:$0 sm:$0xff] }
 0x5ca   :  { %v2936_v47 = vpop.f32.mrf.mxu1 }
 0x5cb   :  { %v2937_v61 = vadd.f32 %v2936_v47, %v2846_v18  ;;  %v2956_v50 = vsel %vm86_vm0, %v2942_v34, 0.0 }
 0x5cd   :  { %v2953_v33 = vsel %vm86_vm0, %v2937_v61, 0.0 }
 0x5ce   :  { %2954 = vadd.xlane.f32.xlu1 %v2953_v33 }
 0x5d2   :  { %2957 = vadd.xlane.f32.xlu1 %v2956_v50 }
 0x64d   :  { %v2952_v22 = vpop.xlane.xlu0 %2951 }
 0x64e   :  { %v2960_v43 = vmul.f32 0.015625, %v2952_v22 }
 0x64f   :  { %v2949_v9 = vpop.xlane.xlu1 %2948 }
 0x650   :  { %v6397_v46 = vsub.f32 %v2932_v26, %v2960_v43  ;;  %v2959_v11 = vmul.f32 0.015625, %v2949_v9 }
 0x652   :  { %v6399_v5 = vsub.f32 %v2927_v62, %v2959_v11  ;;  %v2968_v59 = vmul.f32 %v6397_v46, %v6397_v46 }
 0x654   :  { %v2974_v35 = vsel %vm86_vm0, %v2968_v59, 0.0  ;;  %v2967_v16 = vmul.f32 %v6399_v5, %v6399_v5 }
 0x655   :  { %2975 = vadd.xlane.f32.xlu1 %v2974_v35 }
 0x656   :  { %v2971_v58 = vsel %vm86_vm0, %v2967_v16, 0.0 }
 0x657   :  { %v2955_v31 = vpop.xlane.xlu1 %2954 }
 0x658   :  { %v2961_v23 = vmul.f32 0.015625, %v2955_v31  ;;  %v3161_v31 = vld [vmem:[%s6586_s17 + $0x30] sm:$0xff] }
 0x659   :  { %2972 = vadd.xlane.f32.xlu1 %v2971_v58 }
 0x65a   :  { %v6407_v56 = vsub.f32 %v2937_v61, %v2961_v23 }
 0x65b   :  { %v2958_v28 = vpop.xlane.xlu1 %2957 }
 0x65c   :  { %v2962_v13 = vmul.f32 0.015625, %v2958_v28  ;;  %v2969_v1 = vmul.f32 %v6407_v56, %v6407_v56  ;;  %v3160_v28 = vld [vmem:[%s6586_s17 + $0x28] sm:$0xff] }
 0x65e   :  { %v6411_v14 = vsub.f32 %v2942_v34, %v2962_v13  ;;  %v2977_v54 = vsel %vm86_vm0, %v2969_v1, 0.0  ;;  %v3568_v34 = vld [vmem:[%s6588_s14] ss:$0 sm:$0xff] }
 0x65f   :  { %2978 = vadd.xlane.f32.xlu0 %v2977_v54 }
 0x660   :  { %v2970_v27 = vmul.f32 %v6411_v14, %v6411_v14 }
 0x662   :  { %v2980_v41 = vsel %vm86_vm0, %v2970_v27, 0.0 }
 0x663   :  { %2981 = vadd.xlane.f32.xlu1 %v2980_v41 }
 0x674   :  { %4050 = vrot.lane.b32.xlu1 %v4049_v63, %s4199_s29  ;;  %v3569_v63 = vld [vmem:[%s6590_s16] ss:$0 sm:$0xff] }
 0x675   :  { %4045 = vrot.lane.b32.xlu0 %v4044_v21, %s4199_s29 }
 0x6de   :  { %v2976_v45 = vpop.xlane.xlu1 %2975 }
 0x6df   :  { %v2984_v52 = vmul.f32 0.015625, %v2976_v45 }
 0x6e1   :  { %v2988_v19 = vadd.f32 1e-05, %v2984_v52 }
 0x6e2   :  { %v2973_v48 = vpop.xlane.xlu1 %2972 }
 0x6e3   :  { %4185 = vrsqrt.f32 %v2988_v19  ;;  %v2983_v39 = vmul.f32 0.015625, %v2973_v48 }
 0x6e5   :  { %v2987_v4 = vadd.f32 1e-05, %v2983_v39 }
 0x6e7   :  { %4187 = vrsqrt.f32 %v2987_v4  ;;  %v3570_v4 = vld [vmem:[%s6591_s18] ss:$0 sm:$0xff] }
 0x6e8   :  { %v2979_v26 = vpop.xlane.xlu0 %2978 }
 0x6e9   :  { %v2985_v57 = vmul.f32 0.015625, %v2979_v26 }
 0x6eb   :  { %v2989_v7 = vadd.f32 1e-05, %v2985_v57 }
 0x6ec   :  { %v2982_v62 = vpop.xlane.xlu1 %2981  ;;  %v4046_v61 = vpop.permute.xlu0 %4045 }
 0x6ed   :  { %4189 = vrsqrt.f32 %v2989_v7  ;;  %v2986_v38 = vmul.f32 0.015625, %v2982_v62  ;;  %v4047_v50 = vunpack.i.l.bf16 %v4046_v61  ;;  %v4048_v22 = vunpack.i.h.bf16 %v4046_v61 }
 0x6ef   :  { %v2990_v29 = vadd.f32 1e-05, %v2986_v38 }
 0x6f0   :  { %v4186_v60 = vpop.eup %4185  ;;  %v4051_v59 = vpop.permute.xlu1 %4050 }
 0x6f1   :  { %4191 = vrsqrt.f32 %v2990_v29  ;;  %v2996_v18 = vmul.f32 %v4186_v60, %v6397_v46  ;;  %v4053_v54 = vunpack.i.h.bf16 %v4051_v59 }
 0x6f3   :  { %v3006_v44 = vmul.f32 %v3567_v12, %v2996_v18 }
 0x6f4   :  { %v4188_v47 = vpop.eup %4187 }
 0x6f5   :  { %v2995_v33 = vmul.f32 %v4188_v47, %v6399_v5  ;;  %v3016_v43 = vadd.f32 %v3568_v34, %v3006_v44  ;;  %v4052_v5 = vunpack.i.l.bf16 %v4051_v59  ;;  %v3580_v44 = vld [vmem:[%s6593_s21] ss:$0 sm:$0xff] }
 0x6f7   :  { %v3005_v20 = vmul.f32 %v3567_v12, %v2995_v33  ;;  %v3040_v16 = vsel %vm86_vm0, %v3016_v43, %v4048_v22 }
 0x6f9   :  { %v3015_v9 = vadd.f32 %v3568_v34, %v3005_v20 }
 0x6fa   :  { %v4190_v11 = vpop.eup %4189 }
 0x6fb   :  { %v3039_v35 = vsel %vm86_vm0, %v3015_v9, %v4047_v50  ;;  %v2997_v46 = vmul.f32 %v4190_v11, %v6407_v56  ;;  %v3159_v56 = vld [vmem:[%s6586_s17 + $0x20] sm:$0xff] }
 0x6fc   :  { %3921 = vmatprep.mubr.f32.mxu1 %v3039_v35 }
 0x6fd   :  { %3922 = vmatmul.mubr.f32.vlgmr.msra.gmra.mxu1 %v3040_v16  ;;  %v3007_v23 = vmul.f32 %v3567_v12, %v2997_v46 }
 0x6fe   :  { %v4192_v58 = vpop.eup %4191  ;;  %3928 = vmatpush3.msra.mxu1 %v3162_v8 }
 0x6ff   :  { %v3017_v13 = vadd.f32 %v3568_v34, %v3007_v23  ;;  %v2998_v1 = vmul.f32 %v4192_v58, %v6411_v14  ;;  %3929 = vmatprep.subr.mxu1 %v3161_v31  ;;  %v3158_v14 = vld [vmem:[%s6586_s17 + $0x18] sm:$0xff] }
 0x700   :  { %3930 = vmatpush3.msra.mxu1 %v3161_v31 }
 0x701   :  { %v3041_v49 = vsel %vm86_vm0, %v3017_v13, %v4052_v5  ;;  %v3008_v27 = vmul.f32 %v3567_v12, %v2998_v1  ;;  %3931 = vmatprep.subr.mxu1 %v3160_v28  ;;  %v3575_v12 = vld [vmem:[%s6592_s20] ss:$0 sm:$0xff] }
 0x702   :  { %3924 = vmatprep.mubr.f32.mxu1 %v3041_v49  ;;  %3932 = vmatpush3.msra.mxu1 %v3160_v28 }
 0x703   :  { %v3018_v0 = vadd.f32 %v3568_v34, %v3008_v27  ;;  %3933 = vmatprep.subr.mxu1 %v3159_v56 }
 0x704   :  { %3934 = vmatpush3.msra.mxu1 %v3159_v56 }
 0x705   :  { %v3042_v41 = vsel %vm86_vm0, %v3018_v0, %v4053_v54  ;;  %3935 = vmatprep.subr.mxu1 %v3158_v14 }
 0x706   :  { %3925 = vmatmul.mubr.f32.gmra.mxu1 %v3042_v41 }
 0x707   :  { %3936 = vmatpush3.msra.mxu1 %v3158_v14 }
 0x708   :  { %3937 = vmatprep.subr.mxu1 %v3157_v10 }
 0x709   :  { %3938 = vmatpush3.msra.mxu1 %v3157_v10 }
 0x70a   :  { %3939 = vmatprep.subr.mxu1 %v3156_v32 }
 0x70b   :  { %3940 = vmatpush3.msra.mxu1 %v3156_v32 }
 0x70c   :  { %3941 = vmatprep.subr.mxu1 %v3155_v40 }
 0x70d   :  { %3942 = vmatpush3.msra.mxu1 %v3155_v40 }
 0x7bd   :  { %v3923_v21 = vpop.f32.mrf.mxu1 }
 0x7be   :  { %v3138_v3 = vadd.f32 %v3923_v21, %v3569_v63 }
 0x7bf   :  { %v3132_v6 = vpop.f32.mrf.mxu1 }
 0x7c0   :  { %v3133_v42 = vadd.f32 %v3569_v63, %v3132_v6  ;;  %v3152_v30 = vmax.f32 %v3138_v3, 0.0 }
 0x7c2   :  { %v3151_v37 = vmax.f32 %v3133_v42, 0.0 }
 0x7c4   :  { %3943 = vmatprep.mubr.msk.f32.mxu1 %vm86_vm0, %v3151_v37 }
 0x7c5   :  { %3944 = vmatmul.mubr.msk.f32.vlgmr.msra.gmra.mxu1 %vm86_vm0, %v3152_v30 }
 0x7c6   :  { %v3926_v24 = vpop.f32.mrf.mxu1 }
 0x7c7   :  { %v3148_v8 = vadd.f32 %v3926_v24, %v3569_v63 }
 0x7c8   :  { %v3142_v45 = vpop.f32.mrf.mxu1 }
 0x7c9   :  { %v3143_v52 = vadd.f32 %v3569_v63, %v3142_v45  ;;  %v3154_v48 = vmax.f32 %v3148_v8, 0.0 }
 0x7cb   :  { %v3153_v19 = vmax.f32 %v3143_v52, 0.0 }
 0x7cd   :  { %3946 = vmatprep.mubr.msk.f32.mxu1 %vm86_vm0, %v3153_v19 }
 0x7ce   :  { %3947 = vmatmul.mubr.msk.f32.gmra.mxu1 %vm86_vm0, %v3154_v48 }
 0x885   :  { %v3945_v39 = vpop.f32.mrf.mxu1 }
 0x886   :  { %v3254_v7 = vadd.f32 %v3945_v39, %v3570_v4 }
 0x887   :  { %v3248_v26 = vpop.f32.mrf.mxu1 }
 0x888   :  { %v3249_v57 = vadd.f32 %v3570_v4, %v3248_v26 }
 0x88a   :  { %3965 = vmatprep.mubr.msk.f32.mxu0 %vm86_vm0, %v3249_v57 }
 0x88b   :  { %3966 = vmatmul.mubr.msk.f32.vlgmr.msra.gmra.mxu0 %vm86_vm0, %v3254_v7 }
 0x88e   :  { %v3948_v62 = vpop.f32.mrf.mxu1 }
 0x88f   :  { %v3264_v60 = vadd.f32 %v3948_v62, %v3570_v4 }
 0x890   :  { %v3258_v38 = vpop.f32.mrf.mxu1 }
 0x891   :  { %v3259_v29 = vadd.f32 %v3570_v4, %v3258_v38 }
 0x893   :  { %3968 = vmatprep.mubr.msk.f32.mxu0 %vm86_vm0, %v3259_v29 }
 0x894   :  { %3969 = vmatmul.mubr.msk.f32.gmra.mxu0 %vm86_vm0, %v3264_v60 }
 0x94b   :  { %v3967_v18 = vpop.f32.mrf.mxu0 }
 0x94c   :  { %v3366_v47 = vadd.f32 %v3967_v18, %v3575_v12 }
 0x94d   :  { %v3360_v61 = vpop.f32.mrf.mxu0 }
 0x94e   :  { %v3380_v34 = vmax.f32 %v3366_v47, 0.0  ;;  %v3361_v33 = vadd.f32 %v3575_v12, %v3360_v61 }
 0x950   :  { %v3391_v50 = vmul.f32 %v3580_v44, %v3380_v34  ;;  %v3379_v20 = vmax.f32 %v3361_v33, 0.0 }
 0x952   :  { %v3390_v22 = vmul.f32 %v3580_v44, %v3379_v20  ;;  %v3397_v43 = vsel %vm86_vm0, %v3391_v50, 0.0 }
 0x953   :  { %3398 = vadd.xlane.f32.xlu0 %v3397_v43 }
 0x954   :  { %v3970_v9 = vpop.f32.mrf.mxu0  ;;  %v3394_v11 = vsel %vm86_vm0, %v3390_v22, 0.0 }
 0x955   :  { %v3376_v59 = vadd.f32 %v3970_v9, %v3575_v12  ;;  %3395 = vadd.xlane.f32.xlu1 %v3394_v11 }
 0x956   :  { %v3370_v35 = vpop.f32.mrf.mxu0 }
 0x957   :  { %v3382_v46 = vmax.f32 %v3376_v59, 0.0  ;;  %v3371_v16 = vadd.f32 %v3575_v12, %v3370_v35 }
 0x959   :  { %v3393_v31 = vmul.f32 %v3580_v44, %v3382_v46  ;;  %v3381_v5 = vmax.f32 %v3371_v16, 0.0 }
 0x95b   :  { %v3392_v23 = vmul.f32 %v3580_v44, %v3381_v5  ;;  %v3403_v58 = vsel %vm86_vm0, %v3393_v31, 0.0 }
 0x95c   :  { %3404 = vadd.xlane.f32.xlu1 %v3403_v58 }
 0x95d   :  { %v3400_v28 = vsel %vm86_vm0, %v3392_v23, 0.0 }
 0x95e   :  { %3401 = vadd.xlane.f32.xlu0 %v3400_v28 }
 0x9dc   :  { %v3399_v13 = vpop.xlane.xlu0 %3398 }
 0x9dd   :  { %3408 = vst.msk [vmem:[%s6594_s22 + $0x8] sm:$0xff] %vm3406_vm2, %v3399_v13 }
 0x9de   :  { %v3396_v1 = vpop.xlane.xlu1 %3395 }
 0x9df   :  { %3407 = vst.msk [vmem:[%s6594_s22] sm:$0xff] %vm3406_vm2, %v3396_v1 }
 0x9e5   :  { %v3405_v56 = vpop.xlane.xlu1 %3404 }
 0x9e6   :  { %3410 = vst.msk [vmem:[%s6594_s22 + $0x18] sm:$0xff] %vm3406_vm2, %v3405_v56 }
 0x9e7   :  { %v3402_v54 = vpop.xlane.xlu0 %3401 }
 0x9e8   :  { %3409 = vst.msk [vmem:[%s6594_s22 + $0x10] sm:$0xff] %vm3406_vm2, %v3402_v54 }

</bundles_post_ra>
